<compile_context>
chip_gen: v6e
topology: v6e:2x2x1
jax: 0.10.0
libtpu: 0.0.40
codegen_flags: <defaults>
</compile_context>

<pallas_src>
import jax
import jax.numpy as jnp
from jax.experimental import pallas as pl
from jax.experimental.pallas import tpu as pltpu

_BN_EPS = 1e-5
# Tiles are <= (512, 512, 512); 32 MiB scoped VMEM leaves generous headroom on every
# generation (v7x physical VMEM is 64 MiB).
_VMEM_LIMIT = 32 * 1024 * 1024


# --------------------------------------------------------------------------------------
# small helpers
# --------------------------------------------------------------------------------------
def _round_up(x, m):
    return (x + m - 1) // m * m


def _pick_tile(size, candidates):
    for t in candidates:
        if size % t == 0:
            return t
    return size  # fall back to full-dimension block (always legal)


# --------------------------------------------------------------------------------------
# Pallas kernels
# --------------------------------------------------------------------------------------
def _make_mm_affine_kernel(apply_relu: bool, has_residual: bool, has_affine: bool):
    """Tiled matmul (bf16 MXU, f32 accum) + BN affine (+ residual) (+ ReLU) epilogue."""

    def kernel(*refs):
        idx = 0
        a_ref = refs[idx]; idx += 1
        w_ref = refs[idx]; idx += 1
        scale_ref = None
        if has_affine:
            scale_ref = refs[idx]; idx += 1
        shift_ref = refs[idx]; idx += 1
        res_ref = None
        if has_residual:
            res_ref = refs[idx]; idx += 1
        o_ref = refs[idx]; idx += 1
        acc_ref = refs[idx]

        @pl.when(pl.program_id(2) == 0)
        def _init():
            acc_ref[...] = jnp.zeros_like(acc_ref)

        acc_ref[...] += jnp.dot(a_ref[...], w_ref[...],
                                preferred_element_type=jnp.float32)

        @pl.when(pl.program_id(2) == pl.num_programs(2) - 1)
        def _epilogue():
            acc = acc_ref[...]
            if has_affine:
                acc = acc * scale_ref[...]
            acc = acc + shift_ref[...]
            if has_residual:
                acc = acc + res_ref[...].astype(jnp.float32)
            if apply_relu:
                acc = jnp.maximum(acc, 0.0)
            o_ref[...] = acc.astype(o_ref.dtype)

    return kernel


def _avgpool_kernel(x_ref, o_ref):
    # x: (N, HW, C) bf16 -> mean over spatial axis in f32.
    o_ref[...] = jnp.mean(x_ref[...].astype(jnp.float32), axis=1)


# --------------------------------------------------------------------------------------
# Pallas wrappers
# --------------------------------------------------------------------------------------
def matmul_affine(a, w_p, scale_p, shift_p, *, n_true, residual=None, relu=True,
                  out_dtype=jnp.bfloat16):
    """out = act((a @ w) * scale + shift [+ residual]) with a tiled/pipelined Pallas grid.

    a:       (M, K) activation (any float dtype; cast to bf16 here).
    w_p:     (Kp, Np) bf16 weight, ALREADY zero-padded to multiples of 128.
    scale_p: (1, Np) f32 or None.   shift_p: (1, Np) f32.
    Returns (M, n_true) in out_dtype.
    """
    m, k = a.shape
    kp, np_ = w_p.shape
    mp = _round_up(m, 16)  # bf16 sublane pairs

    a_p = a.astype(jnp.bfloat16)
    if (mp, kp) != (m, k):
        a_p = jnp.pad(a_p, ((0, mp - m), (0, kp - k)))

    res_p = None
    if residual is not None:
        res_p = residual.astype(jnp.bfloat16)
        if res_p.shape != (mp, np_):
            res_p = jnp.pad(res_p, ((0, mp - m), (0, np_ - n_true)))

    # Tile selection: full-dim when small (always legal), otherwise lane/sublane aligned.
    tm = mp if mp <= 512 else _pick_tile(mp, (512, 256, 128, 64, 32, 16))
    tk = _pick_tile(kp, (512, 384, 256, 128))
    tn = 512 if (np_ % 512 == 0) else (256 if (np_ % 256 == 0) else 128)
    grid = (mp // tm, np_ // tn, kp // tk)

    has_res = res_p is not None
    has_affine = scale_p is not None
    kernel = _make_mm_affine_kernel(relu, has_res, has_affine)

    in_specs = [
        pl.BlockSpec((tm, tk), lambda i, j, kk: (i, kk)),   # A
        pl.BlockSpec((tk, tn), lambda i, j, kk: (kk, j)),   # W
    ]
    args = [a_p, w_p]
    if has_affine:
        in_specs.append(pl.BlockSpec((1, tn), lambda i, j, kk: (0, j)))
        args.append(scale_p)
    in_specs.append(pl.BlockSpec((1, tn), lambda i, j, kk: (0, j)))
    args.append(shift_p)
    if has_res:
        # index_map independent of kk -> Pallas keeps the same block resident across the
        # K reduction (no re-DMA per K step).
        in_specs.append(pl.BlockSpec((tm, tn), lambda i, j, kk: (i, j)))
        args.append(res_p)

    out = pl.pallas_call(
        kernel,
        out_shape=jax.ShapeDtypeStruct((mp, np_), out_dtype),
        grid_spec=pltpu.PrefetchScalarGridSpec(
            num_scalar_prefetch=0,
            grid=grid,
            in_specs=in_specs,
            out_specs=pl.BlockSpec((tm, tn), lambda i, j, kk: (i, j)),
            scratch_shapes=[pltpu.VMEM((tm, tn), jnp.float32)],
        ),
        compiler_params=pltpu.CompilerParams(
            dimension_semantics=("parallel", "parallel", "arbitrary"),
            vmem_limit_bytes=_VMEM_LIMIT,
        ),
    )(*args)

    if (mp, np_) != (m, n_true):
        out = out[:m, :n_true]
    return out


def _extract_patches(x, kh, kw, stride, pad):
    """im2col glue (static slicing only).  x:(N,H,W,C) -> ((N*Ho*Wo, kh*kw*C), Ho, Wo).

    K-axis ordering is (kh, kw, cin), matching the weight reshape in init_params."""
    n, h, w, c = x.shape
    if pad > 0:
        x = jnp.pad(x, ((0, 0), (pad, pad), (pad, pad), (0, 0)))
    ho = (h + 2 * pad - kh) // stride + 1
    wo = (w + 2 * pad - kw) // stride + 1
    cols = [x[:, i:i + stride * ho:stride, j:j + stride * wo:stride, :]
            for i in range(kh) for j in range(kw)]
    patches = jnp.concatenate(cols, axis=-1)                # (N, Ho, Wo, kh*kw*C)
    return patches.reshape(n * ho * wo, kh * kw * c), ho, wo


def conv2d_bn_act(x, packed, *, kh, kw, stride, pad, cout, relu=True, residual=None):
    """Conv (im2col + tiled Pallas matmul) fused with BN affine / residual / ReLU."""
    n = x.shape[0]
    a, ho, wo = _extract_patches(x, kh, kw, stride, pad)
    res2 = residual.reshape(n * ho * wo, cout) if residual is not None else None
    out = matmul_affine(a, packed["w"], packed["scale"], packed["shift"],
                        n_true=cout, residual=res2, relu=relu,
                        out_dtype=jnp.bfloat16)
    return out.reshape(n, ho, wo, cout)


def maxpool_3x3_s2(x):
    """3x3 max-pool, stride 2, pad 1.  Pure jnp.maximum reduction tree (no HBM-stacked
    (9, M, C) intermediate); XLA fuses the 9 shifted windows into the elementwise max."""
    # TODO(synk): strided-window Pallas kernel (pl.ds with stride) once strided multi-dim
    #             ref slicing is exercised; the fused XLA max tree is already mem-bound.
    n, h, w, c = x.shape
    xp = jnp.pad(x, ((0, 0), (1, 1), (1, 1), (0, 0)), constant_values=-jnp.inf)
    ho = (h + 2 - 3) // 2 + 1
    wo = (w + 2 - 3) // 2 + 1
    out = None
    for i in range(3):
        for j in range(3):
            win = xp[:, i:i + 2 * ho:2, j:j + 2 * wo:2, :]
            out = win if out is None else jnp.maximum(out, win)
    return out


def global_avgpool(x):
    n, h, w, c = x.shape
    return pl.pallas_call(
        _avgpool_kernel,
        out_shape=jax.ShapeDtypeStruct((n, c), jnp.float32),
    )(x.reshape(n, h * w, c))


# --------------------------------------------------------------------------------------
# Parameter construction (deterministic; shapes match torchvision resnet18 w/ fc->10).
# Weights are reshaped to (K, Cout), cast to bf16 and zero-padded to lane-aligned
# multiples of 128 ONCE here; BN is folded to eval-mode scale/shift in f32.
# --------------------------------------------------------------------------------------
def init_params(key):
    keys = iter(jax.random.split(key, 256))

    def conv_w(kh, kw, cin, cout):
        return 0.05 * jax.random.normal(next(keys), (kh, kw, cin, cout), jnp.float32)

    def bn(c):
        gamma = 1.0 + 0.01 * jax.random.normal(next(keys), (c,), jnp.float32)
        beta = 0.01 * jax.random.normal(next(keys), (c,), jnp.float32)
        mean = 0.01 * jax.random.normal(next(keys), (c,), jnp.float32)
        var = 1.0 + 0.1 * jnp.abs(jax.random.normal(next(keys), (c,), jnp.float32))
        scale = gamma / jnp.sqrt(var + _BN_EPS)
        shift = beta - mean * scale
        return scale, shift

    def pack_conv(kh, kw, cin, cout):
        w = conv_w(kh, kw, cin, cout)
        scale, shift = bn(cout)
        k = kh * kw * cin
        kp, np_ = _round_up(k, 128), _round_up(cout, 128)
        w2 = jnp.pad(w.reshape(k, cout).astype(jnp.bfloat16),
                     ((0, kp - k), (0, np_ - cout)))
        s2 = jnp.pad(scale, (0, np_ - cout)).reshape(1, np_).astype(jnp.float32)
        b2 = jnp.pad(shift, (0, np_ - cout)).reshape(1, np_).astype(jnp.float32)
        return {"w": w2, "scale": s2, "shift": b2}

    def basic_block(cin, cout, stride):
        blk = {"c1": pack_conv(3, 3, cin, cout), "c2": pack_conv(3, 3, cout, cout)}
        if stride != 1 or cin != cout:
            blk["ds"] = pack_conv(1, 1, cin, cout)
        return blk

    params = {"conv1": pack_conv(7, 7, 3, 64)}
    for name, cin, cout, stride in (("layer1", 64, 64, 1), ("layer2", 64, 128, 2),
                                    ("layer3", 128, 256, 2), ("layer4", 256, 512, 2)):
        params[name] = [basic_block(cin, cout, stride), basic_block(cout, cout, 1)]

    fc_w = 0.05 * jax.random.normal(next(keys), (512, 10), jnp.float32)
    fc_b = 0.01 * jax.random.normal(next(keys), (10,), jnp.float32)
    np_fc = _round_up(10, 128)
    params["fc"] = {
        "w": jnp.pad(fc_w.astype(jnp.bfloat16), ((0, 0), (0, np_fc - 10))),
        "shift": jnp.pad(fc_b, (0, np_fc - 10)).reshape(1, np_fc).astype(jnp.float32),
    }
    return params


# --------------------------------------------------------------------------------------
# Forward pass.  Strides / kernel sizes / channel counts are STATIC Python config.
# --------------------------------------------------------------------------------------
_BLOCK_CFG = (("layer1", 64, 1), ("layer2", 128, 2), ("layer3", 256, 2), ("layer4", 512, 2))


def _basic_block_fwd(x, p, stride, cout):
    if "ds" in p:
        identity = conv2d_bn_act(x, p["ds"], kh=1, kw=1, stride=stride, pad=0,
                                 cout=cout, relu=False)
    else:
        identity = x
    out = conv2d_bn_act(x, p["c1"], kh=3, kw=3, stride=stride, pad=1, cout=cout, relu=True)
    out = conv2d_bn_act(out, p["c2"], kh=3, kw=3, stride=1, pad=1, cout=cout,
                        relu=True, residual=identity)
    return out


@jax.jit
def resnet18_forward(x_nchw, params):
    # Accept NCHW (PyTorch) and transpose once to NHWC bf16 for the kernel pipeline.
    x = jnp.transpose(x_nchw, (0, 2, 3, 1)).astype(jnp.bfloat16)
    x = conv2d_bn_act(x, params["conv1"], kh=7, kw=7, stride=2, pad=3, cout=64, relu=True)
    x = maxpool_3x3_s2(x)
    for name, cout, stride in _BLOCK_CFG:
        x = _basic_block_fwd(x, params[name][0], stride, cout)
        x = _basic_block_fwd(x, params[name][1], 1, cout)
    feat = global_avgpool(x)                                      # (N, 512) f32
    logits = matmul_affine(feat.astype(jnp.bfloat16), params["fc"]["w"], None,
                           params["fc"]["shift"], n_true=10, relu=False,
                           out_dtype=jnp.float32)
    return logits                                                 # (N, 10) f32


# --------------------------------------------------------------------------------------
if __name__ == "__main__":
    root = jax.random.PRNGKey(0)
    k_param, k_input = jax.random.split(root)
    params = init_params(k_param)
    # Small ResNet-compatible input: batch=2, 3 channels, 32x32 spatial (NCHW).
    x = jax.random.normal(k_input, (2, 3, 32, 32), jnp.float32)
    logits = resnet18_forward(x, params)
    logits = jax.block_until_ready(logits)
    assert logits.shape == (2, 10) and logits.dtype == jnp.float32
    assert bool(jnp.all(jnp.isfinite(logits)))
    print("KERNEL_OK")
</pallas_src>

<mosaic_0001>
module attributes {stable_mosaic.version = 11 : i64} {
  func.func @kernel(%arg0: i32, %arg1: i32, %arg2: i32, %arg3: memref<512x256xbf16, #tpu.memory_space<vmem>>, %arg4: memref<256x128xbf16, #tpu.memory_space<vmem>>, %arg5: memref<1x128xf32, #tpu.memory_space<vmem>>, %arg6: memref<1x128xf32, #tpu.memory_space<vmem>>, %arg7: memref<512x128xbf16, #tpu.memory_space<vmem>>, %arg8: memref<512x128xf32, #tpu.memory_space<vmem>>) attributes {dimension_semantics = [#tpu.dimension_semantics<parallel>, #tpu.dimension_semantics<parallel>, #tpu.dimension_semantics<arbitrary>], iteration_bounds = array<i64: 1, 1, 1>, scalar_prefetch = 0 : i64, scratch_operands = 1 : i64, tpu.core_type = #tpu.core_type<tc>, window_params = [{transform_indices = @transform_0, window_bounds = array<i64: 512, 256>}, {transform_indices = @transform_1, window_bounds = array<i64: 256, 128>}, {transform_indices = @transform_2, window_bounds = array<i64: 1, 128>}, {transform_indices = @transform_3, window_bounds = array<i64: 1, 128>}, {transform_indices = @transform_4, window_bounds = array<i64: 512, 128>}]} {
    %c0_i32 = arith.constant 0 : i32
    %0 = arith.cmpi eq, %arg2, %c0_i32 : i32
    %1 = arith.extui %0 : i1 to i32
    %c0_i32_0 = arith.constant 0 : i32
    %2 = arith.cmpi ne, %1, %c0_i32_0 : i32
    scf.if %2 {
      %cst_10 = arith.constant 0.000000e+00 : f32
      %12 = vector.broadcast %cst_10 : f32 to vector<512x128xf32>
      %c0_11 = arith.constant 0 : index
      %c0_12 = arith.constant 0 : index
      %13 = vector.load %arg8[%c0_11, %c0_12] : memref<512x128xf32, #tpu.memory_space<vmem>>, vector<512x128xf32>
      tpu.vector_store %arg8[%c0_11, %c0_12], %12 {strides = array<i32>} : memref<512x128xf32, #tpu.memory_space<vmem>>, vector<512x128xf32>,
    } else {
    }
    %c0 = arith.constant 0 : index
    %c0_1 = arith.constant 0 : index
    %3 = vector.load %arg8[%c0, %c0_1] : memref<512x128xf32, #tpu.memory_space<vmem>>, vector<512x128xf32>
    %c0_2 = arith.constant 0 : index
    %c0_3 = arith.constant 0 : index
    %4 = vector.load %arg3[%c0_2, %c0_3] : memref<512x256xbf16, #tpu.memory_space<vmem>>, vector<512x256xbf16>
    %c0_4 = arith.constant 0 : index
    %c0_5 = arith.constant 0 : index
    %5 = vector.load %arg4[%c0_4, %c0_5] : memref<256x128xbf16, #tpu.memory_space<vmem>>, vector<256x128xbf16>
    %cst = arith.constant dense<0.000000e+00> : vector<512x128xf32>
    %6 = tpu.matmul %4, %5, %cst {dimension_numbers = #tpu.dot_dimension_numbers<[1], [0], [0], [1], [0, 0, 1, 1], [], []>} : vector<512x256xbf16>, vector<256x128xbf16>, vector<512x128xf32> -> vector<512x128xf32>
    %7 = arith.addf %3, %6 : vector<512x128xf32>
    %c0_6 = arith.constant 0 : index
    %c0_7 = arith.constant 0 : index
    %8 = vector.load %arg8[%c0_6, %c0_7] : memref<512x128xf32, #tpu.memory_space<vmem>>, vector<512x128xf32>
    tpu.vector_store %arg8[%c0_6, %c0_7], %7 {strides = array<i32>} : memref<512x128xf32, #tpu.memory_space<vmem>>, vector<512x128xf32>,
    %c0_i32_8 = arith.constant 0 : i32
    %9 = arith.cmpi eq, %arg2, %c0_i32_8 : i32
    %10 = arith.extui %9 : i1 to i32
    %c0_i32_9 = arith.constant 0 : i32
    %11 = arith.cmpi ne, %10, %c0_i32_9 : i32
    scf.if %11 {
      %c0_10 = arith.constant 0 : index
      %c0_11 = arith.constant 0 : index
      %12 = vector.load %arg8[%c0_10, %c0_11] : memref<512x128xf32, #tpu.memory_space<vmem>>, vector<512x128xf32>
      %c0_12 = arith.constant 0 : index
      %c0_13 = arith.constant 0 : index
      %13 = vector.load %arg5[%c0_12, %c0_13] : memref<1x128xf32, #tpu.memory_space<vmem>>, vector<1x128xf32>
      %14 = vector.broadcast %13 : vector<1x128xf32> to vector<512x128xf32>
      %15 = arith.mulf %12, %14 : vector<512x128xf32>
      %c0_14 = arith.constant 0 : index
      %c0_15 = arith.constant 0 : index
      %16 = vector.load %arg6[%c0_14, %c0_15] : memref<1x128xf32, #tpu.memory_space<vmem>>, vector<1x128xf32>
      %17 = vector.broadcast %16 : vector<1x128xf32> to vector<512x128xf32>
      %18 = arith.addf %15, %17 : vector<512x128xf32>
      %cst_16 = arith.constant 0.000000e+00 : f32
      %19 = vector.broadcast %cst_16 : f32 to vector<512x128xf32>
      %20 = arith.maximumf %18, %19 : vector<512x128xf32>
      %21 = arith.truncf %20 : vector<512x128xf32> to vector<512x128xbf16>
      %c0_17 = arith.constant 0 : index
      %c0_18 = arith.constant 0 : index
      %22 = vector.load %arg7[%c0_17, %c0_18] : memref<512x128xbf16, #tpu.memory_space<vmem>>, vector<512x128xbf16>
      tpu.vector_store %arg7[%c0_17, %c0_18], %21 {strides = array<i32>} : memref<512x128xbf16, #tpu.memory_space<vmem>>, vector<512x128xbf16>,
    } else {
    }
    return
  }
  func.func @transform_0(%arg0: i32, %arg1: i32, %arg2: i32) -> (i32, i32) {
    %c0_i32 = arith.constant 0 : i32
    return %arg0, %arg2 : i32, i32
  }
  func.func @transform_1(%arg0: i32, %arg1: i32, %arg2: i32) -> (i32, i32) {
    %c0_i32 = arith.constant 0 : i32
    return %arg2, %arg1 : i32, i32
  }
  func.func @transform_2(%arg0: i32, %arg1: i32, %arg2: i32) -> (i32, i32) {
    %c0_i32 = arith.constant 0 : i32
    %c0_i32_0 = arith.constant 0 : i32
    return %c0_i32, %arg1 : i32, i32
  }
  func.func @transform_3(%arg0: i32, %arg1: i32, %arg2: i32) -> (i32, i32) {
    %c0_i32 = arith.constant 0 : i32
    %c0_i32_0 = arith.constant 0 : i32
    return %c0_i32, %arg1 : i32, i32
  }
  func.func @transform_4(%arg0: i32, %arg1: i32, %arg2: i32) -> (i32, i32) {
    %c0_i32 = arith.constant 0 : i32
    return %arg0, %arg1 : i32, i32
  }
}

module attributes {stable_mosaic.version = 11 : i64} {
  func.func @kernel(%arg0: i32, %arg1: i32, %arg2: i32, %arg3: memref<128x128xbf16, #tpu.memory_space<vmem>>, %arg4: memref<128x128xbf16, #tpu.memory_space<vmem>>, %arg5: memref<1x128xf32, #tpu.memory_space<vmem>>, %arg6: memref<1x128xf32, #tpu.memory_space<vmem>>, %arg7: memref<128x128xbf16, #tpu.memory_space<vmem>>, %arg8: memref<128x128xf32, #tpu.memory_space<vmem>>) attributes {dimension_semantics = [#tpu.dimension_semantics<parallel>, #tpu.dimension_semantics<parallel>, #tpu.dimension_semantics<arbitrary>], iteration_bounds = array<i64: 1, 1, 5>, scalar_prefetch = 0 : i64, scratch_operands = 1 : i64, tpu.core_type = #tpu.core_type<tc>, window_params = [{transform_indices = @transform_0, window_bounds = array<i64: 128, 128>}, {transform_indices = @transform_1, window_bounds = array<i64: 128, 128>}, {transform_indices = @transform_2, window_bounds = array<i64: 1, 128>}, {transform_indices = @transform_3, window_bounds = array<i64: 1, 128>}, {transform_indices = @transform_4, window_bounds = array<i64: 128, 128>}]} {
    %c0_i32 = arith.constant 0 : i32
    %0 = arith.cmpi eq, %arg2, %c0_i32 : i32
    %1 = arith.extui %0 : i1 to i32
    %c0_i32_0 = arith.constant 0 : i32
    %2 = arith.cmpi ne, %1, %c0_i32_0 : i32
    scf.if %2 {
      %cst_9 = arith.constant 0.000000e+00 : f32
      %12 = vector.broadcast %cst_9 : f32 to vector<128x128xf32>
      %c0_10 = arith.constant 0 : index
      %c0_11 = arith.constant 0 : index
      %13 = vector.load %arg8[%c0_10, %c0_11] : memref<128x128xf32, #tpu.memory_space<vmem>>, vector<128x128xf32>
      tpu.vector_store %arg8[%c0_10, %c0_11], %12 {strides = array<i32>} : memref<128x128xf32, #tpu.memory_space<vmem>>, vector<128x128xf32>,
    } else {
    }
    %c0 = arith.constant 0 : index
    %c0_1 = arith.constant 0 : index
    %3 = vector.load %arg8[%c0, %c0_1] : memref<128x128xf32, #tpu.memory_space<vmem>>, vector<128x128xf32>
    %c0_2 = arith.constant 0 : index
    %c0_3 = arith.constant 0 : index
    %4 = vector.load %arg3[%c0_2, %c0_3] : memref<128x128xbf16, #tpu.memory_space<vmem>>, vector<128x128xbf16>
    %c0_4 = arith.constant 0 : index
    %c0_5 = arith.constant 0 : index
    %5 = vector.load %arg4[%c0_4, %c0_5] : memref<128x128xbf16, #tpu.memory_space<vmem>>, vector<128x128xbf16>
    %cst = arith.constant dense<0.000000e+00> : vector<128x128xf32>
    %6 = tpu.matmul %4, %5, %cst {dimension_numbers = #tpu.dot_dimension_numbers<[1], [0], [0], [1], [0, 0, 1, 1], [], []>} : vector<128x128xbf16>, vector<128x128xbf16>, vector<128x128xf32> -> vector<128x128xf32>
    %7 = arith.addf %3, %6 : vector<128x128xf32>
    %c0_6 = arith.constant 0 : index
    %c0_7 = arith.constant 0 : index
    %8 = vector.load %arg8[%c0_6, %c0_7] : memref<128x128xf32, #tpu.memory_space<vmem>>, vector<128x128xf32>
    tpu.vector_store %arg8[%c0_6, %c0_7], %7 {strides = array<i32>} : memref<128x128xf32, #tpu.memory_space<vmem>>, vector<128x128xf32>,
    %c4_i32 = arith.constant 4 : i32
    %9 = arith.cmpi eq, %arg2, %c4_i32 : i32
    %10 = arith.extui %9 : i1 to i32
    %c0_i32_8 = arith.constant 0 : i32
    %11 = arith.cmpi ne, %10, %c0_i32_8 : i32
    scf.if %11 {
      %c0_9 = arith.constant 0 : index
      %c0_10 = arith.constant 0 : index
      %12 = vector.load %arg8[%c0_9, %c0_10] : memref<128x128xf32, #tpu.memory_space<vmem>>, vector<128x128xf32>
      %c0_11 = arith.constant 0 : index
      %c0_12 = arith.constant 0 : index
      %13 = vector.load %arg5[%c0_11, %c0_12] : memref<1x128xf32, #tpu.memory_space<vmem>>, vector<1x128xf32>
      %14 = vector.broadcast %13 : vector<1x128xf32> to vector<128x128xf32>
      %15 = arith.mulf %12, %14 : vector<128x128xf32>
      %c0_13 = arith.constant 0 : index
      %c0_14 = arith.constant 0 : index
      %16 = vector.load %arg6[%c0_13, %c0_14] : memref<1x128xf32, #tpu.memory_space<vmem>>, vector<1x128xf32>
      %17 = vector.broadcast %16 : vector<1x128xf32> to vector<128x128xf32>
      %18 = arith.addf %15, %17 : vector<128x128xf32>
      %cst_15 = arith.constant 0.000000e+00 : f32
      %19 = vector.broadcast %cst_15 : f32 to vector<128x128xf32>
      %20 = arith.maximumf %18, %19 : vector<128x128xf32>
      %21 = arith.truncf %20 : vector<128x128xf32> to vector<128x128xbf16>
      %c0_16 = arith.constant 0 : index
      %c0_17 = arith.constant 0 : index
      %22 = vector.load %arg7[%c0_16, %c0_17] : memref<128x128xbf16, #tpu.memory_space<vmem>>, vector<128x128xbf16>
      tpu.vector_store %arg7[%c0_16, %c0_17], %21 {strides = array<i32>} : memref<128x128xbf16, #tpu.memory_space<vmem>>, vector<128x128xbf16>,
    } else {
    }
    return
  }
  func.func @transform_0(%arg0: i32, %arg1: i32, %arg2: i32) -> (i32, i32) {
    %c0_i32 = arith.constant 0 : i32
    return %arg0, %arg2 : i32, i32
  }
  func.func @transform_1(%arg0: i32, %arg1: i32, %arg2: i32) -> (i32, i32) {
    %c0_i32 = arith.constant 0 : i32
    return %arg2, %arg1 : i32, i32
  }
  func.func @transform_2(%arg0: i32, %arg1: i32, %arg2: i32) -> (i32, i32) {
    %c0_i32 = arith.constant 0 : i32
    %c0_i32_0 = arith.constant 0 : i32
    return %c0_i32, %arg1 : i32, i32
  }
  func.func @transform_3(%arg0: i32, %arg1: i32, %arg2: i32) -> (i32, i32) {
    %c0_i32 = arith.constant 0 : i32
    %c0_i32_0 = arith.constant 0 : i32
    return %c0_i32, %arg1 : i32, i32
  }
  func.func @transform_4(%arg0: i32, %arg1: i32, %arg2: i32) -> (i32, i32) {
    %c0_i32 = arith.constant 0 : i32
    return %arg0, %arg1 : i32, i32
  }
}

module attributes {stable_mosaic.version = 11 : i64} {
  func.func @kernel(%arg0: i32, %arg1: i32, %arg2: i32, %arg3: memref<128x128xbf16, #tpu.memory_space<vmem>>, %arg4: memref<128x128xbf16, #tpu.memory_space<vmem>>, %arg5: memref<1x128xf32, #tpu.memory_space<vmem>>, %arg6: memref<1x128xf32, #tpu.memory_space<vmem>>, %arg7: memref<128x128xbf16, #tpu.memory_space<vmem>>, %arg8: memref<128x128xbf16, #tpu.memory_space<vmem>>, %arg9: memref<128x128xf32, #tpu.memory_space<vmem>>) attributes {dimension_semantics = [#tpu.dimension_semantics<parallel>, #tpu.dimension_semantics<parallel>, #tpu.dimension_semantics<arbitrary>], iteration_bounds = array<i64: 1, 1, 5>, scalar_prefetch = 0 : i64, scratch_operands = 1 : i64, tpu.core_type = #tpu.core_type<tc>, window_params = [{transform_indices = @transform_0, window_bounds = array<i64: 128, 128>}, {transform_indices = @transform_1, window_bounds = array<i64: 128, 128>}, {transform_indices = @transform_2, window_bounds = array<i64: 1, 128>}, {transform_indices = @transform_3, window_bounds = array<i64: 1, 128>}, {transform_indices = @transform_4, window_bounds = array<i64: 128, 128>}, {transform_indices = @transform_5, window_bounds = array<i64: 128, 128>}]} {
    %c0_i32 = arith.constant 0 : i32
    %0 = arith.cmpi eq, %arg2, %c0_i32 : i32
    %1 = arith.extui %0 : i1 to i32
    %c0_i32_0 = arith.constant 0 : i32
    %2 = arith.cmpi ne, %1, %c0_i32_0 : i32
    scf.if %2 {
      %cst_9 = arith.constant 0.000000e+00 : f32
      %12 = vector.broadcast %cst_9 : f32 to vector<128x128xf32>
      %c0_10 = arith.constant 0 : index
      %c0_11 = arith.constant 0 : index
      %13 = vector.load %arg9[%c0_10, %c0_11] : memref<128x128xf32, #tpu.memory_space<vmem>>, vector<128x128xf32>
      tpu.vector_store %arg9[%c0_10, %c0_11], %12 {strides = array<i32>} : memref<128x128xf32, #tpu.memory_space<vmem>>, vector<128x128xf32>,
    } else {
    }
    %c0 = arith.constant 0 : index
    %c0_1 = arith.constant 0 : index
    %3 = vector.load %arg9[%c0, %c0_1] : memref<128x128xf32, #tpu.memory_space<vmem>>, vector<128x128xf32>
    %c0_2 = arith.constant 0 : index
    %c0_3 = arith.constant 0 : index
    %4 = vector.load %arg3[%c0_2, %c0_3] : memref<128x128xbf16, #tpu.memory_space<vmem>>, vector<128x128xbf16>
    %c0_4 = arith.constant 0 : index
    %c0_5 = arith.constant 0 : index
    %5 = vector.load %arg4[%c0_4, %c0_5] : memref<128x128xbf16, #tpu.memory_space<vmem>>, vector<128x128xbf16>
    %cst = arith.constant dense<0.000000e+00> : vector<128x128xf32>
    %6 = tpu.matmul %4, %5, %cst {dimension_numbers = #tpu.dot_dimension_numbers<[1], [0], [0], [1], [0, 0, 1, 1], [], []>} : vector<128x128xbf16>, vector<128x128xbf16>, vector<128x128xf32> -> vector<128x128xf32>
    %7 = arith.addf %3, %6 : vector<128x128xf32>
    %c0_6 = arith.constant 0 : index
    %c0_7 = arith.constant 0 : index
    %8 = vector.load %arg9[%c0_6, %c0_7] : memref<128x128xf32, #tpu.memory_space<vmem>>, vector<128x128xf32>
    tpu.vector_store %arg9[%c0_6, %c0_7], %7 {strides = array<i32>} : memref<128x128xf32, #tpu.memory_space<vmem>>, vector<128x128xf32>,
    %c4_i32 = arith.constant 4 : i32
    %9 = arith.cmpi eq, %arg2, %c4_i32 : i32
    %10 = arith.extui %9 : i1 to i32
    %c0_i32_8 = arith.constant 0 : i32
    %11 = arith.cmpi ne, %10, %c0_i32_8 : i32
    scf.if %11 {
      %c0_9 = arith.constant 0 : index
      %c0_10 = arith.constant 0 : index
      %12 = vector.load %arg9[%c0_9, %c0_10] : memref<128x128xf32, #tpu.memory_space<vmem>>, vector<128x128xf32>
      %c0_11 = arith.constant 0 : index
      %c0_12 = arith.constant 0 : index
      %13 = vector.load %arg5[%c0_11, %c0_12] : memref<1x128xf32, #tpu.memory_space<vmem>>, vector<1x128xf32>
      %14 = vector.broadcast %13 : vector<1x128xf32> to vector<128x128xf32>
      %15 = arith.mulf %12, %14 : vector<128x128xf32>
      %c0_13 = arith.constant 0 : index
      %c0_14 = arith.constant 0 : index
      %16 = vector.load %arg6[%c0_13, %c0_14] : memref<1x128xf32, #tpu.memory_space<vmem>>, vector<1x128xf32>
      %17 = vector.broadcast %16 : vector<1x128xf32> to vector<128x128xf32>
      %18 = arith.addf %15, %17 : vector<128x128xf32>
      %c0_15 = arith.constant 0 : index
      %c0_16 = arith.constant 0 : index
      %19 = vector.load %arg7[%c0_15, %c0_16] : memref<128x128xbf16, #tpu.memory_space<vmem>>, vector<128x128xbf16>
      %20 = arith.extf %19 : vector<128x128xbf16> to vector<128x128xf32>
      %21 = arith.addf %18, %20 : vector<128x128xf32>
      %cst_17 = arith.constant 0.000000e+00 : f32
      %22 = vector.broadcast %cst_17 : f32 to vector<128x128xf32>
      %23 = arith.maximumf %21, %22 : vector<128x128xf32>
      %24 = arith.truncf %23 : vector<128x128xf32> to vector<128x128xbf16>
      %c0_18 = arith.constant 0 : index
      %c0_19 = arith.constant 0 : index
      %25 = vector.load %arg8[%c0_18, %c0_19] : memref<128x128xbf16, #tpu.memory_space<vmem>>, vector<128x128xbf16>
      tpu.vector_store %arg8[%c0_18, %c0_19], %24 {strides = array<i32>} : memref<128x128xbf16, #tpu.memory_space<vmem>>, vector<128x128xbf16>,
    } else {
    }
    return
  }
  func.func @transform_0(%arg0: i32, %arg1: i32, %arg2: i32) -> (i32, i32) {
    %c0_i32 = arith.constant 0 : i32
    return %arg0, %arg2 : i32, i32
  }
  func.func @transform_1(%arg0: i32, %arg1: i32, %arg2: i32) -> (i32, i32) {
    %c0_i32 = arith.constant 0 : i32
    return %arg2, %arg1 : i32, i32
  }
  func.func @transform_2(%arg0: i32, %arg1: i32, %arg2: i32) -> (i32, i32) {
    %c0_i32 = arith.constant 0 : i32
    %c0_i32_0 = arith.constant 0 : i32
    return %c0_i32, %arg1 : i32, i32
  }
  func.func @transform_3(%arg0: i32, %arg1: i32, %arg2: i32) -> (i32, i32) {
    %c0_i32 = arith.constant 0 : i32
    %c0_i32_0 = arith.constant 0 : i32
    return %c0_i32, %arg1 : i32, i32
  }
  func.func @transform_4(%arg0: i32, %arg1: i32, %arg2: i32) -> (i32, i32) {
    %c0_i32 = arith.constant 0 : i32
    return %arg0, %arg1 : i32, i32
  }
  func.func @transform_5(%arg0: i32, %arg1: i32, %arg2: i32) -> (i32, i32) {
    %c0_i32 = arith.constant 0 : i32
    return %arg0, %arg1 : i32, i32
  }
}

module attributes {stable_mosaic.version = 11 : i64} {
  func.func @kernel(%arg0: i32, %arg1: i32, %arg2: i32, %arg3: memref<32x128xbf16, #tpu.memory_space<vmem>>, %arg4: memref<128x128xbf16, #tpu.memory_space<vmem>>, %arg5: memref<1x128xf32, #tpu.memory_space<vmem>>, %arg6: memref<1x128xf32, #tpu.memory_space<vmem>>, %arg7: memref<32x128xbf16, #tpu.memory_space<vmem>>, %arg8: memref<32x128xf32, #tpu.memory_space<vmem>>) attributes {dimension_semantics = [#tpu.dimension_semantics<parallel>, #tpu.dimension_semantics<parallel>, #tpu.dimension_semantics<arbitrary>], iteration_bounds = array<i64: 1, 1, 5>, scalar_prefetch = 0 : i64, scratch_operands = 1 : i64, tpu.core_type = #tpu.core_type<tc>, window_params = [{transform_indices = @transform_0, window_bounds = array<i64: 32, 128>}, {transform_indices = @transform_1, window_bounds = array<i64: 128, 128>}, {transform_indices = @transform_2, window_bounds = array<i64: 1, 128>}, {transform_indices = @transform_3, window_bounds = array<i64: 1, 128>}, {transform_indices = @transform_4, window_bounds = array<i64: 32, 128>}]} {
    %c0_i32 = arith.constant 0 : i32
    %0 = arith.cmpi eq, %arg2, %c0_i32 : i32
    %1 = arith.extui %0 : i1 to i32
    %c0_i32_0 = arith.constant 0 : i32
    %2 = arith.cmpi ne, %1, %c0_i32_0 : i32
    scf.if %2 {
      %cst_9 = arith.constant 0.000000e+00 : f32
      %12 = vector.broadcast %cst_9 : f32 to vector<32x128xf32>
      %c0_10 = arith.constant 0 : index
      %c0_11 = arith.constant 0 : index
      %13 = vector.load %arg8[%c0_10, %c0_11] : memref<32x128xf32, #tpu.memory_space<vmem>>, vector<32x128xf32>
      tpu.vector_store %arg8[%c0_10, %c0_11], %12 {strides = array<i32>} : memref<32x128xf32, #tpu.memory_space<vmem>>, vector<32x128xf32>,
    } else {
    }
    %c0 = arith.constant 0 : index
    %c0_1 = arith.constant 0 : index
    %3 = vector.load %arg8[%c0, %c0_1] : memref<32x128xf32, #tpu.memory_space<vmem>>, vector<32x128xf32>
    %c0_2 = arith.constant 0 : index
    %c0_3 = arith.constant 0 : index
    %4 = vector.load %arg3[%c0_2, %c0_3] : memref<32x128xbf16, #tpu.memory_space<vmem>>, vector<32x128xbf16>
    %c0_4 = arith.constant 0 : index
    %c0_5 = arith.constant 0 : index
    %5 = vector.load %arg4[%c0_4, %c0_5] : memref<128x128xbf16, #tpu.memory_space<vmem>>, vector<128x128xbf16>
    %cst = arith.constant dense<0.000000e+00> : vector<32x128xf32>
    %6 = tpu.matmul %4, %5, %cst {dimension_numbers = #tpu.dot_dimension_numbers<[1], [0], [0], [1], [0, 0, 1, 1], [], []>} : vector<32x128xbf16>, vector<128x128xbf16>, vector<32x128xf32> -> vector<32x128xf32>
    %7 = arith.addf %3, %6 : vector<32x128xf32>
    %c0_6 = arith.constant 0 : index
    %c0_7 = arith.constant 0 : index
    %8 = vector.load %arg8[%c0_6, %c0_7] : memref<32x128xf32, #tpu.memory_space<vmem>>, vector<32x128xf32>
    tpu.vector_store %arg8[%c0_6, %c0_7], %7 {strides = array<i32>} : memref<32x128xf32, #tpu.memory_space<vmem>>, vector<32x128xf32>,
    %c4_i32 = arith.constant 4 : i32
    %9 = arith.cmpi eq, %arg2, %c4_i32 : i32
    %10 = arith.extui %9 : i1 to i32
    %c0_i32_8 = arith.constant 0 : i32
    %11 = arith.cmpi ne, %10, %c0_i32_8 : i32
    scf.if %11 {
      %c0_9 = arith.constant 0 : index
      %c0_10 = arith.constant 0 : index
      %12 = vector.load %arg8[%c0_9, %c0_10] : memref<32x128xf32, #tpu.memory_space<vmem>>, vector<32x128xf32>
      %c0_11 = arith.constant 0 : index
      %c0_12 = arith.constant 0 : index
      %13 = vector.load %arg5[%c0_11, %c0_12] : memref<1x128xf32, #tpu.memory_space<vmem>>, vector<1x128xf32>
      %14 = vector.broadcast %13 : vector<1x128xf32> to vector<32x128xf32>
      %15 = arith.mulf %12, %14 : vector<32x128xf32>
      %c0_13 = arith.constant 0 : index
      %c0_14 = arith.constant 0 : index
      %16 = vector.load %arg6[%c0_13, %c0_14] : memref<1x128xf32, #tpu.memory_space<vmem>>, vector<1x128xf32>
      %17 = vector.broadcast %16 : vector<1x128xf32> to vector<32x128xf32>
      %18 = arith.addf %15, %17 : vector<32x128xf32>
      %cst_15 = arith.constant 0.000000e+00 : f32
      %19 = vector.broadcast %cst_15 : f32 to vector<32x128xf32>
      %20 = arith.maximumf %18, %19 : vector<32x128xf32>
      %21 = arith.truncf %20 : vector<32x128xf32> to vector<32x128xbf16>
      %c0_16 = arith.constant 0 : index
      %c0_17 = arith.constant 0 : index
      %22 = vector.load %arg7[%c0_16, %c0_17] : memref<32x128xbf16, #tpu.memory_space<vmem>>, vector<32x128xbf16>
      tpu.vector_store %arg7[%c0_16, %c0_17], %21 {strides = array<i32>} : memref<32x128xbf16, #tpu.memory_space<vmem>>, vector<32x128xbf16>,
    } else {
    }
    return
  }
  func.func @transform_0(%arg0: i32, %arg1: i32, %arg2: i32) -> (i32, i32) {
    %c0_i32 = arith.constant 0 : i32
    return %arg0, %arg2 : i32, i32
  }
  func.func @transform_1(%arg0: i32, %arg1: i32, %arg2: i32) -> (i32, i32) {
    %c0_i32 = arith.constant 0 : i32
    return %arg2, %arg1 : i32, i32
  }
  func.func @transform_2(%arg0: i32, %arg1: i32, %arg2: i32) -> (i32, i32) {
    %c0_i32 = arith.constant 0 : i32
    %c0_i32_0 = arith.constant 0 : i32
    return %c0_i32, %arg1 : i32, i32
  }
  func.func @transform_3(%arg0: i32, %arg1: i32, %arg2: i32) -> (i32, i32) {
    %c0_i32 = arith.constant 0 : i32
    %c0_i32_0 = arith.constant 0 : i32
    return %c0_i32, %arg1 : i32, i32
  }
  func.func @transform_4(%arg0: i32, %arg1: i32, %arg2: i32) -> (i32, i32) {
    %c0_i32 = arith.constant 0 : i32
    return %arg0, %arg1 : i32, i32
  }
}

module attributes {stable_mosaic.version = 11 : i64} {
  func.func @kernel(%arg0: i32, %arg1: i32, %arg2: i32, %arg3: memref<32x384xbf16, #tpu.memory_space<vmem>>, %arg4: memref<384x128xbf16, #tpu.memory_space<vmem>>, %arg5: memref<1x128xf32, #tpu.memory_space<vmem>>, %arg6: memref<1x128xf32, #tpu.memory_space<vmem>>, %arg7: memref<32x128xbf16, #tpu.memory_space<vmem>>, %arg8: memref<32x128xbf16, #tpu.memory_space<vmem>>, %arg9: memref<32x128xf32, #tpu.memory_space<vmem>>) attributes {dimension_semantics = [#tpu.dimension_semantics<parallel>, #tpu.dimension_semantics<parallel>, #tpu.dimension_semantics<arbitrary>], iteration_bounds = array<i64: 1, 1, 3>, scalar_prefetch = 0 : i64, scratch_operands = 1 : i64, tpu.core_type = #tpu.core_type<tc>, window_params = [{transform_indices = @transform_0, window_bounds = array<i64: 32, 384>}, {transform_indices = @transform_1, window_bounds = array<i64: 384, 128>}, {transform_indices = @transform_2, window_bounds = array<i64: 1, 128>}, {transform_indices = @transform_3, window_bounds = array<i64: 1, 128>}, {transform_indices = @transform_4, window_bounds = array<i64: 32, 128>}, {transform_indices = @transform_5, window_bounds = array<i64: 32, 128>}]} {
    %c0_i32 = arith.constant 0 : i32
    %0 = arith.cmpi eq, %arg2, %c0_i32 : i32
    %1 = arith.extui %0 : i1 to i32
    %c0_i32_0 = arith.constant 0 : i32
    %2 = arith.cmpi ne, %1, %c0_i32_0 : i32
    scf.if %2 {
      %cst_9 = arith.constant 0.000000e+00 : f32
      %12 = vector.broadcast %cst_9 : f32 to vector<32x128xf32>
      %c0_10 = arith.constant 0 : index
      %c0_11 = arith.constant 0 : index
      %13 = vector.load %arg9[%c0_10, %c0_11] : memref<32x128xf32, #tpu.memory_space<vmem>>, vector<32x128xf32>
      tpu.vector_store %arg9[%c0_10, %c0_11], %12 {strides = array<i32>} : memref<32x128xf32, #tpu.memory_space<vmem>>, vector<32x128xf32>,
    } else {
    }
    %c0 = arith.constant 0 : index
    %c0_1 = arith.constant 0 : index
    %3 = vector.load %arg9[%c0, %c0_1] : memref<32x128xf32, #tpu.memory_space<vmem>>, vector<32x128xf32>
    %c0_2 = arith.constant 0 : index
    %c0_3 = arith.constant 0 : index
    %4 = vector.load %arg3[%c0_2, %c0_3] : memref<32x384xbf16, #tpu.memory_space<vmem>>, vector<32x384xbf16>
    %c0_4 = arith.constant 0 : index
    %c0_5 = arith.constant 0 : index
    %5 = vector.load %arg4[%c0_4, %c0_5] : memref<384x128xbf16, #tpu.memory_space<vmem>>, vector<384x128xbf16>
    %cst = arith.constant dense<0.000000e+00> : vector<32x128xf32>
    %6 = tpu.matmul %4, %5, %cst {dimension_numbers = #tpu.dot_dimension_numbers<[1], [0], [0], [1], [0, 0, 1, 1], [], []>} : vector<32x384xbf16>, vector<384x128xbf16>, vector<32x128xf32> -> vector<32x128xf32>
    %7 = arith.addf %3, %6 : vector<32x128xf32>
    %c0_6 = arith.constant 0 : index
    %c0_7 = arith.constant 0 : index
    %8 = vector.load %arg9[%c0_6, %c0_7] : memref<32x128xf32, #tpu.memory_space<vmem>>, vector<32x128xf32>
    tpu.vector_store %arg9[%c0_6, %c0_7], %7 {strides = array<i32>} : memref<32x128xf32, #tpu.memory_space<vmem>>, vector<32x128xf32>,
    %c2_i32 = arith.constant 2 : i32
    %9 = arith.cmpi eq, %arg2, %c2_i32 : i32
    %10 = arith.extui %9 : i1 to i32
    %c0_i32_8 = arith.constant 0 : i32
    %11 = arith.cmpi ne, %10, %c0_i32_8 : i32
    scf.if %11 {
      %c0_9 = arith.constant 0 : index
      %c0_10 = arith.constant 0 : index
      %12 = vector.load %arg9[%c0_9, %c0_10] : memref<32x128xf32, #tpu.memory_space<vmem>>, vector<32x128xf32>
      %c0_11 = arith.constant 0 : index
      %c0_12 = arith.constant 0 : index
      %13 = vector.load %arg5[%c0_11, %c0_12] : memref<1x128xf32, #tpu.memory_space<vmem>>, vector<1x128xf32>
      %14 = vector.broadcast %13 : vector<1x128xf32> to vector<32x128xf32>
      %15 = arith.mulf %12, %14 : vector<32x128xf32>
      %c0_13 = arith.constant 0 : index
      %c0_14 = arith.constant 0 : index
      %16 = vector.load %arg6[%c0_13, %c0_14] : memref<1x128xf32, #tpu.memory_space<vmem>>, vector<1x128xf32>
      %17 = vector.broadcast %16 : vector<1x128xf32> to vector<32x128xf32>
      %18 = arith.addf %15, %17 : vector<32x128xf32>
      %c0_15 = arith.constant 0 : index
      %c0_16 = arith.constant 0 : index
      %19 = vector.load %arg7[%c0_15, %c0_16] : memref<32x128xbf16, #tpu.memory_space<vmem>>, vector<32x128xbf16>
      %20 = arith.extf %19 : vector<32x128xbf16> to vector<32x128xf32>
      %21 = arith.addf %18, %20 : vector<32x128xf32>
      %cst_17 = arith.constant 0.000000e+00 : f32
      %22 = vector.broadcast %cst_17 : f32 to vector<32x128xf32>
      %23 = arith.maximumf %21, %22 : vector<32x128xf32>
      %24 = arith.truncf %23 : vector<32x128xf32> to vector<32x128xbf16>
      %c0_18 = arith.constant 0 : index
      %c0_19 = arith.constant 0 : index
      %25 = vector.load %arg8[%c0_18, %c0_19] : memref<32x128xbf16, #tpu.memory_space<vmem>>, vector<32x128xbf16>
      tpu.vector_store %arg8[%c0_18, %c0_19], %24 {strides = array<i32>} : memref<32x128xbf16, #tpu.memory_space<vmem>>, vector<32x128xbf16>,
    } else {
    }
    return
  }
  func.func @transform_0(%arg0: i32, %arg1: i32, %arg2: i32) -> (i32, i32) {
    %c0_i32 = arith.constant 0 : i32
    return %arg0, %arg2 : i32, i32
  }
  func.func @transform_1(%arg0: i32, %arg1: i32, %arg2: i32) -> (i32, i32) {
    %c0_i32 = arith.constant 0 : i32
    return %arg2, %arg1 : i32, i32
  }
  func.func @transform_2(%arg0: i32, %arg1: i32, %arg2: i32) -> (i32, i32) {
    %c0_i32 = arith.constant 0 : i32
    %c0_i32_0 = arith.constant 0 : i32
    return %c0_i32, %arg1 : i32, i32
  }
  func.func @transform_3(%arg0: i32, %arg1: i32, %arg2: i32) -> (i32, i32) {
    %c0_i32 = arith.constant 0 : i32
    %c0_i32_0 = arith.constant 0 : i32
    return %c0_i32, %arg1 : i32, i32
  }
  func.func @transform_4(%arg0: i32, %arg1: i32, %arg2: i32) -> (i32, i32) {
    %c0_i32 = arith.constant 0 : i32
    return %arg0, %arg1 : i32, i32
  }
  func.func @transform_5(%arg0: i32, %arg1: i32, %arg2: i32) -> (i32, i32) {
    %c0_i32 = arith.constant 0 : i32
    return %arg0, %arg1 : i32, i32
  }
}

module attributes {stable_mosaic.version = 11 : i64} {
  func.func @kernel(%arg0: i32, %arg1: i32, %arg2: i32, %arg3: memref<32x128xbf16, #tpu.memory_space<vmem>>, %arg4: memref<128x128xbf16, #tpu.memory_space<vmem>>, %arg5: memref<1x128xf32, #tpu.memory_space<vmem>>, %arg6: memref<1x128xf32, #tpu.memory_space<vmem>>, %arg7: memref<32x128xbf16, #tpu.memory_space<vmem>>, %arg8: memref<32x128xf32, #tpu.memory_space<vmem>>) attributes {dimension_semantics = [#tpu.dimension_semantics<parallel>, #tpu.dimension_semantics<parallel>, #tpu.dimension_semantics<arbitrary>], iteration_bounds = array<i64: 1, 1, 1>, scalar_prefetch = 0 : i64, scratch_operands = 1 : i64, tpu.core_type = #tpu.core_type<tc>, window_params = [{transform_indices = @transform_0, window_bounds = array<i64: 32, 128>}, {transform_indices = @transform_1, window_bounds = array<i64: 128, 128>}, {transform_indices = @transform_2, window_bounds = array<i64: 1, 128>}, {transform_indices = @transform_3, window_bounds = array<i64: 1, 128>}, {transform_indices = @transform_4, window_bounds = array<i64: 32, 128>}]} {
    %c0_i32 = arith.constant 0 : i32
    %0 = arith.cmpi eq, %arg2, %c0_i32 : i32
    %1 = arith.extui %0 : i1 to i32
    %c0_i32_0 = arith.constant 0 : i32
    %2 = arith.cmpi ne, %1, %c0_i32_0 : i32
    scf.if %2 {
      %cst_10 = arith.constant 0.000000e+00 : f32
      %12 = vector.broadcast %cst_10 : f32 to vector<32x128xf32>
      %c0_11 = arith.constant 0 : index
      %c0_12 = arith.constant 0 : index
      %13 = vector.load %arg8[%c0_11, %c0_12] : memref<32x128xf32, #tpu.memory_space<vmem>>, vector<32x128xf32>
      tpu.vector_store %arg8[%c0_11, %c0_12], %12 {strides = array<i32>} : memref<32x128xf32, #tpu.memory_space<vmem>>, vector<32x128xf32>,
    } else {
    }
    %c0 = arith.constant 0 : index
    %c0_1 = arith.constant 0 : index
    %3 = vector.load %arg8[%c0, %c0_1] : memref<32x128xf32, #tpu.memory_space<vmem>>, vector<32x128xf32>
    %c0_2 = arith.constant 0 : index
    %c0_3 = arith.constant 0 : index
    %4 = vector.load %arg3[%c0_2, %c0_3] : memref<32x128xbf16, #tpu.memory_space<vmem>>, vector<32x128xbf16>
    %c0_4 = arith.constant 0 : index
    %c0_5 = arith.constant 0 : index
    %5 = vector.load %arg4[%c0_4, %c0_5] : memref<128x128xbf16, #tpu.memory_space<vmem>>, vector<128x128xbf16>
    %cst = arith.constant dense<0.000000e+00> : vector<32x128xf32>
    %6 = tpu.matmul %4, %5, %cst {dimension_numbers = #tpu.dot_dimension_numbers<[1], [0], [0], [1], [0, 0, 1, 1], [], []>} : vector<32x128xbf16>, vector<128x128xbf16>, vector<32x128xf32> -> vector<32x128xf32>
    %7 = arith.addf %3, %6 : vector<32x128xf32>
    %c0_6 = arith.constant 0 : index
    %c0_7 = arith.constant 0 : index
    %8 = vector.load %arg8[%c0_6, %c0_7] : memref<32x128xf32, #tpu.memory_space<vmem>>, vector<32x128xf32>
    tpu.vector_store %arg8[%c0_6, %c0_7], %7 {strides = array<i32>} : memref<32x128xf32, #tpu.memory_space<vmem>>, vector<32x128xf32>,
    %c0_i32_8 = arith.constant 0 : i32
    %9 = arith.cmpi eq, %arg2, %c0_i32_8 : i32
    %10 = arith.extui %9 : i1 to i32
    %c0_i32_9 = arith.constant 0 : i32
    %11 = arith.cmpi ne, %10, %c0_i32_9 : i32
    scf.if %11 {
      %c0_10 = arith.constant 0 : index
      %c0_11 = arith.constant 0 : index
      %12 = vector.load %arg8[%c0_10, %c0_11] : memref<32x128xf32, #tpu.memory_space<vmem>>, vector<32x128xf32>
      %c0_12 = arith.constant 0 : index
      %c0_13 = arith.constant 0 : index
      %13 = vector.load %arg5[%c0_12, %c0_13] : memref<1x128xf32, #tpu.memory_space<vmem>>, vector<1x128xf32>
      %14 = vector.broadcast %13 : vector<1x128xf32> to vector<32x128xf32>
      %15 = arith.mulf %12, %14 : vector<32x128xf32>
      %c0_14 = arith.constant 0 : index
      %c0_15 = arith.constant 0 : index
      %16 = vector.load %arg6[%c0_14, %c0_15] : memref<1x128xf32, #tpu.memory_space<vmem>>, vector<1x128xf32>
      %17 = vector.broadcast %16 : vector<1x128xf32> to vector<32x128xf32>
      %18 = arith.addf %15, %17 : vector<32x128xf32>
      %19 = arith.truncf %18 : vector<32x128xf32> to vector<32x128xbf16>
      %c0_16 = arith.constant 0 : index
      %c0_17 = arith.constant 0 : index
      %20 = vector.load %arg7[%c0_16, %c0_17] : memref<32x128xbf16, #tpu.memory_space<vmem>>, vector<32x128xbf16>
      tpu.vector_store %arg7[%c0_16, %c0_17], %19 {strides = array<i32>} : memref<32x128xbf16, #tpu.memory_space<vmem>>, vector<32x128xbf16>,
    } else {
    }
    return
  }
  func.func @transform_0(%arg0: i32, %arg1: i32, %arg2: i32) -> (i32, i32) {
    %c0_i32 = arith.constant 0 : i32
    return %arg0, %arg2 : i32, i32
  }
  func.func @transform_1(%arg0: i32, %arg1: i32, %arg2: i32) -> (i32, i32) {
    %c0_i32 = arith.constant 0 : i32
    return %arg2, %arg1 : i32, i32
  }
  func.func @transform_2(%arg0: i32, %arg1: i32, %arg2: i32) -> (i32, i32) {
    %c0_i32 = arith.constant 0 : i32
    %c0_i32_0 = arith.constant 0 : i32
    return %c0_i32, %arg1 : i32, i32
  }
  func.func @transform_3(%arg0: i32, %arg1: i32, %arg2: i32) -> (i32, i32) {
    %c0_i32 = arith.constant 0 : i32
    %c0_i32_0 = arith.constant 0 : i32
    return %c0_i32, %arg1 : i32, i32
  }
  func.func @transform_4(%arg0: i32, %arg1: i32, %arg2: i32) -> (i32, i32) {
    %c0_i32 = arith.constant 0 : i32
    return %arg0, %arg1 : i32, i32
  }
}

module attributes {stable_mosaic.version = 11 : i64} {
  func.func @kernel(%arg0: i32, %arg1: i32, %arg2: i32, %arg3: memref<32x384xbf16, #tpu.memory_space<vmem>>, %arg4: memref<384x128xbf16, #tpu.memory_space<vmem>>, %arg5: memref<1x128xf32, #tpu.memory_space<vmem>>, %arg6: memref<1x128xf32, #tpu.memory_space<vmem>>, %arg7: memref<32x128xbf16, #tpu.memory_space<vmem>>, %arg8: memref<32x128xf32, #tpu.memory_space<vmem>>) attributes {dimension_semantics = [#tpu.dimension_semantics<parallel>, #tpu.dimension_semantics<parallel>, #tpu.dimension_semantics<arbitrary>], iteration_bounds = array<i64: 1, 1, 3>, scalar_prefetch = 0 : i64, scratch_operands = 1 : i64, tpu.core_type = #tpu.core_type<tc>, window_params = [{transform_indices = @transform_0, window_bounds = array<i64: 32, 384>}, {transform_indices = @transform_1, window_bounds = array<i64: 384, 128>}, {transform_indices = @transform_2, window_bounds = array<i64: 1, 128>}, {transform_indices = @transform_3, window_bounds = array<i64: 1, 128>}, {transform_indices = @transform_4, window_bounds = array<i64: 32, 128>}]} {
    %c0_i32 = arith.constant 0 : i32
    %0 = arith.cmpi eq, %arg2, %c0_i32 : i32
    %1 = arith.extui %0 : i1 to i32
    %c0_i32_0 = arith.constant 0 : i32
    %2 = arith.cmpi ne, %1, %c0_i32_0 : i32
    scf.if %2 {
      %cst_9 = arith.constant 0.000000e+00 : f32
      %12 = vector.broadcast %cst_9 : f32 to vector<32x128xf32>
      %c0_10 = arith.constant 0 : index
      %c0_11 = arith.constant 0 : index
      %13 = vector.load %arg8[%c0_10, %c0_11] : memref<32x128xf32, #tpu.memory_space<vmem>>, vector<32x128xf32>
      tpu.vector_store %arg8[%c0_10, %c0_11], %12 {strides = array<i32>} : memref<32x128xf32, #tpu.memory_space<vmem>>, vector<32x128xf32>,
    } else {
    }
    %c0 = arith.constant 0 : index
    %c0_1 = arith.constant 0 : index
    %3 = vector.load %arg8[%c0, %c0_1] : memref<32x128xf32, #tpu.memory_space<vmem>>, vector<32x128xf32>
    %c0_2 = arith.constant 0 : index
    %c0_3 = arith.constant 0 : index
    %4 = vector.load %arg3[%c0_2, %c0_3] : memref<32x384xbf16, #tpu.memory_space<vmem>>, vector<32x384xbf16>
    %c0_4 = arith.constant 0 : index
    %c0_5 = arith.constant 0 : index
    %5 = vector.load %arg4[%c0_4, %c0_5] : memref<384x128xbf16, #tpu.memory_space<vmem>>, vector<384x128xbf16>
    %cst = arith.constant dense<0.000000e+00> : vector<32x128xf32>
    %6 = tpu.matmul %4, %5, %cst {dimension_numbers = #tpu.dot_dimension_numbers<[1], [0], [0], [1], [0, 0, 1, 1], [], []>} : vector<32x384xbf16>, vector<384x128xbf16>, vector<32x128xf32> -> vector<32x128xf32>
    %7 = arith.addf %3, %6 : vector<32x128xf32>
    %c0_6 = arith.constant 0 : index
    %c0_7 = arith.constant 0 : index
    %8 = vector.load %arg8[%c0_6, %c0_7] : memref<32x128xf32, #tpu.memory_space<vmem>>, vector<32x128xf32>
    tpu.vector_store %arg8[%c0_6, %c0_7], %7 {strides = array<i32>} : memref<32x128xf32, #tpu.memory_space<vmem>>, vector<32x128xf32>,
    %c2_i32 = arith.constant 2 : i32
    %9 = arith.cmpi eq, %arg2, %c2_i32 : i32
    %10 = arith.extui %9 : i1 to i32
    %c0_i32_8 = arith.constant 0 : i32
    %11 = arith.cmpi ne, %10, %c0_i32_8 : i32
    scf.if %11 {
      %c0_9 = arith.constant 0 : index
      %c0_10 = arith.constant 0 : index
      %12 = vector.load %arg8[%c0_9, %c0_10] : memref<32x128xf32, #tpu.memory_space<vmem>>, vector<32x128xf32>
      %c0_11 = arith.constant 0 : index
      %c0_12 = arith.constant 0 : index
      %13 = vector.load %arg5[%c0_11, %c0_12] : memref<1x128xf32, #tpu.memory_space<vmem>>, vector<1x128xf32>
      %14 = vector.broadcast %13 : vector<1x128xf32> to vector<32x128xf32>
      %15 = arith.mulf %12, %14 : vector<32x128xf32>
      %c0_13 = arith.constant 0 : index
      %c0_14 = arith.constant 0 : index
      %16 = vector.load %arg6[%c0_13, %c0_14] : memref<1x128xf32, #tpu.memory_space<vmem>>, vector<1x128xf32>
      %17 = vector.broadcast %16 : vector<1x128xf32> to vector<32x128xf32>
      %18 = arith.addf %15, %17 : vector<32x128xf32>
      %cst_15 = arith.constant 0.000000e+00 : f32
      %19 = vector.broadcast %cst_15 : f32 to vector<32x128xf32>
      %20 = arith.maximumf %18, %19 : vector<32x128xf32>
      %21 = arith.truncf %20 : vector<32x128xf32> to vector<32x128xbf16>
      %c0_16 = arith.constant 0 : index
      %c0_17 = arith.constant 0 : index
      %22 = vector.load %arg7[%c0_16, %c0_17] : memref<32x128xbf16, #tpu.memory_space<vmem>>, vector<32x128xbf16>
      tpu.vector_store %arg7[%c0_16, %c0_17], %21 {strides = array<i32>} : memref<32x128xbf16, #tpu.memory_space<vmem>>, vector<32x128xbf16>,
    } else {
    }
    return
  }
  func.func @transform_0(%arg0: i32, %arg1: i32, %arg2: i32) -> (i32, i32) {
    %c0_i32 = arith.constant 0 : i32
    return %arg0, %arg2 : i32, i32
  }
  func.func @transform_1(%arg0: i32, %arg1: i32, %arg2: i32) -> (i32, i32) {
    %c0_i32 = arith.constant 0 : i32
    return %arg2, %arg1 : i32, i32
  }
  func.func @transform_2(%arg0: i32, %arg1: i32, %arg2: i32) -> (i32, i32) {
    %c0_i32 = arith.constant 0 : i32
    %c0_i32_0 = arith.constant 0 : i32
    return %c0_i32, %arg1 : i32, i32
  }
  func.func @transform_3(%arg0: i32, %arg1: i32, %arg2: i32) -> (i32, i32) {
    %c0_i32 = arith.constant 0 : i32
    %c0_i32_0 = arith.constant 0 : i32
    return %c0_i32, %arg1 : i32, i32
  }
  func.func @transform_4(%arg0: i32, %arg1: i32, %arg2: i32) -> (i32, i32) {
    %c0_i32 = arith.constant 0 : i32
    return %arg0, %arg1 : i32, i32
  }
}

module attributes {stable_mosaic.version = 11 : i64} {
  func.func @kernel(%arg0: i32, %arg1: i32, %arg2: i32, %arg3: memref<16x384xbf16, #tpu.memory_space<vmem>>, %arg4: memref<384x256xbf16, #tpu.memory_space<vmem>>, %arg5: memref<1x256xf32, #tpu.memory_space<vmem>>, %arg6: memref<1x256xf32, #tpu.memory_space<vmem>>, %arg7: memref<16x256xbf16, #tpu.memory_space<vmem>>, %arg8: memref<16x256xf32, #tpu.memory_space<vmem>>) attributes {dimension_semantics = [#tpu.dimension_semantics<parallel>, #tpu.dimension_semantics<parallel>, #tpu.dimension_semantics<arbitrary>], iteration_bounds = array<i64: 1, 1, 3>, scalar_prefetch = 0 : i64, scratch_operands = 1 : i64, tpu.core_type = #tpu.core_type<tc>, window_params = [{transform_indices = @transform_0, window_bounds = array<i64: 16, 384>}, {transform_indices = @transform_1, window_bounds = array<i64: 384, 256>}, {transform_indices = @transform_2, window_bounds = array<i64: 1, 256>}, {transform_indices = @transform_3, window_bounds = array<i64: 1, 256>}, {transform_indices = @transform_4, window_bounds = array<i64: 16, 256>}]} {
    %c0_i32 = arith.constant 0 : i32
    %0 = arith.cmpi eq, %arg2, %c0_i32 : i32
    %1 = arith.extui %0 : i1 to i32
    %c0_i32_0 = arith.constant 0 : i32
    %2 = arith.cmpi ne, %1, %c0_i32_0 : i32
    scf.if %2 {
      %cst_9 = arith.constant 0.000000e+00 : f32
      %12 = vector.broadcast %cst_9 : f32 to vector<16x256xf32>
      %c0_10 = arith.constant 0 : index
      %c0_11 = arith.constant 0 : index
      %13 = vector.load %arg8[%c0_10, %c0_11] : memref<16x256xf32, #tpu.memory_space<vmem>>, vector<16x256xf32>
      tpu.vector_store %arg8[%c0_10, %c0_11], %12 {strides = array<i32>} : memref<16x256xf32, #tpu.memory_space<vmem>>, vector<16x256xf32>,
    } else {
    }
    %c0 = arith.constant 0 : index
    %c0_1 = arith.constant 0 : index
    %3 = vector.load %arg8[%c0, %c0_1] : memref<16x256xf32, #tpu.memory_space<vmem>>, vector<16x256xf32>
    %c0_2 = arith.constant 0 : index
    %c0_3 = arith.constant 0 : index
    %4 = vector.load %arg3[%c0_2, %c0_3] : memref<16x384xbf16, #tpu.memory_space<vmem>>, vector<16x384xbf16>
    %c0_4 = arith.constant 0 : index
    %c0_5 = arith.constant 0 : index
    %5 = vector.load %arg4[%c0_4, %c0_5] : memref<384x256xbf16, #tpu.memory_space<vmem>>, vector<384x256xbf16>
    %cst = arith.constant dense<0.000000e+00> : vector<16x256xf32>
    %6 = tpu.matmul %4, %5, %cst {dimension_numbers = #tpu.dot_dimension_numbers<[1], [0], [0], [1], [0, 0, 1, 1], [], []>} : vector<16x384xbf16>, vector<384x256xbf16>, vector<16x256xf32> -> vector<16x256xf32>
    %7 = arith.addf %3, %6 : vector<16x256xf32>
    %c0_6 = arith.constant 0 : index
    %c0_7 = arith.constant 0 : index
    %8 = vector.load %arg8[%c0_6, %c0_7] : memref<16x256xf32, #tpu.memory_space<vmem>>, vector<16x256xf32>
    tpu.vector_store %arg8[%c0_6, %c0_7], %7 {strides = array<i32>} : memref<16x256xf32, #tpu.memory_space<vmem>>, vector<16x256xf32>,
    %c2_i32 = arith.constant 2 : i32
    %9 = arith.cmpi eq, %arg2, %c2_i32 : i32
    %10 = arith.extui %9 : i1 to i32
    %c0_i32_8 = arith.constant 0 : i32
    %11 = arith.cmpi ne, %10, %c0_i32_8 : i32
    scf.if %11 {
      %c0_9 = arith.constant 0 : index
      %c0_10 = arith.constant 0 : index
      %12 = vector.load %arg8[%c0_9, %c0_10] : memref<16x256xf32, #tpu.memory_space<vmem>>, vector<16x256xf32>
      %c0_11 = arith.constant 0 : index
      %c0_12 = arith.constant 0 : index
      %13 = vector.load %arg5[%c0_11, %c0_12] : memref<1x256xf32, #tpu.memory_space<vmem>>, vector<1x256xf32>
      %14 = vector.broadcast %13 : vector<1x256xf32> to vector<16x256xf32>
      %15 = arith.mulf %12, %14 : vector<16x256xf32>
      %c0_13 = arith.constant 0 : index
      %c0_14 = arith.constant 0 : index
      %16 = vector.load %arg6[%c0_13, %c0_14] : memref<1x256xf32, #tpu.memory_space<vmem>>, vector<1x256xf32>
      %17 = vector.broadcast %16 : vector<1x256xf32> to vector<16x256xf32>
      %18 = arith.addf %15, %17 : vector<16x256xf32>
      %cst_15 = arith.constant 0.000000e+00 : f32
      %19 = vector.broadcast %cst_15 : f32 to vector<16x256xf32>
      %20 = arith.maximumf %18, %19 : vector<16x256xf32>
      %21 = arith.truncf %20 : vector<16x256xf32> to vector<16x256xbf16>
      %c0_16 = arith.constant 0 : index
      %c0_17 = arith.constant 0 : index
      %22 = vector.load %arg7[%c0_16, %c0_17] : memref<16x256xbf16, #tpu.memory_space<vmem>>, vector<16x256xbf16>
      tpu.vector_store %arg7[%c0_16, %c0_17], %21 {strides = array<i32>} : memref<16x256xbf16, #tpu.memory_space<vmem>>, vector<16x256xbf16>,
    } else {
    }
    return
  }
  func.func @transform_0(%arg0: i32, %arg1: i32, %arg2: i32) -> (i32, i32) {
    %c0_i32 = arith.constant 0 : i32
    return %arg0, %arg2 : i32, i32
  }
  func.func @transform_1(%arg0: i32, %arg1: i32, %arg2: i32) -> (i32, i32) {
    %c0_i32 = arith.constant 0 : i32
    return %arg2, %arg1 : i32, i32
  }
  func.func @transform_2(%arg0: i32, %arg1: i32, %arg2: i32) -> (i32, i32) {
    %c0_i32 = arith.constant 0 : i32
    %c0_i32_0 = arith.constant 0 : i32
    return %c0_i32, %arg1 : i32, i32
  }
  func.func @transform_3(%arg0: i32, %arg1: i32, %arg2: i32) -> (i32, i32) {
    %c0_i32 = arith.constant 0 : i32
    %c0_i32_0 = arith.constant 0 : i32
    return %c0_i32, %arg1 : i32, i32
  }
  func.func @transform_4(%arg0: i32, %arg1: i32, %arg2: i32) -> (i32, i32) {
    %c0_i32 = arith.constant 0 : i32
    return %arg0, %arg1 : i32, i32
  }
}

module attributes {stable_mosaic.version = 11 : i64} {
  func.func @kernel(%arg0: i32, %arg1: i32, %arg2: i32, %arg3: memref<16x384xbf16, #tpu.memory_space<vmem>>, %arg4: memref<384x256xbf16, #tpu.memory_space<vmem>>, %arg5: memref<1x256xf32, #tpu.memory_space<vmem>>, %arg6: memref<1x256xf32, #tpu.memory_space<vmem>>, %arg7: memref<16x256xbf16, #tpu.memory_space<vmem>>, %arg8: memref<16x256xf32, #tpu.memory_space<vmem>>) attributes {dimension_semantics = [#tpu.dimension_semantics<parallel>, #tpu.dimension_semantics<parallel>, #tpu.dimension_semantics<arbitrary>], iteration_bounds = array<i64: 1, 1, 6>, scalar_prefetch = 0 : i64, scratch_operands = 1 : i64, tpu.core_type = #tpu.core_type<tc>, window_params = [{transform_indices = @transform_0, window_bounds = array<i64: 16, 384>}, {transform_indices = @transform_1, window_bounds = array<i64: 384, 256>}, {transform_indices = @transform_2, window_bounds = array<i64: 1, 256>}, {transform_indices = @transform_3, window_bounds = array<i64: 1, 256>}, {transform_indices = @transform_4, window_bounds = array<i64: 16, 256>}]} {
    %c0_i32 = arith.constant 0 : i32
    %0 = arith.cmpi eq, %arg2, %c0_i32 : i32
    %1 = arith.extui %0 : i1 to i32
    %c0_i32_0 = arith.constant 0 : i32
    %2 = arith.cmpi ne, %1, %c0_i32_0 : i32
    scf.if %2 {
      %cst_9 = arith.constant 0.000000e+00 : f32
      %12 = vector.broadcast %cst_9 : f32 to vector<16x256xf32>
      %c0_10 = arith.constant 0 : index
      %c0_11 = arith.constant 0 : index
      %13 = vector.load %arg8[%c0_10, %c0_11] : memref<16x256xf32, #tpu.memory_space<vmem>>, vector<16x256xf32>
      tpu.vector_store %arg8[%c0_10, %c0_11], %12 {strides = array<i32>} : memref<16x256xf32, #tpu.memory_space<vmem>>, vector<16x256xf32>,
    } else {
    }
    %c0 = arith.constant 0 : index
    %c0_1 = arith.constant 0 : index
    %3 = vector.load %arg8[%c0, %c0_1] : memref<16x256xf32, #tpu.memory_space<vmem>>, vector<16x256xf32>
    %c0_2 = arith.constant 0 : index
    %c0_3 = arith.constant 0 : index
    %4 = vector.load %arg3[%c0_2, %c0_3] : memref<16x384xbf16, #tpu.memory_space<vmem>>, vector<16x384xbf16>
    %c0_4 = arith.constant 0 : index
    %c0_5 = arith.constant 0 : index
    %5 = vector.load %arg4[%c0_4, %c0_5] : memref<384x256xbf16, #tpu.memory_space<vmem>>, vector<384x256xbf16>
    %cst = arith.constant dense<0.000000e+00> : vector<16x256xf32>
    %6 = tpu.matmul %4, %5, %cst {dimension_numbers = #tpu.dot_dimension_numbers<[1], [0], [0], [1], [0, 0, 1, 1], [], []>} : vector<16x384xbf16>, vector<384x256xbf16>, vector<16x256xf32> -> vector<16x256xf32>
    %7 = arith.addf %3, %6 : vector<16x256xf32>
    %c0_6 = arith.constant 0 : index
    %c0_7 = arith.constant 0 : index
    %8 = vector.load %arg8[%c0_6, %c0_7] : memref<16x256xf32, #tpu.memory_space<vmem>>, vector<16x256xf32>
    tpu.vector_store %arg8[%c0_6, %c0_7], %7 {strides = array<i32>} : memref<16x256xf32, #tpu.memory_space<vmem>>, vector<16x256xf32>,
    %c5_i32 = arith.constant 5 : i32
    %9 = arith.cmpi eq, %arg2, %c5_i32 : i32
    %10 = arith.extui %9 : i1 to i32
    %c0_i32_8 = arith.constant 0 : i32
    %11 = arith.cmpi ne, %10, %c0_i32_8 : i32
    scf.if %11 {
      %c0_9 = arith.constant 0 : index
      %c0_10 = arith.constant 0 : index
      %12 = vector.load %arg8[%c0_9, %c0_10] : memref<16x256xf32, #tpu.memory_space<vmem>>, vector<16x256xf32>
      %c0_11 = arith.constant 0 : index
      %c0_12 = arith.constant 0 : index
      %13 = vector.load %arg5[%c0_11, %c0_12] : memref<1x256xf32, #tpu.memory_space<vmem>>, vector<1x256xf32>
      %14 = vector.broadcast %13 : vector<1x256xf32> to vector<16x256xf32>
      %15 = arith.mulf %12, %14 : vector<16x256xf32>
      %c0_13 = arith.constant 0 : index
      %c0_14 = arith.constant 0 : index
      %16 = vector.load %arg6[%c0_13, %c0_14] : memref<1x256xf32, #tpu.memory_space<vmem>>, vector<1x256xf32>
      %17 = vector.broadcast %16 : vector<1x256xf32> to vector<16x256xf32>
      %18 = arith.addf %15, %17 : vector<16x256xf32>
      %cst_15 = arith.constant 0.000000e+00 : f32
      %19 = vector.broadcast %cst_15 : f32 to vector<16x256xf32>
      %20 = arith.maximumf %18, %19 : vector<16x256xf32>
      %21 = arith.truncf %20 : vector<16x256xf32> to vector<16x256xbf16>
      %c0_16 = arith.constant 0 : index
      %c0_17 = arith.constant 0 : index
      %22 = vector.load %arg7[%c0_16, %c0_17] : memref<16x256xbf16, #tpu.memory_space<vmem>>, vector<16x256xbf16>
      tpu.vector_store %arg7[%c0_16, %c0_17], %21 {strides = array<i32>} : memref<16x256xbf16, #tpu.memory_space<vmem>>, vector<16x256xbf16>,
    } else {
    }
    return
  }
  func.func @transform_0(%arg0: i32, %arg1: i32, %arg2: i32) -> (i32, i32) {
    %c0_i32 = arith.constant 0 : i32
    return %arg0, %arg2 : i32, i32
  }
  func.func @transform_1(%arg0: i32, %arg1: i32, %arg2: i32) -> (i32, i32) {
    %c0_i32 = arith.constant 0 : i32
    return %arg2, %arg1 : i32, i32
  }
  func.func @transform_2(%arg0: i32, %arg1: i32, %arg2: i32) -> (i32, i32) {
    %c0_i32 = arith.constant 0 : i32
    %c0_i32_0 = arith.constant 0 : i32
    return %c0_i32, %arg1 : i32, i32
  }
  func.func @transform_3(%arg0: i32, %arg1: i32, %arg2: i32) -> (i32, i32) {
    %c0_i32 = arith.constant 0 : i32
    %c0_i32_0 = arith.constant 0 : i32
    return %c0_i32, %arg1 : i32, i32
  }
  func.func @transform_4(%arg0: i32, %arg1: i32, %arg2: i32) -> (i32, i32) {
    %c0_i32 = arith.constant 0 : i32
    return %arg0, %arg1 : i32, i32
  }
}

module attributes {stable_mosaic.version = 11 : i64} {
  func.func @kernel(%arg0: i32, %arg1: i32, %arg2: i32, %arg3: memref<16x128xbf16, #tpu.memory_space<vmem>>, %arg4: memref<128x256xbf16, #tpu.memory_space<vmem>>, %arg5: memref<1x256xf32, #tpu.memory_space<vmem>>, %arg6: memref<1x256xf32, #tpu.memory_space<vmem>>, %arg7: memref<16x256xbf16, #tpu.memory_space<vmem>>, %arg8: memref<16x256xf32, #tpu.memory_space<vmem>>) attributes {dimension_semantics = [#tpu.dimension_semantics<parallel>, #tpu.dimension_semantics<parallel>, #tpu.dimension_semantics<arbitrary>], iteration_bounds = array<i64: 1, 1, 1>, scalar_prefetch = 0 : i64, scratch_operands = 1 : i64, tpu.core_type = #tpu.core_type<tc>, window_params = [{transform_indices = @transform_0, window_bounds = array<i64: 16, 128>}, {transform_indices = @transform_1, window_bounds = array<i64: 128, 256>}, {transform_indices = @transform_2, window_bounds = array<i64: 1, 256>}, {transform_indices = @transform_3, window_bounds = array<i64: 1, 256>}, {transform_indices = @transform_4, window_bounds = array<i64: 16, 256>}]} {
    %c0_i32 = arith.constant 0 : i32
    %0 = arith.cmpi eq, %arg2, %c0_i32 : i32
    %1 = arith.extui %0 : i1 to i32
    %c0_i32_0 = arith.constant 0 : i32
    %2 = arith.cmpi ne, %1, %c0_i32_0 : i32
    scf.if %2 {
      %cst_10 = arith.constant 0.000000e+00 : f32
      %12 = vector.broadcast %cst_10 : f32 to vector<16x256xf32>
      %c0_11 = arith.constant 0 : index
      %c0_12 = arith.constant 0 : index
      %13 = vector.load %arg8[%c0_11, %c0_12] : memref<16x256xf32, #tpu.memory_space<vmem>>, vector<16x256xf32>
      tpu.vector_store %arg8[%c0_11, %c0_12], %12 {strides = array<i32>} : memref<16x256xf32, #tpu.memory_space<vmem>>, vector<16x256xf32>,
    } else {
    }
    %c0 = arith.constant 0 : index
    %c0_1 = arith.constant 0 : index
    %3 = vector.load %arg8[%c0, %c0_1] : memref<16x256xf32, #tpu.memory_space<vmem>>, vector<16x256xf32>
    %c0_2 = arith.constant 0 : index
    %c0_3 = arith.constant 0 : index
    %4 = vector.load %arg3[%c0_2, %c0_3] : memref<16x128xbf16, #tpu.memory_space<vmem>>, vector<16x128xbf16>
    %c0_4 = arith.constant 0 : index
    %c0_5 = arith.constant 0 : index
    %5 = vector.load %arg4[%c0_4, %c0_5] : memref<128x256xbf16, #tpu.memory_space<vmem>>, vector<128x256xbf16>
    %cst = arith.constant dense<0.000000e+00> : vector<16x256xf32>
    %6 = tpu.matmul %4, %5, %cst {dimension_numbers = #tpu.dot_dimension_numbers<[1], [0], [0], [1], [0, 0, 1, 1], [], []>} : vector<16x128xbf16>, vector<128x256xbf16>, vector<16x256xf32> -> vector<16x256xf32>
    %7 = arith.addf %3, %6 : vector<16x256xf32>
    %c0_6 = arith.constant 0 : index
    %c0_7 = arith.constant 0 : index
    %8 = vector.load %arg8[%c0_6, %c0_7] : memref<16x256xf32, #tpu.memory_space<vmem>>, vector<16x256xf32>
    tpu.vector_store %arg8[%c0_6, %c0_7], %7 {strides = array<i32>} : memref<16x256xf32, #tpu.memory_space<vmem>>, vector<16x256xf32>,
    %c0_i32_8 = arith.constant 0 : i32
    %9 = arith.cmpi eq, %arg2, %c0_i32_8 : i32
    %10 = arith.extui %9 : i1 to i32
    %c0_i32_9 = arith.constant 0 : i32
    %11 = arith.cmpi ne, %10, %c0_i32_9 : i32
    scf.if %11 {
      %c0_10 = arith.constant 0 : index
      %c0_11 = arith.constant 0 : index
      %12 = vector.load %arg8[%c0_10, %c0_11] : memref<16x256xf32, #tpu.memory_space<vmem>>, vector<16x256xf32>
      %c0_12 = arith.constant 0 : index
      %c0_13 = arith.constant 0 : index
      %13 = vector.load %arg5[%c0_12, %c0_13] : memref<1x256xf32, #tpu.memory_space<vmem>>, vector<1x256xf32>
      %14 = vector.broadcast %13 : vector<1x256xf32> to vector<16x256xf32>
      %15 = arith.mulf %12, %14 : vector<16x256xf32>
      %c0_14 = arith.constant 0 : index
      %c0_15 = arith.constant 0 : index
      %16 = vector.load %arg6[%c0_14, %c0_15] : memref<1x256xf32, #tpu.memory_space<vmem>>, vector<1x256xf32>
      %17 = vector.broadcast %16 : vector<1x256xf32> to vector<16x256xf32>
      %18 = arith.addf %15, %17 : vector<16x256xf32>
      %19 = arith.truncf %18 : vector<16x256xf32> to vector<16x256xbf16>
      %c0_16 = arith.constant 0 : index
      %c0_17 = arith.constant 0 : index
      %20 = vector.load %arg7[%c0_16, %c0_17] : memref<16x256xbf16, #tpu.memory_space<vmem>>, vector<16x256xbf16>
      tpu.vector_store %arg7[%c0_16, %c0_17], %19 {strides = array<i32>} : memref<16x256xbf16, #tpu.memory_space<vmem>>, vector<16x256xbf16>,
    } else {
    }
    return
  }
  func.func @transform_0(%arg0: i32, %arg1: i32, %arg2: i32) -> (i32, i32) {
    %c0_i32 = arith.constant 0 : i32
    return %arg0, %arg2 : i32, i32
  }
  func.func @transform_1(%arg0: i32, %arg1: i32, %arg2: i32) -> (i32, i32) {
    %c0_i32 = arith.constant 0 : i32
    return %arg2, %arg1 : i32, i32
  }
  func.func @transform_2(%arg0: i32, %arg1: i32, %arg2: i32) -> (i32, i32) {
    %c0_i32 = arith.constant 0 : i32
    %c0_i32_0 = arith.constant 0 : i32
    return %c0_i32, %arg1 : i32, i32
  }
  func.func @transform_3(%arg0: i32, %arg1: i32, %arg2: i32) -> (i32, i32) {
    %c0_i32 = arith.constant 0 : i32
    %c0_i32_0 = arith.constant 0 : i32
    return %c0_i32, %arg1 : i32, i32
  }
  func.func @transform_4(%arg0: i32, %arg1: i32, %arg2: i32) -> (i32, i32) {
    %c0_i32 = arith.constant 0 : i32
    return %arg0, %arg1 : i32, i32
  }
}

module attributes {stable_mosaic.version = 11 : i64} {
  func.func @kernel(%arg0: i32, %arg1: i32, %arg2: i32, %arg3: memref<16x384xbf16, #tpu.memory_space<vmem>>, %arg4: memref<384x256xbf16, #tpu.memory_space<vmem>>, %arg5: memref<1x256xf32, #tpu.memory_space<vmem>>, %arg6: memref<1x256xf32, #tpu.memory_space<vmem>>, %arg7: memref<16x256xbf16, #tpu.memory_space<vmem>>, %arg8: memref<16x256xbf16, #tpu.memory_space<vmem>>, %arg9: memref<16x256xf32, #tpu.memory_space<vmem>>) attributes {dimension_semantics = [#tpu.dimension_semantics<parallel>, #tpu.dimension_semantics<parallel>, #tpu.dimension_semantics<arbitrary>], iteration_bounds = array<i64: 1, 1, 6>, scalar_prefetch = 0 : i64, scratch_operands = 1 : i64, tpu.core_type = #tpu.core_type<tc>, window_params = [{transform_indices = @transform_0, window_bounds = array<i64: 16, 384>}, {transform_indices = @transform_1, window_bounds = array<i64: 384, 256>}, {transform_indices = @transform_2, window_bounds = array<i64: 1, 256>}, {transform_indices = @transform_3, window_bounds = array<i64: 1, 256>}, {transform_indices = @transform_4, window_bounds = array<i64: 16, 256>}, {transform_indices = @transform_5, window_bounds = array<i64: 16, 256>}]} {
    %c0_i32 = arith.constant 0 : i32
    %0 = arith.cmpi eq, %arg2, %c0_i32 : i32
    %1 = arith.extui %0 : i1 to i32
    %c0_i32_0 = arith.constant 0 : i32
    %2 = arith.cmpi ne, %1, %c0_i32_0 : i32
    scf.if %2 {
      %cst_9 = arith.constant 0.000000e+00 : f32
      %12 = vector.broadcast %cst_9 : f32 to vector<16x256xf32>
      %c0_10 = arith.constant 0 : index
      %c0_11 = arith.constant 0 : index
      %13 = vector.load %arg9[%c0_10, %c0_11] : memref<16x256xf32, #tpu.memory_space<vmem>>, vector<16x256xf32>
      tpu.vector_store %arg9[%c0_10, %c0_11], %12 {strides = array<i32>} : memref<16x256xf32, #tpu.memory_space<vmem>>, vector<16x256xf32>,
    } else {
    }
    %c0 = arith.constant 0 : index
    %c0_1 = arith.constant 0 : index
    %3 = vector.load %arg9[%c0, %c0_1] : memref<16x256xf32, #tpu.memory_space<vmem>>, vector<16x256xf32>
    %c0_2 = arith.constant 0 : index
    %c0_3 = arith.constant 0 : index
    %4 = vector.load %arg3[%c0_2, %c0_3] : memref<16x384xbf16, #tpu.memory_space<vmem>>, vector<16x384xbf16>
    %c0_4 = arith.constant 0 : index
    %c0_5 = arith.constant 0 : index
    %5 = vector.load %arg4[%c0_4, %c0_5] : memref<384x256xbf16, #tpu.memory_space<vmem>>, vector<384x256xbf16>
    %cst = arith.constant dense<0.000000e+00> : vector<16x256xf32>
    %6 = tpu.matmul %4, %5, %cst {dimension_numbers = #tpu.dot_dimension_numbers<[1], [0], [0], [1], [0, 0, 1, 1], [], []>} : vector<16x384xbf16>, vector<384x256xbf16>, vector<16x256xf32> -> vector<16x256xf32>
    %7 = arith.addf %3, %6 : vector<16x256xf32>
    %c0_6 = arith.constant 0 : index
    %c0_7 = arith.constant 0 : index
    %8 = vector.load %arg9[%c0_6, %c0_7] : memref<16x256xf32, #tpu.memory_space<vmem>>, vector<16x256xf32>
    tpu.vector_store %arg9[%c0_6, %c0_7], %7 {strides = array<i32>} : memref<16x256xf32, #tpu.memory_space<vmem>>, vector<16x256xf32>,
    %c5_i32 = arith.constant 5 : i32
    %9 = arith.cmpi eq, %arg2, %c5_i32 : i32
    %10 = arith.extui %9 : i1 to i32
    %c0_i32_8 = arith.constant 0 : i32
    %11 = arith.cmpi ne, %10, %c0_i32_8 : i32
    scf.if %11 {
      %c0_9 = arith.constant 0 : index
      %c0_10 = arith.constant 0 : index
      %12 = vector.load %arg9[%c0_9, %c0_10] : memref<16x256xf32, #tpu.memory_space<vmem>>, vector<16x256xf32>
      %c0_11 = arith.constant 0 : index
      %c0_12 = arith.constant 0 : index
      %13 = vector.load %arg5[%c0_11, %c0_12] : memref<1x256xf32, #tpu.memory_space<vmem>>, vector<1x256xf32>
      %14 = vector.broadcast %13 : vector<1x256xf32> to vector<16x256xf32>
      %15 = arith.mulf %12, %14 : vector<16x256xf32>
      %c0_13 = arith.constant 0 : index
      %c0_14 = arith.constant 0 : index
      %16 = vector.load %arg6[%c0_13, %c0_14] : memref<1x256xf32, #tpu.memory_space<vmem>>, vector<1x256xf32>
      %17 = vector.broadcast %16 : vector<1x256xf32> to vector<16x256xf32>
      %18 = arith.addf %15, %17 : vector<16x256xf32>
      %c0_15 = arith.constant 0 : index
      %c0_16 = arith.constant 0 : index
      %19 = vector.load %arg7[%c0_15, %c0_16] : memref<16x256xbf16, #tpu.memory_space<vmem>>, vector<16x256xbf16>
      %20 = arith.extf %19 : vector<16x256xbf16> to vector<16x256xf32>
      %21 = arith.addf %18, %20 : vector<16x256xf32>
      %cst_17 = arith.constant 0.000000e+00 : f32
      %22 = vector.broadcast %cst_17 : f32 to vector<16x256xf32>
      %23 = arith.maximumf %21, %22 : vector<16x256xf32>
      %24 = arith.truncf %23 : vector<16x256xf32> to vector<16x256xbf16>
      %c0_18 = arith.constant 0 : index
      %c0_19 = arith.constant 0 : index
      %25 = vector.load %arg8[%c0_18, %c0_19] : memref<16x256xbf16, #tpu.memory_space<vmem>>, vector<16x256xbf16>
      tpu.vector_store %arg8[%c0_18, %c0_19], %24 {strides = array<i32>} : memref<16x256xbf16, #tpu.memory_space<vmem>>, vector<16x256xbf16>,
    } else {
    }
    return
  }
  func.func @transform_0(%arg0: i32, %arg1: i32, %arg2: i32) -> (i32, i32) {
    %c0_i32 = arith.constant 0 : i32
    return %arg0, %arg2 : i32, i32
  }
  func.func @transform_1(%arg0: i32, %arg1: i32, %arg2: i32) -> (i32, i32) {
    %c0_i32 = arith.constant 0 : i32
    return %arg2, %arg1 : i32, i32
  }
  func.func @transform_2(%arg0: i32, %arg1: i32, %arg2: i32) -> (i32, i32) {
    %c0_i32 = arith.constant 0 : i32
    %c0_i32_0 = arith.constant 0 : i32
    return %c0_i32, %arg1 : i32, i32
  }
  func.func @transform_3(%arg0: i32, %arg1: i32, %arg2: i32) -> (i32, i32) {
    %c0_i32 = arith.constant 0 : i32
    %c0_i32_0 = arith.constant 0 : i32
    return %c0_i32, %arg1 : i32, i32
  }
  func.func @transform_4(%arg0: i32, %arg1: i32, %arg2: i32) -> (i32, i32) {
    %c0_i32 = arith.constant 0 : i32
    return %arg0, %arg1 : i32, i32
  }
  func.func @transform_5(%arg0: i32, %arg1: i32, %arg2: i32) -> (i32, i32) {
    %c0_i32 = arith.constant 0 : i32
    return %arg0, %arg1 : i32, i32
  }
}

module attributes {stable_mosaic.version = 11 : i64} {
  func.func @kernel(%arg0: i32, %arg1: i32, %arg2: i32, %arg3: memref<16x384xbf16, #tpu.memory_space<vmem>>, %arg4: memref<384x512xbf16, #tpu.memory_space<vmem>>, %arg5: memref<1x512xf32, #tpu.memory_space<vmem>>, %arg6: memref<1x512xf32, #tpu.memory_space<vmem>>, %arg7: memref<16x512xbf16, #tpu.memory_space<vmem>>, %arg8: memref<16x512xf32, #tpu.memory_space<vmem>>) attributes {dimension_semantics = [#tpu.dimension_semantics<parallel>, #tpu.dimension_semantics<parallel>, #tpu.dimension_semantics<arbitrary>], iteration_bounds = array<i64: 1, 1, 6>, scalar_prefetch = 0 : i64, scratch_operands = 1 : i64, tpu.core_type = #tpu.core_type<tc>, window_params = [{transform_indices = @transform_0, window_bounds = array<i64: 16, 384>}, {transform_indices = @transform_1, window_bounds = array<i64: 384, 512>}, {transform_indices = @transform_2, window_bounds = array<i64: 1, 512>}, {transform_indices = @transform_3, window_bounds = array<i64: 1, 512>}, {transform_indices = @transform_4, window_bounds = array<i64: 16, 512>}]} {
    %c0_i32 = arith.constant 0 : i32
    %0 = arith.cmpi eq, %arg2, %c0_i32 : i32
    %1 = arith.extui %0 : i1 to i32
    %c0_i32_0 = arith.constant 0 : i32
    %2 = arith.cmpi ne, %1, %c0_i32_0 : i32
    scf.if %2 {
      %cst_9 = arith.constant 0.000000e+00 : f32
      %12 = vector.broadcast %cst_9 : f32 to vector<16x512xf32>
      %c0_10 = arith.constant 0 : index
      %c0_11 = arith.constant 0 : index
      %13 = vector.load %arg8[%c0_10, %c0_11] : memref<16x512xf32, #tpu.memory_space<vmem>>, vector<16x512xf32>
      tpu.vector_store %arg8[%c0_10, %c0_11], %12 {strides = array<i32>} : memref<16x512xf32, #tpu.memory_space<vmem>>, vector<16x512xf32>,
    } else {
    }
    %c0 = arith.constant 0 : index
    %c0_1 = arith.constant 0 : index
    %3 = vector.load %arg8[%c0, %c0_1] : memref<16x512xf32, #tpu.memory_space<vmem>>, vector<16x512xf32>
    %c0_2 = arith.constant 0 : index
    %c0_3 = arith.constant 0 : index
    %4 = vector.load %arg3[%c0_2, %c0_3] : memref<16x384xbf16, #tpu.memory_space<vmem>>, vector<16x384xbf16>
    %c0_4 = arith.constant 0 : index
    %c0_5 = arith.constant 0 : index
    %5 = vector.load %arg4[%c0_4, %c0_5] : memref<384x512xbf16, #tpu.memory_space<vmem>>, vector<384x512xbf16>
    %cst = arith.constant dense<0.000000e+00> : vector<16x512xf32>
    %6 = tpu.matmul %4, %5, %cst {dimension_numbers = #tpu.dot_dimension_numbers<[1], [0], [0], [1], [0, 0, 1, 1], [], []>} : vector<16x384xbf16>, vector<384x512xbf16>, vector<16x512xf32> -> vector<16x512xf32>
    %7 = arith.addf %3, %6 : vector<16x512xf32>
    %c0_6 = arith.constant 0 : index
    %c0_7 = arith.constant 0 : index
    %8 = vector.load %arg8[%c0_6, %c0_7] : memref<16x512xf32, #tpu.memory_space<vmem>>, vector<16x512xf32>
    tpu.vector_store %arg8[%c0_6, %c0_7], %7 {strides = array<i32>} : memref<16x512xf32, #tpu.memory_space<vmem>>, vector<16x512xf32>,
    %c5_i32 = arith.constant 5 : i32
    %9 = arith.cmpi eq, %arg2, %c5_i32 : i32
    %10 = arith.extui %9 : i1 to i32
    %c0_i32_8 = arith.constant 0 : i32
    %11 = arith.cmpi ne, %10, %c0_i32_8 : i32
    scf.if %11 {
      %c0_9 = arith.constant 0 : index
      %c0_10 = arith.constant 0 : index
      %12 = vector.load %arg8[%c0_9, %c0_10] : memref<16x512xf32, #tpu.memory_space<vmem>>, vector<16x512xf32>
      %c0_11 = arith.constant 0 : index
      %c0_12 = arith.constant 0 : index
      %13 = vector.load %arg5[%c0_11, %c0_12] : memref<1x512xf32, #tpu.memory_space<vmem>>, vector<1x512xf32>
      %14 = vector.broadcast %13 : vector<1x512xf32> to vector<16x512xf32>
      %15 = arith.mulf %12, %14 : vector<16x512xf32>
      %c0_13 = arith.constant 0 : index
      %c0_14 = arith.constant 0 : index
      %16 = vector.load %arg6[%c0_13, %c0_14] : memref<1x512xf32, #tpu.memory_space<vmem>>, vector<1x512xf32>
      %17 = vector.broadcast %16 : vector<1x512xf32> to vector<16x512xf32>
      %18 = arith.addf %15, %17 : vector<16x512xf32>
      %cst_15 = arith.constant 0.000000e+00 : f32
      %19 = vector.broadcast %cst_15 : f32 to vector<16x512xf32>
      %20 = arith.maximumf %18, %19 : vector<16x512xf32>
      %21 = arith.truncf %20 : vector<16x512xf32> to vector<16x512xbf16>
      %c0_16 = arith.constant 0 : index
      %c0_17 = arith.constant 0 : index
      %22 = vector.load %arg7[%c0_16, %c0_17] : memref<16x512xbf16, #tpu.memory_space<vmem>>, vector<16x512xbf16>
      tpu.vector_store %arg7[%c0_16, %c0_17], %21 {strides = array<i32>} : memref<16x512xbf16, #tpu.memory_space<vmem>>, vector<16x512xbf16>,
    } else {
    }
    return
  }
  func.func @transform_0(%arg0: i32, %arg1: i32, %arg2: i32) -> (i32, i32) {
    %c0_i32 = arith.constant 0 : i32
    return %arg0, %arg2 : i32, i32
  }
  func.func @transform_1(%arg0: i32, %arg1: i32, %arg2: i32) -> (i32, i32) {
    %c0_i32 = arith.constant 0 : i32
    return %arg2, %arg1 : i32, i32
  }
  func.func @transform_2(%arg0: i32, %arg1: i32, %arg2: i32) -> (i32, i32) {
    %c0_i32 = arith.constant 0 : i32
    %c0_i32_0 = arith.constant 0 : i32
    return %c0_i32, %arg1 : i32, i32
  }
  func.func @transform_3(%arg0: i32, %arg1: i32, %arg2: i32) -> (i32, i32) {
    %c0_i32 = arith.constant 0 : i32
    %c0_i32_0 = arith.constant 0 : i32
    return %c0_i32, %arg1 : i32, i32
  }
  func.func @transform_4(%arg0: i32, %arg1: i32, %arg2: i32) -> (i32, i32) {
    %c0_i32 = arith.constant 0 : i32
    return %arg0, %arg1 : i32, i32
  }
}

module attributes {stable_mosaic.version = 11 : i64} {
  func.func @kernel(%arg0: i32, %arg1: i32, %arg2: i32, %arg3: memref<16x256xbf16, #tpu.memory_space<vmem>>, %arg4: memref<256x512xbf16, #tpu.memory_space<vmem>>, %arg5: memref<1x512xf32, #tpu.memory_space<vmem>>, %arg6: memref<1x512xf32, #tpu.memory_space<vmem>>, %arg7: memref<16x512xbf16, #tpu.memory_space<vmem>>, %arg8: memref<16x512xf32, #tpu.memory_space<vmem>>) attributes {dimension_semantics = [#tpu.dimension_semantics<parallel>, #tpu.dimension_semantics<parallel>, #tpu.dimension_semantics<arbitrary>], iteration_bounds = array<i64: 1, 1, 1>, scalar_prefetch = 0 : i64, scratch_operands = 1 : i64, tpu.core_type = #tpu.core_type<tc>, window_params = [{transform_indices = @transform_0, window_bounds = array<i64: 16, 256>}, {transform_indices = @transform_1, window_bounds = array<i64: 256, 512>}, {transform_indices = @transform_2, window_bounds = array<i64: 1, 512>}, {transform_indices = @transform_3, window_bounds = array<i64: 1, 512>}, {transform_indices = @transform_4, window_bounds = array<i64: 16, 512>}]} {
    %c0_i32 = arith.constant 0 : i32
    %0 = arith.cmpi eq, %arg2, %c0_i32 : i32
    %1 = arith.extui %0 : i1 to i32
    %c0_i32_0 = arith.constant 0 : i32
    %2 = arith.cmpi ne, %1, %c0_i32_0 : i32
    scf.if %2 {
      %cst_10 = arith.constant 0.000000e+00 : f32
      %12 = vector.broadcast %cst_10 : f32 to vector<16x512xf32>
      %c0_11 = arith.constant 0 : index
      %c0_12 = arith.constant 0 : index
      %13 = vector.load %arg8[%c0_11, %c0_12] : memref<16x512xf32, #tpu.memory_space<vmem>>, vector<16x512xf32>
      tpu.vector_store %arg8[%c0_11, %c0_12], %12 {strides = array<i32>} : memref<16x512xf32, #tpu.memory_space<vmem>>, vector<16x512xf32>,
    } else {
    }
    %c0 = arith.constant 0 : index
    %c0_1 = arith.constant 0 : index
    %3 = vector.load %arg8[%c0, %c0_1] : memref<16x512xf32, #tpu.memory_space<vmem>>, vector<16x512xf32>
    %c0_2 = arith.constant 0 : index
    %c0_3 = arith.constant 0 : index
    %4 = vector.load %arg3[%c0_2, %c0_3] : memref<16x256xbf16, #tpu.memory_space<vmem>>, vector<16x256xbf16>
    %c0_4 = arith.constant 0 : index
    %c0_5 = arith.constant 0 : index
    %5 = vector.load %arg4[%c0_4, %c0_5] : memref<256x512xbf16, #tpu.memory_space<vmem>>, vector<256x512xbf16>
    %cst = arith.constant dense<0.000000e+00> : vector<16x512xf32>
    %6 = tpu.matmul %4, %5, %cst {dimension_numbers = #tpu.dot_dimension_numbers<[1], [0], [0], [1], [0, 0, 1, 1], [], []>} : vector<16x256xbf16>, vector<256x512xbf16>, vector<16x512xf32> -> vector<16x512xf32>
    %7 = arith.addf %3, %6 : vector<16x512xf32>
    %c0_6 = arith.constant 0 : index
    %c0_7 = arith.constant 0 : index
    %8 = vector.load %arg8[%c0_6, %c0_7] : memref<16x512xf32, #tpu.memory_space<vmem>>, vector<16x512xf32>
    tpu.vector_store %arg8[%c0_6, %c0_7], %7 {strides = array<i32>} : memref<16x512xf32, #tpu.memory_space<vmem>>, vector<16x512xf32>,
    %c0_i32_8 = arith.constant 0 : i32
    %9 = arith.cmpi eq, %arg2, %c0_i32_8 : i32
    %10 = arith.extui %9 : i1 to i32
    %c0_i32_9 = arith.constant 0 : i32
    %11 = arith.cmpi ne, %10, %c0_i32_9 : i32
    scf.if %11 {
      %c0_10 = arith.constant 0 : index
      %c0_11 = arith.constant 0 : index
      %12 = vector.load %arg8[%c0_10, %c0_11] : memref<16x512xf32, #tpu.memory_space<vmem>>, vector<16x512xf32>
      %c0_12 = arith.constant 0 : index
      %c0_13 = arith.constant 0 : index
      %13 = vector.load %arg5[%c0_12, %c0_13] : memref<1x512xf32, #tpu.memory_space<vmem>>, vector<1x512xf32>
      %14 = vector.broadcast %13 : vector<1x512xf32> to vector<16x512xf32>
      %15 = arith.mulf %12, %14 : vector<16x512xf32>
      %c0_14 = arith.constant 0 : index
      %c0_15 = arith.constant 0 : index
      %16 = vector.load %arg6[%c0_14, %c0_15] : memref<1x512xf32, #tpu.memory_space<vmem>>, vector<1x512xf32>
      %17 = vector.broadcast %16 : vector<1x512xf32> to vector<16x512xf32>
      %18 = arith.addf %15, %17 : vector<16x512xf32>
      %19 = arith.truncf %18 : vector<16x512xf32> to vector<16x512xbf16>
      %c0_16 = arith.constant 0 : index
      %c0_17 = arith.constant 0 : index
      %20 = vector.load %arg7[%c0_16, %c0_17] : memref<16x512xbf16, #tpu.memory_space<vmem>>, vector<16x512xbf16>
      tpu.vector_store %arg7[%c0_16, %c0_17], %19 {strides = array<i32>} : memref<16x512xbf16, #tpu.memory_space<vmem>>, vector<16x512xbf16>,
    } else {
    }
    return
  }
  func.func @transform_0(%arg0: i32, %arg1: i32, %arg2: i32) -> (i32, i32) {
    %c0_i32 = arith.constant 0 : i32
    return %arg0, %arg2 : i32, i32
  }
  func.func @transform_1(%arg0: i32, %arg1: i32, %arg2: i32) -> (i32, i32) {
    %c0_i32 = arith.constant 0 : i32
    return %arg2, %arg1 : i32, i32
  }
  func.func @transform_2(%arg0: i32, %arg1: i32, %arg2: i32) -> (i32, i32) {
    %c0_i32 = arith.constant 0 : i32
    %c0_i32_0 = arith.constant 0 : i32
    return %c0_i32, %arg1 : i32, i32
  }
  func.func @transform_3(%arg0: i32, %arg1: i32, %arg2: i32) -> (i32, i32) {
    %c0_i32 = arith.constant 0 : i32
    %c0_i32_0 = arith.constant 0 : i32
    return %c0_i32, %arg1 : i32, i32
  }
  func.func @transform_4(%arg0: i32, %arg1: i32, %arg2: i32) -> (i32, i32) {
    %c0_i32 = arith.constant 0 : i32
    return %arg0, %arg1 : i32, i32
  }
}

module attributes {stable_mosaic.version = 11 : i64} {
  func.func @kernel(%arg0: i32, %arg1: i32, %arg2: i32, %arg3: memref<16x512xbf16, #tpu.memory_space<vmem>>, %arg4: memref<512x512xbf16, #tpu.memory_space<vmem>>, %arg5: memref<1x512xf32, #tpu.memory_space<vmem>>, %arg6: memref<1x512xf32, #tpu.memory_space<vmem>>, %arg7: memref<16x512xbf16, #tpu.memory_space<vmem>>, %arg8: memref<16x512xbf16, #tpu.memory_space<vmem>>, %arg9: memref<16x512xf32, #tpu.memory_space<vmem>>) attributes {dimension_semantics = [#tpu.dimension_semantics<parallel>, #tpu.dimension_semantics<parallel>, #tpu.dimension_semantics<arbitrary>], iteration_bounds = array<i64: 1, 1, 9>, scalar_prefetch = 0 : i64, scratch_operands = 1 : i64, tpu.core_type = #tpu.core_type<tc>, window_params = [{transform_indices = @transform_0, window_bounds = array<i64: 16, 512>}, {transform_indices = @transform_1, window_bounds = array<i64: 512, 512>}, {transform_indices = @transform_2, window_bounds = array<i64: 1, 512>}, {transform_indices = @transform_3, window_bounds = array<i64: 1, 512>}, {transform_indices = @transform_4, window_bounds = array<i64: 16, 512>}, {transform_indices = @transform_5, window_bounds = array<i64: 16, 512>}]} {
    %c0_i32 = arith.constant 0 : i32
    %0 = arith.cmpi eq, %arg2, %c0_i32 : i32
    %1 = arith.extui %0 : i1 to i32
    %c0_i32_0 = arith.constant 0 : i32
    %2 = arith.cmpi ne, %1, %c0_i32_0 : i32
    scf.if %2 {
      %cst_9 = arith.constant 0.000000e+00 : f32
      %12 = vector.broadcast %cst_9 : f32 to vector<16x512xf32>
      %c0_10 = arith.constant 0 : index
      %c0_11 = arith.constant 0 : index
      %13 = vector.load %arg9[%c0_10, %c0_11] : memref<16x512xf32, #tpu.memory_space<vmem>>, vector<16x512xf32>
      tpu.vector_store %arg9[%c0_10, %c0_11], %12 {strides = array<i32>} : memref<16x512xf32, #tpu.memory_space<vmem>>, vector<16x512xf32>,
    } else {
    }
    %c0 = arith.constant 0 : index
    %c0_1 = arith.constant 0 : index
    %3 = vector.load %arg9[%c0, %c0_1] : memref<16x512xf32, #tpu.memory_space<vmem>>, vector<16x512xf32>
    %c0_2 = arith.constant 0 : index
    %c0_3 = arith.constant 0 : index
    %4 = vector.load %arg3[%c0_2, %c0_3] : memref<16x512xbf16, #tpu.memory_space<vmem>>, vector<16x512xbf16>
    %c0_4 = arith.constant 0 : index
    %c0_5 = arith.constant 0 : index
    %5 = vector.load %arg4[%c0_4, %c0_5] : memref<512x512xbf16, #tpu.memory_space<vmem>>, vector<512x512xbf16>
    %cst = arith.constant dense<0.000000e+00> : vector<16x512xf32>
    %6 = tpu.matmul %4, %5, %cst {dimension_numbers = #tpu.dot_dimension_numbers<[1], [0], [0], [1], [0, 0, 1, 1], [], []>} : vector<16x512xbf16>, vector<512x512xbf16>, vector<16x512xf32> -> vector<16x512xf32>
    %7 = arith.addf %3, %6 : vector<16x512xf32>
    %c0_6 = arith.constant 0 : index
    %c0_7 = arith.constant 0 : index
    %8 = vector.load %arg9[%c0_6, %c0_7] : memref<16x512xf32, #tpu.memory_space<vmem>>, vector<16x512xf32>
    tpu.vector_store %arg9[%c0_6, %c0_7], %7 {strides = array<i32>} : memref<16x512xf32, #tpu.memory_space<vmem>>, vector<16x512xf32>,
    %c8_i32 = arith.constant 8 : i32
    %9 = arith.cmpi eq, %arg2, %c8_i32 : i32
    %10 = arith.extui %9 : i1 to i32
    %c0_i32_8 = arith.constant 0 : i32
    %11 = arith.cmpi ne, %10, %c0_i32_8 : i32
    scf.if %11 {
      %c0_9 = arith.constant 0 : index
      %c0_10 = arith.constant 0 : index
      %12 = vector.load %arg9[%c0_9, %c0_10] : memref<16x512xf32, #tpu.memory_space<vmem>>, vector<16x512xf32>
      %c0_11 = arith.constant 0 : index
      %c0_12 = arith.constant 0 : index
      %13 = vector.load %arg5[%c0_11, %c0_12] : memref<1x512xf32, #tpu.memory_space<vmem>>, vector<1x512xf32>
      %14 = vector.broadcast %13 : vector<1x512xf32> to vector<16x512xf32>
      %15 = arith.mulf %12, %14 : vector<16x512xf32>
      %c0_13 = arith.constant 0 : index
      %c0_14 = arith.constant 0 : index
      %16 = vector.load %arg6[%c0_13, %c0_14] : memref<1x512xf32, #tpu.memory_space<vmem>>, vector<1x512xf32>
      %17 = vector.broadcast %16 : vector<1x512xf32> to vector<16x512xf32>
      %18 = arith.addf %15, %17 : vector<16x512xf32>
      %c0_15 = arith.constant 0 : index
      %c0_16 = arith.constant 0 : index
      %19 = vector.load %arg7[%c0_15, %c0_16] : memref<16x512xbf16, #tpu.memory_space<vmem>>, vector<16x512xbf16>
      %20 = arith.extf %19 : vector<16x512xbf16> to vector<16x512xf32>
      %21 = arith.addf %18, %20 : vector<16x512xf32>
      %cst_17 = arith.constant 0.000000e+00 : f32
      %22 = vector.broadcast %cst_17 : f32 to vector<16x512xf32>
      %23 = arith.maximumf %21, %22 : vector<16x512xf32>
      %24 = arith.truncf %23 : vector<16x512xf32> to vector<16x512xbf16>
      %c0_18 = arith.constant 0 : index
      %c0_19 = arith.constant 0 : index
      %25 = vector.load %arg8[%c0_18, %c0_19] : memref<16x512xbf16, #tpu.memory_space<vmem>>, vector<16x512xbf16>
      tpu.vector_store %arg8[%c0_18, %c0_19], %24 {strides = array<i32>} : memref<16x512xbf16, #tpu.memory_space<vmem>>, vector<16x512xbf16>,
    } else {
    }
    return
  }
  func.func @transform_0(%arg0: i32, %arg1: i32, %arg2: i32) -> (i32, i32) {
    %c0_i32 = arith.constant 0 : i32
    return %arg0, %arg2 : i32, i32
  }
  func.func @transform_1(%arg0: i32, %arg1: i32, %arg2: i32) -> (i32, i32) {
    %c0_i32 = arith.constant 0 : i32
    return %arg2, %arg1 : i32, i32
  }
  func.func @transform_2(%arg0: i32, %arg1: i32, %arg2: i32) -> (i32, i32) {
    %c0_i32 = arith.constant 0 : i32
    %c0_i32_0 = arith.constant 0 : i32
    return %c0_i32, %arg1 : i32, i32
  }
  func.func @transform_3(%arg0: i32, %arg1: i32, %arg2: i32) -> (i32, i32) {
    %c0_i32 = arith.constant 0 : i32
    %c0_i32_0 = arith.constant 0 : i32
    return %c0_i32, %arg1 : i32, i32
  }
  func.func @transform_4(%arg0: i32, %arg1: i32, %arg2: i32) -> (i32, i32) {
    %c0_i32 = arith.constant 0 : i32
    return %arg0, %arg1 : i32, i32
  }
  func.func @transform_5(%arg0: i32, %arg1: i32, %arg2: i32) -> (i32, i32) {
    %c0_i32 = arith.constant 0 : i32
    return %arg0, %arg1 : i32, i32
  }
}

module attributes {stable_mosaic.version = 11 : i64} {
  func.func @kernel(%arg0: i32, %arg1: i32, %arg2: i32, %arg3: memref<16x512xbf16, #tpu.memory_space<vmem>>, %arg4: memref<512x512xbf16, #tpu.memory_space<vmem>>, %arg5: memref<1x512xf32, #tpu.memory_space<vmem>>, %arg6: memref<1x512xf32, #tpu.memory_space<vmem>>, %arg7: memref<16x512xbf16, #tpu.memory_space<vmem>>, %arg8: memref<16x512xf32, #tpu.memory_space<vmem>>) attributes {dimension_semantics = [#tpu.dimension_semantics<parallel>, #tpu.dimension_semantics<parallel>, #tpu.dimension_semantics<arbitrary>], iteration_bounds = array<i64: 1, 1, 9>, scalar_prefetch = 0 : i64, scratch_operands = 1 : i64, tpu.core_type = #tpu.core_type<tc>, window_params = [{transform_indices = @transform_0, window_bounds = array<i64: 16, 512>}, {transform_indices = @transform_1, window_bounds = array<i64: 512, 512>}, {transform_indices = @transform_2, window_bounds = array<i64: 1, 512>}, {transform_indices = @transform_3, window_bounds = array<i64: 1, 512>}, {transform_indices = @transform_4, window_bounds = array<i64: 16, 512>}]} {
    %c0_i32 = arith.constant 0 : i32
    %0 = arith.cmpi eq, %arg2, %c0_i32 : i32
    %1 = arith.extui %0 : i1 to i32
    %c0_i32_0 = arith.constant 0 : i32
    %2 = arith.cmpi ne, %1, %c0_i32_0 : i32
    scf.if %2 {
      %cst_9 = arith.constant 0.000000e+00 : f32
      %12 = vector.broadcast %cst_9 : f32 to vector<16x512xf32>
      %c0_10 = arith.constant 0 : index
      %c0_11 = arith.constant 0 : index
      %13 = vector.load %arg8[%c0_10, %c0_11] : memref<16x512xf32, #tpu.memory_space<vmem>>, vector<16x512xf32>
      tpu.vector_store %arg8[%c0_10, %c0_11], %12 {strides = array<i32>} : memref<16x512xf32, #tpu.memory_space<vmem>>, vector<16x512xf32>,
    } else {
    }
    %c0 = arith.constant 0 : index
    %c0_1 = arith.constant 0 : index
    %3 = vector.load %arg8[%c0, %c0_1] : memref<16x512xf32, #tpu.memory_space<vmem>>, vector<16x512xf32>
    %c0_2 = arith.constant 0 : index
    %c0_3 = arith.constant 0 : index
    %4 = vector.load %arg3[%c0_2, %c0_3] : memref<16x512xbf16, #tpu.memory_space<vmem>>, vector<16x512xbf16>
    %c0_4 = arith.constant 0 : index
    %c0_5 = arith.constant 0 : index
    %5 = vector.load %arg4[%c0_4, %c0_5] : memref<512x512xbf16, #tpu.memory_space<vmem>>, vector<512x512xbf16>
    %cst = arith.constant dense<0.000000e+00> : vector<16x512xf32>
    %6 = tpu.matmul %4, %5, %cst {dimension_numbers = #tpu.dot_dimension_numbers<[1], [0], [0], [1], [0, 0, 1, 1], [], []>} : vector<16x512xbf16>, vector<512x512xbf16>, vector<16x512xf32> -> vector<16x512xf32>
    %7 = arith.addf %3, %6 : vector<16x512xf32>
    %c0_6 = arith.constant 0 : index
    %c0_7 = arith.constant 0 : index
    %8 = vector.load %arg8[%c0_6, %c0_7] : memref<16x512xf32, #tpu.memory_space<vmem>>, vector<16x512xf32>
    tpu.vector_store %arg8[%c0_6, %c0_7], %7 {strides = array<i32>} : memref<16x512xf32, #tpu.memory_space<vmem>>, vector<16x512xf32>,
    %c8_i32 = arith.constant 8 : i32
    %9 = arith.cmpi eq, %arg2, %c8_i32 : i32
    %10 = arith.extui %9 : i1 to i32
    %c0_i32_8 = arith.constant 0 : i32
    %11 = arith.cmpi ne, %10, %c0_i32_8 : i32
    scf.if %11 {
      %c0_9 = arith.constant 0 : index
      %c0_10 = arith.constant 0 : index
      %12 = vector.load %arg8[%c0_9, %c0_10] : memref<16x512xf32, #tpu.memory_space<vmem>>, vector<16x512xf32>
      %c0_11 = arith.constant 0 : index
      %c0_12 = arith.constant 0 : index
      %13 = vector.load %arg5[%c0_11, %c0_12] : memref<1x512xf32, #tpu.memory_space<vmem>>, vector<1x512xf32>
      %14 = vector.broadcast %13 : vector<1x512xf32> to vector<16x512xf32>
      %15 = arith.mulf %12, %14 : vector<16x512xf32>
      %c0_13 = arith.constant 0 : index
      %c0_14 = arith.constant 0 : index
      %16 = vector.load %arg6[%c0_13, %c0_14] : memref<1x512xf32, #tpu.memory_space<vmem>>, vector<1x512xf32>
      %17 = vector.broadcast %16 : vector<1x512xf32> to vector<16x512xf32>
      %18 = arith.addf %15, %17 : vector<16x512xf32>
      %cst_15 = arith.constant 0.000000e+00 : f32
      %19 = vector.broadcast %cst_15 : f32 to vector<16x512xf32>
      %20 = arith.maximumf %18, %19 : vector<16x512xf32>
      %21 = arith.truncf %20 : vector<16x512xf32> to vector<16x512xbf16>
      %c0_16 = arith.constant 0 : index
      %c0_17 = arith.constant 0 : index
      %22 = vector.load %arg7[%c0_16, %c0_17] : memref<16x512xbf16, #tpu.memory_space<vmem>>, vector<16x512xbf16>
      tpu.vector_store %arg7[%c0_16, %c0_17], %21 {strides = array<i32>} : memref<16x512xbf16, #tpu.memory_space<vmem>>, vector<16x512xbf16>,
    } else {
    }
    return
  }
  func.func @transform_0(%arg0: i32, %arg1: i32, %arg2: i32) -> (i32, i32) {
    %c0_i32 = arith.constant 0 : i32
    return %arg0, %arg2 : i32, i32
  }
  func.func @transform_1(%arg0: i32, %arg1: i32, %arg2: i32) -> (i32, i32) {
    %c0_i32 = arith.constant 0 : i32
    return %arg2, %arg1 : i32, i32
  }
  func.func @transform_2(%arg0: i32, %arg1: i32, %arg2: i32) -> (i32, i32) {
    %c0_i32 = arith.constant 0 : i32
    %c0_i32_0 = arith.constant 0 : i32
    return %c0_i32, %arg1 : i32, i32
  }
  func.func @transform_3(%arg0: i32, %arg1: i32, %arg2: i32) -> (i32, i32) {
    %c0_i32 = arith.constant 0 : i32
    %c0_i32_0 = arith.constant 0 : i32
    return %c0_i32, %arg1 : i32, i32
  }
  func.func @transform_4(%arg0: i32, %arg1: i32, %arg2: i32) -> (i32, i32) {
    %c0_i32 = arith.constant 0 : i32
    return %arg0, %arg1 : i32, i32
  }
}

module attributes {stable_mosaic.version = 11 : i64} {
  func.func @_avgpool_kernel(%arg0: memref<2x1x512xbf16, #tpu.memory_space<vmem>>, %arg1: memref<2x512xf32, #tpu.memory_space<vmem>>) attributes {dimension_semantics = [], scalar_prefetch = 0 : i64, scratch_operands = 0 : i64, tpu.core_type = #tpu.core_type<tc>} {
    %c0 = arith.constant 0 : index
    %c0_0 = arith.constant 0 : index
    %c0_1 = arith.constant 0 : index
    %0 = vector.load %arg0[%c0, %c0_0, %c0_1] : memref<2x1x512xbf16, #tpu.memory_space<vmem>>, vector<2x1x512xbf16>
    %1 = arith.extf %0 : vector<2x1x512xbf16> to vector<2x1x512xf32>
    %cst = arith.constant dense<0.000000e+00> : vector<2x512xf32>
    %2 = vector.multi_reduction <add>, %1, %cst [1] : vector<2x1x512xf32> to vector<2x512xf32>
    %cst_2 = arith.constant 1.000000e+00 : f32
    %3 = vector.broadcast %cst_2 : f32 to vector<2x512xf32>
    %4 = arith.divf %2, %3 : vector<2x512xf32>
    %c0_3 = arith.constant 0 : index
    %c0_4 = arith.constant 0 : index
    %5 = vector.load %arg1[%c0_3, %c0_4] : memref<2x512xf32, #tpu.memory_space<vmem>>, vector<2x512xf32>
    tpu.vector_store %arg1[%c0_3, %c0_4], %4 {strides = array<i32>} : memref<2x512xf32, #tpu.memory_space<vmem>>, vector<2x512xf32>,
    return
  }
}

module attributes {stable_mosaic.version = 11 : i64} {
  func.func @kernel(%arg0: i32, %arg1: i32, %arg2: i32, %arg3: memref<16x512xbf16, #tpu.memory_space<vmem>>, %arg4: memref<512x128xbf16, #tpu.memory_space<vmem>>, %arg5: memref<1x128xf32, #tpu.memory_space<vmem>>, %arg6: memref<16x128xf32, #tpu.memory_space<vmem>>, %arg7: memref<16x128xf32, #tpu.memory_space<vmem>>) attributes {dimension_semantics = [#tpu.dimension_semantics<parallel>, #tpu.dimension_semantics<parallel>, #tpu.dimension_semantics<arbitrary>], iteration_bounds = array<i64: 1, 1, 1>, scalar_prefetch = 0 : i64, scratch_operands = 1 : i64, tpu.core_type = #tpu.core_type<tc>, window_params = [{transform_indices = @transform_0, window_bounds = array<i64: 16, 512>}, {transform_indices = @transform_1, window_bounds = array<i64: 512, 128>}, {transform_indices = @transform_2, window_bounds = array<i64: 1, 128>}, {transform_indices = @transform_3, window_bounds = array<i64: 16, 128>}]} {
    %c0_i32 = arith.constant 0 : i32
    %0 = arith.cmpi eq, %arg2, %c0_i32 : i32
    %1 = arith.extui %0 : i1 to i32
    %c0_i32_0 = arith.constant 0 : i32
    %2 = arith.cmpi ne, %1, %c0_i32_0 : i32
    scf.if %2 {
      %cst_10 = arith.constant 0.000000e+00 : f32
      %12 = vector.broadcast %cst_10 : f32 to vector<16x128xf32>
      %c0_11 = arith.constant 0 : index
      %c0_12 = arith.constant 0 : index
      %13 = vector.load %arg7[%c0_11, %c0_12] : memref<16x128xf32, #tpu.memory_space<vmem>>, vector<16x128xf32>
      tpu.vector_store %arg7[%c0_11, %c0_12], %12 {strides = array<i32>} : memref<16x128xf32, #tpu.memory_space<vmem>>, vector<16x128xf32>,
    } else {
    }
    %c0 = arith.constant 0 : index
    %c0_1 = arith.constant 0 : index
    %3 = vector.load %arg7[%c0, %c0_1] : memref<16x128xf32, #tpu.memory_space<vmem>>, vector<16x128xf32>
    %c0_2 = arith.constant 0 : index
    %c0_3 = arith.constant 0 : index
    %4 = vector.load %arg3[%c0_2, %c0_3] : memref<16x512xbf16, #tpu.memory_space<vmem>>, vector<16x512xbf16>
    %c0_4 = arith.constant 0 : index
    %c0_5 = arith.constant 0 : index
    %5 = vector.load %arg4[%c0_4, %c0_5] : memref<512x128xbf16, #tpu.memory_space<vmem>>, vector<512x128xbf16>
    %cst = arith.constant dense<0.000000e+00> : vector<16x128xf32>
    %6 = tpu.matmul %4, %5, %cst {dimension_numbers = #tpu.dot_dimension_numbers<[1], [0], [0], [1], [0, 0, 1, 1], [], []>} : vector<16x512xbf16>, vector<512x128xbf16>, vector<16x128xf32> -> vector<16x128xf32>
    %7 = arith.addf %3, %6 : vector<16x128xf32>
    %c0_6 = arith.constant 0 : index
    %c0_7 = arith.constant 0 : index
    %8 = vector.load %arg7[%c0_6, %c0_7] : memref<16x128xf32, #tpu.memory_space<vmem>>, vector<16x128xf32>
    tpu.vector_store %arg7[%c0_6, %c0_7], %7 {strides = array<i32>} : memref<16x128xf32, #tpu.memory_space<vmem>>, vector<16x128xf32>,
    %c0_i32_8 = arith.constant 0 : i32
    %9 = arith.cmpi eq, %arg2, %c0_i32_8 : i32
    %10 = arith.extui %9 : i1 to i32
    %c0_i32_9 = arith.constant 0 : i32
    %11 = arith.cmpi ne, %10, %c0_i32_9 : i32
    scf.if %11 {
      %c0_10 = arith.constant 0 : index
      %c0_11 = arith.constant 0 : index
      %12 = vector.load %arg7[%c0_10, %c0_11] : memref<16x128xf32, #tpu.memory_space<vmem>>, vector<16x128xf32>
      %c0_12 = arith.constant 0 : index
      %c0_13 = arith.constant 0 : index
      %13 = vector.load %arg5[%c0_12, %c0_13] : memref<1x128xf32, #tpu.memory_space<vmem>>, vector<1x128xf32>
      %14 = vector.broadcast %13 : vector<1x128xf32> to vector<16x128xf32>
      %15 = arith.addf %12, %14 : vector<16x128xf32>
      %c0_14 = arith.constant 0 : index
      %c0_15 = arith.constant 0 : index
      %16 = vector.load %arg6[%c0_14, %c0_15] : memref<16x128xf32, #tpu.memory_space<vmem>>, vector<16x128xf32>
      tpu.vector_store %arg6[%c0_14, %c0_15], %15 {strides = array<i32>} : memref<16x128xf32, #tpu.memory_space<vmem>>, vector<16x128xf32>,
    } else {
    }
    return
  }
  func.func @transform_0(%arg0: i32, %arg1: i32, %arg2: i32) -> (i32, i32) {
    %c0_i32 = arith.constant 0 : i32
    return %arg0, %arg2 : i32, i32
  }
  func.func @transform_1(%arg0: i32, %arg1: i32, %arg2: i32) -> (i32, i32) {
    %c0_i32 = arith.constant 0 : i32
    return %arg2, %arg1 : i32, i32
  }
  func.func @transform_2(%arg0: i32, %arg1: i32, %arg2: i32) -> (i32, i32) {
    %c0_i32 = arith.constant 0 : i32
    %c0_i32_0 = arith.constant 0 : i32
    return %c0_i32, %arg1 : i32, i32
  }
  func.func @transform_3(%arg0: i32, %arg1: i32, %arg2: i32) -> (i32, i32) {
    %c0_i32 = arith.constant 0 : i32
    return %arg0, %arg1 : i32, i32
  }
}

</mosaic_0001>

<bundles_post_ra>
// kernel: resnet18_forward.23
= control target key start
LH: loop header
LB: loop body
LE: loop exit
PB: predicated region body
PF: predicated region fallthrough
CT: control target
= control target key end

     0   :  { %s1275_s15 = smov 0   ;;  %s1277_s16 = smov 0   ;;  %s1446_s0 = inlined_call_operand.vmem [shape: bf16[128,640], index: 0, kind: input, shape index: {}]   ;;  %s1447_s1 = inlined_call_operand.vmem [shape: bf16[640,128], index: 1, kind: input, shape index: {}]   ;;  %s1448_s2 = inlined_call_operand.vmem [shape: f32[1,128], index: 2, kind: input, shape index: {}]   ;;  %s1449_s3 = inlined_call_operand.vmem [shape: f32[1,128], index: 3, kind: input, shape index: {}]   ;;  %s1450_s4 = inlined_call_operand.vmem [shape: bf16[128,128], index: 4, kind: output, shape index: {}]  }
   0x1   :  { %s1279_s17 = smov 0   ;;  %s1281_s18 = smov 0  }
   0x2   :  { %s1283_s19 = smov 0  }
   0x3 LB: > { %s26_s20 = sadd.s32 1, %s1243_s18  ;;  %p49_p1 = scmp.ne.s32.totalorder %s1235_s16, %s1231_s15  ;;  %s1247_s19 = sphi %s1283_s19, %s14_s19   ;;  %s1243_s18 = sphi %s1281_s18, %s1454_s18   ;;  %s1239_s17 = sphi %s1279_s17, %s1453_s17   ;;  %s1235_s16 = sphi %s1277_s16, %s1452_s16   ;;  %s1231_s15 = sphi %s1275_s15, %s1451_s15  }
   0x4   : > { %p27_p0 = scmp.ge.s32.totalorder %s26_s20, 5  ;;  %p50_p2 = scmp.eq.s32.totalorder %s1247_s19, 0 }
   0x5   : > { %s42_s22 = sadd.s32 1, %s1235_s16  ;;  %p978_p5 = scmp.ge.s32.totalorder %s1247_s19, 5 }
   0x6   : > { %s1456_s20 = smov (%p27_p0, %s26_s20), 0  ;;  %p51_p3 = por %p50_p2, %p49_p1 }
   0x7   : > { %s38_s21 = ssub.s32 %s1243_s18, %s1456_s20  ;;  %195 = sbr.rel (%p978_p5) target bundleno = 26 (0x1a), region = 24 }
   0x8   : > { %p40_p4 = scmp.eq.s32.totalorder %s38_s21, 0 }
   0xa   : > { %s1310_s23 = scalar_select %p40_p4, %s1235_s16, %s42_s22  }
   0xc   : > { %198 = sbr.rel (!%p51_p3) target bundleno = 26 (0x1a), region = 28  ;;  %s200_s24 = sand.u32 (%p51_p3), 1, %s1235_s16  }
   0xd   : > { %s980_s25 = sshll.u32 (%p51_p3), %s1243_s18, 2  ;;  %s979_s26 = sshll.u32 (%p51_p3), %s200_s24, 6 }
   0xe   : > { %s1318_s29 = scalar_lea.vmem (%p51_p3), %s1446_s0, %s980_s25  ;;  %s202_s30 = scalar_lea.vmem (%p51_p3), [#allocation3], %s979_s26 }
   0xf   : > { %v224_v0 = vld [vmem:[%s1318_s29] sm:$0xf] (%p51_p3)  ;;  %v226_v1 = vld [vmem:[%s1318_s29 + $0x14] sm:$0xf] (%p51_p3)  ;;  %v228_v2 = vld [vmem:[%s1318_s29 + $0x28] sm:$0xf] (%p51_p3) }
  0x10   : > { %225 = vst [vmem:[%s202_s30] sm:$0xf] (%p51_p3), %v224_v0  ;;  %227 = vst [vmem:[%s202_s30 + $0x4] sm:$0xf] (%p51_p3), %v226_v1  ;;  %v230_v3 = vld [vmem:[%s1318_s29 + $0x3c] sm:$0xf] (%p51_p3) }
  0x11   : > { %v232_v4 = vld [vmem:[%s1318_s29 + $0x50] sm:$0xf]  ;;  %229 = vst [vmem:[%s202_s30 + $0x8] sm:$0xf] %v228_v2  ;;  %231 = vst [vmem:[%s202_s30 + $0xc] sm:$0xf] %v230_v3 }
  0x12   : > { %233 = vst [vmem:[%s202_s30 + $0x10] sm:$0xf] %v232_v4  ;;  %v234_v5 = vld [vmem:[%s1318_s29 + $0x64] sm:$0xf]  ;;  %v236_v6 = vld [vmem:[%s1318_s29 + $0x78] sm:$0xf] }
  0x13   : > { %v238_v7 = vld [vmem:[%s1318_s29 + $0x8c] sm:$0xf]  ;;  %235 = vst [vmem:[%s202_s30 + $0x14] sm:$0xf] %v234_v5  ;;  %237 = vst [vmem:[%s202_s30 + $0x18] sm:$0xf] %v236_v6 }
  0x14   : > { %239 = vst [vmem:[%s202_s30 + $0x1c] sm:$0xf] %v238_v7  ;;  %v240_v8 = vld [vmem:[%s1318_s29 + $0xa0] sm:$0xf]  ;;  %v242_v9 = vld [vmem:[%s1318_s29 + $0xb4] sm:$0xf] }
  0x15   : > { %v244_v10 = vld [vmem:[%s1318_s29 + $0xc8] sm:$0xf]  ;;  %241 = vst [vmem:[%s202_s30 + $0x20] sm:$0xf] %v240_v8  ;;  %243 = vst [vmem:[%s202_s30 + $0x24] sm:$0xf] %v242_v9 }
  0x16   : > { %245 = vst [vmem:[%s202_s30 + $0x28] sm:$0xf] %v244_v10  ;;  %v246_v11 = vld [vmem:[%s1318_s29 + $0xdc] sm:$0xf]  ;;  %v248_v12 = vld [vmem:[%s1318_s29 + $0xf0] sm:$0xf] }
  0x17   : > { %v250_v13 = vld [vmem:[%s1318_s29 + $0x104] sm:$0xf]  ;;  %247 = vst [vmem:[%s202_s30 + $0x2c] sm:$0xf] %v246_v11  ;;  %249 = vst [vmem:[%s202_s30 + $0x30] sm:$0xf] %v248_v12 }
  0x18   : > { %251 = vst [vmem:[%s202_s30 + $0x34] sm:$0xf] %v250_v13  ;;  %v252_v14 = vld [vmem:[%s1318_s29 + $0x118] sm:$0xf]  ;;  %v254_v15 = vld [vmem:[%s1318_s29 + $0x12c] sm:$0xf] }
  0x19   : > { %253 = vst [vmem:[%s202_s30 + $0x38] sm:$0xf] %v252_v14  ;;  %255 = vst [vmem:[%s202_s30 + $0x3c] sm:$0xf] %v254_v15 }
  0x1a PF: > { %p981_p6 = scmp.ge.s32.totalorder %s1247_s19, 1  ;;  %p322_p7 = scmp.lt.s32.totalorder %s1247_s19, 6 }
  0x1c   : > { %p323_p8 = pnand %p981_p6, %p322_p7 }
  0x1d   : > { %s329_s5 = sand.u32 (!%p323_p8), 1, %s1231_s15   ;;  %s983_s6 = sshll.u32 (!%p323_p8), %s1239_s17, 4 }
  0x1e   : > { %326 = sbr.rel (%p323_p8) target bundleno = 313 (0x139), region = 73  ;;  %s982_s7 = sshll.u32 (!%p323_p8), %s329_s5, 6 }
  0x1f   : > { %p373_p9 = scmp.lt.s32.totalorder (!%p323_p8), %s983_s6, 79  ;;  %s1345_s12 = scalar_lea.vmem (!%p323_p8), [#allocation3], %s982_s7 }
  0x20   : > { %p985_p10 = scmp.ne.s32.totalorder (!%p323_p8), %s1239_s17, 0 }
  0x23   : > { %s1458_s6 = smov (!%p373_p9, %s983_s6), 79  ;;  %400 = sbr.rel (%p985_p10) target bundleno = 49 (0x31), region = 81 }
  0x24   : > { %s984_s8 = sshll.u32 %s1458_s6, 2 }
  0x25   : > { %s1343_s11 = scalar_lea.vmem %s1447_s1, %s984_s8 }
  0x28   : > { %v1249_v16 = vmov 0.0  }
  0x29   : > { %401 = vst [vmem:[#allocation2 + $0x30] sm:$0xff] %v1249_v16  ;;  %402 = vst [vmem:[#allocation2] sm:$0xff] %v1249_v16 }
  0x2a   : > { %403 = vst [vmem:[#allocation2 + $0x58] sm:$0xff] %v1249_v16  ;;  %404 = vst [vmem:[#allocation2 + $0x18] sm:$0xff] %v1249_v16 }
  0x2b   : > { %405 = vst [vmem:[#allocation2 + $0x50] sm:$0xff] %v1249_v16  ;;  %406 = vst [vmem:[#allocation2 + $0x68] sm:$0xff] %v1249_v16 }
  0x2c   : > { %407 = vst [vmem:[#allocation2 + $0x8] sm:$0xff] %v1249_v16  ;;  %408 = vst [vmem:[#allocation2 + $0x48] sm:$0xff] %v1249_v16 }
  0x2d   : > { %409 = vst [vmem:[#allocation2 + $0x40] sm:$0xff] %v1249_v16  ;;  %410 = vst [vmem:[#allocation2 + $0x20] sm:$0xff] %v1249_v16 }
  0x2e   : > { %411 = vst [vmem:[#allocation2 + $0x10] sm:$0xff] %v1249_v16  ;;  %412 = vst [vmem:[#allocation2 + $0x38] sm:$0xff] %v1249_v16 }
  0x2f   : > { %413 = vst [vmem:[#allocation2 + $0x60] sm:$0xff] %v1249_v16  ;;  %414 = vst [vmem:[#allocation2 + $0x70] sm:$0xff] %v1249_v16 }
  0x30   : > { %415 = vst [vmem:[#allocation2 + $0x78] sm:$0xff] %v1249_v16  ;;  %416 = vst [vmem:[#allocation2 + $0x28] sm:$0xff] %v1249_v16 }
  0x31 PF: > { %v1193_v17 = vld [vmem:[%s1343_s11 + $0x38] sm:$0xff]   ;;  %v1194_v18 = vld [vmem:[%s1343_s11 + $0x30] sm:$0xff]   ;;  %v1195_v19 = vld [vmem:[%s1343_s11 + $0x28] sm:$0xff]   ;;  %p1002_p11 = scmp.ne.s32.totalorder %s1239_s17, 4 }
  0x32   : > { %1104 = vmatprep.subr.bf16.mxu0 %v1193_v17  ;;  %1136 = vmatprep.subr.bf16.mxu1 %v1193_v17  ;;  %v1196_v20 = vld [vmem:[%s1343_s11 + $0x20] sm:$0xff]   ;;  %v1197_v23 = vld [vmem:[%s1343_s11 + $0x18] sm:$0xff]   ;;  %v1198_v24 = vld [vmem:[%s1343_s11 + $0x10] sm:$0xff]  }
  0x33   : > { %1105 = vmatpush3.bf16.msra.mxu0 %v1193_v17  ;;  %1144 = vmatpush3.bf16.msra.mxu1 %v1193_v17  ;;  %v1201_v21 = vld [vmem:[%s1345_s12] sm:$0xff]   ;;  %v1199_v25 = vld [vmem:[%s1343_s11 + $0x8] sm:$0xff]   ;;  %v1205_v29 = vld [vmem:[%s1345_s12 + $0x10] sm:$0xff]  }
  0x34   : > { %1106 = vmatprep.subr.bf16.mxu0 %v1194_v18  ;;  %1137 = vmatprep.subr.bf16.mxu1 %v1194_v18  ;;  %v1202_v22 = vld [vmem:[%s1345_s12 + $0x20] sm:$0xff]   ;;  %v1203_v27 = vld [vmem:[%s1345_s12 + $0x8] sm:$0xff]   ;;  %v1206_v30 = vld [vmem:[%s1345_s12 + $0x30] sm:$0xff]  }
  0x35   : > { %1120 = vmatprep.mubr.bf16.mxu0 %v1201_v21  ;;  %1128 = vmatprep.mubr.bf16.mxu1 %v1202_v22  ;;  %v1200_v26 = vld [vmem:[%s1343_s11] sm:$0xff]   ;;  %v1204_v28 = vld [vmem:[%s1345_s12 + $0x28] sm:$0xff]   ;;  %v1207_v31 = vld [vmem:[%s1345_s12 + $0x18] sm:$0xff]  }
  0x36   : > { %v1208_v32 = vld [vmem:[%s1345_s12 + $0x38] sm:$0xff]   ;;  %v427_v34 = vld [vmem:[#allocation2 + $0x10] sm:$0xff]  ;;  %v425_v38 = vld [vmem:[#allocation2 + $0x40] sm:$0xff] }
  0x37   : > { %1107 = vmatpush3.bf16.msra.mxu0 %v1194_v18  ;;  %1145 = vmatpush3.bf16.msra.mxu1 %v1194_v18  ;;  %v419_v33 = vld [vmem:[#allocation2 + $0x58] sm:$0xff]  ;;  %v417_v37 = vld [vmem:[#allocation2 + $0x30] sm:$0xff]  ;;  %v418_v49 = vld [vmem:[#allocation2] sm:$0xff] }
  0x38   : > { %1108 = vmatprep.subr.bf16.mxu0 %v1195_v19  ;;  %1138 = vmatprep.subr.bf16.mxu1 %v1195_v19  ;;  %v420_v43 = vld [vmem:[#allocation2 + $0x18] sm:$0xff]  ;;  %v426_v50 = vld [vmem:[#allocation2 + $0x20] sm:$0xff]  ;;  %v423_v55 = vld [vmem:[#allocation2 + $0x8] sm:$0xff] }
  0x39   : > { %v428_v44 = vld [vmem:[#allocation2 + $0x38] sm:$0xff]  ;;  %v421_v61 = vld [vmem:[#allocation2 + $0x50] sm:$0xff]  ;;  %v429_v62 = vld [vmem:[#allocation2 + $0x60] sm:$0xff] }
  0x3a   : > { %v431_v56 = vld [vmem:[#allocation2 + $0x78] sm:$0xff]  ;;  %v424_v3 = vld [vmem:[#allocation2 + $0x48] sm:$0xff]  ;;  %v430_v10 = vld [vmem:[#allocation2 + $0x70] sm:$0xff] }
  0x3b   : > { %1109 = vmatpush3.bf16.msra.mxu0 %v1195_v19  ;;  %1146 = vmatpush3.bf16.msra.mxu1 %v1195_v19  ;;  %v432_v4 = vld [vmem:[#allocation2 + $0x28] sm:$0xff] }
  0x3c   : > { %1110 = vmatprep.subr.bf16.mxu0 %v1196_v20  ;;  %1139 = vmatprep.subr.bf16.mxu1 %v1196_v20  ;;  %v422_v9 = vld [vmem:[#allocation2 + $0x68] sm:$0xff] }
  0x3f   : > { %1111 = vmatpush3.bf16.msra.mxu0 %v1196_v20  ;;  %1147 = vmatpush3.bf16.msra.mxu1 %v1196_v20 }
  0x40   : > { %1112 = vmatprep.subr.bf16.mxu0 %v1197_v23  ;;  %1140 = vmatprep.subr.bf16.mxu1 %v1197_v23 }
  0x43   : > { %1113 = vmatpush3.bf16.msra.mxu0 %v1197_v23  ;;  %1148 = vmatpush3.bf16.msra.mxu1 %v1197_v23 }
  0x44   : > { %1114 = vmatprep.subr.bf16.mxu0 %v1198_v24  ;;  %1141 = vmatprep.subr.bf16.mxu1 %v1198_v24 }
  0x47   : > { %1115 = vmatpush3.bf16.msra.mxu0 %v1198_v24  ;;  %1149 = vmatpush3.bf16.msra.mxu1 %v1198_v24 }
  0x48   : > { %1116 = vmatprep.subr.bf16.mxu0 %v1199_v25  ;;  %1142 = vmatprep.subr.bf16.mxu1 %v1199_v25 }
  0x4b   : > { %1117 = vmatpush3.bf16.msra.mxu0 %v1199_v25  ;;  %1150 = vmatpush3.bf16.msra.mxu1 %v1199_v25 }
  0x4c   : > { %1118 = vmatprep.subr.bf16.mxu0 %v1200_v26  ;;  %1143 = vmatprep.subr.bf16.mxu1 %v1200_v26 }
  0x4f   : > { %1119 = vmatpush3.bf16.msra.mxu0 %v1200_v26  ;;  %1151 = vmatpush3.bf16.msra.mxu1 %v1200_v26 }
  0x52   : > { %1121 = vmatmul.mubr.bf16.vlgmr.msra.gmra.mxu0 %v1203_v27  ;;  %1129 = vmatmul.mubr.bf16.vlgmr.msra.gmra.mxu1 %v1204_v28 }
  0x53   : > { %1124 = vmatprep.mubr.bf16.mxu0 %v1205_v29  ;;  %1132 = vmatprep.mubr.bf16.mxu1 %v1206_v30 }
  0x5a   : > { %1125 = vmatmul.mubr.bf16.gmra.mxu0 %v1207_v31  ;;  %1133 = vmatmul.mubr.bf16.gmra.mxu1 %v1208_v32 }
 0x112   : > { %v1122_v35 = vpop.f32.mrf.mxu0  ;;  %v1130_v36 = vpop.f32.mrf.mxu1 }
 0x113   : > { %v660_v39 = vadd.f32 %v1122_v35, %v419_v33  ;;  %v668_v40 = vadd.f32 %v1130_v36, %v427_v34 }
 0x114   : > { %v595_v41 = vpop.f32.mrf.mxu0  ;;  %v627_v42 = vpop.f32.mrf.mxu1 }
 0x115   : > { %676 = vst [vmem:[#allocation2 + $0x58] sm:$0xff] %v660_v39  ;;  %684 = vst [vmem:[#allocation2 + $0x10] sm:$0xff] %v668_v40  ;;  %v658_v45 = vadd.f32 %v595_v41, %v417_v37  ;;  %v666_v46 = vadd.f32 %v627_v42, %v425_v38 }
 0x116   : > { %v1123_v47 = vpop.f32.mrf.mxu0  ;;  %v1131_v48 = vpop.f32.mrf.mxu1 }
 0x117   : > { %674 = vst [vmem:[#allocation2 + $0x30] sm:$0xff] %v658_v45  ;;  %682 = vst [vmem:[#allocation2 + $0x40] sm:$0xff] %v666_v46  ;;  %v661_v51 = vadd.f32 %v1123_v47, %v420_v43  ;;  %v669_v52 = vadd.f32 %v1131_v48, %v428_v44 }
 0x118   : > { %v598_v53 = vpop.f32.mrf.mxu0  ;;  %v630_v54 = vpop.f32.mrf.mxu1 }
 0x119   : > { %677 = vst [vmem:[#allocation2 + $0x18] sm:$0xff] %v661_v51  ;;  %685 = vst [vmem:[#allocation2 + $0x38] sm:$0xff] %v669_v52  ;;  %v659_v57 = vadd.f32 %v598_v53, %v418_v49  ;;  %v667_v58 = vadd.f32 %v630_v54, %v426_v50 }
 0x11a   : > { %v1126_v59 = vpop.f32.mrf.mxu0  ;;  %v1134_v60 = vpop.f32.mrf.mxu1 }
 0x11b   : > { %675 = vst [vmem:[#allocation2] sm:$0xff] %v659_v57  ;;  %683 = vst [vmem:[#allocation2 + $0x20] sm:$0xff] %v667_v58  ;;  %v664_v63 = vadd.f32 %v1126_v59, %v423_v55  ;;  %v672_v0 = vadd.f32 %v1134_v60, %v431_v56 }
 0x11c   : > { %v611_v1 = vpop.f32.mrf.mxu0  ;;  %v643_v2 = vpop.f32.mrf.mxu1 }
 0x11d   : > { %680 = vst [vmem:[#allocation2 + $0x8] sm:$0xff] %v664_v63  ;;  %688 = vst [vmem:[#allocation2 + $0x78] sm:$0xff] %v672_v0  ;;  %v662_v5 = vadd.f32 %v611_v1, %v421_v61  ;;  %v670_v6 = vadd.f32 %v643_v2, %v429_v62 }
 0x11e   : > { %v1127_v7 = vpop.f32.mrf.mxu0  ;;  %v1135_v8 = vpop.f32.mrf.mxu1 }
 0x11f   : > { %678 = vst [vmem:[#allocation2 + $0x50] sm:$0xff] %v662_v5  ;;  %686 = vst [vmem:[#allocation2 + $0x60] sm:$0xff] %v670_v6  ;;  %v665_v11 = vadd.f32 %v1127_v7, %v424_v3  ;;  %v673_v12 = vadd.f32 %v1135_v8, %v432_v4  ;;  %693 = sbr.rel (%p1002_p11) target bundleno = 313 (0x139), region = 85 }
 0x120   : > { %v614_v13 = vpop.f32.mrf.mxu0  ;;  %v646_v14 = vpop.f32.mrf.mxu1 }
 0x121   : > { %681 = vst [vmem:[#allocation2 + $0x48] sm:$0xff] %v665_v11  ;;  %689 = vst [vmem:[#allocation2 + $0x28] sm:$0xff] %v673_v12  ;;  %v663_v15 = vadd.f32 %v614_v13, %v422_v9  ;;  %v671_v16 = vadd.f32 %v646_v14, %v430_v10 }
 0x123   : > { %679 = vst [vmem:[#allocation2 + $0x68] sm:$0xff] %v663_v15  ;;  %687 = vst [vmem:[#allocation2 + $0x70] sm:$0xff] %v671_v16 }
 0x124   : > { %v694_v17 = vld [vmem:[#allocation2 + $0x30] sm:$0xff]  ;;  %v695_v18 = vld [vmem:[#allocation2] sm:$0xff]  ;;  %v696_v23 = vld [vmem:[#allocation2 + $0x58] sm:$0xff] }
 0x125   : > { %v1368_v19 = vld [vmem:[%s1448_s2] ss:$0 sm:$0xff]  ;;  %v697_v24 = vld [vmem:[#allocation2 + $0x18] sm:$0xff]  ;;  %v700_v29 = vld [vmem:[#allocation2 + $0x8] sm:$0xff] }
 0x126   : > { %v717_v20 = vmul.f32 %v1368_v19, %v694_v17  ;;  %v718_v21 = vmul.f32 %v1368_v19, %v695_v18  ;;  %v1375_v22 = vld [vmem:[%s1449_s3] ss:$0 sm:$0xff]  ;;  %v719_v25 = vmul.f32 %v1368_v19, %v696_v23  ;;  %v720_v26 = vmul.f32 %v1368_v19, %v697_v24  ;;  %v698_v27 = vld [vmem:[#allocation2 + $0x50] sm:$0xff]  ;;  %v705_v50 = vld [vmem:[#allocation2 + $0x38] sm:$0xff] }
 0x127   : > { %v721_v32 = vmul.f32 %v1368_v19, %v698_v27  ;;  %v723_v37 = vmul.f32 %v1368_v19, %v700_v29  ;;  %v702_v39 = vld [vmem:[#allocation2 + $0x40] sm:$0xff]  ;;  %v704_v49 = vld [vmem:[#allocation2 + $0x10] sm:$0xff]  ;;  %v708_v61 = vld [vmem:[#allocation2 + $0x78] sm:$0xff]  ;;  %v728_v1 = vmul.f32 %v1368_v19, %v705_v50 }
 0x128   : > { %v740_v30 = vadd.f32 %v1375_v22, %v717_v20  ;;  %v741_v31 = vadd.f32 %v1375_v22, %v718_v21  ;;  %v701_v34 = vld [vmem:[#allocation2 + $0x48] sm:$0xff]  ;;  %v742_v35 = vadd.f32 %v1375_v22, %v719_v25  ;;  %v743_v36 = vadd.f32 %v1375_v22, %v720_v26  ;;  %v703_v44 = vld [vmem:[#allocation2 + $0x20] sm:$0xff] }
 0x129   : > { %v724_v38 = vmul.f32 %v1368_v19, %v701_v34  ;;  %v744_v42 = vadd.f32 %v1375_v22, %v721_v32  ;;  %v746_v47 = vadd.f32 %v1375_v22, %v723_v37  ;;  %v725_v54 = vmul.f32 %v1368_v19, %v702_v39  ;;  %v706_v55 = vld [vmem:[#allocation2 + $0x60] sm:$0xff]  ;;  %v709_v2 = vld [vmem:[#allocation2 + $0x28] sm:$0xff] }
 0x12a   : > { %v699_v28 = vld [vmem:[#allocation2 + $0x68] sm:$0xff]  ;;  %v756_v40 = vmax.f32 %v740_v30, 0.0  ;;  %v757_v41 = vmax.f32 %v741_v31, 0.0  ;;  %v758_v45 = vmax.f32 %v742_v35, 0.0  ;;  %v759_v46 = vmax.f32 %v743_v36, 0.0  ;;  %v707_v56 = vld [vmem:[#allocation2 + $0x70] sm:$0xff] }
 0x12b   : > { %v722_v33 = vmul.f32 %v1368_v19, %v699_v28  ;;  %v747_v48 = vadd.f32 %v1375_v22, %v724_v38  ;;  %v760_v52 = vmax.f32 %v744_v42, 0.0  ;;  %v762_v58 = vmax.f32 %v746_v47, 0.0 }
 0x12c   : > { %v1044_v51 = vpack.c.bf16 %v757_v41, %v756_v40  ;;  %v1049_v57 = vpack.c.bf16 %v759_v46, %v758_v45  ;;  %v726_v60 = vmul.f32 %v1368_v19, %v703_v44  ;;  %v748_v63 = vadd.f32 %v1375_v22, %v725_v54 }
 0x12d   : > { %v745_v43 = vadd.f32 %v1375_v22, %v722_v33  ;;  %v763_v59 = vmax.f32 %v747_v48, 0.0  ;;  %v727_v0 = vmul.f32 %v1368_v19, %v704_v49  ;;  %v729_v5 = vmul.f32 %v1368_v19, %v706_v55 }
 0x12e   : > { %1045 = vst [vmem:[%s1450_s4] sm:$0xff] %v1044_v51   ;;  %1081 = vst [vmem:[%s1450_s4 + $0x8] sm:$0xff] %v1049_v57   ;;  %v749_v4 = vadd.f32 %v1375_v22, %v726_v60  ;;  %v730_v6 = vmul.f32 %v1368_v19, %v707_v56  ;;  %v764_v7 = vmax.f32 %v748_v63, 0.0  ;;  %v751_v9 = vadd.f32 %v1375_v22, %v728_v1 }
 0x12f   : > { %v761_v53 = vmax.f32 %v745_v43, 0.0  ;;  %v1059_v3 = vpack.c.bf16 %v763_v59, %v762_v58  ;;  %v750_v8 = vadd.f32 %v1375_v22, %v727_v0  ;;  %v731_v10 = vmul.f32 %v1368_v19, %v708_v61 }
 0x130   : > { %v765_v11 = vmax.f32 %v749_v4, 0.0  ;;  %v752_v12 = vadd.f32 %v1375_v22, %v729_v5  ;;  %v753_v13 = vadd.f32 %v1375_v22, %v730_v6  ;;  %v732_v14 = vmul.f32 %v1368_v19, %v709_v2 }
 0x131   : > { %v1054_v62 = vpack.c.bf16 %v761_v53, %v760_v52  ;;  %1083 = vst [vmem:[%s1450_s4 + $0x18] sm:$0xff] %v1059_v3   ;;  %v766_v15 = vmax.f32 %v750_v8, 0.0  ;;  %v767_v16 = vmax.f32 %v751_v9, 0.0  ;;  %v754_v17 = vadd.f32 %v1375_v22, %v731_v10 }
 0x132   : > { %v1064_v18 = vpack.c.bf16 %v765_v11, %v764_v7  ;;  %v768_v20 = vmax.f32 %v752_v12, 0.0  ;;  %v769_v21 = vmax.f32 %v753_v13, 0.0  ;;  %v755_v23 = vadd.f32 %v1375_v22, %v732_v14 }
 0x133   : > { %1082 = vst [vmem:[%s1450_s4 + $0x10] sm:$0xff] %v1054_v62   ;;  %v1069_v24 = vpack.c.bf16 %v767_v16, %v766_v15  ;;  %v770_v25 = vmax.f32 %v754_v17, 0.0 }
 0x134   : > { %1084 = vst [vmem:[%s1450_s4 + $0x20] sm:$0xff] %v1064_v18   ;;  %v1074_v26 = vpack.c.bf16 %v769_v21, %v768_v20  ;;  %v771_v27 = vmax.f32 %v755_v23, 0.0 }
 0x135   : > { %1085 = vst [vmem:[%s1450_s4 + $0x28] sm:$0xff] %v1069_v24  }
 0x136   : > { %1086 = vst [vmem:[%s1450_s4 + $0x30] sm:$0xff] %v1074_v26   ;;  %v1079_v19 = vpack.c.bf16 %v771_v27, %v770_v25 }
 0x138   : > { %1087 = vst [vmem:[%s1450_s4 + $0x38] sm:$0xff] %v1079_v19  }
 0x139 PF: > { %s14_s19 = sadd.s32 1, %s1247_s19   ;;  %s1451_s15 = smov %s1235_s16 }
 0x13a   : > { %p11_p12 = scmp.ge.s32.totalorder %s14_s19, 7   ;;  %s1452_s16 = smov %s1310_s23 }
 0x13b   : > { %s1453_s17 = smov %s1243_s18  ;;  %s1454_s18 = smov %s1456_s20 }
 0x13c   :  { %13 = sbr.rel (!%p11_p12) target bundleno = 3 (0x3), region = 129 }

// kernel: resnet18_forward.22
= control target key start
LH: loop header
LB: loop body
LE: loop exit
PB: predicated region body
PF: predicated region fallthrough
CT: control target
= control target key end

     0   :  { %v2222_v0 = vmov 0   ;;  %s2754_s1 = inlined_call_operand.vmem [shape: bf16[256,128], index: 1, kind: input, shape index: {}]   ;;  %s2755_s0 = inlined_call_operand.vmem [shape: bf16[512,256], index: 0, kind: input, shape index: {}]   ;;  %s2756_s2 = inlined_call_operand.vmem [shape: f32[1,128], index: 2, kind: input, shape index: {}]   ;;  %s2757_s3 = inlined_call_operand.vmem [shape: f32[1,128], index: 3, kind: input, shape index: {}]   ;;  %s2758_s4 = inlined_call_operand.vmem [shape: bf16[512,128], index: 4, kind: output, shape index: {}]  }
   0x1   :  { %662 = vmatprep.subr.bf16.mxu0 %v2222_v0  ;;  %2077 = vmatprep.subr.bf16.mxu1 %v2222_v0  ;;  %v2110_v1 = vld [vmem:[%s2754_s1 + $0x38] sm:$0xff]   ;;  %v2111_v2 = vld [vmem:[%s2754_s1 + $0x30] sm:$0xff]   ;;  %v2112_v3 = vld [vmem:[%s2754_s1 + $0x28] sm:$0xff]  }
   0x2   :  { %663 = vmatpush1.bf16.msra.mxu0 %v2110_v1  ;;  %2093 = vmatpush1.bf16.msra.mxu1 %v2110_v1  ;;  %v2113_v4 = vld [vmem:[%s2754_s1 + $0x20] sm:$0xff]   ;;  %v2114_v5 = vld [vmem:[%s2754_s1 + $0x18] sm:$0xff]   ;;  %v2115_v7 = vld [vmem:[%s2754_s1 + $0x10] sm:$0xff]  }
   0x3   :  { %664 = vmatprep.subr.bf16.mxu0 %v2222_v0  ;;  %2078 = vmatprep.subr.bf16.mxu1 %v2222_v0  ;;  %v2128_v6 = vld [vmem:[%s2755_s0 + $0x4] ss:$8 sps:$4 sm:$0xff]   ;;  %v2118_v11 = vld [vmem:[%s2754_s1 + $0x78] sm:$0xff]   ;;  %v2119_v12 = vld [vmem:[%s2754_s1 + $0x70] sm:$0xff]  }
   0x4   :  { %v2131_v8 = vld [vmem:[%s2755_s0 + $0x104] ss:$8 sps:$4 sm:$0xff]   ;;  %694 = vmatprep.mubr.bf16.mxu0 %v2128_v6  ;;  %v2122_v15 = vld [vmem:[%s2754_s1 + $0x58] sm:$0xff]   ;;  %v2123_v16 = vld [vmem:[%s2754_s1 + $0x50] sm:$0xff]  }
   0x5   :  { %822 = vmatprep.mubr.bf16.mxu1 %v2131_v8  ;;  %v2116_v9 = vld [vmem:[%s2754_s1 + $0x8] sm:$0xff]   ;;  %v2117_v10 = vld [vmem:[%s2754_s1] sm:$0xff]   ;;  %v2132_v21 = vld [vmem:[%s2755_s0 + $0x14] ss:$8 sps:$4 sm:$0xff]  }
   0x6   :  { %665 = vmatpush1.bf16.msra.mxu0 %v2111_v2  ;;  %2094 = vmatpush1.bf16.msra.mxu1 %v2111_v2  ;;  %v2120_v13 = vld [vmem:[%s2754_s1 + $0x68] sm:$0xff]   ;;  %v2121_v14 = vld [vmem:[%s2754_s1 + $0x60] sm:$0xff]   ;;  %v2134_v22 = vld [vmem:[%s2755_s0 + $0x114] ss:$8 sps:$4 sm:$0xff]  }
   0x7   :  { %666 = vmatprep.subr.bf16.mxu0 %v2222_v0  ;;  %2079 = vmatprep.subr.bf16.mxu1 %v2222_v0  ;;  %v2124_v17 = vld [vmem:[%s2754_s1 + $0x48] sm:$0xff]   ;;  %v2125_v18 = vld [vmem:[%s2754_s1 + $0x40] sm:$0xff]   ;;  %v2136_v23 = vld [vmem:[%s2755_s0 + $0x10] ss:$8 sps:$4 sm:$0xff]  }
   0x8   :  { %v2126_v19 = vld [vmem:[%s2755_s0] ss:$8 sps:$4 sm:$0xff]   ;;  %v2137_v24 = vld [vmem:[%s2755_s0 + $0x110] ss:$8 sps:$4 sm:$0xff]   ;;  %v2138_v25 = vld [vmem:[%s2755_s0 + $0x24] ss:$8 sps:$4 sm:$0xff]  }
   0x9   :  { %v2129_v20 = vld [vmem:[%s2755_s0 + $0x100] ss:$8 sps:$4 sm:$0xff]   ;;  %v2140_v26 = vld [vmem:[%s2755_s0 + $0x124] ss:$8 sps:$4 sm:$0xff]   ;;  %v2144_v29 = vld [vmem:[%s2755_s0 + $0x34] ss:$8 sps:$4 sm:$0xff]  }
   0xa   :  { %667 = vmatpush1.bf16.msra.mxu0 %v2112_v3  ;;  %2095 = vmatpush1.bf16.msra.mxu1 %v2112_v3  ;;  %v2142_v27 = vld [vmem:[%s2755_s0 + $0x20] ss:$8 sps:$4 sm:$0xff]   ;;  %v2146_v30 = vld [vmem:[%s2755_s0 + $0x134] ss:$8 sps:$4 sm:$0xff]   ;;  %v2148_v31 = vld [vmem:[%s2755_s0 + $0x30] ss:$8 sps:$4 sm:$0xff]  }
   0xb   :  { %668 = vmatprep.subr.bf16.mxu0 %v2222_v0  ;;  %2080 = vmatprep.subr.bf16.mxu1 %v2222_v0  ;;  %v2143_v28 = vld [vmem:[%s2755_s0 + $0x120] ss:$8 sps:$4 sm:$0xff]   ;;  %v2149_v32 = vld [vmem:[%s2755_s0 + $0x130] ss:$8 sps:$4 sm:$0xff]   ;;  %v2150_v33 = vld [vmem:[%s2755_s0 + $0x44] ss:$8 sps:$4 sm:$0xff]  }
   0xc   :  { %v2152_v34 = vld [vmem:[%s2755_s0 + $0x144] ss:$8 sps:$4 sm:$0xff]   ;;  %v2154_v35 = vld [vmem:[%s2755_s0 + $0x40] ss:$8 sps:$4 sm:$0xff]   ;;  %v2156_v37 = vld [vmem:[%s2755_s0 + $0x54] ss:$8 sps:$4 sm:$0xff]  }
   0xd   :  { %v2155_v36 = vld [vmem:[%s2755_s0 + $0x140] ss:$8 sps:$4 sm:$0xff]   ;;  %v2158_v38 = vld [vmem:[%s2755_s0 + $0x154] ss:$8 sps:$4 sm:$0xff]   ;;  %v2160_v39 = vld [vmem:[%s2755_s0 + $0x50] ss:$8 sps:$4 sm:$0xff]  }
   0xe   :  { %669 = vmatpush1.bf16.msra.mxu0 %v2113_v4  ;;  %2096 = vmatpush1.bf16.msra.mxu1 %v2113_v4  ;;  %v2161_v40 = vld [vmem:[%s2755_s0 + $0x150] ss:$8 sps:$4 sm:$0xff]   ;;  %v2162_v41 = vld [vmem:[%s2755_s0 + $0x64] ss:$8 sps:$4 sm:$0xff]   ;;  %v2166_v43 = vld [vmem:[%s2755_s0 + $0x60] ss:$8 sps:$4 sm:$0xff]  }
   0xf   :  { %670 = vmatprep.subr.bf16.mxu0 %v2222_v0  ;;  %2081 = vmatprep.subr.bf16.mxu1 %v2222_v0  ;;  %v2164_v42 = vld [vmem:[%s2755_s0 + $0x164] ss:$8 sps:$4 sm:$0xff]   ;;  %v2167_v44 = vld [vmem:[%s2755_s0 + $0x160] ss:$8 sps:$4 sm:$0xff]   ;;  %v2168_v45 = vld [vmem:[%s2755_s0 + $0x74] ss:$8 sps:$4 sm:$0xff]  }
  0x10   :  { %v2170_v46 = vld [vmem:[%s2755_s0 + $0x174] ss:$8 sps:$4 sm:$0xff]   ;;  %v2172_v47 = vld [vmem:[%s2755_s0 + $0x70] ss:$8 sps:$4 sm:$0xff]   ;;  %v2174_v49 = vld [vmem:[%s2755_s0 + $0x84] ss:$8 sps:$4 sm:$0xff]  }
  0x11   :  { %v2173_v48 = vld [vmem:[%s2755_s0 + $0x170] ss:$8 sps:$4 sm:$0xff]   ;;  %v2176_v50 = vld [vmem:[%s2755_s0 + $0x184] ss:$8 sps:$4 sm:$0xff]   ;;  %v2178_v51 = vld [vmem:[%s2755_s0 + $0x80] ss:$8 sps:$4 sm:$0xff]  }
  0x12   :  { %671 = vmatpush1.bf16.msra.mxu0 %v2114_v5  ;;  %2097 = vmatpush1.bf16.msra.mxu1 %v2114_v5  ;;  %v2179_v52 = vld [vmem:[%s2755_s0 + $0x180] ss:$8 sps:$4 sm:$0xff]   ;;  %v2180_v53 = vld [vmem:[%s2755_s0 + $0x94] ss:$8 sps:$4 sm:$0xff]   ;;  %v2184_v55 = vld [vmem:[%s2755_s0 + $0x90] ss:$8 sps:$4 sm:$0xff]  }
  0x13   :  { %672 = vmatprep.subr.bf16.mxu0 %v2222_v0  ;;  %2082 = vmatprep.subr.bf16.mxu1 %v2222_v0  ;;  %v2182_v54 = vld [vmem:[%s2755_s0 + $0x194] ss:$8 sps:$4 sm:$0xff]   ;;  %v2185_v56 = vld [vmem:[%s2755_s0 + $0x190] ss:$8 sps:$4 sm:$0xff]   ;;  %v2186_v57 = vld [vmem:[%s2755_s0 + $0xa4] ss:$8 sps:$4 sm:$0xff]  }
  0x14   :  { %v2188_v58 = vld [vmem:[%s2755_s0 + $0x1a4] ss:$8 sps:$4 sm:$0xff]   ;;  %v2190_v59 = vld [vmem:[%s2755_s0 + $0xa0] ss:$8 sps:$4 sm:$0xff]   ;;  %v2192_v61 = vld [vmem:[%s2755_s0 + $0xb4] ss:$8 sps:$4 sm:$0xff]  }
  0x15   :  { %v2191_v60 = vld [vmem:[%s2755_s0 + $0x1a0] ss:$8 sps:$4 sm:$0xff]   ;;  %v2194_v62 = vld [vmem:[%s2755_s0 + $0x1b4] ss:$8 sps:$4 sm:$0xff]   ;;  %v2196_v63 = vld [vmem:[%s2755_s0 + $0xb0] ss:$8 sps:$4 sm:$0xff]  }
  0x16   :  { %673 = vmatpush1.bf16.msra.mxu0 %v2115_v7  ;;  %2098 = vmatpush1.bf16.msra.mxu1 %v2115_v7  ;;  %v2198_v1 = vld [vmem:[%s2755_s0 + $0xc4] ss:$8 sps:$4 sm:$0xff]   ;;  %v2202_v3 = vld [vmem:[%s2755_s0 + $0xc0] ss:$8 sps:$4 sm:$0xff]   ;;  %v2204_v5 = vld [vmem:[%s2755_s0 + $0xd4] ss:$8 sps:$4 sm:$0xff]  }
  0x17   :  { %674 = vmatprep.subr.bf16.mxu0 %v2222_v0  ;;  %2083 = vmatprep.subr.bf16.mxu1 %v2222_v0  ;;  %v2200_v2 = vld [vmem:[%s2755_s0 + $0x1c4] ss:$8 sps:$4 sm:$0xff]   ;;  %v2203_v4 = vld [vmem:[%s2755_s0 + $0x1c0] ss:$8 sps:$4 sm:$0xff]   ;;  %v2206_v6 = vld [vmem:[%s2755_s0 + $0x1d4] ss:$8 sps:$4 sm:$0xff]  }
  0x18   :  { %v2208_v7 = vld [vmem:[%s2755_s0 + $0xd0] ss:$8 sps:$4 sm:$0xff]  }
  0x19   :  { %v2209_v8 = vld [vmem:[%s2755_s0 + $0x1d0] ss:$8 sps:$4 sm:$0xff]  }
  0x1a   :  { %675 = vmatpush1.bf16.msra.mxu0 %v2116_v9  ;;  %2099 = vmatpush1.bf16.msra.mxu1 %v2116_v9  ;;  %v2210_v9 = vld [vmem:[%s2755_s0 + $0xe4] ss:$8 sps:$4 sm:$0xff]  }
  0x1b   :  { %676 = vmatprep.subr.bf16.mxu0 %v2222_v0  ;;  %2084 = vmatprep.subr.bf16.mxu1 %v2222_v0 }
  0x1e   :  { %677 = vmatpush1.bf16.msra.mxu0 %v2117_v10  ;;  %2100 = vmatpush1.bf16.msra.mxu1 %v2117_v10  ;;  %v2212_v10 = vld [vmem:[%s2755_s0 + $0x1e4] ss:$8 sps:$4 sm:$0xff]  }
  0x1f   :  { %678 = vmatprep.subr.bf16.mxu0 %v2222_v0  ;;  %2085 = vmatprep.subr.bf16.mxu1 %v2222_v0 }
  0x22   :  { %679 = vmatpush2.bf16.msra.mxu0 %v2118_v11  ;;  %2101 = vmatpush2.bf16.msra.mxu1 %v2118_v11  ;;  %v2214_v11 = vld [vmem:[%s2755_s0 + $0xe0] ss:$8 sps:$4 sm:$0xff]  }
  0x23   :  { %680 = vmatprep.subr.bf16.mxu0 %v2222_v0  ;;  %2086 = vmatprep.subr.bf16.mxu1 %v2222_v0 }
  0x26   :  { %681 = vmatpush2.bf16.msra.mxu0 %v2119_v12  ;;  %2102 = vmatpush2.bf16.msra.mxu1 %v2119_v12  ;;  %v2215_v12 = vld [vmem:[%s2755_s0 + $0x1e0] ss:$8 sps:$4 sm:$0xff]  }
  0x27   :  { %682 = vmatprep.subr.bf16.mxu0 %v2222_v0  ;;  %2087 = vmatprep.subr.bf16.mxu1 %v2222_v0 }
  0x2a   :  { %683 = vmatpush2.bf16.msra.mxu0 %v2120_v13  ;;  %2103 = vmatpush2.bf16.msra.mxu1 %v2120_v13  ;;  %v2216_v13 = vld [vmem:[%s2755_s0 + $0xf4] ss:$8 sps:$4 sm:$0xff]  }
  0x2b   :  { %684 = vmatprep.subr.bf16.mxu0 %v2222_v0  ;;  %2088 = vmatprep.subr.bf16.mxu1 %v2222_v0 }
  0x2e   :  { %685 = vmatpush2.bf16.msra.mxu0 %v2121_v14  ;;  %2104 = vmatpush2.bf16.msra.mxu1 %v2121_v14  ;;  %v2218_v14 = vld [vmem:[%s2755_s0 + $0x1f4] ss:$8 sps:$4 sm:$0xff]  }
  0x2f   :  { %686 = vmatprep.subr.bf16.mxu0 %v2222_v0  ;;  %2089 = vmatprep.subr.bf16.mxu1 %v2222_v0 }
  0x32   :  { %687 = vmatpush2.bf16.msra.mxu0 %v2122_v15  ;;  %2105 = vmatpush2.bf16.msra.mxu1 %v2122_v15  ;;  %v2220_v15 = vld [vmem:[%s2755_s0 + $0xf0] ss:$8 sps:$4 sm:$0xff]  }
  0x33   :  { %688 = vmatprep.subr.bf16.mxu0 %v2222_v0  ;;  %2090 = vmatprep.subr.bf16.mxu1 %v2222_v0 }
  0x36   :  { %689 = vmatpush2.bf16.msra.mxu0 %v2123_v16  ;;  %2106 = vmatpush2.bf16.msra.mxu1 %v2123_v16  ;;  %v2221_v16 = vld [vmem:[%s2755_s0 + $0x1f0] ss:$8 sps:$4 sm:$0xff]  }
  0x37   :  { %690 = vmatprep.subr.bf16.mxu0 %v2222_v0  ;;  %2091 = vmatprep.subr.bf16.mxu1 %v2222_v0 }
  0x3a   :  { %691 = vmatpush2.bf16.msra.mxu0 %v2124_v17  ;;  %2107 = vmatpush2.bf16.msra.mxu1 %v2124_v17  ;;  %v2523_v17 = vld [vmem:[%s2756_s2] ss:$0 sm:$0xff] }
  0x3b   :  { %692 = vmatprep.subr.bf16.mxu0 %v2222_v0  ;;  %2092 = vmatprep.subr.bf16.mxu1 %v2222_v0  ;;  %v2197_v0 = vld [vmem:[%s2755_s0 + $0x1b0] ss:$8 sps:$4 sm:$0xff]  }
  0x3e   :  { %693 = vmatpush2.bf16.msra.mxu0 %v2125_v18  ;;  %2108 = vmatpush2.bf16.msra.mxu1 %v2125_v18 }
  0x41   :  { %695 = vmatmul.mubr.bf16.vlgmr.msra.gmra.mxu0 %v2126_v19  ;;  %823 = vmatmul.mubr.bf16.vlgmr.msra.gmra.mxu1 %v2129_v20 }
  0x42   :  { %702 = vmatprep.mubr.bf16.mxu0 %v2132_v21  ;;  %830 = vmatprep.mubr.bf16.mxu1 %v2134_v22  ;;  %v2529_v21 = vld [vmem:[%s2757_s3] ss:$0 sm:$0xff] }
  0x49   :  { %703 = vmatmul.mubr.bf16.gmra.mxu0 %v2136_v23  ;;  %831 = vmatmul.mubr.bf16.gmra.mxu1 %v2137_v24 }
  0x4a   :  { %710 = vmatprep.mubr.bf16.mxu0 %v2138_v25  ;;  %838 = vmatprep.mubr.bf16.mxu1 %v2140_v26 }
  0x51   :  { %711 = vmatmul.mubr.bf16.gmra.mxu0 %v2142_v27  ;;  %839 = vmatmul.mubr.bf16.gmra.mxu1 %v2143_v28 }
  0x52   :  { %718 = vmatprep.mubr.bf16.mxu0 %v2144_v29  ;;  %846 = vmatprep.mubr.bf16.mxu1 %v2146_v30 }
  0x59   :  { %719 = vmatmul.mubr.bf16.gmra.mxu0 %v2148_v31  ;;  %847 = vmatmul.mubr.bf16.gmra.mxu1 %v2149_v32 }
  0x5a   :  { %726 = vmatprep.mubr.bf16.mxu0 %v2150_v33  ;;  %854 = vmatprep.mubr.bf16.mxu1 %v2152_v34 }
  0x61   :  { %727 = vmatmul.mubr.bf16.gmra.mxu0 %v2154_v35  ;;  %855 = vmatmul.mubr.bf16.gmra.mxu1 %v2155_v36 }
  0x62   :  { %734 = vmatprep.mubr.bf16.mxu0 %v2156_v37  ;;  %862 = vmatprep.mubr.bf16.mxu1 %v2158_v38 }
  0x69   :  { %735 = vmatmul.mubr.bf16.gmra.mxu0 %v2160_v39  ;;  %863 = vmatmul.mubr.bf16.gmra.mxu1 %v2161_v40 }
  0x6a   :  { %742 = vmatprep.mubr.bf16.mxu0 %v2162_v41  ;;  %870 = vmatprep.mubr.bf16.mxu1 %v2164_v42 }
  0x71   :  { %743 = vmatmul.mubr.bf16.gmra.mxu0 %v2166_v43  ;;  %871 = vmatmul.mubr.bf16.gmra.mxu1 %v2167_v44 }
  0x72   :  { %750 = vmatprep.mubr.bf16.mxu0 %v2168_v45  ;;  %878 = vmatprep.mubr.bf16.mxu1 %v2170_v46 }
  0x79   :  { %751 = vmatmul.mubr.bf16.gmra.mxu0 %v2172_v47  ;;  %879 = vmatmul.mubr.bf16.gmra.mxu1 %v2173_v48 }
  0x7a   :  { %758 = vmatprep.mubr.bf16.mxu0 %v2174_v49  ;;  %886 = vmatprep.mubr.bf16.mxu1 %v2176_v50 }
  0x81   :  { %759 = vmatmul.mubr.bf16.gmra.mxu0 %v2178_v51  ;;  %887 = vmatmul.mubr.bf16.gmra.mxu1 %v2179_v52 }
  0x82   :  { %766 = vmatprep.mubr.bf16.mxu0 %v2180_v53  ;;  %894 = vmatprep.mubr.bf16.mxu1 %v2182_v54 }
  0x89   :  { %767 = vmatmul.mubr.bf16.gmra.mxu0 %v2184_v55  ;;  %895 = vmatmul.mubr.bf16.gmra.mxu1 %v2185_v56 }
  0x8a   :  { %774 = vmatprep.mubr.bf16.mxu0 %v2186_v57  ;;  %902 = vmatprep.mubr.bf16.mxu1 %v2188_v58 }
  0x91   :  { %775 = vmatmul.mubr.bf16.gmra.mxu0 %v2190_v59  ;;  %903 = vmatmul.mubr.bf16.gmra.mxu1 %v2191_v60 }
  0x92   :  { %782 = vmatprep.mubr.bf16.mxu0 %v2192_v61  ;;  %910 = vmatprep.mubr.bf16.mxu1 %v2194_v62 }
  0x99   :  { %783 = vmatmul.mubr.bf16.gmra.mxu0 %v2196_v63  ;;  %911 = vmatmul.mubr.bf16.gmra.mxu1 %v2197_v0 }
  0x9a   :  { %790 = vmatprep.mubr.bf16.mxu0 %v2198_v1  ;;  %918 = vmatprep.mubr.bf16.mxu1 %v2200_v2 }
  0xa1   :  { %791 = vmatmul.mubr.bf16.gmra.mxu0 %v2202_v3  ;;  %919 = vmatmul.mubr.bf16.gmra.mxu1 %v2203_v4 }
  0xa2   :  { %798 = vmatprep.mubr.bf16.mxu0 %v2204_v5  ;;  %926 = vmatprep.mubr.bf16.mxu1 %v2206_v6 }
  0xa9   :  { %799 = vmatmul.mubr.bf16.gmra.mxu0 %v2208_v7  ;;  %927 = vmatmul.mubr.bf16.gmra.mxu1 %v2209_v8 }
  0xaa   :  { %806 = vmatprep.mubr.bf16.mxu0 %v2210_v9  ;;  %934 = vmatprep.mubr.bf16.mxu1 %v2212_v10 }
  0xb1   :  { %807 = vmatmul.mubr.bf16.gmra.mxu0 %v2214_v11  ;;  %935 = vmatmul.mubr.bf16.gmra.mxu1 %v2215_v12 }
  0xb2   :  { %814 = vmatprep.mubr.bf16.mxu0 %v2216_v13  ;;  %942 = vmatprep.mubr.bf16.mxu1 %v2218_v14 }
  0xb9   :  { %815 = vmatmul.mubr.bf16.gmra.mxu0 %v2220_v15  ;;  %943 = vmatmul.mubr.bf16.gmra.mxu1 %v2221_v16 }
 0x101   :  { %v696_v18 = vpop.f32.mrf.mxu0  ;;  %v824_v19 = vpop.f32.mrf.mxu1 }
 0x102   :  { %v1153_v20 = vmul.f32 %v2523_v17, %v696_v18  ;;  %v1185_v22 = vmul.f32 %v2523_v17, %v824_v19 }
 0x103   :  { %v698_v23 = vpop.f32.mrf.mxu0  ;;  %v826_v24 = vpop.f32.mrf.mxu1 }
 0x104   :  { %v1224_v25 = vadd.f32 %v2529_v21, %v1153_v20  ;;  %v1256_v26 = vadd.f32 %v2529_v21, %v1185_v22 }
 0x105   :  { %v699_v27 = vpop.f32.mrf.mxu0  ;;  %v827_v28 = vpop.f32.mrf.mxu1 }
 0x106   :  { %v1154_v29 = vmul.f32 %v2523_v17, %v699_v27  ;;  %v1186_v30 = vmul.f32 %v2523_v17, %v827_v28  ;;  %v1288_v35 = vmax.f32 %v1224_v25, 0.0  ;;  %v1320_v36 = vmax.f32 %v1256_v26, 0.0 }
 0x107   :  { %v701_v31 = vpop.f32.mrf.mxu0  ;;  %v829_v32 = vpop.f32.mrf.mxu1 }
 0x108   :  { %v1225_v33 = vadd.f32 %v2529_v21, %v1154_v29  ;;  %v1257_v34 = vadd.f32 %v2529_v21, %v1186_v30 }
 0x109   :  { %v704_v37 = vpop.f32.mrf.mxu0  ;;  %v832_v38 = vpop.f32.mrf.mxu1 }
 0x10a   :  { %v1289_v39 = vmax.f32 %v1225_v33, 0.0  ;;  %v1321_v40 = vmax.f32 %v1257_v34, 0.0  ;;  %v1155_v41 = vmul.f32 %v2523_v17, %v704_v37  ;;  %v1187_v42 = vmul.f32 %v2523_v17, %v832_v38 }
 0x10b   :  { %v706_v43 = vpop.f32.mrf.mxu0  ;;  %v834_v44 = vpop.f32.mrf.mxu1 }
 0x10c   :  { %v1889_v45 = vpack.c.bf16 %v1289_v39, %v1288_v35  ;;  %v1969_v46 = vpack.c.bf16 %v1321_v40, %v1320_v36  ;;  %v1226_v47 = vadd.f32 %v2529_v21, %v1155_v41  ;;  %v1258_v48 = vadd.f32 %v2529_v21, %v1187_v42 }
 0x10d   :  { %v707_v49 = vpop.f32.mrf.mxu0  ;;  %v835_v50 = vpop.f32.mrf.mxu1 }
 0x10e   :  { %1890 = vst [vmem:[%s2758_s4] sm:$0xff] %v1889_v45   ;;  %2061 = vst [vmem:[%s2758_s4 + $0x80] sm:$0xff] %v1969_v46   ;;  %v1156_v51 = vmul.f32 %v2523_v17, %v707_v49  ;;  %v1188_v52 = vmul.f32 %v2523_v17, %v835_v50  ;;  %v1290_v57 = vmax.f32 %v1226_v47, 0.0  ;;  %v1322_v58 = vmax.f32 %v1258_v48, 0.0 }
 0x10f   :  { %v709_v53 = vpop.f32.mrf.mxu0  ;;  %v837_v54 = vpop.f32.mrf.mxu1 }
 0x110   :  { %v1227_v55 = vadd.f32 %v2529_v21, %v1156_v51  ;;  %v1259_v56 = vadd.f32 %v2529_v21, %v1188_v52 }
 0x111   :  { %v712_v59 = vpop.f32.mrf.mxu0  ;;  %v840_v60 = vpop.f32.mrf.mxu1 }
 0x112   :  { %v1291_v61 = vmax.f32 %v1227_v55, 0.0  ;;  %v1323_v62 = vmax.f32 %v1259_v56, 0.0  ;;  %v1157_v63 = vmul.f32 %v2523_v17, %v712_v59  ;;  %v1189_v0 = vmul.f32 %v2523_v17, %v840_v60 }
 0x113   :  { %v714_v1 = vpop.f32.mrf.mxu0  ;;  %v842_v2 = vpop.f32.mrf.mxu1 }
 0x114   :  { %v1894_v3 = vpack.c.bf16 %v1291_v61, %v1290_v57  ;;  %v1974_v4 = vpack.c.bf16 %v1323_v62, %v1322_v58  ;;  %v1228_v5 = vadd.f32 %v2529_v21, %v1157_v63  ;;  %v1260_v6 = vadd.f32 %v2529_v21, %v1189_v0 }
 0x115   :  { %v715_v7 = vpop.f32.mrf.mxu0  ;;  %v843_v8 = vpop.f32.mrf.mxu1 }
 0x116   :  { %2046 = vst [vmem:[%s2758_s4 + $0x8] sm:$0xff] %v1894_v3   ;;  %2062 = vst [vmem:[%s2758_s4 + $0x88] sm:$0xff] %v1974_v4   ;;  %v1158_v9 = vmul.f32 %v2523_v17, %v715_v7  ;;  %v1190_v10 = vmul.f32 %v2523_v17, %v843_v8  ;;  %v1292_v15 = vmax.f32 %v1228_v5, 0.0  ;;  %v1324_v16 = vmax.f32 %v1260_v6, 0.0 }
 0x117   :  { %v717_v11 = vpop.f32.mrf.mxu0  ;;  %v845_v12 = vpop.f32.mrf.mxu1 }
 0x118   :  { %v1229_v13 = vadd.f32 %v2529_v21, %v1158_v9  ;;  %v1261_v14 = vadd.f32 %v2529_v21, %v1190_v10 }
 0x119   :  { %v720_v18 = vpop.f32.mrf.mxu0  ;;  %v848_v19 = vpop.f32.mrf.mxu1 }
 0x11a   :  { %v1293_v20 = vmax.f32 %v1229_v13, 0.0  ;;  %v1325_v22 = vmax.f32 %v1261_v14, 0.0  ;;  %v1159_v23 = vmul.f32 %v2523_v17, %v720_v18  ;;  %v1191_v24 = vmul.f32 %v2523_v17, %v848_v19 }
 0x11b   :  { %v722_v25 = vpop.f32.mrf.mxu0  ;;  %v850_v26 = vpop.f32.mrf.mxu1 }
 0x11c   :  { %v1899_v27 = vpack.c.bf16 %v1293_v20, %v1292_v15  ;;  %v1979_v28 = vpack.c.bf16 %v1325_v22, %v1324_v16  ;;  %v1230_v29 = vadd.f32 %v2529_v21, %v1159_v23  ;;  %v1262_v30 = vadd.f32 %v2529_v21, %v1191_v24 }
 0x11d   :  { %v723_v31 = vpop.f32.mrf.mxu0  ;;  %v851_v32 = vpop.f32.mrf.mxu1 }
 0x11e   :  { %2047 = vst [vmem:[%s2758_s4 + $0x10] sm:$0xff] %v1899_v27   ;;  %2063 = vst [vmem:[%s2758_s4 + $0x90] sm:$0xff] %v1979_v28   ;;  %v1160_v33 = vmul.f32 %v2523_v17, %v723_v31  ;;  %v1192_v34 = vmul.f32 %v2523_v17, %v851_v32  ;;  %v1294_v39 = vmax.f32 %v1230_v29, 0.0  ;;  %v1326_v40 = vmax.f32 %v1262_v30, 0.0 }
 0x11f   :  { %v725_v35 = vpop.f32.mrf.mxu0  ;;  %v853_v36 = vpop.f32.mrf.mxu1 }
 0x120   :  { %v1231_v37 = vadd.f32 %v2529_v21, %v1160_v33  ;;  %v1263_v38 = vadd.f32 %v2529_v21, %v1192_v34 }
 0x121   :  { %v728_v41 = vpop.f32.mrf.mxu0  ;;  %v856_v42 = vpop.f32.mrf.mxu1 }
 0x122   :  { %v1295_v43 = vmax.f32 %v1231_v37, 0.0  ;;  %v1327_v44 = vmax.f32 %v1263_v38, 0.0  ;;  %v1161_v45 = vmul.f32 %v2523_v17, %v728_v41  ;;  %v1193_v46 = vmul.f32 %v2523_v17, %v856_v42 }
 0x123   :  { %v730_v47 = vpop.f32.mrf.mxu0  ;;  %v858_v48 = vpop.f32.mrf.mxu1 }
 0x124   :  { %v1904_v49 = vpack.c.bf16 %v1295_v43, %v1294_v39  ;;  %v1984_v50 = vpack.c.bf16 %v1327_v44, %v1326_v40  ;;  %v1232_v51 = vadd.f32 %v2529_v21, %v1161_v45  ;;  %v1264_v52 = vadd.f32 %v2529_v21, %v1193_v46 }
 0x125   :  { %v731_v53 = vpop.f32.mrf.mxu0  ;;  %v859_v54 = vpop.f32.mrf.mxu1 }
 0x126   :  { %2048 = vst [vmem:[%s2758_s4 + $0x18] sm:$0xff] %v1904_v49   ;;  %2064 = vst [vmem:[%s2758_s4 + $0x98] sm:$0xff] %v1984_v50   ;;  %v1162_v55 = vmul.f32 %v2523_v17, %v731_v53  ;;  %v1194_v56 = vmul.f32 %v2523_v17, %v859_v54  ;;  %v1296_v61 = vmax.f32 %v1232_v51, 0.0  ;;  %v1328_v62 = vmax.f32 %v1264_v52, 0.0 }
 0x127   :  { %v733_v57 = vpop.f32.mrf.mxu0  ;;  %v861_v58 = vpop.f32.mrf.mxu1 }
 0x128   :  { %v1233_v59 = vadd.f32 %v2529_v21, %v1162_v55  ;;  %v1265_v60 = vadd.f32 %v2529_v21, %v1194_v56 }
 0x129   :  { %v736_v63 = vpop.f32.mrf.mxu0  ;;  %v864_v0 = vpop.f32.mrf.mxu1 }
 0x12a   :  { %v1297_v1 = vmax.f32 %v1233_v59, 0.0  ;;  %v1329_v2 = vmax.f32 %v1265_v60, 0.0  ;;  %v1163_v3 = vmul.f32 %v2523_v17, %v736_v63  ;;  %v1195_v4 = vmul.f32 %v2523_v17, %v864_v0 }
 0x12b   :  { %v738_v5 = vpop.f32.mrf.mxu0  ;;  %v866_v6 = vpop.f32.mrf.mxu1 }
 0x12c   :  { %v1909_v7 = vpack.c.bf16 %v1297_v1, %v1296_v61  ;;  %v1989_v8 = vpack.c.bf16 %v1329_v2, %v1328_v62  ;;  %v1234_v9 = vadd.f32 %v2529_v21, %v1163_v3  ;;  %v1266_v10 = vadd.f32 %v2529_v21, %v1195_v4 }
 0x12d   :  { %v739_v11 = vpop.f32.mrf.mxu0  ;;  %v867_v12 = vpop.f32.mrf.mxu1 }
 0x12e   :  { %2049 = vst [vmem:[%s2758_s4 + $0x20] sm:$0xff] %v1909_v7   ;;  %2065 = vst [vmem:[%s2758_s4 + $0xa0] sm:$0xff] %v1989_v8   ;;  %v1164_v13 = vmul.f32 %v2523_v17, %v739_v11  ;;  %v1196_v14 = vmul.f32 %v2523_v17, %v867_v12  ;;  %v1298_v20 = vmax.f32 %v1234_v9, 0.0  ;;  %v1330_v22 = vmax.f32 %v1266_v10, 0.0 }
 0x12f   :  { %v741_v15 = vpop.f32.mrf.mxu0  ;;  %v869_v16 = vpop.f32.mrf.mxu1 }
 0x130   :  { %v1235_v18 = vadd.f32 %v2529_v21, %v1164_v13  ;;  %v1267_v19 = vadd.f32 %v2529_v21, %v1196_v14 }
 0x131   :  { %v744_v23 = vpop.f32.mrf.mxu0  ;;  %v872_v24 = vpop.f32.mrf.mxu1 }
 0x132   :  { %v1299_v25 = vmax.f32 %v1235_v18, 0.0  ;;  %v1331_v26 = vmax.f32 %v1267_v19, 0.0  ;;  %v1165_v27 = vmul.f32 %v2523_v17, %v744_v23  ;;  %v1197_v28 = vmul.f32 %v2523_v17, %v872_v24 }
 0x133   :  { %v746_v29 = vpop.f32.mrf.mxu0  ;;  %v874_v30 = vpop.f32.mrf.mxu1 }
 0x134   :  { %v1914_v31 = vpack.c.bf16 %v1299_v25, %v1298_v20  ;;  %v1994_v32 = vpack.c.bf16 %v1331_v26, %v1330_v22  ;;  %v1236_v33 = vadd.f32 %v2529_v21, %v1165_v27  ;;  %v1268_v34 = vadd.f32 %v2529_v21, %v1197_v28 }
 0x135   :  { %v747_v35 = vpop.f32.mrf.mxu0  ;;  %v875_v36 = vpop.f32.mrf.mxu1 }
 0x136   :  { %2050 = vst [vmem:[%s2758_s4 + $0x28] sm:$0xff] %v1914_v31   ;;  %2066 = vst [vmem:[%s2758_s4 + $0xa8] sm:$0xff] %v1994_v32   ;;  %v1166_v37 = vmul.f32 %v2523_v17, %v747_v35  ;;  %v1198_v38 = vmul.f32 %v2523_v17, %v875_v36  ;;  %v1300_v43 = vmax.f32 %v1236_v33, 0.0  ;;  %v1332_v44 = vmax.f32 %v1268_v34, 0.0 }
 0x137   :  { %v749_v39 = vpop.f32.mrf.mxu0  ;;  %v877_v40 = vpop.f32.mrf.mxu1 }
 0x138   :  { %v1237_v41 = vadd.f32 %v2529_v21, %v1166_v37  ;;  %v1269_v42 = vadd.f32 %v2529_v21, %v1198_v38 }
 0x139   :  { %v752_v45 = vpop.f32.mrf.mxu0  ;;  %v880_v46 = vpop.f32.mrf.mxu1 }
 0x13a   :  { %v1301_v47 = vmax.f32 %v1237_v41, 0.0  ;;  %v1333_v48 = vmax.f32 %v1269_v42, 0.0  ;;  %v1167_v49 = vmul.f32 %v2523_v17, %v752_v45  ;;  %v1199_v50 = vmul.f32 %v2523_v17, %v880_v46 }
 0x13b   :  { %v754_v51 = vpop.f32.mrf.mxu0  ;;  %v882_v52 = vpop.f32.mrf.mxu1 }
 0x13c   :  { %v1919_v53 = vpack.c.bf16 %v1301_v47, %v1300_v43  ;;  %v1999_v54 = vpack.c.bf16 %v1333_v48, %v1332_v44  ;;  %v1238_v55 = vadd.f32 %v2529_v21, %v1167_v49  ;;  %v1270_v56 = vadd.f32 %v2529_v21, %v1199_v50 }
 0x13d   :  { %v755_v57 = vpop.f32.mrf.mxu0  ;;  %v883_v58 = vpop.f32.mrf.mxu1 }
 0x13e   :  { %2051 = vst [vmem:[%s2758_s4 + $0x30] sm:$0xff] %v1919_v53   ;;  %2067 = vst [vmem:[%s2758_s4 + $0xb0] sm:$0xff] %v1999_v54   ;;  %v1168_v59 = vmul.f32 %v2523_v17, %v755_v57  ;;  %v1200_v60 = vmul.f32 %v2523_v17, %v883_v58  ;;  %v1302_v1 = vmax.f32 %v1238_v55, 0.0  ;;  %v1334_v2 = vmax.f32 %v1270_v56, 0.0 }
 0x13f   :  { %v757_v61 = vpop.f32.mrf.mxu0  ;;  %v885_v62 = vpop.f32.mrf.mxu1 }
 0x140   :  { %v1239_v63 = vadd.f32 %v2529_v21, %v1168_v59  ;;  %v1271_v0 = vadd.f32 %v2529_v21, %v1200_v60 }
 0x141   :  { %v760_v3 = vpop.f32.mrf.mxu0  ;;  %v888_v4 = vpop.f32.mrf.mxu1 }
 0x142   :  { %v1303_v5 = vmax.f32 %v1239_v63, 0.0  ;;  %v1335_v6 = vmax.f32 %v1271_v0, 0.0  ;;  %v1169_v7 = vmul.f32 %v2523_v17, %v760_v3  ;;  %v1201_v8 = vmul.f32 %v2523_v17, %v888_v4 }
 0x143   :  { %v762_v9 = vpop.f32.mrf.mxu0  ;;  %v890_v10 = vpop.f32.mrf.mxu1 }
 0x144   :  { %v1924_v11 = vpack.c.bf16 %v1303_v5, %v1302_v1  ;;  %v2004_v12 = vpack.c.bf16 %v1335_v6, %v1334_v2  ;;  %v1240_v13 = vadd.f32 %v2529_v21, %v1169_v7  ;;  %v1272_v14 = vadd.f32 %v2529_v21, %v1201_v8 }
 0x145   :  { %v763_v15 = vpop.f32.mrf.mxu0  ;;  %v891_v16 = vpop.f32.mrf.mxu1 }
 0x146   :  { %2052 = vst [vmem:[%s2758_s4 + $0x38] sm:$0xff] %v1924_v11   ;;  %2068 = vst [vmem:[%s2758_s4 + $0xb8] sm:$0xff] %v2004_v12   ;;  %v1170_v18 = vmul.f32 %v2523_v17, %v763_v15  ;;  %v1202_v19 = vmul.f32 %v2523_v17, %v891_v16  ;;  %v1304_v25 = vmax.f32 %v1240_v13, 0.0  ;;  %v1336_v26 = vmax.f32 %v1272_v14, 0.0 }
 0x147   :  { %v765_v20 = vpop.f32.mrf.mxu0  ;;  %v893_v22 = vpop.f32.mrf.mxu1 }
 0x148   :  { %v1241_v23 = vadd.f32 %v2529_v21, %v1170_v18  ;;  %v1273_v24 = vadd.f32 %v2529_v21, %v1202_v19 }
 0x149   :  { %v768_v27 = vpop.f32.mrf.mxu0  ;;  %v896_v28 = vpop.f32.mrf.mxu1 }
 0x14a   :  { %v1305_v29 = vmax.f32 %v1241_v23, 0.0  ;;  %v1337_v30 = vmax.f32 %v1273_v24, 0.0  ;;  %v1171_v31 = vmul.f32 %v2523_v17, %v768_v27  ;;  %v1203_v32 = vmul.f32 %v2523_v17, %v896_v28 }
 0x14b   :  { %v770_v33 = vpop.f32.mrf.mxu0  ;;  %v898_v34 = vpop.f32.mrf.mxu1 }
 0x14c   :  { %v1929_v35 = vpack.c.bf16 %v1305_v29, %v1304_v25  ;;  %v2009_v36 = vpack.c.bf16 %v1337_v30, %v1336_v26  ;;  %v1242_v37 = vadd.f32 %v2529_v21, %v1171_v31  ;;  %v1274_v38 = vadd.f32 %v2529_v21, %v1203_v32 }
 0x14d   :  { %v771_v39 = vpop.f32.mrf.mxu0  ;;  %v899_v40 = vpop.f32.mrf.mxu1 }
 0x14e   :  { %2053 = vst [vmem:[%s2758_s4 + $0x40] sm:$0xff] %v1929_v35   ;;  %2069 = vst [vmem:[%s2758_s4 + $0xc0] sm:$0xff] %v2009_v36   ;;  %v1172_v41 = vmul.f32 %v2523_v17, %v771_v39  ;;  %v1204_v42 = vmul.f32 %v2523_v17, %v899_v40  ;;  %v1306_v47 = vmax.f32 %v1242_v37, 0.0  ;;  %v1338_v48 = vmax.f32 %v1274_v38, 0.0 }
 0x14f   :  { %v773_v43 = vpop.f32.mrf.mxu0  ;;  %v901_v44 = vpop.f32.mrf.mxu1 }
 0x150   :  { %v1243_v45 = vadd.f32 %v2529_v21, %v1172_v41  ;;  %v1275_v46 = vadd.f32 %v2529_v21, %v1204_v42 }
 0x151   :  { %v776_v49 = vpop.f32.mrf.mxu0  ;;  %v904_v50 = vpop.f32.mrf.mxu1 }
 0x152   :  { %v1307_v51 = vmax.f32 %v1243_v45, 0.0  ;;  %v1339_v52 = vmax.f32 %v1275_v46, 0.0  ;;  %v1173_v53 = vmul.f32 %v2523_v17, %v776_v49  ;;  %v1205_v54 = vmul.f32 %v2523_v17, %v904_v50 }
 0x153   :  { %v778_v55 = vpop.f32.mrf.mxu0  ;;  %v906_v56 = vpop.f32.mrf.mxu1 }
 0x154   :  { %v1934_v57 = vpack.c.bf16 %v1307_v51, %v1306_v47  ;;  %v2014_v58 = vpack.c.bf16 %v1339_v52, %v1338_v48  ;;  %v1244_v59 = vadd.f32 %v2529_v21, %v1173_v53  ;;  %v1276_v60 = vadd.f32 %v2529_v21, %v1205_v54 }
 0x155   :  { %v779_v61 = vpop.f32.mrf.mxu0  ;;  %v907_v62 = vpop.f32.mrf.mxu1 }
 0x156   :  { %2054 = vst [vmem:[%s2758_s4 + $0x48] sm:$0xff] %v1934_v57   ;;  %2070 = vst [vmem:[%s2758_s4 + $0xc8] sm:$0xff] %v2014_v58   ;;  %v1174_v63 = vmul.f32 %v2523_v17, %v779_v61  ;;  %v1206_v0 = vmul.f32 %v2523_v17, %v907_v62  ;;  %v1308_v5 = vmax.f32 %v1244_v59, 0.0  ;;  %v1340_v6 = vmax.f32 %v1276_v60, 0.0 }
 0x157   :  { %v781_v1 = vpop.f32.mrf.mxu0  ;;  %v909_v2 = vpop.f32.mrf.mxu1 }
 0x158   :  { %v1245_v3 = vadd.f32 %v2529_v21, %v1174_v63  ;;  %v1277_v4 = vadd.f32 %v2529_v21, %v1206_v0 }
 0x159   :  { %v784_v7 = vpop.f32.mrf.mxu0  ;;  %v912_v8 = vpop.f32.mrf.mxu1 }
 0x15a   :  { %v1309_v9 = vmax.f32 %v1245_v3, 0.0  ;;  %v1341_v10 = vmax.f32 %v1277_v4, 0.0  ;;  %v1175_v11 = vmul.f32 %v2523_v17, %v784_v7  ;;  %v1207_v12 = vmul.f32 %v2523_v17, %v912_v8 }
 0x15b   :  { %v786_v13 = vpop.f32.mrf.mxu0  ;;  %v914_v14 = vpop.f32.mrf.mxu1 }
 0x15c   :  { %v1939_v15 = vpack.c.bf16 %v1309_v9, %v1308_v5  ;;  %v2019_v16 = vpack.c.bf16 %v1341_v10, %v1340_v6  ;;  %v1246_v18 = vadd.f32 %v2529_v21, %v1175_v11  ;;  %v1278_v19 = vadd.f32 %v2529_v21, %v1207_v12 }
 0x15d   :  { %v787_v20 = vpop.f32.mrf.mxu0  ;;  %v915_v22 = vpop.f32.mrf.mxu1 }
 0x15e   :  { %2055 = vst [vmem:[%s2758_s4 + $0x50] sm:$0xff] %v1939_v15   ;;  %2071 = vst [vmem:[%s2758_s4 + $0xd0] sm:$0xff] %v2019_v16   ;;  %v1176_v23 = vmul.f32 %v2523_v17, %v787_v20  ;;  %v1208_v24 = vmul.f32 %v2523_v17, %v915_v22  ;;  %v1310_v29 = vmax.f32 %v1246_v18, 0.0  ;;  %v1342_v30 = vmax.f32 %v1278_v19, 0.0 }
 0x15f   :  { %v789_v25 = vpop.f32.mrf.mxu0  ;;  %v917_v26 = vpop.f32.mrf.mxu1 }
 0x160   :  { %v1247_v27 = vadd.f32 %v2529_v21, %v1176_v23  ;;  %v1279_v28 = vadd.f32 %v2529_v21, %v1208_v24 }
 0x161   :  { %v792_v31 = vpop.f32.mrf.mxu0  ;;  %v920_v32 = vpop.f32.mrf.mxu1 }
 0x162   :  { %v1311_v33 = vmax.f32 %v1247_v27, 0.0  ;;  %v1343_v34 = vmax.f32 %v1279_v28, 0.0  ;;  %v1177_v35 = vmul.f32 %v2523_v17, %v792_v31  ;;  %v1209_v36 = vmul.f32 %v2523_v17, %v920_v32 }
 0x163   :  { %v794_v37 = vpop.f32.mrf.mxu0  ;;  %v922_v38 = vpop.f32.mrf.mxu1 }
 0x164   :  { %v1944_v39 = vpack.c.bf16 %v1311_v33, %v1310_v29  ;;  %v2024_v40 = vpack.c.bf16 %v1343_v34, %v1342_v30  ;;  %v1248_v41 = vadd.f32 %v2529_v21, %v1177_v35  ;;  %v1280_v42 = vadd.f32 %v2529_v21, %v1209_v36 }
 0x165   :  { %v795_v43 = vpop.f32.mrf.mxu0  ;;  %v923_v44 = vpop.f32.mrf.mxu1 }
 0x166   :  { %2056 = vst [vmem:[%s2758_s4 + $0x58] sm:$0xff] %v1944_v39   ;;  %2072 = vst [vmem:[%s2758_s4 + $0xd8] sm:$0xff] %v2024_v40   ;;  %v1178_v45 = vmul.f32 %v2523_v17, %v795_v43  ;;  %v1210_v46 = vmul.f32 %v2523_v17, %v923_v44  ;;  %v1312_v51 = vmax.f32 %v1248_v41, 0.0  ;;  %v1344_v52 = vmax.f32 %v1280_v42, 0.0 }
 0x167   :  { %v797_v47 = vpop.f32.mrf.mxu0  ;;  %v925_v48 = vpop.f32.mrf.mxu1 }
 0x168   :  { %v1249_v49 = vadd.f32 %v2529_v21, %v1178_v45  ;;  %v1281_v50 = vadd.f32 %v2529_v21, %v1210_v46 }
 0x169   :  { %v800_v53 = vpop.f32.mrf.mxu0  ;;  %v928_v54 = vpop.f32.mrf.mxu1 }
 0x16a   :  { %v1313_v55 = vmax.f32 %v1249_v49, 0.0  ;;  %v1345_v56 = vmax.f32 %v1281_v50, 0.0  ;;  %v1179_v57 = vmul.f32 %v2523_v17, %v800_v53  ;;  %v1211_v58 = vmul.f32 %v2523_v17, %v928_v54 }
 0x16b   :  { %v802_v59 = vpop.f32.mrf.mxu0  ;;  %v930_v60 = vpop.f32.mrf.mxu1 }
 0x16c   :  { %v1949_v61 = vpack.c.bf16 %v1313_v55, %v1312_v51  ;;  %v2029_v62 = vpack.c.bf16 %v1345_v56, %v1344_v52  ;;  %v1250_v63 = vadd.f32 %v2529_v21, %v1179_v57  ;;  %v1282_v0 = vadd.f32 %v2529_v21, %v1211_v58 }
 0x16d   :  { %v803_v1 = vpop.f32.mrf.mxu0  ;;  %v931_v2 = vpop.f32.mrf.mxu1 }
 0x16e   :  { %2057 = vst [vmem:[%s2758_s4 + $0x60] sm:$0xff] %v1949_v61   ;;  %2073 = vst [vmem:[%s2758_s4 + $0xe0] sm:$0xff] %v2029_v62   ;;  %v1180_v3 = vmul.f32 %v2523_v17, %v803_v1  ;;  %v1212_v4 = vmul.f32 %v2523_v17, %v931_v2  ;;  %v1314_v9 = vmax.f32 %v1250_v63, 0.0  ;;  %v1346_v10 = vmax.f32 %v1282_v0, 0.0 }
 0x16f   :  { %v805_v5 = vpop.f32.mrf.mxu0  ;;  %v933_v6 = vpop.f32.mrf.mxu1 }
 0x170   :  { %v1251_v7 = vadd.f32 %v2529_v21, %v1180_v3  ;;  %v1283_v8 = vadd.f32 %v2529_v21, %v1212_v4 }
 0x171   :  { %v808_v11 = vpop.f32.mrf.mxu0  ;;  %v936_v12 = vpop.f32.mrf.mxu1 }
 0x172   :  { %v1315_v13 = vmax.f32 %v1251_v7, 0.0  ;;  %v1347_v14 = vmax.f32 %v1283_v8, 0.0  ;;  %v1181_v15 = vmul.f32 %v2523_v17, %v808_v11  ;;  %v1213_v16 = vmul.f32 %v2523_v17, %v936_v12 }
 0x173   :  { %v810_v18 = vpop.f32.mrf.mxu0  ;;  %v938_v19 = vpop.f32.mrf.mxu1 }
 0x174   :  { %v1954_v20 = vpack.c.bf16 %v1315_v13, %v1314_v9  ;;  %v2034_v22 = vpack.c.bf16 %v1347_v14, %v1346_v10  ;;  %v1252_v23 = vadd.f32 %v2529_v21, %v1181_v15  ;;  %v1284_v24 = vadd.f32 %v2529_v21, %v1213_v16 }
 0x175   :  { %v811_v25 = vpop.f32.mrf.mxu0  ;;  %v939_v26 = vpop.f32.mrf.mxu1 }
 0x176   :  { %2058 = vst [vmem:[%s2758_s4 + $0x68] sm:$0xff] %v1954_v20   ;;  %2074 = vst [vmem:[%s2758_s4 + $0xe8] sm:$0xff] %v2034_v22   ;;  %v1182_v27 = vmul.f32 %v2523_v17, %v811_v25  ;;  %v1214_v28 = vmul.f32 %v2523_v17, %v939_v26  ;;  %v1316_v33 = vmax.f32 %v1252_v23, 0.0  ;;  %v1348_v34 = vmax.f32 %v1284_v24, 0.0 }
 0x177   :  { %v813_v29 = vpop.f32.mrf.mxu0  ;;  %v941_v30 = vpop.f32.mrf.mxu1 }
 0x178   :  { %v1253_v31 = vadd.f32 %v2529_v21, %v1182_v27  ;;  %v1285_v32 = vadd.f32 %v2529_v21, %v1214_v28 }
 0x179   :  { %v816_v35 = vpop.f32.mrf.mxu0  ;;  %v944_v36 = vpop.f32.mrf.mxu1 }
 0x17a   :  { %v1317_v37 = vmax.f32 %v1253_v31, 0.0  ;;  %v1349_v38 = vmax.f32 %v1285_v32, 0.0  ;;  %v1183_v39 = vmul.f32 %v2523_v17, %v816_v35  ;;  %v1215_v40 = vmul.f32 %v2523_v17, %v944_v36 }
 0x17b   :  { %v818_v41 = vpop.f32.mrf.mxu0  ;;  %v946_v42 = vpop.f32.mrf.mxu1 }
 0x17c   :  { %v1959_v43 = vpack.c.bf16 %v1317_v37, %v1316_v33  ;;  %v2039_v44 = vpack.c.bf16 %v1349_v38, %v1348_v34  ;;  %v1254_v47 = vadd.f32 %v2529_v21, %v1183_v39  ;;  %v1286_v48 = vadd.f32 %v2529_v21, %v1215_v40 }
 0x17d   :  { %v819_v45 = vpop.f32.mrf.mxu0  ;;  %v947_v46 = vpop.f32.mrf.mxu1 }
 0x17e   :  { %2059 = vst [vmem:[%s2758_s4 + $0x70] sm:$0xff] %v1959_v43   ;;  %2075 = vst [vmem:[%s2758_s4 + $0xf0] sm:$0xff] %v2039_v44   ;;  %v1184_v49 = vmul.f32 %v2523_v17, %v819_v45  ;;  %v1216_v50 = vmul.f32 %v2523_v17, %v947_v46  ;;  %v1318_v55 = vmax.f32 %v1254_v47, 0.0  ;;  %v1350_v56 = vmax.f32 %v1286_v48, 0.0 }
 0x17f   :  { %v821_v51 = vpop.f32.mrf.mxu0  ;;  %v949_v52 = vpop.f32.mrf.mxu1 }
 0x180   :  { %v1255_v53 = vadd.f32 %v2529_v21, %v1184_v49  ;;  %v1287_v54 = vadd.f32 %v2529_v21, %v1216_v50 }
 0x182   :  { %v1319_v57 = vmax.f32 %v1255_v53, 0.0  ;;  %v1351_v58 = vmax.f32 %v1287_v54, 0.0 }
 0x184   :  { %v1964_v59 = vpack.c.bf16 %v1319_v57, %v1318_v55  ;;  %v2044_v60 = vpack.c.bf16 %v1351_v58, %v1350_v56 }
 0x186   :  { %2060 = vst [vmem:[%s2758_s4 + $0x78] sm:$0xff] %v1964_v59   ;;  %2076 = vst [vmem:[%s2758_s4 + $0xf8] sm:$0xff] %v2044_v60  }

// kernel: resnet18_forward.24
= control target key start
LH: loop header
LB: loop body
LE: loop exit
PB: predicated region body
PF: predicated region fallthrough
CT: control target
= control target key end

     0   :  { %s1446_s18 = smov 0   ;;  %s1448_s19 = smov 0   ;;  %s1641_s0 = inlined_call_operand.vmem [shape: bf16[128,640], index: 0, kind: input, shape index: {}]   ;;  %s1642_s1 = inlined_call_operand.vmem [shape: bf16[640,128], index: 1, kind: input, shape index: {}]   ;;  %s1643_s2 = inlined_call_operand.vmem [shape: f32[1,128], index: 2, kind: input, shape index: {}]   ;;  %s1644_s3 = inlined_call_operand.vmem [shape: f32[1,128], index: 3, kind: input, shape index: {}]   ;;  %s1645_s4 = inlined_call_operand.vmem [shape: bf16[128,128], index: 4, kind: input, shape index: {}]   ;;  %s1646_s5 = inlined_call_operand.vmem [shape: bf16[128,128], index: 5, kind: output, shape index: {}]  }
   0x1   :  { %s1450_s20 = smov 0   ;;  %s1452_s21 = smov 0  }
   0x2   :  { %s1454_s22 = smov 0  }
   0x3 LB: > { %s27_s23 = sadd.s32 1, %s1409_s21  ;;  %p50_p1 = scmp.ne.s32.totalorder %s1401_s19, %s1397_s18  ;;  %s1413_s22 = sphi %s1454_s22, %s15_s22   ;;  %s1409_s21 = sphi %s1452_s21, %s1650_s21   ;;  %s1405_s20 = sphi %s1450_s20, %s1649_s20   ;;  %s1401_s19 = sphi %s1448_s19, %s1648_s19   ;;  %s1397_s18 = sphi %s1446_s18, %s1647_s18  }
   0x4   : > { %p28_p0 = scmp.ge.s32.totalorder %s27_s23, 5  ;;  %p51_p2 = scmp.eq.s32.totalorder %s1413_s22, 0 }
   0x5   : > { %s43_s25 = sadd.s32 1, %s1401_s19  ;;  %p1105_p5 = scmp.ge.s32.totalorder %s1413_s22, 5 }
   0x6   : > { %s1652_s23 = smov (%p28_p0, %s27_s23), 0  ;;  %p52_p3 = por %p51_p2, %p50_p1 }
   0x7   : > { %s39_s24 = ssub.s32 %s1409_s21, %s1652_s23  ;;  %236 = sbr.rel (%p1105_p5) target bundleno = 26 (0x1a), region = 28 }
   0x8   : > { %p41_p4 = scmp.eq.s32.totalorder %s39_s24, 0 }
   0xa   : > { %s1481_s26 = scalar_select %p41_p4, %s1401_s19, %s43_s25  }
   0xc   : > { %239 = sbr.rel (!%p52_p3) target bundleno = 26 (0x1a), region = 32  ;;  %s241_s27 = sand.u32 (%p52_p3), 1, %s1401_s19  }
   0xd   : > { %s1107_s28 = sshll.u32 (%p52_p3), %s1409_s21, 2  ;;  %s1106_s29 = sshll.u32 (%p52_p3), %s241_s27, 6 }
   0xe   : > { %s1489_s7 = scalar_lea.vmem (%p52_p3), %s1641_s0, %s1107_s28  ;;  %s243_s8 = scalar_lea.vmem (%p52_p3), [#allocation3], %s1106_s29 }
   0xf   : > { %v265_v0 = vld [vmem:[%s1489_s7] sm:$0xf] (%p52_p3)  ;;  %v267_v1 = vld [vmem:[%s1489_s7 + $0x14] sm:$0xf] (%p52_p3)  ;;  %v269_v2 = vld [vmem:[%s1489_s7 + $0x28] sm:$0xf] (%p52_p3) }
  0x10   : > { %266 = vst [vmem:[%s243_s8] sm:$0xf] (%p52_p3), %v265_v0  ;;  %268 = vst [vmem:[%s243_s8 + $0x4] sm:$0xf] (%p52_p3), %v267_v1  ;;  %v271_v3 = vld [vmem:[%s1489_s7 + $0x3c] sm:$0xf] (%p52_p3) }
  0x11   : > { %v273_v4 = vld [vmem:[%s1489_s7 + $0x50] sm:$0xf]  ;;  %270 = vst [vmem:[%s243_s8 + $0x8] sm:$0xf] %v269_v2  ;;  %272 = vst [vmem:[%s243_s8 + $0xc] sm:$0xf] %v271_v3 }
  0x12   : > { %274 = vst [vmem:[%s243_s8 + $0x10] sm:$0xf] %v273_v4  ;;  %v275_v5 = vld [vmem:[%s1489_s7 + $0x64] sm:$0xf]  ;;  %v277_v6 = vld [vmem:[%s1489_s7 + $0x78] sm:$0xf] }
  0x13   : > { %v279_v7 = vld [vmem:[%s1489_s7 + $0x8c] sm:$0xf]  ;;  %276 = vst [vmem:[%s243_s8 + $0x14] sm:$0xf] %v275_v5  ;;  %278 = vst [vmem:[%s243_s8 + $0x18] sm:$0xf] %v277_v6 }
  0x14   : > { %280 = vst [vmem:[%s243_s8 + $0x1c] sm:$0xf] %v279_v7  ;;  %v281_v8 = vld [vmem:[%s1489_s7 + $0xa0] sm:$0xf]  ;;  %v283_v9 = vld [vmem:[%s1489_s7 + $0xb4] sm:$0xf] }
  0x15   : > { %v285_v10 = vld [vmem:[%s1489_s7 + $0xc8] sm:$0xf]  ;;  %282 = vst [vmem:[%s243_s8 + $0x20] sm:$0xf] %v281_v8  ;;  %284 = vst [vmem:[%s243_s8 + $0x24] sm:$0xf] %v283_v9 }
  0x16   : > { %286 = vst [vmem:[%s243_s8 + $0x28] sm:$0xf] %v285_v10  ;;  %v287_v11 = vld [vmem:[%s1489_s7 + $0xdc] sm:$0xf]  ;;  %v289_v12 = vld [vmem:[%s1489_s7 + $0xf0] sm:$0xf] }
  0x17   : > { %v291_v13 = vld [vmem:[%s1489_s7 + $0x104] sm:$0xf]  ;;  %288 = vst [vmem:[%s243_s8 + $0x2c] sm:$0xf] %v287_v11  ;;  %290 = vst [vmem:[%s243_s8 + $0x30] sm:$0xf] %v289_v12 }
  0x18   : > { %292 = vst [vmem:[%s243_s8 + $0x34] sm:$0xf] %v291_v13  ;;  %v293_v14 = vld [vmem:[%s1489_s7 + $0x118] sm:$0xf]  ;;  %v295_v15 = vld [vmem:[%s1489_s7 + $0x12c] sm:$0xf] }
  0x19   : > { %294 = vst [vmem:[%s243_s8 + $0x38] sm:$0xf] %v293_v14  ;;  %296 = vst [vmem:[%s243_s8 + $0x3c] sm:$0xf] %v295_v15 }
  0x1a PF: > { %p1108_p6 = scmp.ge.s32.totalorder %s1413_s22, 1  ;;  %p363_p7 = scmp.lt.s32.totalorder %s1413_s22, 6 }
  0x1c   : > { %p364_p8 = pnand %p1108_p6, %p363_p7 }
  0x1d   : > { %s370_s9 = sand.u32 (!%p364_p8), 1, %s1397_s18   ;;  %s1110_s10 = sshll.u32 (!%p364_p8), %s1405_s20, 4 }
  0x1e   : > { %367 = sbr.rel (%p364_p8) target bundleno = 322 (0x142), region = 77  ;;  %s1109_s11 = sshll.u32 (!%p364_p8), %s370_s9, 6 }
  0x1f   : > { %p424_p9 = scmp.lt.s32.totalorder (!%p364_p8), %s1110_s10, 79  ;;  %s1516_s16 = scalar_lea.vmem (!%p364_p8), [#allocation3], %s1109_s11 }
  0x20   : > { %p1112_p10 = scmp.ne.s32.totalorder (!%p364_p8), %s1405_s20, 0 }
  0x23   : > { %s1654_s10 = smov (!%p424_p9, %s1110_s10), 79  ;;  %460 = sbr.rel (%p1112_p10) target bundleno = 49 (0x31), region = 85 }
  0x24   : > { %s1111_s12 = sshll.u32 %s1654_s10, 2 }
  0x25   : > { %s1514_s15 = scalar_lea.vmem %s1642_s1, %s1111_s12 }
  0x28   : > { %v1415_v16 = vmov 0.0  }
  0x29   : > { %461 = vst [vmem:[#allocation2 + $0x30] sm:$0xff] %v1415_v16  ;;  %462 = vst [vmem:[#allocation2] sm:$0xff] %v1415_v16 }
  0x2a   : > { %463 = vst [vmem:[#allocation2 + $0x58] sm:$0xff] %v1415_v16  ;;  %464 = vst [vmem:[#allocation2 + $0x18] sm:$0xff] %v1415_v16 }
  0x2b   : > { %465 = vst [vmem:[#allocation2 + $0x50] sm:$0xff] %v1415_v16  ;;  %466 = vst [vmem:[#allocation2 + $0x68] sm:$0xff] %v1415_v16 }
  0x2c   : > { %467 = vst [vmem:[#allocation2 + $0x8] sm:$0xff] %v1415_v16  ;;  %468 = vst [vmem:[#allocation2 + $0x48] sm:$0xff] %v1415_v16 }
  0x2d   : > { %469 = vst [vmem:[#allocation2 + $0x40] sm:$0xff] %v1415_v16  ;;  %470 = vst [vmem:[#allocation2 + $0x20] sm:$0xff] %v1415_v16 }
  0x2e   : > { %471 = vst [vmem:[#allocation2 + $0x10] sm:$0xff] %v1415_v16  ;;  %472 = vst [vmem:[#allocation2 + $0x38] sm:$0xff] %v1415_v16 }
  0x2f   : > { %473 = vst [vmem:[#allocation2 + $0x60] sm:$0xff] %v1415_v16  ;;  %474 = vst [vmem:[#allocation2 + $0x70] sm:$0xff] %v1415_v16 }
  0x30   : > { %475 = vst [vmem:[#allocation2 + $0x78] sm:$0xff] %v1415_v16  ;;  %476 = vst [vmem:[#allocation2 + $0x28] sm:$0xff] %v1415_v16 }
  0x31 PF: > { %v1359_v17 = vld [vmem:[%s1514_s15 + $0x38] sm:$0xff]   ;;  %v1360_v18 = vld [vmem:[%s1514_s15 + $0x30] sm:$0xff]   ;;  %v1361_v19 = vld [vmem:[%s1514_s15 + $0x28] sm:$0xff]   ;;  %p1129_p11 = scmp.ne.s32.totalorder %s1405_s20, 4 }
  0x32   : > { %1270 = vmatprep.subr.bf16.mxu0 %v1359_v17  ;;  %1302 = vmatprep.subr.bf16.mxu1 %v1359_v17  ;;  %v1362_v20 = vld [vmem:[%s1514_s15 + $0x20] sm:$0xff]   ;;  %v1363_v23 = vld [vmem:[%s1514_s15 + $0x18] sm:$0xff]   ;;  %v1364_v24 = vld [vmem:[%s1514_s15 + $0x10] sm:$0xff]  }
  0x33   : > { %1271 = vmatpush3.bf16.msra.mxu0 %v1359_v17  ;;  %1310 = vmatpush3.bf16.msra.mxu1 %v1359_v17  ;;  %v1367_v21 = vld [vmem:[%s1516_s16] sm:$0xff]   ;;  %v1365_v25 = vld [vmem:[%s1514_s15 + $0x8] sm:$0xff]   ;;  %v1371_v29 = vld [vmem:[%s1516_s16 + $0x10] sm:$0xff]  }
  0x34   : > { %1272 = vmatprep.subr.bf16.mxu0 %v1360_v18  ;;  %1303 = vmatprep.subr.bf16.mxu1 %v1360_v18  ;;  %v1368_v22 = vld [vmem:[%s1516_s16 + $0x20] sm:$0xff]   ;;  %v1369_v27 = vld [vmem:[%s1516_s16 + $0x8] sm:$0xff]   ;;  %v1372_v30 = vld [vmem:[%s1516_s16 + $0x30] sm:$0xff]  }
  0x35   : > { %1286 = vmatprep.mubr.bf16.mxu0 %v1367_v21  ;;  %1294 = vmatprep.mubr.bf16.mxu1 %v1368_v22  ;;  %v1366_v26 = vld [vmem:[%s1514_s15] sm:$0xff]   ;;  %v1370_v28 = vld [vmem:[%s1516_s16 + $0x28] sm:$0xff]   ;;  %v1373_v31 = vld [vmem:[%s1516_s16 + $0x18] sm:$0xff]  }
  0x36   : > { %v1374_v32 = vld [vmem:[%s1516_s16 + $0x38] sm:$0xff]   ;;  %v487_v34 = vld [vmem:[#allocation2 + $0x10] sm:$0xff]  ;;  %v485_v38 = vld [vmem:[#allocation2 + $0x40] sm:$0xff] }
  0x37   : > { %1273 = vmatpush3.bf16.msra.mxu0 %v1360_v18  ;;  %1311 = vmatpush3.bf16.msra.mxu1 %v1360_v18  ;;  %v479_v33 = vld [vmem:[#allocation2 + $0x58] sm:$0xff]  ;;  %v477_v37 = vld [vmem:[#allocation2 + $0x30] sm:$0xff]  ;;  %v478_v49 = vld [vmem:[#allocation2] sm:$0xff] }
  0x38   : > { %1274 = vmatprep.subr.bf16.mxu0 %v1361_v19  ;;  %1304 = vmatprep.subr.bf16.mxu1 %v1361_v19  ;;  %v480_v43 = vld [vmem:[#allocation2 + $0x18] sm:$0xff]  ;;  %v486_v50 = vld [vmem:[#allocation2 + $0x20] sm:$0xff]  ;;  %v483_v55 = vld [vmem:[#allocation2 + $0x8] sm:$0xff] }
  0x39   : > { %v488_v44 = vld [vmem:[#allocation2 + $0x38] sm:$0xff]  ;;  %v481_v61 = vld [vmem:[#allocation2 + $0x50] sm:$0xff]  ;;  %v489_v62 = vld [vmem:[#allocation2 + $0x60] sm:$0xff] }
  0x3a   : > { %v491_v56 = vld [vmem:[#allocation2 + $0x78] sm:$0xff]  ;;  %v484_v3 = vld [vmem:[#allocation2 + $0x48] sm:$0xff]  ;;  %v490_v10 = vld [vmem:[#allocation2 + $0x70] sm:$0xff] }
  0x3b   : > { %1275 = vmatpush3.bf16.msra.mxu0 %v1361_v19  ;;  %1312 = vmatpush3.bf16.msra.mxu1 %v1361_v19  ;;  %v492_v4 = vld [vmem:[#allocation2 + $0x28] sm:$0xff] }
  0x3c   : > { %1276 = vmatprep.subr.bf16.mxu0 %v1362_v20  ;;  %1305 = vmatprep.subr.bf16.mxu1 %v1362_v20  ;;  %v482_v9 = vld [vmem:[#allocation2 + $0x68] sm:$0xff] }
  0x3f   : > { %1277 = vmatpush3.bf16.msra.mxu0 %v1362_v20  ;;  %1313 = vmatpush3.bf16.msra.mxu1 %v1362_v20 }
  0x40   : > { %1278 = vmatprep.subr.bf16.mxu0 %v1363_v23  ;;  %1306 = vmatprep.subr.bf16.mxu1 %v1363_v23 }
  0x43   : > { %1279 = vmatpush3.bf16.msra.mxu0 %v1363_v23  ;;  %1314 = vmatpush3.bf16.msra.mxu1 %v1363_v23 }
  0x44   : > { %1280 = vmatprep.subr.bf16.mxu0 %v1364_v24  ;;  %1307 = vmatprep.subr.bf16.mxu1 %v1364_v24 }
  0x47   : > { %1281 = vmatpush3.bf16.msra.mxu0 %v1364_v24  ;;  %1315 = vmatpush3.bf16.msra.mxu1 %v1364_v24 }
  0x48   : > { %1282 = vmatprep.subr.bf16.mxu0 %v1365_v25  ;;  %1308 = vmatprep.subr.bf16.mxu1 %v1365_v25 }
  0x4b   : > { %1283 = vmatpush3.bf16.msra.mxu0 %v1365_v25  ;;  %1316 = vmatpush3.bf16.msra.mxu1 %v1365_v25 }
  0x4c   : > { %1284 = vmatprep.subr.bf16.mxu0 %v1366_v26  ;;  %1309 = vmatprep.subr.bf16.mxu1 %v1366_v26 }
  0x4f   : > { %1285 = vmatpush3.bf16.msra.mxu0 %v1366_v26  ;;  %1317 = vmatpush3.bf16.msra.mxu1 %v1366_v26 }
  0x52   : > { %1287 = vmatmul.mubr.bf16.vlgmr.msra.gmra.mxu0 %v1369_v27  ;;  %1295 = vmatmul.mubr.bf16.vlgmr.msra.gmra.mxu1 %v1370_v28 }
  0x53   : > { %1290 = vmatprep.mubr.bf16.mxu0 %v1371_v29  ;;  %1298 = vmatprep.mubr.bf16.mxu1 %v1372_v30 }
  0x5a   : > { %1291 = vmatmul.mubr.bf16.gmra.mxu0 %v1373_v31  ;;  %1299 = vmatmul.mubr.bf16.gmra.mxu1 %v1374_v32 }
 0x112   : > { %v1288_v35 = vpop.f32.mrf.mxu0  ;;  %v1296_v36 = vpop.f32.mrf.mxu1 }
 0x113   : > { %v720_v39 = vadd.f32 %v1288_v35, %v479_v33  ;;  %v728_v40 = vadd.f32 %v1296_v36, %v487_v34 }
 0x114   : > { %v655_v41 = vpop.f32.mrf.mxu0  ;;  %v687_v42 = vpop.f32.mrf.mxu1 }
 0x115   : > { %736 = vst [vmem:[#allocation2 + $0x58] sm:$0xff] %v720_v39  ;;  %744 = vst [vmem:[#allocation2 + $0x10] sm:$0xff] %v728_v40  ;;  %v718_v45 = vadd.f32 %v655_v41, %v477_v37  ;;  %v726_v46 = vadd.f32 %v687_v42, %v485_v38 }
 0x116   : > { %v1289_v47 = vpop.f32.mrf.mxu0  ;;  %v1297_v48 = vpop.f32.mrf.mxu1 }
 0x117   : > { %734 = vst [vmem:[#allocation2 + $0x30] sm:$0xff] %v718_v45  ;;  %742 = vst [vmem:[#allocation2 + $0x40] sm:$0xff] %v726_v46  ;;  %v721_v51 = vadd.f32 %v1289_v47, %v480_v43  ;;  %v729_v52 = vadd.f32 %v1297_v48, %v488_v44 }
 0x118   : > { %v658_v53 = vpop.f32.mrf.mxu0  ;;  %v690_v54 = vpop.f32.mrf.mxu1 }
 0x119   : > { %737 = vst [vmem:[#allocation2 + $0x18] sm:$0xff] %v721_v51  ;;  %745 = vst [vmem:[#allocation2 + $0x38] sm:$0xff] %v729_v52  ;;  %v719_v57 = vadd.f32 %v658_v53, %v478_v49  ;;  %v727_v58 = vadd.f32 %v690_v54, %v486_v50 }
 0x11a   : > { %v1292_v59 = vpop.f32.mrf.mxu0  ;;  %v1300_v60 = vpop.f32.mrf.mxu1 }
 0x11b   : > { %735 = vst [vmem:[#allocation2] sm:$0xff] %v719_v57  ;;  %743 = vst [vmem:[#allocation2 + $0x20] sm:$0xff] %v727_v58  ;;  %v724_v63 = vadd.f32 %v1292_v59, %v483_v55  ;;  %v732_v0 = vadd.f32 %v1300_v60, %v491_v56 }
 0x11c   : > { %v671_v1 = vpop.f32.mrf.mxu0  ;;  %v703_v2 = vpop.f32.mrf.mxu1 }
 0x11d   : > { %740 = vst [vmem:[#allocation2 + $0x8] sm:$0xff] %v724_v63  ;;  %748 = vst [vmem:[#allocation2 + $0x78] sm:$0xff] %v732_v0  ;;  %v722_v5 = vadd.f32 %v671_v1, %v481_v61  ;;  %v730_v6 = vadd.f32 %v703_v2, %v489_v62 }
 0x11e   : > { %v1293_v7 = vpop.f32.mrf.mxu0  ;;  %v1301_v8 = vpop.f32.mrf.mxu1 }
 0x11f   : > { %738 = vst [vmem:[#allocation2 + $0x50] sm:$0xff] %v722_v5  ;;  %746 = vst [vmem:[#allocation2 + $0x60] sm:$0xff] %v730_v6  ;;  %v725_v11 = vadd.f32 %v1293_v7, %v484_v3  ;;  %v733_v12 = vadd.f32 %v1301_v8, %v492_v4  ;;  %753 = sbr.rel (%p1129_p11) target bundleno = 322 (0x142), region = 89 }
 0x120   : > { %v674_v13 = vpop.f32.mrf.mxu0  ;;  %v706_v14 = vpop.f32.mrf.mxu1 }
 0x121   : > { %741 = vst [vmem:[#allocation2 + $0x48] sm:$0xff] %v725_v11  ;;  %749 = vst [vmem:[#allocation2 + $0x28] sm:$0xff] %v733_v12  ;;  %v723_v15 = vadd.f32 %v674_v13, %v482_v9  ;;  %v731_v16 = vadd.f32 %v706_v14, %v490_v10 }
 0x123   : > { %739 = vst [vmem:[#allocation2 + $0x68] sm:$0xff] %v723_v15  ;;  %747 = vst [vmem:[#allocation2 + $0x70] sm:$0xff] %v731_v16 }
 0x124   : > { %v754_v17 = vld [vmem:[#allocation2 + $0x30] sm:$0xff]  ;;  %v755_v18 = vld [vmem:[#allocation2] sm:$0xff]  ;;  %v756_v24 = vld [vmem:[#allocation2 + $0x58] sm:$0xff] }
 0x125   : > { %v1539_v19 = vld [vmem:[%s1643_s2] ss:$0 sm:$0xff]  ;;  %v757_v27 = vld [vmem:[#allocation2 + $0x18] sm:$0xff]  ;;  %v1240_v29 = vld [vmem:[%s1645_s4 + $0x8] sm:$0xff]  }
 0x126   : > { %v777_v20 = vmul.f32 %v1539_v19, %v754_v17  ;;  %v778_v21 = vmul.f32 %v1539_v19, %v755_v18  ;;  %v1546_v22 = vld [vmem:[%s1644_s3] ss:$0 sm:$0xff]  ;;  %v779_v28 = vmul.f32 %v1539_v19, %v756_v24  ;;  %v758_v30 = vld [vmem:[#allocation2 + $0x50] sm:$0xff]  ;;  %v780_v33 = vmul.f32 %v1539_v19, %v757_v27  ;;  %v760_v41 = vld [vmem:[#allocation2 + $0x8] sm:$0xff] }
 0x127   : > { %v1169_v23 = vld [vmem:[%s1645_s4] sm:$0xff]   ;;  %v1174_v34 = vunpack.c.l.bf16 %v1240_v29  ;;  %v1241_v36 = vld [vmem:[%s1645_s4 + $0x10] sm:$0xff]   ;;  %v1175_v38 = vunpack.c.h.bf16 %v1240_v29  ;;  %v781_v39 = vmul.f32 %v1539_v19, %v758_v30  ;;  %v1242_v51 = vld [vmem:[%s1645_s4 + $0x18] sm:$0xff]   ;;  %v783_v55 = vmul.f32 %v1539_v19, %v760_v41 }
 0x128   : > { %v1170_v25 = vunpack.c.l.bf16 %v1169_v23  ;;  %v1171_v26 = vunpack.c.h.bf16 %v1169_v23  ;;  %v800_v31 = vadd.f32 %v1546_v22, %v777_v20  ;;  %v801_v32 = vadd.f32 %v1546_v22, %v778_v21  ;;  %v761_v46 = vld [vmem:[#allocation2 + $0x48] sm:$0xff]  ;;  %v762_v60 = vld [vmem:[#allocation2 + $0x40] sm:$0xff]  ;;  %v764_v7 = vld [vmem:[#allocation2 + $0x10] sm:$0xff] }
 0x129   : > { %v802_v37 = vadd.f32 %v1546_v22, %v779_v28  ;;  %v803_v44 = vadd.f32 %v1546_v22, %v780_v33  ;;  %v1178_v45 = vunpack.c.l.bf16 %v1241_v36  ;;  %v804_v48 = vadd.f32 %v1546_v22, %v781_v39  ;;  %v763_v61 = vld [vmem:[#allocation2 + $0x20] sm:$0xff]  ;;  %v765_v12 = vld [vmem:[#allocation2 + $0x38] sm:$0xff]  ;;  %v1244_v13 = vld [vmem:[%s1645_s4 + $0x28] sm:$0xff]  }
 0x12a   : > { %v759_v35 = vld [vmem:[#allocation2 + $0x68] sm:$0xff]  ;;  %v848_v42 = vadd.f32 %v1170_v25, %v800_v31  ;;  %v849_v43 = vadd.f32 %v1171_v26, %v801_v32  ;;  %v1179_v50 = vunpack.c.h.bf16 %v1241_v36  ;;  %v784_v59 = vmul.f32 %v1539_v19, %v761_v46  ;;  %v1243_v2 = vld [vmem:[%s1645_s4 + $0x20] sm:$0xff]   ;;  %v767_v25 = vld [vmem:[#allocation2 + $0x70] sm:$0xff] }
 0x12b   : > { %v782_v40 = vmul.f32 %v1539_v19, %v759_v35  ;;  %v850_v47 = vadd.f32 %v1174_v34, %v802_v37  ;;  %v851_v54 = vadd.f32 %v1175_v38, %v803_v44  ;;  %v852_v57 = vadd.f32 %v1178_v45, %v804_v48  ;;  %v766_v18 = vld [vmem:[#allocation2 + $0x60] sm:$0xff]  ;;  %v1245_v26 = vld [vmem:[%s1645_s4 + $0x30] sm:$0xff]   ;;  %v768_v35 = vld [vmem:[#allocation2 + $0x78] sm:$0xff] }
 0x12c   : > { %v864_v52 = vmax.f32 %v848_v42, 0.0  ;;  %v865_v53 = vmax.f32 %v849_v43, 0.0  ;;  %v806_v0 = vadd.f32 %v1546_v22, %v783_v55  ;;  %v1182_v1 = vunpack.c.l.bf16 %v1242_v51  ;;  %v1246_v45 = vld [vmem:[%s1645_s4 + $0x38] sm:$0xff]  }
 0x12d   : > { %v805_v49 = vadd.f32 %v1546_v22, %v782_v40  ;;  %v866_v56 = vmax.f32 %v850_v47, 0.0  ;;  %v867_v63 = vmax.f32 %v851_v54, 0.0  ;;  %v868_v3 = vmax.f32 %v852_v57, 0.0  ;;  %v769_v40 = vld [vmem:[#allocation2 + $0x28] sm:$0xff] }
 0x12e   : > { %v1203_v62 = vpack.c.bf16 %v865_v53, %v864_v52  ;;  %v807_v5 = vadd.f32 %v1546_v22, %v784_v59  ;;  %v1183_v6 = vunpack.c.h.bf16 %v1242_v51  ;;  %v854_v9 = vadd.f32 %v1182_v1, %v806_v0 }
 0x12f   : > { %v853_v58 = vadd.f32 %v1179_v50, %v805_v49  ;;  %v1208_v8 = vpack.c.bf16 %v867_v63, %v866_v56  ;;  %v785_v10 = vmul.f32 %v1539_v19, %v762_v60  ;;  %v786_v11 = vmul.f32 %v1539_v19, %v763_v61 }
 0x130   : > { %1204 = vst [vmem:[%s1646_s5] sm:$0xff] %v1203_v62   ;;  %v855_v15 = vadd.f32 %v1183_v6, %v807_v5  ;;  %v1186_v16 = vunpack.c.l.bf16 %v1243_v2  ;;  %v1187_v17 = vunpack.c.h.bf16 %v1243_v2  ;;  %v870_v20 = vmax.f32 %v854_v9, 0.0 }
 0x131   : > { %v869_v4 = vmax.f32 %v853_v58, 0.0  ;;  %1247 = vst [vmem:[%s1646_s5 + $0x8] sm:$0xff] %v1208_v8   ;;  %v808_v21 = vadd.f32 %v1546_v22, %v785_v10  ;;  %v809_v23 = vadd.f32 %v1546_v22, %v786_v11  ;;  %v787_v24 = vmul.f32 %v1539_v19, %v764_v7 }
 0x132   : > { %v871_v27 = vmax.f32 %v855_v15, 0.0  ;;  %v788_v28 = vmul.f32 %v1539_v19, %v765_v12  ;;  %v1190_v29 = vunpack.c.l.bf16 %v1244_v13  ;;  %v1191_v30 = vunpack.c.h.bf16 %v1244_v13 }
 0x133   : > { %v1213_v14 = vpack.c.bf16 %v869_v4, %v868_v3  ;;  %v856_v31 = vadd.f32 %v1186_v16, %v808_v21  ;;  %v857_v32 = vadd.f32 %v1187_v17, %v809_v23  ;;  %v810_v33 = vadd.f32 %v1546_v22, %v787_v24 }
 0x134   : > { %v789_v34 = vmul.f32 %v1539_v19, %v766_v18  ;;  %v1218_v36 = vpack.c.bf16 %v871_v27, %v870_v20  ;;  %v811_v37 = vadd.f32 %v1546_v22, %v788_v28  ;;  %v790_v38 = vmul.f32 %v1539_v19, %v767_v25 }
 0x135   : > { %1248 = vst [vmem:[%s1646_s5 + $0x10] sm:$0xff] %v1213_v14   ;;  %v1194_v39 = vunpack.c.l.bf16 %v1245_v26  ;;  %v872_v41 = vmax.f32 %v856_v31, 0.0  ;;  %v873_v42 = vmax.f32 %v857_v32, 0.0  ;;  %v858_v43 = vadd.f32 %v1190_v29, %v810_v33 }
 0x136   : > { %v812_v44 = vadd.f32 %v1546_v22, %v789_v34  ;;  %1249 = vst [vmem:[%s1646_s5 + $0x18] sm:$0xff] %v1218_v36   ;;  %v859_v46 = vadd.f32 %v1191_v30, %v811_v37  ;;  %v813_v47 = vadd.f32 %v1546_v22, %v790_v38  ;;  %v1195_v48 = vunpack.c.h.bf16 %v1245_v26 }
 0x137   : > { %v791_v49 = vmul.f32 %v1539_v19, %v768_v35  ;;  %v1223_v50 = vpack.c.bf16 %v873_v42, %v872_v41  ;;  %v874_v51 = vmax.f32 %v858_v43, 0.0  ;;  %v792_v53 = vmul.f32 %v1539_v19, %v769_v40 }
 0x138   : > { %v860_v52 = vadd.f32 %v1194_v39, %v812_v44  ;;  %v875_v54 = vmax.f32 %v859_v46, 0.0  ;;  %v861_v55 = vadd.f32 %v1195_v48, %v813_v47  ;;  %v1198_v57 = vunpack.c.l.bf16 %v1246_v45 }
 0x139   : > { %v814_v56 = vadd.f32 %v1546_v22, %v791_v49  ;;  %1250 = vst [vmem:[%s1646_s5 + $0x20] sm:$0xff] %v1223_v50   ;;  %v815_v59 = vadd.f32 %v1546_v22, %v792_v53  ;;  %v1199_v60 = vunpack.c.h.bf16 %v1246_v45 }
 0x13a   : > { %v876_v58 = vmax.f32 %v860_v52, 0.0  ;;  %v1228_v61 = vpack.c.bf16 %v875_v54, %v874_v51  ;;  %v877_v62 = vmax.f32 %v861_v55, 0.0 }
 0x13b   : > { %v862_v63 = vadd.f32 %v1198_v57, %v814_v56  ;;  %v863_v0 = vadd.f32 %v1199_v60, %v815_v59 }
 0x13c   : > { %1251 = vst [vmem:[%s1646_s5 + $0x28] sm:$0xff] %v1228_v61   ;;  %v1233_v19 = vpack.c.bf16 %v877_v62, %v876_v58 }
 0x13d   : > { %v878_v1 = vmax.f32 %v862_v63, 0.0  ;;  %v879_v2 = vmax.f32 %v863_v0, 0.0 }
 0x13e   : > { %1252 = vst [vmem:[%s1646_s5 + $0x30] sm:$0xff] %v1233_v19  }
 0x13f   : > { %v1238_v3 = vpack.c.bf16 %v879_v2, %v878_v1 }
 0x141   : > { %1253 = vst [vmem:[%s1646_s5 + $0x38] sm:$0xff] %v1238_v3  }
 0x142 PF: > { %s15_s22 = sadd.s32 1, %s1413_s22   ;;  %s1647_s18 = smov %s1401_s19 }
 0x143   : > { %p12_p12 = scmp.ge.s32.totalorder %s15_s22, 7   ;;  %s1648_s19 = smov %s1481_s26 }
 0x144   : > { %s1649_s20 = smov %s1409_s21  ;;  %s1650_s21 = smov %s1652_s23 }
 0x145   :  { %14 = sbr.rel (!%p12_p12) target bundleno = 3 (0x3), region = 136 }

// kernel: resnet18_forward.28
= control target key start
LH: loop header
LB: loop body
LE: loop exit
PB: predicated region body
PF: predicated region fallthrough
CT: control target
= control target key end

     0   :  { %s869_s15 = smov 0   ;;  %s871_s16 = smov 0   ;;  %s965_s0 = inlined_call_operand.vmem [shape: bf16[32,640], index: 0, kind: input, shape index: {}]   ;;  %s966_s1 = inlined_call_operand.vmem [shape: bf16[640,128], index: 1, kind: input, shape index: {}]   ;;  %s967_s2 = inlined_call_operand.vmem [shape: f32[1,128], index: 2, kind: input, shape index: {}]   ;;  %s968_s3 = inlined_call_operand.vmem [shape: f32[1,128], index: 3, kind: input, shape index: {}]   ;;  %s969_s4 = inlined_call_operand.vmem [shape: bf16[32,128], index: 4, kind: output, shape index: {}]  }
   0x1   :  { %s873_s17 = smov 0   ;;  %s875_s18 = smov 0  }
   0x2   :  { %s877_s19 = smov 0  }
   0x3 LB: > { %s26_s20 = sadd.s32 1, %s837_s18  ;;  %p49_p1 = scmp.ne.s32.totalorder %s829_s16, %s825_s15  ;;  %s841_s19 = sphi %s877_s19, %s14_s19   ;;  %s837_s18 = sphi %s875_s18, %s973_s18   ;;  %s833_s17 = sphi %s873_s17, %s972_s17   ;;  %s829_s16 = sphi %s871_s16, %s971_s16   ;;  %s825_s15 = sphi %s869_s15, %s970_s15  }
   0x4   : > { %p27_p0 = scmp.ge.s32.totalorder %s26_s20, 5  ;;  %p50_p2 = scmp.eq.s32.totalorder %s841_s19, 0 }
   0x5   : > { %s42_s22 = sadd.s32 1, %s829_s16  ;;  %p678_p5 = scmp.ge.s32.totalorder %s841_s19, 5 }
   0x6   : > { %s975_s20 = smov (%p27_p0, %s26_s20), 0  ;;  %p51_p3 = por %p50_p2, %p49_p1 }
   0x7   : > { %s38_s21 = ssub.s32 %s837_s18, %s975_s20  ;;  %195 = sbr.rel (%p678_p5) target bundleno = 18 (0x12), region = 24 }
   0x8   : > { %p40_p4 = scmp.eq.s32.totalorder %s38_s21, 0 }
   0xa   : > { %s904_s23 = scalar_select %p40_p4, %s829_s16, %s42_s22  }
   0xc   : > { %198 = sbr.rel (!%p51_p3) target bundleno = 18 (0x12), region = 28  ;;  %s200_s24 = sand.u32 (%p51_p3), 1, %s829_s16  }
   0xd   : > { %s680_s25 = sshll.u32 (%p51_p3), %s837_s18, 2  ;;  %s679_s26 = sshll.u32 (%p51_p3), %s200_s24, 4 }
   0xe   : > { %s207_s29 = scalar_lea.vmem (%p51_p3), %s965_s0, %s680_s25  ;;  %s202_s30 = scalar_lea.vmem (%p51_p3), [#allocation3], %s679_s26 }
   0xf   : > { %v224_v0 = vld [vmem:[%s207_s29] sm:$0xf] (%p51_p3)  ;;  %v226_v1 = vld [vmem:[%s207_s29 + $0x14] sm:$0xf] (%p51_p3)  ;;  %v228_v2 = vld [vmem:[%s207_s29 + $0x28] sm:$0xf] (%p51_p3) }
  0x10   : > { %225 = vst [vmem:[%s202_s30] sm:$0xf] (%p51_p3), %v224_v0  ;;  %227 = vst [vmem:[%s202_s30 + $0x4] sm:$0xf] (%p51_p3), %v226_v1  ;;  %v230_v3 = vld [vmem:[%s207_s29 + $0x3c] sm:$0xf] (%p51_p3) }
  0x11   : > { %229 = vst [vmem:[%s202_s30 + $0x8] sm:$0xf] %v228_v2  ;;  %231 = vst [vmem:[%s202_s30 + $0xc] sm:$0xf] %v230_v3 }
  0x12 PF: > { %p681_p6 = scmp.ge.s32.totalorder %s841_s19, 1  ;;  %p274_p7 = scmp.lt.s32.totalorder %s841_s19, 6 }
  0x14   : > { %p275_p8 = pnand %p681_p6, %p274_p7 }
  0x15   : > { %s281_s5 = sand.u32 (!%p275_p8), 1, %s825_s15   ;;  %s683_s6 = sshll.u32 (!%p275_p8), %s833_s17, 4 }
  0x16   : > { %278 = sbr.rel (%p275_p8) target bundleno = 286 (0x11e), region = 73  ;;  %s916_s7 = sshll.u32 (!%p275_p8), %s281_s5, 4 }
  0x17   : > { %p325_p9 = scmp.lt.s32.totalorder (!%p275_p8), %s683_s6, 79  ;;  %s283_s12 = scalar_lea.vmem (!%p275_p8), [#allocation3], %s916_s7 }
  0x18   : > { %p685_p10 = scmp.ne.s32.totalorder (!%p275_p8), %s833_s17, 0 }
  0x1b   : > { %s977_s6 = smov (!%p325_p9, %s683_s6), 79  ;;  %352 = sbr.rel (%p685_p10) target bundleno = 35 (0x23), region = 81 }
  0x1c   : > { %s684_s8 = sshll.u32 %s977_s6, 2 }
  0x1d   : > { %s921_s11 = scalar_lea.vmem %s966_s1, %s684_s8 }
  0x20   : > { %v843_v4 = vmov 0.0  }
  0x21   : > { %353 = vst [vmem:[#allocation2 + $0x10] sm:$0xff] %v843_v4  ;;  %354 = vst [vmem:[#allocation2] sm:$0xff] %v843_v4 }
  0x22   : > { %355 = vst [vmem:[#allocation2 + $0x18] sm:$0xff] %v843_v4  ;;  %356 = vst [vmem:[#allocation2 + $0x8] sm:$0xff] %v843_v4 }
  0x23 PF: > { %v793_v5 = vld [vmem:[%s921_s11 + $0x38] sm:$0xff]   ;;  %v794_v6 = vld [vmem:[%s921_s11 + $0x30] sm:$0xff]   ;;  %v795_v7 = vld [vmem:[%s921_s11 + $0x28] sm:$0xff]   ;;  %p696_p11 = scmp.ne.s32.totalorder %s833_s17, 4 }
  0x24   : > { %732 = vmatprep.subr.bf16.mxu0 %v793_v5  ;;  %v796_v8 = vld [vmem:[%s921_s11 + $0x20] sm:$0xff]   ;;  %v797_v10 = vld [vmem:[%s921_s11 + $0x18] sm:$0xff]   ;;  %v798_v11 = vld [vmem:[%s921_s11 + $0x10] sm:$0xff]  }
  0x25   : > { %733 = vmatpush3.bf16.msra.mxu0 %v793_v5  ;;  %v801_v9 = vld [vmem:[%s283_s12] sm:$0xff]   ;;  %v799_v12 = vld [vmem:[%s921_s11 + $0x8] sm:$0xff]  }
  0x26   : > { %734 = vmatprep.subr.bf16.mxu0 %v794_v6  ;;  %748 = vmatprep.mubr.bf16.mxu0 %v801_v9  ;;  %v800_v13 = vld [vmem:[%s921_s11] sm:$0xff]   ;;  %v802_v14 = vld [vmem:[%s283_s12 + $0x8] sm:$0xff]  }
  0x28   : > { %v357_v17 = vld [vmem:[#allocation2 + $0x10] sm:$0xff]  ;;  %v358_v23 = vld [vmem:[#allocation2] sm:$0xff] }
  0x29   : > { %735 = vmatpush3.bf16.msra.mxu0 %v794_v6  ;;  %v359_v15 = vld [vmem:[#allocation2 + $0x18] sm:$0xff]  ;;  %v360_v20 = vld [vmem:[#allocation2 + $0x8] sm:$0xff] }
  0x2a   : > { %736 = vmatprep.subr.bf16.mxu0 %v795_v7 }
  0x2d   : > { %737 = vmatpush3.bf16.msra.mxu0 %v795_v7 }
  0x2e   : > { %738 = vmatprep.subr.bf16.mxu0 %v796_v8 }
  0x31   : > { %739 = vmatpush3.bf16.msra.mxu0 %v796_v8 }
  0x32   : > { %740 = vmatprep.subr.bf16.mxu0 %v797_v10 }
  0x35   : > { %741 = vmatpush3.bf16.msra.mxu0 %v797_v10 }
  0x36   : > { %742 = vmatprep.subr.bf16.mxu0 %v798_v11 }
  0x39   : > { %743 = vmatpush3.bf16.msra.mxu0 %v798_v11 }
  0x3a   : > { %744 = vmatprep.subr.bf16.mxu0 %v799_v12 }
  0x3d   : > { %745 = vmatpush3.bf16.msra.mxu0 %v799_v12 }
  0x3e   : > { %746 = vmatprep.subr.bf16.mxu0 %v800_v13 }
  0x41   : > { %747 = vmatpush3.bf16.msra.mxu0 %v800_v13 }
  0x44   : > { %749 = vmatmul.mubr.bf16.vlgmr.msra.gmra.mxu0 %v802_v14 }
 0x104   : > { %v750_v16 = vpop.f32.mrf.mxu0 }
 0x105   : > { %v492_v18 = vadd.f32 %v750_v16, %v359_v15 }
 0x106   : > { %v475_v19 = vpop.f32.mrf.mxu0 }
 0x107   : > { %496 = vst [vmem:[#allocation2 + $0x18] sm:$0xff] %v492_v18  ;;  %v490_v21 = vadd.f32 %v475_v19, %v357_v17 }
 0x108   : > { %v751_v22 = vpop.f32.mrf.mxu0 }
 0x109   : > { %494 = vst [vmem:[#allocation2 + $0x10] sm:$0xff] %v490_v21  ;;  %v493_v24 = vadd.f32 %v751_v22, %v360_v20  ;;  %501 = sbr.rel (%p696_p11) target bundleno = 286 (0x11e), region = 85 }
 0x10a   : > { %v478_v25 = vpop.f32.mrf.mxu0 }
 0x10b   : > { %497 = vst [vmem:[#allocation2 + $0x8] sm:$0xff] %v493_v24  ;;  %v491_v26 = vadd.f32 %v478_v25, %v358_v23 }
 0x10d   : > { %495 = vst [vmem:[#allocation2] sm:$0xff] %v491_v26 }
 0x10e   : > { %v697_v29 = vld [vmem:[%s967_s2] ss:$0 sm:$0xff]  ;;  %v504_v33 = vld [vmem:[#allocation2 + $0x18] sm:$0xff] }
 0x10f   : > { %v698_v32 = vld [vmem:[%s968_s3] ss:$0 sm:$0xff]  ;;  %v515_v35 = vmul.f32 %v697_v29, %v504_v33 }
 0x110   : > { %v502_v27 = vld [vmem:[#allocation2 + $0x10] sm:$0xff] }
 0x111   : > { %v513_v30 = vmul.f32 %v697_v29, %v502_v27  ;;  %v526_v39 = vadd.f32 %v698_v32, %v515_v35 }
 0x112   : > { %v505_v34 = vld [vmem:[#allocation2 + $0x8] sm:$0xff] }
 0x113   : > { %v516_v36 = vmul.f32 %v697_v29, %v505_v34  ;;  %v524_v37 = vadd.f32 %v698_v32, %v513_v30  ;;  %v530_v43 = vmax.f32 %v526_v39, 0.0 }
 0x114   : > { %v503_v28 = vld [vmem:[#allocation2] sm:$0xff] }
 0x115   : > { %v514_v31 = vmul.f32 %v697_v29, %v503_v28  ;;  %v527_v40 = vadd.f32 %v698_v32, %v516_v36  ;;  %v528_v41 = vmax.f32 %v524_v37, 0.0 }
 0x117   : > { %v525_v38 = vadd.f32 %v698_v32, %v514_v31  ;;  %v531_v44 = vmax.f32 %v527_v40, 0.0 }
 0x119   : > { %v529_v42 = vmax.f32 %v525_v38, 0.0  ;;  %v719_v46 = vpack.c.bf16 %v531_v44, %v530_v43 }
 0x11b   : > { %v714_v45 = vpack.c.bf16 %v529_v42, %v528_v41  ;;  %721 = vst [vmem:[%s969_s4 + $0x8] sm:$0xff] %v719_v46  }
 0x11d   : > { %715 = vst [vmem:[%s969_s4] sm:$0xff] %v714_v45  }
 0x11e PF: > { %s14_s19 = sadd.s32 1, %s841_s19   ;;  %s970_s15 = smov %s829_s16 }
 0x11f   : > { %p11_p12 = scmp.ge.s32.totalorder %s14_s19, 7   ;;  %s971_s16 = smov %s904_s23 }
 0x120   : > { %s972_s17 = smov %s837_s18  ;;  %s973_s18 = smov %s975_s20 }
 0x121   :  { %13 = sbr.rel (!%p11_p12) target bundleno = 3 (0x3), region = 129 }

// kernel: resnet18_forward.29
= control target key start
LH: loop header
LB: loop body
LE: loop exit
PB: predicated region body
PF: predicated region fallthrough
CT: control target
= control target key end

     0   :  { %s1248_s18 = smov 0   ;;  %s1250_s19 = smov 0   ;;  %s1367_s0 = inlined_call_operand.vmem [shape: bf16[32,1152], index: 0, kind: input, shape index: {}]   ;;  %s1368_s1 = inlined_call_operand.vmem [shape: bf16[1152,128], index: 1, kind: input, shape index: {}]   ;;  %s1369_s2 = inlined_call_operand.vmem [shape: f32[1,128], index: 2, kind: input, shape index: {}]   ;;  %s1370_s3 = inlined_call_operand.vmem [shape: f32[1,128], index: 3, kind: input, shape index: {}]   ;;  %s1371_s4 = inlined_call_operand.vmem [shape: bf16[32,128], index: 4, kind: input, shape index: {}]   ;;  %s1372_s5 = inlined_call_operand.vmem [shape: bf16[32,128], index: 5, kind: output, shape index: {}]  }
   0x1   :  { %s1252_s20 = smov 0   ;;  %s1254_s21 = smov 0  }
   0x2   :  { %s1256_s22 = smov 0  }
   0x3 LB: > { %s27_s23 = sadd.s32 1, %s1211_s21  ;;  %p50_p1 = scmp.ne.s32.totalorder %s1203_s19, %s1199_s18  ;;  %s1215_s22 = sphi %s1256_s22, %s15_s22   ;;  %s1211_s21 = sphi %s1254_s21, %s1376_s21   ;;  %s1207_s20 = sphi %s1252_s20, %s1375_s20   ;;  %s1203_s19 = sphi %s1250_s19, %s1374_s19   ;;  %s1199_s18 = sphi %s1248_s18, %s1373_s18  }
   0x4   : > { %p28_p0 = scmp.ge.s32.totalorder %s27_s23, 3  ;;  %p51_p2 = scmp.eq.s32.totalorder %s1215_s22, 0 }
   0x5   : > { %s43_s25 = sadd.s32 1, %s1203_s19  ;;  %p965_p5 = scmp.ge.s32.totalorder %s1215_s22, 3 }
   0x6   : > { %s1378_s23 = smov (%p28_p0, %s27_s23), 0  ;;  %p52_p3 = por %p51_p2, %p50_p1 }
   0x7   : > { %s39_s24 = ssub.s32 %s1211_s21, %s1378_s23  ;;  %236 = sbr.rel (%p965_p5) target bundleno = 21 (0x15), region = 28 }
   0x8   : > { %p41_p4 = scmp.eq.s32.totalorder %s39_s24, 0 }
   0xa   : > { %s1283_s26 = scalar_select %p41_p4, %s1203_s19, %s43_s25  }
   0xc   : > { %239 = sbr.rel (!%p52_p3) target bundleno = 21 (0x15), region = 32  ;;  %s241_s27 = sand.u32 (%p52_p3), 1, %s1203_s19  }
   0xd   : > { %s1019_s28 = smul.u32 (%p52_p3), 12, %s1211_s21 }
   0xe   : > { %s1102_s29 = smul.u32 (%p52_p3), 48, %s241_s27 }
   0xf   : > { %s249_s7 = scalar_lea.vmem (%p52_p3), %s1367_s0, %s1019_s28 }
  0x10   : > { %v264_v0 = vld [vmem:[%s249_s7] sm:$0xff] (%p52_p3)  ;;  %v268_v2 = vld [vmem:[%s249_s7 + $0x48] sm:$0xff] (%p52_p3)  ;;  %s243_s8 = scalar_lea.vmem (%p52_p3), [#allocation3], %s1102_s29  ;;  %v971_v6 = vld [vmem:[%s249_s7 + $0x50] sm:$0xf] (%p52_p3) }
  0x11   : > { %v266_v1 = vld [vmem:[%s249_s7 + $0x24] sm:$0xff]  ;;  %265 = vst [vmem:[%s243_s8] sm:$0xff] %v264_v0  ;;  %269 = vst [vmem:[%s243_s8 + $0x18] sm:$0xff] %v268_v2  ;;  %v270_v3 = vld [vmem:[%s249_s7 + $0x6c] sm:$0xff] }
  0x12   : > { %267 = vst [vmem:[%s243_s8 + $0xc] sm:$0xff] %v266_v1  ;;  %v967_v4 = vld [vmem:[%s249_s7 + $0x8] sm:$0xf]  ;;  %v969_v5 = vld [vmem:[%s249_s7 + $0x2c] sm:$0xf]  ;;  %271 = vst [vmem:[%s243_s8 + $0x24] sm:$0xff] %v270_v3 }
  0x13   : > { %968 = vst [vmem:[%s243_s8 + $0x8] sm:$0xf] %v967_v4  ;;  %970 = vst [vmem:[%s243_s8 + $0x14] sm:$0xf] %v969_v5  ;;  %v973_v7 = vld [vmem:[%s249_s7 + $0x74] sm:$0xf] }
  0x14   : > { %972 = vst [vmem:[%s243_s8 + $0x20] sm:$0xf] %v971_v6  ;;  %974 = vst [vmem:[%s243_s8 + $0x2c] sm:$0xf] %v973_v7 }
  0x15 PF: > { %p975_p6 = scmp.ge.s32.totalorder %s1215_s22, 1  ;;  %p304_p7 = scmp.lt.s32.totalorder %s1215_s22, 4 }
  0x17   : > { %p305_p8 = pnand %p975_p6, %p304_p7 }
  0x18   : > { %s311_s9 = sand.u32 (!%p305_p8), 1, %s1199_s18   ;;  %s365_s10 = smul.u32 (!%p305_p8), 48, %s1207_s20 }
  0x19   : > { %308 = sbr.rel (%p305_p8) target bundleno = 303 (0x12f), region = 62  ;;  %p977_p10 = scmp.ne.s32.totalorder (!%p305_p8), %s1207_s20, 0 }
  0x1a   : > { %s1103_s11 = smul.u32 (!%p305_p8), 48, %s311_s9  ;;  %p366_p9 = scmp.lt.s32.totalorder (!%p305_p8), %s365_s10, 143 }
  0x1c   : > { %s1300_s16 = scalar_lea.vmem (!%p305_p8), [#allocation3], %s1103_s11 }
  0x1e   : > { %s1380_s10 = smov (!%p366_p9, %s365_s10), 143  ;;  %402 = sbr.rel (%p977_p10) target bundleno = 38 (0x26), region = 70 }
  0x1f   : > { %s976_s12 = sshll.u32 %s1380_s10, 2 }
  0x20   : > { %s1298_s15 = scalar_lea.vmem %s1368_s1, %s976_s12 }
  0x23   : > { %v1217_v8 = vmov 0.0  }
  0x24   : > { %403 = vst [vmem:[#allocation2 + $0x10] sm:$0xff] %v1217_v8  ;;  %404 = vst [vmem:[#allocation2] sm:$0xff] %v1217_v8 }
  0x25   : > { %405 = vst [vmem:[#allocation2 + $0x18] sm:$0xff] %v1217_v8  ;;  %406 = vst [vmem:[#allocation2 + $0x8] sm:$0xff] %v1217_v8 }
  0x26 PF: > { %v1145_v9 = vld [vmem:[%s1298_s15 + $0x78] sm:$0xff]   ;;  %v1148_v12 = vld [vmem:[%s1298_s15 + $0x70] sm:$0xff]   ;;  %v1151_v15 = vld [vmem:[%s1298_s15 + $0x68] sm:$0xff]   ;;  %p1008_p11 = scmp.ne.s32.totalorder %s1207_s20, 2 }
  0x27   : > { %v1146_v10 = vld [vmem:[%s1298_s15 + $0x38] sm:$0xff]   ;;  %1044 = vmatprep.subr.bf16.mxu0 %v1145_v9  ;;  %v1149_v13 = vld [vmem:[%s1298_s15 + $0x30] sm:$0xff]   ;;  %v1152_v16 = vld [vmem:[%s1298_s15 + $0x28] sm:$0xff]  }
  0x28   : > { %v1147_v11 = vld [vmem:[%s1298_s15 + $0xb8] sm:$0xff]   ;;  %1045 = vmatpush3.bf16.msra.mxu0 %v1146_v10  ;;  %v1150_v14 = vld [vmem:[%s1298_s15 + $0xb0] sm:$0xff]   ;;  %v1153_v17 = vld [vmem:[%s1298_s15 + $0xa8] sm:$0xff]  }
  0x29   : > { %1082 = vmatprep.subr.bf16.mxu1 %v1147_v11  ;;  %1046 = vmatprep.subr.bf16.mxu0 %v1148_v12  ;;  %v1154_v18 = vld [vmem:[%s1298_s15 + $0x60] sm:$0xff]   ;;  %v1157_v21 = vld [vmem:[%s1298_s15 + $0x58] sm:$0xff]   ;;  %v1160_v24 = vld [vmem:[%s1298_s15 + $0x50] sm:$0xff]  }
  0x2a   : > { %1083 = vmatpush3.bf16.msra.mxu1 %v1147_v11  ;;  %v1155_v19 = vld [vmem:[%s1298_s15 + $0x20] sm:$0xff]   ;;  %v1159_v22 = vld [vmem:[%s1298_s15 + $0x98] sm:$0xff]   ;;  %v1162_v25 = vld [vmem:[%s1298_s15 + $0x90] sm:$0xff]  }
  0x2b   : > { %1084 = vmatprep.subr.bf16.mxu1 %v1150_v14  ;;  %v1156_v20 = vld [vmem:[%s1298_s15 + $0xa0] sm:$0xff]   ;;  %v1158_v23 = vld [vmem:[%s1298_s15 + $0x18] sm:$0xff]   ;;  %v1161_v26 = vld [vmem:[%s1298_s15 + $0x10] sm:$0xff]  }
  0x2c   : > { %1047 = vmatpush3.bf16.msra.mxu0 %v1149_v13  ;;  %v1163_v27 = vld [vmem:[%s1298_s15 + $0x48] sm:$0xff]   ;;  %v1166_v30 = vld [vmem:[%s1298_s15 + $0x40] sm:$0xff]   ;;  %v407_v44 = vld [vmem:[#allocation2 + $0x10] sm:$0xff] }
  0x2d   : > { %1048 = vmatprep.subr.bf16.mxu0 %v1151_v15  ;;  %v1164_v28 = vld [vmem:[%s1298_s15 + $0x8] sm:$0xff]   ;;  %v1168_v31 = vld [vmem:[%s1298_s15 + $0x80] sm:$0xff]   ;;  %v409_v58 = vld [vmem:[#allocation2 + $0x18] sm:$0xff] }
  0x2e   : > { %1085 = vmatpush3.bf16.msra.mxu1 %v1150_v14  ;;  %v1165_v29 = vld [vmem:[%s1298_s15 + $0x88] sm:$0xff]   ;;  %v1171_v32 = vld [vmem:[%s1300_s16 + $0x4] ss:$12 sps:$4 sm:$0xff]  }
  0x2f   : > { %1086 = vmatprep.subr.bf16.mxu1 %v1153_v17  ;;  %v1172_v33 = vld [vmem:[%s1300_s16 + $0x8] ss:$12 sps:$4 sm:$0xff]   ;;  %675 = vmatprep.mubr.bf16.mxu0 %v1171_v32  ;;  %v1169_v35 = vld [vmem:[%s1300_s16] ss:$12 sps:$4 sm:$0xff]   ;;  %v1176_v38 = vld [vmem:[%s1300_s16 + $0x18] ss:$12 sps:$4 sm:$0xff]  }
  0x30   : > { %1049 = vmatpush3.bf16.msra.mxu0 %v1152_v16  ;;  %v1167_v34 = vld [vmem:[%s1298_s15] sm:$0xff]   ;;  %1098 = vmatprep.mubr.bf16.mxu1 %v1172_v33  ;;  %v1174_v36 = vld [vmem:[%s1300_s16 + $0x1c] ss:$12 sps:$4 sm:$0xff]  }
  0x31   : > { %1050 = vmatprep.subr.bf16.mxu0 %v1154_v18  ;;  %v1173_v37 = vld [vmem:[%s1300_s16 + $0x20] ss:$12 sps:$4 sm:$0xff]  }
  0x32   : > { %1087 = vmatpush3.bf16.msra.mxu1 %v1153_v17  ;;  %v408_v52 = vld [vmem:[#allocation2] sm:$0xff]  ;;  %v410_v0 = vld [vmem:[#allocation2 + $0x8] sm:$0xff] }
  0x33   : > { %1088 = vmatprep.subr.bf16.mxu1 %v1156_v20 }
  0x34   : > { %1051 = vmatpush3.bf16.msra.mxu0 %v1155_v19 }
  0x35   : > { %1052 = vmatprep.subr.bf16.mxu0 %v1157_v21 }
  0x36   : > { %1089 = vmatpush3.bf16.msra.mxu1 %v1156_v20 }
  0x37   : > { %1090 = vmatprep.subr.bf16.mxu1 %v1159_v22 }
  0x38   : > { %1053 = vmatpush3.bf16.msra.mxu0 %v1158_v23 }
  0x39   : > { %1054 = vmatprep.subr.bf16.mxu0 %v1160_v24 }
  0x3a   : > { %1091 = vmatpush3.bf16.msra.mxu1 %v1159_v22 }
  0x3b   : > { %1092 = vmatprep.subr.bf16.mxu1 %v1162_v25 }
  0x3c   : > { %1055 = vmatpush3.bf16.msra.mxu0 %v1161_v26 }
  0x3d   : > { %1056 = vmatprep.subr.bf16.mxu0 %v1163_v27 }
  0x3e   : > { %1093 = vmatpush3.bf16.msra.mxu1 %v1162_v25 }
  0x3f   : > { %1094 = vmatprep.subr.bf16.mxu1 %v1165_v29 }
  0x40   : > { %1057 = vmatpush3.bf16.msra.mxu0 %v1164_v28 }
  0x41   : > { %1058 = vmatprep.subr.bf16.mxu0 %v1166_v30 }
  0x42   : > { %1095 = vmatpush3.bf16.msra.mxu1 %v1165_v29 }
  0x43   : > { %1096 = vmatprep.subr.bf16.mxu1 %v1168_v31 }
  0x44   : > { %1059 = vmatpush3.bf16.msra.mxu0 %v1167_v34 }
  0x46   : > { %1097 = vmatpush3.bf16.msra.mxu1 %v1168_v31 }
  0x47   : > { %676 = vmatmul.mubr.bf16.vlgmr.msra.gmra.mxu0 %v1169_v35 }
  0x48   : > { %683 = vmatprep.mubr.bf16.mxu0 %v1174_v36 }
  0x49   : > { %1099 = vmatmul.mubr.bf16.vlgmr.msra.gmra.mxu1 %v1173_v37 }
  0x4f   : > { %684 = vmatmul.mubr.bf16.gmra.mxu0 %v1176_v38 }
 0x107   : > { %v1060_v39 = vpop.f32.mrf.mxu0 }
 0x109   : > { %v1061_v40 = vpop.f32.mrf.mxu0  ;;  %v1100_v41 = vpop.f32.mrf.mxu1 }
 0x10a   : > { %v1062_v42 = vadd.f32 %v1061_v40, %v1060_v39 }
 0x10b   : > { %v1063_v43 = vpop.f32.mrf.mxu0  ;;  %v726_v45 = vpop.f32.mrf.mxu1 }
 0x10c   : > { %v727_v46 = vadd.f32 %v1062_v42, %v726_v45 }
 0x10d   : > { %v1064_v47 = vpop.f32.mrf.mxu0  ;;  %v1101_v48 = vpop.f32.mrf.mxu1 }
 0x10e   : > { %v741_v49 = vadd.f32 %v727_v46, %v407_v44  ;;  %v1065_v50 = vadd.f32 %v1064_v47, %v1063_v43 }
 0x10f   : > { %v1066_v51 = vpop.f32.mrf.mxu0  ;;  %v729_v53 = vpop.f32.mrf.mxu1 }
 0x110   : > { %745 = vst [vmem:[#allocation2 + $0x10] sm:$0xff] %v741_v49  ;;  %v730_v54 = vadd.f32 %v1065_v50, %v729_v53 }
 0x111   : > { %v1067_v55 = vpop.f32.mrf.mxu0 }
 0x112   : > { %v742_v56 = vadd.f32 %v730_v54, %v408_v52  ;;  %v1068_v57 = vadd.f32 %v1067_v55, %v1066_v51 }
 0x113   : > { %v1069_v59 = vpop.f32.mrf.mxu0 }
 0x114   : > { %746 = vst [vmem:[#allocation2] sm:$0xff] %v742_v56  ;;  %v735_v60 = vadd.f32 %v1100_v41, %v1068_v57 }
 0x115   : > { %v1070_v61 = vpop.f32.mrf.mxu0 }
 0x116   : > { %v743_v62 = vadd.f32 %v735_v60, %v409_v58  ;;  %v1071_v63 = vadd.f32 %v1070_v61, %v1069_v59 }
 0x118   : > { %747 = vst [vmem:[#allocation2 + $0x18] sm:$0xff] %v743_v62  ;;  %v738_v1 = vadd.f32 %v1101_v48, %v1071_v63  ;;  %752 = sbr.rel (%p1008_p11) target bundleno = 303 (0x12f), region = 74 }
 0x11a   : > { %v744_v2 = vadd.f32 %v738_v1, %v410_v0 }
 0x11c   : > { %748 = vst [vmem:[#allocation2 + $0x8] sm:$0xff] %v744_v2 }
 0x11d   : > { %v753_v3 = vld [vmem:[#allocation2 + $0x10] sm:$0xff]  ;;  %v754_v4 = vld [vmem:[#allocation2] sm:$0xff]  ;;  %v1042_v15 = vld [vmem:[%s1371_s4 + $0x8] sm:$0xff]  }
 0x11e   : > { %v1009_v5 = vld [vmem:[%s1369_s2] ss:$0 sm:$0xff]  ;;  %v1030_v19 = vunpack.c.l.bf16 %v1042_v15  ;;  %v1031_v21 = vunpack.c.h.bf16 %v1042_v15 }
 0x11f   : > { %v764_v6 = vmul.f32 %v1009_v5, %v753_v3  ;;  %v765_v7 = vmul.f32 %v1009_v5, %v754_v4  ;;  %v1010_v8 = vld [vmem:[%s1370_s3] ss:$0 sm:$0xff]  ;;  %v755_v10 = vld [vmem:[#allocation2 + $0x18] sm:$0xff] }
 0x120   : > { %v1025_v9 = vld [vmem:[%s1371_s4] sm:$0xff]   ;;  %v766_v14 = vmul.f32 %v1009_v5, %v755_v10 }
 0x121   : > { %v1026_v11 = vunpack.c.l.bf16 %v1025_v9  ;;  %v1027_v12 = vunpack.c.h.bf16 %v1025_v9  ;;  %v775_v16 = vadd.f32 %v1010_v8, %v764_v6  ;;  %v776_v17 = vadd.f32 %v1010_v8, %v765_v7 }
 0x122   : > { %v777_v20 = vadd.f32 %v1010_v8, %v766_v14 }
 0x123   : > { %v756_v13 = vld [vmem:[#allocation2 + $0x8] sm:$0xff]  ;;  %v787_v22 = vadd.f32 %v1026_v11, %v775_v16  ;;  %v788_v23 = vadd.f32 %v1027_v12, %v776_v17 }
 0x124   : > { %v767_v18 = vmul.f32 %v1009_v5, %v756_v13  ;;  %v789_v25 = vadd.f32 %v1030_v19, %v777_v20 }
 0x125   : > { %v791_v26 = vmax.f32 %v787_v22, 0.0  ;;  %v792_v27 = vmax.f32 %v788_v23, 0.0 }
 0x126   : > { %v778_v24 = vadd.f32 %v1010_v8, %v767_v18  ;;  %v793_v29 = vmax.f32 %v789_v25, 0.0 }
 0x127   : > { %v1035_v30 = vpack.c.bf16 %v792_v27, %v791_v26 }
 0x128   : > { %v790_v28 = vadd.f32 %v1031_v21, %v778_v24 }
 0x129   : > { %1036 = vst [vmem:[%s1372_s5] sm:$0xff] %v1035_v30  }
 0x12a   : > { %v794_v31 = vmax.f32 %v790_v28, 0.0 }
 0x12c   : > { %v1040_v32 = vpack.c.bf16 %v794_v31, %v793_v29 }
 0x12e   : > { %1043 = vst [vmem:[%s1372_s5 + $0x8] sm:$0xff] %v1040_v32  }
 0x12f PF: > { %s15_s22 = sadd.s32 1, %s1215_s22   ;;  %s1373_s18 = smov %s1203_s19 }
 0x130   : > { %p12_p12 = scmp.ge.s32.totalorder %s15_s22, 5   ;;  %s1374_s19 = smov %s1283_s26 }
 0x131   : > { %s1375_s20 = smov %s1211_s21  ;;  %s1376_s21 = smov %s1378_s23 }
 0x132   :  { %14 = sbr.rel (!%p12_p12) target bundleno = 3 (0x3), region = 127 }

// kernel: resnet18_forward.27
= control target key start
LH: loop header
LB: loop body
LE: loop exit
PB: predicated region body
PF: predicated region fallthrough
CT: control target
= control target key end

     0   :  { %s358_s1 = inlined_call_operand.vmem [shape: bf16[128,128], index: 1, kind: input, shape index: {}]   ;;  %s359_s0 = inlined_call_operand.vmem [shape: bf16[32,128], index: 0, kind: input, shape index: {}]   ;;  %s360_s2 = inlined_call_operand.vmem [shape: f32[1,128], index: 2, kind: input, shape index: {}]   ;;  %s361_s3 = inlined_call_operand.vmem [shape: f32[1,128], index: 3, kind: input, shape index: {}]   ;;  %s362_s4 = inlined_call_operand.vmem [shape: bf16[32,128], index: 4, kind: output, shape index: {}]  }
   0x1   :  { %v281_v0 = vld [vmem:[%s358_s1 + $0x38] sm:$0xff]   ;;  %v282_v1 = vld [vmem:[%s358_s1 + $0x30] sm:$0xff]   ;;  %v283_v2 = vld [vmem:[%s358_s1 + $0x28] sm:$0xff]  }
   0x2   :  { %261 = vmatprep.subr.bf16.mxu0 %v281_v0  ;;  %v284_v3 = vld [vmem:[%s358_s1 + $0x20] sm:$0xff]   ;;  %v285_v5 = vld [vmem:[%s358_s1 + $0x18] sm:$0xff]   ;;  %v286_v6 = vld [vmem:[%s358_s1 + $0x10] sm:$0xff]  }
   0x3   :  { %262 = vmatpush3.bf16.msra.mxu0 %v281_v0  ;;  %v289_v4 = vld [vmem:[%s359_s0] sm:$0xff]   ;;  %v287_v7 = vld [vmem:[%s358_s1 + $0x8] sm:$0xff]  }
   0x4   :  { %263 = vmatprep.subr.bf16.mxu0 %v282_v1  ;;  %277 = vmatprep.mubr.bf16.mxu0 %v289_v4  ;;  %v288_v8 = vld [vmem:[%s358_s1] sm:$0xff]   ;;  %v290_v9 = vld [vmem:[%s359_s0 + $0x8] sm:$0xff]  }
   0x5   :  { %v230_v11 = vld [vmem:[%s360_s2] ss:$0 sm:$0xff] }
   0x6   :  { %v231_v14 = vld [vmem:[%s361_s3] ss:$0 sm:$0xff] }
   0x7   :  { %264 = vmatpush3.bf16.msra.mxu0 %v282_v1 }
   0x8   :  { %265 = vmatprep.subr.bf16.mxu0 %v283_v2 }
   0xb   :  { %266 = vmatpush3.bf16.msra.mxu0 %v283_v2 }
   0xc   :  { %267 = vmatprep.subr.bf16.mxu0 %v284_v3 }
   0xf   :  { %268 = vmatpush3.bf16.msra.mxu0 %v284_v3 }
  0x10   :  { %269 = vmatprep.subr.bf16.mxu0 %v285_v5 }
  0x13   :  { %270 = vmatpush3.bf16.msra.mxu0 %v285_v5 }
  0x14   :  { %271 = vmatprep.subr.bf16.mxu0 %v286_v6 }
  0x17   :  { %272 = vmatpush3.bf16.msra.mxu0 %v286_v6 }
  0x18   :  { %273 = vmatprep.subr.bf16.mxu0 %v287_v7 }
  0x1b   :  { %274 = vmatpush3.bf16.msra.mxu0 %v287_v7 }
  0x1c   :  { %275 = vmatprep.subr.bf16.mxu0 %v288_v8 }
  0x1f   :  { %276 = vmatpush3.bf16.msra.mxu0 %v288_v8 }
  0x22   :  { %278 = vmatmul.mubr.bf16.vlgmr.msra.gmra.mxu0 %v290_v9 }
  0xe2   :  { %v279_v10 = vpop.f32.mrf.mxu0 }
  0xe3   :  { %v183_v13 = vmul.f32 %v279_v10, %v230_v11 }
  0xe4   :  { %v144_v12 = vpop.f32.mrf.mxu0 }
  0xe5   :  { %v181_v16 = vmul.f32 %v230_v11, %v144_v12  ;;  %v194_v19 = vadd.f32 %v231_v14, %v183_v13 }
  0xe6   :  { %v280_v15 = vpop.f32.mrf.mxu0 }
  0xe7   :  { %v184_v17 = vmul.f32 %v280_v15, %v230_v11  ;;  %v192_v22 = vadd.f32 %v231_v14, %v181_v16 }
  0xe8   :  { %v147_v18 = vpop.f32.mrf.mxu0 }
  0xe9   :  { %v195_v20 = vadd.f32 %v231_v14, %v184_v17  ;;  %v182_v21 = vmul.f32 %v230_v11, %v147_v18 }
  0xeb   :  { %v248_v23 = vpack.c.bf16 %v195_v20, %v194_v19  ;;  %v193_v24 = vadd.f32 %v231_v14, %v182_v21 }
  0xed   :  { %250 = vst [vmem:[%s362_s4 + $0x8] sm:$0xff] %v248_v23   ;;  %v243_v25 = vpack.c.bf16 %v193_v24, %v192_v22 }
  0xef   :  { %244 = vst [vmem:[%s362_s4] sm:$0xff] %v243_v25  }

// kernel: resnet18_forward.30
= control target key start
LH: loop header
LB: loop body
LE: loop exit
PB: predicated region body
PF: predicated region fallthrough
CT: control target
= control target key end

     0   :  { %s1143_s15 = smov 0   ;;  %s1145_s16 = smov 0   ;;  %s1256_s0 = inlined_call_operand.vmem [shape: bf16[32,1152], index: 0, kind: input, shape index: {}]   ;;  %s1257_s1 = inlined_call_operand.vmem [shape: bf16[1152,128], index: 1, kind: input, shape index: {}]   ;;  %s1258_s2 = inlined_call_operand.vmem [shape: f32[1,128], index: 2, kind: input, shape index: {}]   ;;  %s1259_s3 = inlined_call_operand.vmem [shape: f32[1,128], index: 3, kind: input, shape index: {}]   ;;  %s1260_s4 = inlined_call_operand.vmem [shape: bf16[32,128], index: 4, kind: output, shape index: {}]  }
   0x1   :  { %s1147_s17 = smov 0   ;;  %s1149_s18 = smov 0  }
   0x2   :  { %s1151_s19 = smov 0  }
   0x3 LB: > { %s26_s20 = sadd.s32 1, %s1111_s18  ;;  %p49_p1 = scmp.ne.s32.totalorder %s1103_s16, %s1099_s15  ;;  %s1115_s19 = sphi %s1151_s19, %s14_s19   ;;  %s1111_s18 = sphi %s1149_s18, %s1264_s18   ;;  %s1107_s17 = sphi %s1147_s17, %s1263_s17   ;;  %s1103_s16 = sphi %s1145_s16, %s1262_s16   ;;  %s1099_s15 = sphi %s1143_s15, %s1261_s15  }
   0x4   : > { %p27_p0 = scmp.ge.s32.totalorder %s26_s20, 3  ;;  %p50_p2 = scmp.eq.s32.totalorder %s1115_s19, 0 }
   0x5   : > { %s42_s22 = sadd.s32 1, %s1103_s16  ;;  %p874_p5 = scmp.ge.s32.totalorder %s1115_s19, 3 }
   0x6   : > { %s1266_s20 = smov (%p27_p0, %s26_s20), 0  ;;  %p51_p3 = por %p50_p2, %p49_p1 }
   0x7   : > { %s38_s21 = ssub.s32 %s1111_s18, %s1266_s20  ;;  %195 = sbr.rel (%p874_p5) target bundleno = 21 (0x15), region = 24 }
   0x8   : > { %p40_p4 = scmp.eq.s32.totalorder %s38_s21, 0 }
   0xa   : > { %s1178_s23 = scalar_select %p40_p4, %s1103_s16, %s42_s22  }
   0xc   : > { %198 = sbr.rel (!%p51_p3) target bundleno = 21 (0x15), region = 28  ;;  %s200_s24 = sand.u32 (%p51_p3), 1, %s1103_s16  }
   0xd   : > { %s928_s25 = smul.u32 (%p51_p3), 12, %s1111_s18 }
   0xe   : > { %s1002_s26 = smul.u32 (%p51_p3), 48, %s200_s24 }
   0xf   : > { %s208_s29 = scalar_lea.vmem (%p51_p3), %s1256_s0, %s928_s25 }
  0x10   : > { %v223_v0 = vld [vmem:[%s208_s29] sm:$0xff] (%p51_p3)  ;;  %v227_v2 = vld [vmem:[%s208_s29 + $0x48] sm:$0xff] (%p51_p3)  ;;  %s202_s30 = scalar_lea.vmem (%p51_p3), [#allocation3], %s1002_s26  ;;  %v880_v6 = vld [vmem:[%s208_s29 + $0x50] sm:$0xf] (%p51_p3) }
  0x11   : > { %v225_v1 = vld [vmem:[%s208_s29 + $0x24] sm:$0xff]  ;;  %224 = vst [vmem:[%s202_s30] sm:$0xff] %v223_v0  ;;  %228 = vst [vmem:[%s202_s30 + $0x18] sm:$0xff] %v227_v2  ;;  %v229_v3 = vld [vmem:[%s208_s29 + $0x6c] sm:$0xff] }
  0x12   : > { %226 = vst [vmem:[%s202_s30 + $0xc] sm:$0xff] %v225_v1  ;;  %v876_v4 = vld [vmem:[%s208_s29 + $0x8] sm:$0xf]  ;;  %v878_v5 = vld [vmem:[%s208_s29 + $0x2c] sm:$0xf]  ;;  %230 = vst [vmem:[%s202_s30 + $0x24] sm:$0xff] %v229_v3 }
  0x13   : > { %877 = vst [vmem:[%s202_s30 + $0x8] sm:$0xf] %v876_v4  ;;  %879 = vst [vmem:[%s202_s30 + $0x14] sm:$0xf] %v878_v5  ;;  %v882_v7 = vld [vmem:[%s208_s29 + $0x74] sm:$0xf] }
  0x14   : > { %881 = vst [vmem:[%s202_s30 + $0x20] sm:$0xf] %v880_v6  ;;  %883 = vst [vmem:[%s202_s30 + $0x2c] sm:$0xf] %v882_v7 }
  0x15 PF: > { %p884_p6 = scmp.ge.s32.totalorder %s1115_s19, 1  ;;  %p263_p7 = scmp.lt.s32.totalorder %s1115_s19, 4 }
  0x17   : > { %p264_p8 = pnand %p884_p6, %p263_p7 }
  0x18   : > { %s270_s5 = sand.u32 (!%p264_p8), 1, %s1099_s15   ;;  %s314_s6 = smul.u32 (!%p264_p8), 48, %s1107_s17 }
  0x19   : > { %267 = sbr.rel (%p264_p8) target bundleno = 301 (0x12d), region = 58  ;;  %p886_p10 = scmp.ne.s32.totalorder (!%p264_p8), %s1107_s17, 0 }
  0x1a   : > { %s1003_s7 = smul.u32 (!%p264_p8), 48, %s270_s5  ;;  %p315_p9 = scmp.lt.s32.totalorder (!%p264_p8), %s314_s6, 143 }
  0x1c   : > { %s1195_s12 = scalar_lea.vmem (!%p264_p8), [#allocation3], %s1003_s7 }
  0x1e   : > { %s1268_s6 = smov (!%p315_p9, %s314_s6), 143  ;;  %342 = sbr.rel (%p886_p10) target bundleno = 38 (0x26), region = 66 }
  0x1f   : > { %s885_s8 = sshll.u32 %s1268_s6, 2 }
  0x20   : > { %s1193_s11 = scalar_lea.vmem %s1257_s1, %s885_s8 }
  0x23   : > { %v1117_v8 = vmov 0.0  }
  0x24   : > { %343 = vst [vmem:[#allocation2 + $0x10] sm:$0xff] %v1117_v8  ;;  %344 = vst [vmem:[#allocation2] sm:$0xff] %v1117_v8 }
  0x25   : > { %345 = vst [vmem:[#allocation2 + $0x18] sm:$0xff] %v1117_v8  ;;  %346 = vst [vmem:[#allocation2 + $0x8] sm:$0xff] %v1117_v8 }
  0x26 PF: > { %v1045_v9 = vld [vmem:[%s1193_s11 + $0x78] sm:$0xff]   ;;  %v1048_v12 = vld [vmem:[%s1193_s11 + $0x70] sm:$0xff]   ;;  %v1051_v15 = vld [vmem:[%s1193_s11 + $0x68] sm:$0xff]   ;;  %p917_p11 = scmp.ne.s32.totalorder %s1107_s17, 2 }
  0x27   : > { %v1046_v10 = vld [vmem:[%s1193_s11 + $0x38] sm:$0xff]   ;;  %944 = vmatprep.subr.bf16.mxu0 %v1045_v9  ;;  %v1049_v13 = vld [vmem:[%s1193_s11 + $0x30] sm:$0xff]   ;;  %v1052_v16 = vld [vmem:[%s1193_s11 + $0x28] sm:$0xff]  }
  0x28   : > { %v1047_v11 = vld [vmem:[%s1193_s11 + $0xb8] sm:$0xff]   ;;  %945 = vmatpush3.bf16.msra.mxu0 %v1046_v10  ;;  %v1050_v14 = vld [vmem:[%s1193_s11 + $0xb0] sm:$0xff]   ;;  %v1053_v17 = vld [vmem:[%s1193_s11 + $0xa8] sm:$0xff]  }
  0x29   : > { %982 = vmatprep.subr.bf16.mxu1 %v1047_v11  ;;  %946 = vmatprep.subr.bf16.mxu0 %v1048_v12  ;;  %v1054_v18 = vld [vmem:[%s1193_s11 + $0x60] sm:$0xff]   ;;  %v1057_v21 = vld [vmem:[%s1193_s11 + $0x58] sm:$0xff]   ;;  %v1060_v24 = vld [vmem:[%s1193_s11 + $0x50] sm:$0xff]  }
  0x2a   : > { %983 = vmatpush3.bf16.msra.mxu1 %v1047_v11  ;;  %v1055_v19 = vld [vmem:[%s1193_s11 + $0x20] sm:$0xff]   ;;  %v1059_v22 = vld [vmem:[%s1193_s11 + $0x98] sm:$0xff]   ;;  %v1062_v25 = vld [vmem:[%s1193_s11 + $0x90] sm:$0xff]  }
  0x2b   : > { %984 = vmatprep.subr.bf16.mxu1 %v1050_v14  ;;  %v1056_v20 = vld [vmem:[%s1193_s11 + $0xa0] sm:$0xff]   ;;  %v1058_v23 = vld [vmem:[%s1193_s11 + $0x18] sm:$0xff]   ;;  %v1061_v26 = vld [vmem:[%s1193_s11 + $0x10] sm:$0xff]  }
  0x2c   : > { %947 = vmatpush3.bf16.msra.mxu0 %v1049_v13  ;;  %v1063_v27 = vld [vmem:[%s1193_s11 + $0x48] sm:$0xff]   ;;  %v1066_v30 = vld [vmem:[%s1193_s11 + $0x40] sm:$0xff]   ;;  %v347_v44 = vld [vmem:[#allocation2 + $0x10] sm:$0xff] }
  0x2d   : > { %948 = vmatprep.subr.bf16.mxu0 %v1051_v15  ;;  %v1064_v28 = vld [vmem:[%s1193_s11 + $0x8] sm:$0xff]   ;;  %v1068_v31 = vld [vmem:[%s1193_s11 + $0x80] sm:$0xff]   ;;  %v349_v58 = vld [vmem:[#allocation2 + $0x18] sm:$0xff] }
  0x2e   : > { %985 = vmatpush3.bf16.msra.mxu1 %v1050_v14  ;;  %v1065_v29 = vld [vmem:[%s1193_s11 + $0x88] sm:$0xff]   ;;  %v1071_v32 = vld [vmem:[%s1195_s12 + $0x4] ss:$12 sps:$4 sm:$0xff]  }
  0x2f   : > { %986 = vmatprep.subr.bf16.mxu1 %v1053_v17  ;;  %v1072_v33 = vld [vmem:[%s1195_s12 + $0x8] ss:$12 sps:$4 sm:$0xff]   ;;  %615 = vmatprep.mubr.bf16.mxu0 %v1071_v32  ;;  %v1069_v35 = vld [vmem:[%s1195_s12] ss:$12 sps:$4 sm:$0xff]   ;;  %v1076_v38 = vld [vmem:[%s1195_s12 + $0x18] ss:$12 sps:$4 sm:$0xff]  }
  0x30   : > { %949 = vmatpush3.bf16.msra.mxu0 %v1052_v16  ;;  %v1067_v34 = vld [vmem:[%s1193_s11] sm:$0xff]   ;;  %998 = vmatprep.mubr.bf16.mxu1 %v1072_v33  ;;  %v1074_v36 = vld [vmem:[%s1195_s12 + $0x1c] ss:$12 sps:$4 sm:$0xff]  }
  0x31   : > { %950 = vmatprep.subr.bf16.mxu0 %v1054_v18  ;;  %v1073_v37 = vld [vmem:[%s1195_s12 + $0x20] ss:$12 sps:$4 sm:$0xff]  }
  0x32   : > { %987 = vmatpush3.bf16.msra.mxu1 %v1053_v17  ;;  %v348_v52 = vld [vmem:[#allocation2] sm:$0xff]  ;;  %v350_v0 = vld [vmem:[#allocation2 + $0x8] sm:$0xff] }
  0x33   : > { %988 = vmatprep.subr.bf16.mxu1 %v1056_v20 }
  0x34   : > { %951 = vmatpush3.bf16.msra.mxu0 %v1055_v19 }
  0x35   : > { %952 = vmatprep.subr.bf16.mxu0 %v1057_v21 }
  0x36   : > { %989 = vmatpush3.bf16.msra.mxu1 %v1056_v20 }
  0x37   : > { %990 = vmatprep.subr.bf16.mxu1 %v1059_v22 }
  0x38   : > { %953 = vmatpush3.bf16.msra.mxu0 %v1058_v23 }
  0x39   : > { %954 = vmatprep.subr.bf16.mxu0 %v1060_v24 }
  0x3a   : > { %991 = vmatpush3.bf16.msra.mxu1 %v1059_v22 }
  0x3b   : > { %992 = vmatprep.subr.bf16.mxu1 %v1062_v25 }
  0x3c   : > { %955 = vmatpush3.bf16.msra.mxu0 %v1061_v26 }
  0x3d   : > { %956 = vmatprep.subr.bf16.mxu0 %v1063_v27 }
  0x3e   : > { %993 = vmatpush3.bf16.msra.mxu1 %v1062_v25 }
  0x3f   : > { %994 = vmatprep.subr.bf16.mxu1 %v1065_v29 }
  0x40   : > { %957 = vmatpush3.bf16.msra.mxu0 %v1064_v28 }
  0x41   : > { %958 = vmatprep.subr.bf16.mxu0 %v1066_v30 }
  0x42   : > { %995 = vmatpush3.bf16.msra.mxu1 %v1065_v29 }
  0x43   : > { %996 = vmatprep.subr.bf16.mxu1 %v1068_v31 }
  0x44   : > { %959 = vmatpush3.bf16.msra.mxu0 %v1067_v34 }
  0x46   : > { %997 = vmatpush3.bf16.msra.mxu1 %v1068_v31 }
  0x47   : > { %616 = vmatmul.mubr.bf16.vlgmr.msra.gmra.mxu0 %v1069_v35 }
  0x48   : > { %623 = vmatprep.mubr.bf16.mxu0 %v1074_v36 }
  0x49   : > { %999 = vmatmul.mubr.bf16.vlgmr.msra.gmra.mxu1 %v1073_v37 }
  0x4f   : > { %624 = vmatmul.mubr.bf16.gmra.mxu0 %v1076_v38 }
 0x107   : > { %v960_v39 = vpop.f32.mrf.mxu0 }
 0x109   : > { %v961_v40 = vpop.f32.mrf.mxu0  ;;  %v1000_v41 = vpop.f32.mrf.mxu1 }
 0x10a   : > { %v962_v42 = vadd.f32 %v961_v40, %v960_v39 }
 0x10b   : > { %v963_v43 = vpop.f32.mrf.mxu0  ;;  %v666_v45 = vpop.f32.mrf.mxu1 }
 0x10c   : > { %v667_v46 = vadd.f32 %v962_v42, %v666_v45 }
 0x10d   : > { %v964_v47 = vpop.f32.mrf.mxu0  ;;  %v1001_v48 = vpop.f32.mrf.mxu1 }
 0x10e   : > { %v681_v49 = vadd.f32 %v667_v46, %v347_v44  ;;  %v965_v50 = vadd.f32 %v964_v47, %v963_v43 }
 0x10f   : > { %v966_v51 = vpop.f32.mrf.mxu0  ;;  %v669_v53 = vpop.f32.mrf.mxu1 }
 0x110   : > { %685 = vst [vmem:[#allocation2 + $0x10] sm:$0xff] %v681_v49  ;;  %v670_v54 = vadd.f32 %v965_v50, %v669_v53 }
 0x111   : > { %v967_v55 = vpop.f32.mrf.mxu0 }
 0x112   : > { %v682_v56 = vadd.f32 %v670_v54, %v348_v52  ;;  %v968_v57 = vadd.f32 %v967_v55, %v966_v51 }
 0x113   : > { %v969_v59 = vpop.f32.mrf.mxu0 }
 0x114   : > { %686 = vst [vmem:[#allocation2] sm:$0xff] %v682_v56  ;;  %v675_v60 = vadd.f32 %v1000_v41, %v968_v57 }
 0x115   : > { %v970_v61 = vpop.f32.mrf.mxu0 }
 0x116   : > { %v683_v62 = vadd.f32 %v675_v60, %v349_v58  ;;  %v971_v63 = vadd.f32 %v970_v61, %v969_v59 }
 0x118   : > { %687 = vst [vmem:[#allocation2 + $0x18] sm:$0xff] %v683_v62  ;;  %v678_v1 = vadd.f32 %v1001_v48, %v971_v63  ;;  %692 = sbr.rel (%p917_p11) target bundleno = 301 (0x12d), region = 70 }
 0x11a   : > { %v684_v2 = vadd.f32 %v678_v1, %v350_v0 }
 0x11c   : > { %688 = vst [vmem:[#allocation2 + $0x8] sm:$0xff] %v684_v2 }
 0x11d   : > { %v693_v3 = vld [vmem:[#allocation2 + $0x10] sm:$0xff]  ;;  %v694_v4 = vld [vmem:[#allocation2] sm:$0xff] }
 0x11e   : > { %v918_v5 = vld [vmem:[%s1258_s2] ss:$0 sm:$0xff] }
 0x11f   : > { %v704_v6 = vmul.f32 %v918_v5, %v693_v3  ;;  %v705_v7 = vmul.f32 %v918_v5, %v694_v4  ;;  %v919_v8 = vld [vmem:[%s1259_s3] ss:$0 sm:$0xff]  ;;  %v695_v9 = vld [vmem:[#allocation2 + $0x18] sm:$0xff] }
 0x120   : > { %v706_v11 = vmul.f32 %v918_v5, %v695_v9 }
 0x121   : > { %v715_v13 = vadd.f32 %v919_v8, %v704_v6  ;;  %v716_v14 = vadd.f32 %v919_v8, %v705_v7 }
 0x122   : > { %v717_v15 = vadd.f32 %v919_v8, %v706_v11 }
 0x123   : > { %v696_v10 = vld [vmem:[#allocation2 + $0x8] sm:$0xff]  ;;  %v719_v17 = vmax.f32 %v715_v13, 0.0  ;;  %v720_v18 = vmax.f32 %v716_v14, 0.0 }
 0x124   : > { %v707_v12 = vmul.f32 %v918_v5, %v696_v10  ;;  %v721_v19 = vmax.f32 %v717_v15, 0.0 }
 0x125   : > { %v936_v21 = vpack.c.bf16 %v720_v18, %v719_v17 }
 0x126   : > { %v718_v16 = vadd.f32 %v919_v8, %v707_v12 }
 0x127   : > { %937 = vst [vmem:[%s1260_s4] sm:$0xff] %v936_v21  }
 0x128   : > { %v722_v20 = vmax.f32 %v718_v16, 0.0 }
 0x12a   : > { %v941_v22 = vpack.c.bf16 %v722_v20, %v721_v19 }
 0x12c   : > { %943 = vst [vmem:[%s1260_s4 + $0x8] sm:$0xff] %v941_v22  }
 0x12d PF: > { %s14_s19 = sadd.s32 1, %s1115_s19   ;;  %s1261_s15 = smov %s1103_s16 }
 0x12e   : > { %p11_p12 = scmp.ge.s32.totalorder %s14_s19, 5   ;;  %s1262_s16 = smov %s1178_s23 }
 0x12f   : > { %s1263_s17 = smov %s1111_s18  ;;  %s1264_s18 = smov %s1266_s20 }
 0x130   :  { %13 = sbr.rel (!%p11_p12) target bundleno = 3 (0x3), region = 120 }

// kernel: resnet18_forward.33
= control target key start
LH: loop header
LB: loop body
LE: loop exit
PB: predicated region body
PF: predicated region fallthrough
CT: control target
= control target key end

     0   :  { %s1228_s15 = smov 0   ;;  %s1230_s16 = smov 0   ;;  %s1362_s0 = inlined_call_operand.vmem [shape: bf16[16,1152], index: 0, kind: input, shape index: {}]   ;;  %s1363_s1 = inlined_call_operand.vmem [shape: bf16[1152,256], index: 1, kind: input, shape index: {}]   ;;  %s1364_s2 = inlined_call_operand.vmem [shape: f32[1,256], index: 2, kind: input, shape index: {}]   ;;  %s1365_s3 = inlined_call_operand.vmem [shape: f32[1,256], index: 3, kind: input, shape index: {}]   ;;  %s1366_s4 = inlined_call_operand.vmem [shape: bf16[16,256], index: 4, kind: output, shape index: {}]  }
   0x1   :  { %s1232_s17 = smov 0   ;;  %s1234_s18 = smov 0  }
   0x2   :  { %s1236_s19 = smov 0  }
   0x3 LB: > { %s26_s20 = sadd.s32 1, %s1195_s18  ;;  %p49_p1 = scmp.ne.s32.totalorder %s1187_s16, %s1183_s15  ;;  %s1199_s19 = sphi %s1236_s19, %s14_s19   ;;  %s1195_s18 = sphi %s1234_s18, %s1370_s18   ;;  %s1191_s17 = sphi %s1232_s17, %s1369_s17   ;;  %s1187_s16 = sphi %s1230_s16, %s1368_s16   ;;  %s1183_s15 = sphi %s1228_s15, %s1367_s15  }
   0x4   : > { %p27_p0 = scmp.ge.s32.totalorder %s26_s20, 3  ;;  %p50_p2 = scmp.eq.s32.totalorder %s1199_s19, 0 }
   0x5   : > { %s42_s22 = sadd.s32 1, %s1187_s16  ;;  %p969_p5 = scmp.ge.s32.totalorder %s1199_s19, 3 }
   0x6   : > { %s1372_s20 = smov (%p27_p0, %s26_s20), 0  ;;  %p51_p3 = por %p50_p2, %p49_p1 }
   0x7   : > { %s38_s21 = ssub.s32 %s1195_s18, %s1372_s20  ;;  %199 = sbr.rel (%p969_p5) target bundleno = 19 (0x13), region = 24 }
   0x8   : > { %p40_p4 = scmp.eq.s32.totalorder %s38_s21, 0 }
   0xa   : > { %s1263_s23 = scalar_select %p40_p4, %s1187_s16, %s42_s22  }
   0xc   : > { %202 = sbr.rel (!%p51_p3) target bundleno = 19 (0x13), region = 28  ;;  %s204_s24 = sand.u32 (%p51_p3), 1, %s1187_s16  }
   0xd   : > { %s1037_s25 = smul.u32 (%p51_p3), 12, %s1195_s18 }
   0xe   : > { %s1041_s26 = smul.u32 (%p51_p3), 24, %s204_s24 }
   0xf   : > { %s212_s29 = scalar_lea.vmem (%p51_p3), %s1362_s0, %s1037_s25 }
  0x10   : > { %v227_v0 = vld [vmem:[%s212_s29] sm:$0xff] (%p51_p3)  ;;  %v971_v2 = vld [vmem:[%s212_s29 + $0x8] sm:$0xf] (%p51_p3)  ;;  %s206_s30 = scalar_lea.vmem (%p51_p3), [#allocation3], %s1041_s26  ;;  %v973_v3 = vld [vmem:[%s212_s29 + $0x2c] sm:$0xf] (%p51_p3) }
  0x11   : > { %v229_v1 = vld [vmem:[%s212_s29 + $0x24] sm:$0xff]  ;;  %228 = vst [vmem:[%s206_s30] sm:$0xff] %v227_v0  ;;  %972 = vst [vmem:[%s206_s30 + $0x8] sm:$0xf] %v971_v2 }
  0x12   : > { %230 = vst [vmem:[%s206_s30 + $0xc] sm:$0xff] %v229_v1  ;;  %974 = vst [vmem:[%s206_s30 + $0x14] sm:$0xf] %v973_v3 }
  0x13 PF: > { %p975_p6 = scmp.ge.s32.totalorder %s1199_s19, 1  ;;  %p262_p7 = scmp.lt.s32.totalorder %s1199_s19, 4 }
  0x15   : > { %p263_p8 = pnand %p975_p6, %p262_p7 }
  0x16   : > { %s269_s5 = sand.u32 (!%p263_p8), 1, %s1183_s15   ;;  %s319_s6 = smul.u32 (!%p263_p8), 48, %s1191_s17 }
  0x17   : > { %266 = sbr.rel (%p263_p8) target bundleno = 322 (0x142), region = 58  ;;  %p978_p10 = scmp.ne.s32.totalorder (!%p263_p8), %s1191_s17, 0 }
  0x18   : > { %s1042_s7 = smul.u32 (!%p263_p8), 24, %s269_s5  ;;  %p321_p9 = scmp.lt.s32.totalorder (!%p263_p8), %s319_s6, 143 }
  0x1a   : > { %s1280_s12 = scalar_lea.vmem (!%p263_p8), [#allocation3], %s1042_s7 }
  0x1c   : > { %s1374_s6 = smov (!%p321_p9, %s319_s6), 143  ;;  %357 = sbr.rel (%p978_p10) target bundleno = 36 (0x24), region = 66 }
  0x1d   : > { %s1038_s8 = sshll.u32 %s1374_s6, 3 }
  0x1e   : > { %s1278_s11 = scalar_lea.vmem %s1363_s1, %s1038_s8 }
  0x21   : > { %v1201_v4 = vmov 0.0  }
  0x22   : > { %358 = vst [vmem:[#allocation2 + $0x10] sm:$0xff] %v1201_v4  ;;  %359 = vst [vmem:[#allocation2] sm:$0xff] %v1201_v4 }
  0x23   : > { %360 = vst [vmem:[#allocation2 + $0x18] sm:$0xff] %v1201_v4  ;;  %361 = vst [vmem:[#allocation2 + $0x8] sm:$0xff] %v1201_v4 }
  0x24 PF: > { %v1085_v5 = vld [vmem:[%s1278_s11 + $0x74] ss:$8 sps:$4 sm:$0xff]   ;;  %v1087_v6 = vld [vmem:[%s1278_s11 + $0x70] ss:$8 sps:$4 sm:$0xff]   ;;  %v1202_v7 = vmov 0   ;;  %p1030_p11 = scmp.ne.s32.totalorder %s1191_s17, 2 }
  0x25   : > { %749 = vmatprep.mubr.bf16.mxu1 %v1202_v7  ;;  %674 = vmatprep.subr.bf16.mxu0 %v1085_v5  ;;  %v1088_v8 = vld [vmem:[%s1278_s11 + $0x64] ss:$8 sps:$4 sm:$0xff]   ;;  %v1090_v9 = vld [vmem:[%s1278_s11 + $0x60] ss:$8 sps:$4 sm:$0xff]   ;;  %v1091_v10 = vld [vmem:[%s1278_s11 + $0x54] ss:$8 sps:$4 sm:$0xff]  }
  0x26   : > { %675 = vmatpush1.bf16.msra.mxu0 %v1087_v6  ;;  %v1093_v11 = vld [vmem:[%s1278_s11 + $0x50] ss:$8 sps:$4 sm:$0xff]   ;;  %v1094_v12 = vld [vmem:[%s1278_s11 + $0x44] ss:$8 sps:$4 sm:$0xff]   ;;  %v1106_v13 = vld [vmem:[%s1278_s11 + $0x174] ss:$8 sps:$4 sm:$0xff]  }
  0x27   : > { %676 = vmatprep.subr.bf16.mxu0 %v1088_v8  ;;  %v1108_v14 = vld [vmem:[%s1278_s11 + $0x170] ss:$8 sps:$4 sm:$0xff]   ;;  %v1096_v15 = vld [vmem:[%s1278_s11 + $0x40] ss:$8 sps:$4 sm:$0xff]   ;;  %v1097_v16 = vld [vmem:[%s1278_s11 + $0x34] ss:$8 sps:$4 sm:$0xff]   ;;  %717 = vmatprep.subr.bf16.mxu1 %v1106_v13 }
  0x28   : > { %v1112_v17 = vld [vmem:[%s1278_s11 + $0x164] ss:$8 sps:$4 sm:$0xff]   ;;  %718 = vmatpush1.bf16.msra.mxu1 %v1108_v14  ;;  %v1114_v18 = vld [vmem:[%s1278_s11 + $0x160] ss:$8 sps:$4 sm:$0xff]   ;;  %v1099_v19 = vld [vmem:[%s1278_s11 + $0x30] ss:$8 sps:$4 sm:$0xff]  }
  0x29   : > { %719 = vmatprep.subr.bf16.mxu1 %v1112_v17  ;;  %v1118_v20 = vld [vmem:[%s1278_s11 + $0x154] ss:$8 sps:$4 sm:$0xff]   ;;  %v1100_v21 = vld [vmem:[%s1278_s11 + $0x24] ss:$8 sps:$4 sm:$0xff]   ;;  %v1120_v22 = vld [vmem:[%s1278_s11 + $0x150] ss:$8 sps:$4 sm:$0xff]  }
  0x2a   : > { %677 = vmatpush1.bf16.msra.mxu0 %v1090_v9  ;;  %v1124_v23 = vld [vmem:[%s1278_s11 + $0x144] ss:$8 sps:$4 sm:$0xff]   ;;  %v1102_v24 = vld [vmem:[%s1278_s11 + $0x20] ss:$8 sps:$4 sm:$0xff]   ;;  %v1103_v25 = vld [vmem:[%s1278_s11 + $0x14] ss:$8 sps:$4 sm:$0xff]  }
  0x2b   : > { %678 = vmatprep.subr.bf16.mxu0 %v1091_v10  ;;  %v1126_v26 = vld [vmem:[%s1278_s11 + $0x140] ss:$8 sps:$4 sm:$0xff]   ;;  %v1130_v27 = vld [vmem:[%s1278_s11 + $0x134] ss:$8 sps:$4 sm:$0xff]   ;;  %v1105_v28 = vld [vmem:[%s1278_s11 + $0x10] ss:$8 sps:$4 sm:$0xff]  }
  0x2c   : > { %720 = vmatpush1.bf16.msra.mxu1 %v1114_v18  ;;  %v1109_v29 = vld [vmem:[%s1278_s11 + $0x4] ss:$8 sps:$4 sm:$0xff]   ;;  %v1132_v30 = vld [vmem:[%s1278_s11 + $0x130] ss:$8 sps:$4 sm:$0xff]   ;;  %v1111_v32 = vld [vmem:[%s1278_s11] ss:$8 sps:$4 sm:$0xff]  }
  0x2d   : > { %721 = vmatprep.subr.bf16.mxu1 %v1118_v20  ;;  %v1136_v31 = vld [vmem:[%s1278_s11 + $0x124] ss:$8 sps:$4 sm:$0xff]   ;;  %v1115_v33 = vld [vmem:[%s1278_s11 + $0xf4] ss:$8 sps:$4 sm:$0xff]   ;;  %v1138_v34 = vld [vmem:[%s1278_s11 + $0x120] ss:$8 sps:$4 sm:$0xff]  }
  0x2e   : > { %679 = vmatpush1.bf16.msra.mxu0 %v1093_v11  ;;  %v1142_v35 = vld [vmem:[%s1278_s11 + $0x114] ss:$8 sps:$4 sm:$0xff]   ;;  %v1117_v36 = vld [vmem:[%s1278_s11 + $0xf0] ss:$8 sps:$4 sm:$0xff]   ;;  %v1121_v37 = vld [vmem:[%s1278_s11 + $0xe4] ss:$8 sps:$4 sm:$0xff]  }
  0x2f   : > { %680 = vmatprep.subr.bf16.mxu0 %v1094_v12  ;;  %v1144_v38 = vld [vmem:[%s1278_s11 + $0x110] ss:$8 sps:$4 sm:$0xff]   ;;  %v1148_v39 = vld [vmem:[%s1278_s11 + $0x104] ss:$8 sps:$4 sm:$0xff]   ;;  %v1123_v41 = vld [vmem:[%s1278_s11 + $0xe0] ss:$8 sps:$4 sm:$0xff]  }
  0x30   : > { %722 = vmatpush1.bf16.msra.mxu1 %v1120_v22  ;;  %v1160_v40 = vld [vmem:[%s1280_s12 + $0x4] ss:$12 sps:$4 sm:$0xff]   ;;  %v1154_v46 = vld [vmem:[%s1280_s12 + $0x8] ss:$12 sps:$4 sm:$0xff]   ;;  %v1158_v56 = vld [vmem:[%s1280_s12] ss:$12 sps:$4 sm:$0xff]  }
  0x31   : > { %723 = vmatprep.subr.bf16.mxu1 %v1124_v23  ;;  %v1127_v42 = vld [vmem:[%s1278_s11 + $0xd4] ss:$8 sps:$4 sm:$0xff]   ;;  %706 = vmatprep.mubr.bf16.mxu0 %v1160_v40  ;;  %v1150_v43 = vld [vmem:[%s1278_s11 + $0x100] ss:$8 sps:$4 sm:$0xff]   ;;  %v1129_v44 = vld [vmem:[%s1278_s11 + $0xd0] ss:$8 sps:$4 sm:$0xff]  }
  0x32   : > { %681 = vmatpush1.bf16.msra.mxu0 %v1096_v15  ;;  %v1133_v45 = vld [vmem:[%s1278_s11 + $0xc4] ss:$8 sps:$4 sm:$0xff]   ;;  %v1135_v47 = vld [vmem:[%s1278_s11 + $0xc0] ss:$8 sps:$4 sm:$0xff]   ;;  %v1139_v48 = vld [vmem:[%s1278_s11 + $0xb4] ss:$8 sps:$4 sm:$0xff]  }
  0x33   : > { %682 = vmatprep.subr.bf16.mxu0 %v1097_v16  ;;  %v1141_v49 = vld [vmem:[%s1278_s11 + $0xb0] ss:$8 sps:$4 sm:$0xff]   ;;  %v1145_v50 = vld [vmem:[%s1278_s11 + $0xa4] ss:$8 sps:$4 sm:$0xff]   ;;  %v1147_v51 = vld [vmem:[%s1278_s11 + $0xa0] ss:$8 sps:$4 sm:$0xff]  }
  0x34   : > { %724 = vmatpush1.bf16.msra.mxu1 %v1126_v26  ;;  %v1151_v52 = vld [vmem:[%s1278_s11 + $0x94] ss:$8 sps:$4 sm:$0xff]   ;;  %v1153_v53 = vld [vmem:[%s1278_s11 + $0x90] ss:$8 sps:$4 sm:$0xff]   ;;  %v1155_v54 = vld [vmem:[%s1278_s11 + $0x84] ss:$8 sps:$4 sm:$0xff]  }
  0x35   : > { %725 = vmatprep.subr.bf16.mxu1 %v1130_v27  ;;  %v1157_v55 = vld [vmem:[%s1278_s11 + $0x80] ss:$8 sps:$4 sm:$0xff]   ;;  %v362_v59 = vld [vmem:[#allocation2 + $0x10] sm:$0xff]  ;;  %v364_v3 = vld [vmem:[#allocation2 + $0x18] sm:$0xff] }
  0x36   : > { %683 = vmatpush1.bf16.msra.mxu0 %v1099_v19  ;;  %v363_v63 = vld [vmem:[#allocation2] sm:$0xff]  ;;  %v365_v8 = vld [vmem:[#allocation2 + $0x8] sm:$0xff] }
  0x37   : > { %684 = vmatprep.subr.bf16.mxu0 %v1100_v21 }
  0x38   : > { %726 = vmatpush1.bf16.msra.mxu1 %v1132_v30 }
  0x39   : > { %727 = vmatprep.subr.bf16.mxu1 %v1136_v31 }
  0x3a   : > { %685 = vmatpush1.bf16.msra.mxu0 %v1102_v24 }
  0x3b   : > { %686 = vmatprep.subr.bf16.mxu0 %v1103_v25 }
  0x3c   : > { %728 = vmatpush1.bf16.msra.mxu1 %v1138_v34 }
  0x3d   : > { %729 = vmatprep.subr.bf16.mxu1 %v1142_v35 }
  0x3e   : > { %687 = vmatpush1.bf16.msra.mxu0 %v1105_v28 }
  0x3f   : > { %688 = vmatprep.subr.bf16.mxu0 %v1109_v29 }
  0x40   : > { %730 = vmatpush1.bf16.msra.mxu1 %v1144_v38 }
  0x41   : > { %731 = vmatprep.subr.bf16.mxu1 %v1148_v39 }
  0x42   : > { %689 = vmatpush1.bf16.msra.mxu0 %v1111_v32 }
  0x43   : > { %690 = vmatprep.subr.bf16.mxu0 %v1115_v33 }
  0x44   : > { %732 = vmatpush1.bf16.msra.mxu1 %v1150_v43 }
  0x46   : > { %691 = vmatpush2.bf16.msra.mxu0 %v1117_v36 }
  0x47   : > { %692 = vmatprep.subr.bf16.mxu0 %v1121_v37  ;;  %750 = vmatmul.mubr.bf16.vlgmr.msra.gmra.mxu1 %v1154_v46 }
  0x4a   : > { %693 = vmatpush2.bf16.msra.mxu0 %v1123_v41 }
  0x4b   : > { %694 = vmatprep.subr.bf16.mxu0 %v1127_v42 }
  0x4e   : > { %695 = vmatpush2.bf16.msra.mxu0 %v1129_v44 }
  0x4f   : > { %696 = vmatprep.subr.bf16.mxu0 %v1133_v45 }
  0x52   : > { %697 = vmatpush2.bf16.msra.mxu0 %v1135_v47 }
  0x53   : > { %698 = vmatprep.subr.bf16.mxu0 %v1139_v48 }
  0x56   : > { %699 = vmatpush2.bf16.msra.mxu0 %v1141_v49 }
  0x57   : > { %700 = vmatprep.subr.bf16.mxu0 %v1145_v50 }
  0x5a   : > { %701 = vmatpush2.bf16.msra.mxu0 %v1147_v51 }
  0x5b   : > { %702 = vmatprep.subr.bf16.mxu0 %v1151_v52 }
  0x5e   : > { %703 = vmatpush2.bf16.msra.mxu0 %v1153_v53 }
  0x5f   : > { %704 = vmatprep.subr.bf16.mxu0 %v1155_v54 }
  0x62   : > { %705 = vmatpush2.bf16.msra.mxu0 %v1157_v55 }
  0x65   : > { %707 = vmatmul.mubr.bf16.vlgmr.msra.gmra.mxu0 %v1158_v56 }
 0x107   : > { %v751_v57 = vpop.f32.mrf.mxu1 }
 0x109   : > { %v753_v58 = vpop.f32.mrf.mxu1 }
 0x10b   : > { %v755_v62 = vpop.f32.mrf.mxu1 }
 0x10d   : > { %v757_v7 = vpop.f32.mrf.mxu1 }
 0x125   : > { %v708_v60 = vpop.f32.mrf.mxu0 }
 0x126   : > { %v752_v61 = vadd.f32 %v751_v57, %v708_v60 }
 0x127   : > { %v710_v0 = vpop.f32.mrf.mxu0 }
 0x128   : > { %v760_v1 = vadd.f32 %v752_v61, %v362_v59  ;;  %v754_v2 = vadd.f32 %v753_v58, %v710_v0 }
 0x129   : > { %v712_v4 = vpop.f32.mrf.mxu0 }
 0x12a   : > { %764 = vst [vmem:[#allocation2 + $0x10] sm:$0xff] %v760_v1  ;;  %v761_v5 = vadd.f32 %v754_v2, %v363_v63  ;;  %v756_v6 = vadd.f32 %v755_v62, %v712_v4 }
 0x12b   : > { %v714_v9 = vpop.f32.mrf.mxu0 }
 0x12c   : > { %765 = vst [vmem:[#allocation2] sm:$0xff] %v761_v5  ;;  %v762_v10 = vadd.f32 %v756_v6, %v364_v3  ;;  %v758_v11 = vadd.f32 %v757_v7, %v714_v9  ;;  %771 = sbr.rel (%p1030_p11) target bundleno = 322 (0x142), region = 70 }
 0x12e   : > { %766 = vst [vmem:[#allocation2 + $0x18] sm:$0xff] %v762_v10  ;;  %v763_v12 = vadd.f32 %v758_v11, %v365_v8 }
 0x130   : > { %767 = vst [vmem:[#allocation2 + $0x8] sm:$0xff] %v763_v12 }
 0x131   : > { %v778_v13 = vlaneseq  ;;  %v776_v15 = vld [vmem:[%s1364_s2] sm:$0x3]  ;;  %v772_v17 = vld [vmem:[#allocation2 + $0x10] sm:$0xff] }
 0x132   : > { %v792_v16 = vld [vmem:[%s1365_s3] sm:$0x3] }
 0x133   : > { %v779_v14 = vshrl.u32 %v778_v13, 7  ;;  %v773_v20 = vld [vmem:[#allocation2] sm:$0xff] }
 0x135   : > { %v780_v18 = vsub.s32 0, %v779_v14  ;;  %v784_v19 = vsub.s32 1, %v779_v14  ;;  %v774_v21 = vld [vmem:[#allocation2 + $0x18] sm:$0xff] }
 0x137   : > { %v775_v22 = vld [vmem:[#allocation2 + $0x8] sm:$0xff]  ;;  %v781_v23 = vrot.slane %v776_v15, %v780_v18  ;;  %v785_v24 = vrot.slane %v776_v15, %v784_v19  ;;  %v797_v25 = vrot.slane %v792_v16, %v780_v18  ;;  %v801_v26 = vrot.slane %v792_v16, %v784_v19 }
 0x139   : > { %v788_v27 = vmul.f32 %v781_v23, %v772_v17  ;;  %v789_v28 = vmul.f32 %v785_v24, %v773_v20  ;;  %v790_v29 = vmul.f32 %v781_v23, %v774_v21  ;;  %v791_v30 = vmul.f32 %v785_v24, %v775_v22 }
 0x13b   : > { %v804_v31 = vadd.f32 %v797_v25, %v788_v27  ;;  %v805_v32 = vadd.f32 %v801_v26, %v789_v28  ;;  %v806_v33 = vadd.f32 %v797_v25, %v790_v29  ;;  %v807_v34 = vadd.f32 %v801_v26, %v791_v30 }
 0x13d   : > { %v808_v35 = vmax.f32 %v804_v31, 0.0  ;;  %v809_v36 = vmax.f32 %v805_v32, 0.0  ;;  %v810_v37 = vmax.f32 %v806_v33, 0.0  ;;  %v811_v38 = vmax.f32 %v807_v34, 0.0 }
 0x13f   : > { %v1039_v39 = vpack.c.bf16 %v809_v36, %v808_v35  ;;  %v1040_v40 = vpack.c.bf16 %v811_v38, %v810_v37 }
 0x141   : > { %824 = vst [vmem:[%s1366_s4] sm:$0xff] %v1039_v39  ;;  %825 = vst [vmem:[%s1366_s4 + $0x8] sm:$0xff] %v1040_v40 }
 0x142 PF: > { %s14_s19 = sadd.s32 1, %s1199_s19   ;;  %s1367_s15 = smov %s1187_s16 }
 0x143   : > { %p11_p12 = scmp.ge.s32.totalorder %s14_s19, 5   ;;  %s1368_s16 = smov %s1263_s23 }
 0x144   : > { %s1369_s17 = smov %s1195_s18  ;;  %s1370_s18 = smov %s1372_s20 }
 0x145   :  { %13 = sbr.rel (!%p11_p12) target bundleno = 3 (0x3), region = 120 }

// kernel: resnet18_forward.32
= control target key start
LH: loop header
LB: loop body
LE: loop exit
PB: predicated region body
PF: predicated region fallthrough
CT: control target
= control target key end

     0   :  { %v289_v1 = vmov 0   ;;  %v194_v18 = vlaneseq  ;;  %s378_s1 = inlined_call_operand.vmem [shape: bf16[128,256], index: 1, kind: input, shape index: {}]   ;;  %s379_s0 = inlined_call_operand.vmem [shape: bf16[16,128], index: 0, kind: input, shape index: {}]   ;;  %s380_s2 = inlined_call_operand.vmem [shape: f32[1,256], index: 2, kind: input, shape index: {}]   ;;  %s381_s3 = inlined_call_operand.vmem [shape: f32[1,256], index: 3, kind: input, shape index: {}]   ;;  %s382_s4 = inlined_call_operand.vmem [shape: bf16[16,256], index: 4, kind: output, shape index: {}]  }
   0x1   :  { %v264_v0 = vld [vmem:[%s378_s1 + $0x74] ss:$8 sps:$4 sm:$0xff]   ;;  %166 = vmatprep.mubr.bf16.mxu0 %v289_v1  ;;  %v266_v2 = vld [vmem:[%s378_s1 + $0x70] ss:$8 sps:$4 sm:$0xff]   ;;  %v267_v3 = vld [vmem:[%s378_s1 + $0x64] ss:$8 sps:$4 sm:$0xff]  }
   0x2   :  { %134 = vmatprep.subr.bf16.mxu0 %v264_v0  ;;  %v269_v4 = vld [vmem:[%s378_s1 + $0x60] ss:$8 sps:$4 sm:$0xff]   ;;  %v270_v5 = vld [vmem:[%s378_s1 + $0x54] ss:$8 sps:$4 sm:$0xff]   ;;  %v272_v6 = vld [vmem:[%s378_s1 + $0x50] ss:$8 sps:$4 sm:$0xff]  }
   0x3   :  { %135 = vmatpush1.bf16.msra.mxu0 %v266_v2  ;;  %v273_v7 = vld [vmem:[%s378_s1 + $0x44] ss:$8 sps:$4 sm:$0xff]   ;;  %v275_v8 = vld [vmem:[%s378_s1 + $0x40] ss:$8 sps:$4 sm:$0xff]   ;;  %v276_v9 = vld [vmem:[%s378_s1 + $0x34] ss:$8 sps:$4 sm:$0xff]  }
   0x4   :  { %136 = vmatprep.subr.bf16.mxu0 %v267_v3  ;;  %v278_v10 = vld [vmem:[%s378_s1 + $0x30] ss:$8 sps:$4 sm:$0xff]   ;;  %v279_v11 = vld [vmem:[%s378_s1 + $0x24] ss:$8 sps:$4 sm:$0xff]   ;;  %v281_v12 = vld [vmem:[%s378_s1 + $0x20] ss:$8 sps:$4 sm:$0xff]  }
   0x5   :  { %v282_v13 = vld [vmem:[%s378_s1 + $0x14] ss:$8 sps:$4 sm:$0xff]   ;;  %v284_v14 = vld [vmem:[%s378_s1 + $0x10] ss:$8 sps:$4 sm:$0xff]   ;;  %v285_v15 = vld [vmem:[%s378_s1 + $0x4] ss:$8 sps:$4 sm:$0xff]  }
   0x6   :  { %v287_v16 = vld [vmem:[%s378_s1] ss:$8 sps:$4 sm:$0xff]   ;;  %v195_v19 = vshrl.u32 %v194_v18, 7 }
   0x7   :  { %137 = vmatpush1.bf16.msra.mxu0 %v269_v4  ;;  %v288_v17 = vld [vmem:[%s379_s0] sm:$0xff]  }
   0x8   :  { %138 = vmatprep.subr.bf16.mxu0 %v270_v5  ;;  %v196_v20 = vsub.s32 0, %v195_v19  ;;  %v192_v21 = vld [vmem:[%s380_s2] sm:$0x3]  ;;  %v200_v22 = vsub.s32 1, %v195_v19 }
   0x9   :  { %v208_v24 = vld [vmem:[%s381_s3] sm:$0x3] }
   0xa   :  { %v197_v23 = vrot.slane %v192_v21, %v196_v20  ;;  %v201_v25 = vrot.slane %v192_v21, %v200_v22  ;;  %v213_v28 = vrot.slane %v208_v24, %v196_v20  ;;  %v217_v29 = vrot.slane %v208_v24, %v200_v22 }
   0xb   :  { %139 = vmatpush1.bf16.msra.mxu0 %v272_v6 }
   0xc   :  { %140 = vmatprep.subr.bf16.mxu0 %v273_v7 }
   0xf   :  { %141 = vmatpush1.bf16.msra.mxu0 %v275_v8 }
  0x10   :  { %142 = vmatprep.subr.bf16.mxu0 %v276_v9 }
  0x13   :  { %143 = vmatpush1.bf16.msra.mxu0 %v278_v10 }
  0x14   :  { %144 = vmatprep.subr.bf16.mxu0 %v279_v11 }
  0x17   :  { %145 = vmatpush1.bf16.msra.mxu0 %v281_v12 }
  0x18   :  { %146 = vmatprep.subr.bf16.mxu0 %v282_v13 }
  0x1b   :  { %147 = vmatpush1.bf16.msra.mxu0 %v284_v14 }
  0x1c   :  { %148 = vmatprep.subr.bf16.mxu0 %v285_v15 }
  0x1f   :  { %149 = vmatpush1.bf16.msra.mxu0 %v287_v16 }
  0x22   :  { %167 = vmatmul.mubr.bf16.vlgmr.msra.gmra.mxu0 %v288_v17 }
  0xe2   :  { %v168_v26 = vpop.f32.mrf.mxu0 }
  0xe3   :  { %v204_v27 = vmul.f32 %v197_v23, %v168_v26 }
  0xe4   :  { %v170_v30 = vpop.f32.mrf.mxu0 }
  0xe5   :  { %v205_v31 = vmul.f32 %v201_v25, %v170_v30  ;;  %v220_v33 = vadd.f32 %v213_v28, %v204_v27 }
  0xe6   :  { %v172_v32 = vpop.f32.mrf.mxu0 }
  0xe7   :  { %v221_v34 = vadd.f32 %v217_v29, %v205_v31  ;;  %v206_v35 = vmul.f32 %v197_v23, %v172_v32 }
  0xe8   :  { %v174_v36 = vpop.f32.mrf.mxu0 }
  0xe9   :  { %v261_v37 = vpack.c.bf16 %v221_v34, %v220_v33  ;;  %v207_v38 = vmul.f32 %v201_v25, %v174_v36  ;;  %v222_v39 = vadd.f32 %v213_v28, %v206_v35 }
  0xeb   :  { %236 = vst [vmem:[%s382_s4] sm:$0xff] %v261_v37  ;;  %v223_v40 = vadd.f32 %v217_v29, %v207_v38 }
  0xed   :  { %v262_v41 = vpack.c.bf16 %v223_v40, %v222_v39 }
  0xef   :  { %237 = vst [vmem:[%s382_s4 + $0x8] sm:$0xff] %v262_v41 }

// kernel: resnet18_forward.35
= control target key start
LH: loop header
LB: loop body
LE: loop exit
PB: predicated region body
PF: predicated region fallthrough
CT: control target
= control target key end

     0   :  { %s1228_s15 = smov 0   ;;  %s1230_s16 = smov 0   ;;  %s1362_s0 = inlined_call_operand.vmem [shape: bf16[16,2304], index: 0, kind: input, shape index: {}]   ;;  %s1363_s1 = inlined_call_operand.vmem [shape: bf16[2304,256], index: 1, kind: input, shape index: {}]   ;;  %s1364_s2 = inlined_call_operand.vmem [shape: f32[1,256], index: 2, kind: input, shape index: {}]   ;;  %s1365_s3 = inlined_call_operand.vmem [shape: f32[1,256], index: 3, kind: input, shape index: {}]   ;;  %s1366_s4 = inlined_call_operand.vmem [shape: bf16[16,256], index: 4, kind: output, shape index: {}]  }
   0x1   :  { %s1232_s17 = smov 0   ;;  %s1234_s18 = smov 0  }
   0x2   :  { %s1236_s19 = smov 0  }
   0x3 LB: > { %s26_s20 = sadd.s32 1, %s1195_s18  ;;  %p49_p1 = scmp.ne.s32.totalorder %s1187_s16, %s1183_s15  ;;  %s1199_s19 = sphi %s1236_s19, %s14_s19   ;;  %s1195_s18 = sphi %s1234_s18, %s1370_s18   ;;  %s1191_s17 = sphi %s1232_s17, %s1369_s17   ;;  %s1187_s16 = sphi %s1230_s16, %s1368_s16   ;;  %s1183_s15 = sphi %s1228_s15, %s1367_s15  }
   0x4   : > { %p27_p0 = scmp.ge.s32.totalorder %s26_s20, 6  ;;  %p50_p2 = scmp.eq.s32.totalorder %s1199_s19, 0 }
   0x5   : > { %s42_s22 = sadd.s32 1, %s1187_s16  ;;  %p969_p5 = scmp.ge.s32.totalorder %s1199_s19, 6 }
   0x6   : > { %s1372_s20 = smov (%p27_p0, %s26_s20), 0  ;;  %p51_p3 = por %p50_p2, %p49_p1 }
   0x7   : > { %s38_s21 = ssub.s32 %s1195_s18, %s1372_s20  ;;  %199 = sbr.rel (%p969_p5) target bundleno = 19 (0x13), region = 24 }
   0x8   : > { %p40_p4 = scmp.eq.s32.totalorder %s38_s21, 0 }
   0xa   : > { %s1263_s23 = scalar_select %p40_p4, %s1187_s16, %s42_s22  }
   0xc   : > { %202 = sbr.rel (!%p51_p3) target bundleno = 19 (0x13), region = 28  ;;  %s204_s24 = sand.u32 (%p51_p3), 1, %s1187_s16  }
   0xd   : > { %s1037_s25 = smul.u32 (%p51_p3), 12, %s1195_s18 }
   0xe   : > { %s1041_s26 = smul.u32 (%p51_p3), 24, %s204_s24 }
   0xf   : > { %s212_s29 = scalar_lea.vmem (%p51_p3), %s1362_s0, %s1037_s25 }
  0x10   : > { %v227_v0 = vld [vmem:[%s212_s29] sm:$0xff] (%p51_p3)  ;;  %v229_v1 = vld [vmem:[%s212_s29 + $0x48] sm:$0xff] (%p51_p3)  ;;  %s206_s30 = scalar_lea.vmem (%p51_p3), [#allocation3], %s1041_s26  ;;  %v973_v3 = vld [vmem:[%s212_s29 + $0x50] sm:$0xf] (%p51_p3) }
  0x11   : > { %v971_v2 = vld [vmem:[%s212_s29 + $0x8] sm:$0xf]  ;;  %228 = vst [vmem:[%s206_s30] sm:$0xff] %v227_v0  ;;  %230 = vst [vmem:[%s206_s30 + $0xc] sm:$0xff] %v229_v1 }
  0x12   : > { %972 = vst [vmem:[%s206_s30 + $0x8] sm:$0xf] %v971_v2  ;;  %974 = vst [vmem:[%s206_s30 + $0x14] sm:$0xf] %v973_v3 }
  0x13 PF: > { %p975_p6 = scmp.ge.s32.totalorder %s1199_s19, 1  ;;  %p262_p7 = scmp.lt.s32.totalorder %s1199_s19, 7 }
  0x15   : > { %p263_p8 = pnand %p975_p6, %p262_p7 }
  0x16   : > { %s269_s5 = sand.u32 (!%p263_p8), 1, %s1183_s15   ;;  %s319_s6 = smul.u32 (!%p263_p8), 48, %s1191_s17 }
  0x17   : > { %266 = sbr.rel (%p263_p8) target bundleno = 322 (0x142), region = 58  ;;  %p978_p10 = scmp.ne.s32.totalorder (!%p263_p8), %s1191_s17, 0 }
  0x18   : > { %s1042_s7 = smul.u32 (!%p263_p8), 24, %s269_s5  ;;  %p321_p9 = scmp.lt.s32.totalorder (!%p263_p8), %s319_s6, 287 }
  0x1a   : > { %s1280_s12 = scalar_lea.vmem (!%p263_p8), [#allocation3], %s1042_s7 }
  0x1c   : > { %s1374_s6 = smov (!%p321_p9, %s319_s6), 287  ;;  %357 = sbr.rel (%p978_p10) target bundleno = 36 (0x24), region = 66 }
  0x1d   : > { %s1038_s8 = sshll.u32 %s1374_s6, 3 }
  0x1e   : > { %s1278_s11 = scalar_lea.vmem %s1363_s1, %s1038_s8 }
  0x21   : > { %v1201_v4 = vmov 0.0  }
  0x22   : > { %358 = vst [vmem:[#allocation2 + $0x10] sm:$0xff] %v1201_v4  ;;  %359 = vst [vmem:[#allocation2] sm:$0xff] %v1201_v4 }
  0x23   : > { %360 = vst [vmem:[#allocation2 + $0x18] sm:$0xff] %v1201_v4  ;;  %361 = vst [vmem:[#allocation2 + $0x8] sm:$0xff] %v1201_v4 }
  0x24 PF: > { %v1085_v5 = vld [vmem:[%s1278_s11 + $0x74] ss:$8 sps:$4 sm:$0xff]   ;;  %v1087_v6 = vld [vmem:[%s1278_s11 + $0x70] ss:$8 sps:$4 sm:$0xff]   ;;  %v1202_v7 = vmov 0   ;;  %p1030_p11 = scmp.ne.s32.totalorder %s1191_s17, 5 }
  0x25   : > { %749 = vmatprep.mubr.bf16.mxu1 %v1202_v7  ;;  %674 = vmatprep.subr.bf16.mxu0 %v1085_v5  ;;  %v1088_v8 = vld [vmem:[%s1278_s11 + $0x64] ss:$8 sps:$4 sm:$0xff]   ;;  %v1090_v9 = vld [vmem:[%s1278_s11 + $0x60] ss:$8 sps:$4 sm:$0xff]   ;;  %v1091_v10 = vld [vmem:[%s1278_s11 + $0x54] ss:$8 sps:$4 sm:$0xff]  }
  0x26   : > { %675 = vmatpush1.bf16.msra.mxu0 %v1087_v6  ;;  %v1093_v11 = vld [vmem:[%s1278_s11 + $0x50] ss:$8 sps:$4 sm:$0xff]   ;;  %v1094_v12 = vld [vmem:[%s1278_s11 + $0x44] ss:$8 sps:$4 sm:$0xff]   ;;  %v1106_v13 = vld [vmem:[%s1278_s11 + $0x174] ss:$8 sps:$4 sm:$0xff]  }
  0x27   : > { %676 = vmatprep.subr.bf16.mxu0 %v1088_v8  ;;  %v1108_v14 = vld [vmem:[%s1278_s11 + $0x170] ss:$8 sps:$4 sm:$0xff]   ;;  %v1096_v15 = vld [vmem:[%s1278_s11 + $0x40] ss:$8 sps:$4 sm:$0xff]   ;;  %v1097_v16 = vld [vmem:[%s1278_s11 + $0x34] ss:$8 sps:$4 sm:$0xff]   ;;  %717 = vmatprep.subr.bf16.mxu1 %v1106_v13 }
  0x28   : > { %v1112_v17 = vld [vmem:[%s1278_s11 + $0x164] ss:$8 sps:$4 sm:$0xff]   ;;  %718 = vmatpush1.bf16.msra.mxu1 %v1108_v14  ;;  %v1114_v18 = vld [vmem:[%s1278_s11 + $0x160] ss:$8 sps:$4 sm:$0xff]   ;;  %v1099_v19 = vld [vmem:[%s1278_s11 + $0x30] ss:$8 sps:$4 sm:$0xff]  }
  0x29   : > { %719 = vmatprep.subr.bf16.mxu1 %v1112_v17  ;;  %v1118_v20 = vld [vmem:[%s1278_s11 + $0x154] ss:$8 sps:$4 sm:$0xff]   ;;  %v1100_v21 = vld [vmem:[%s1278_s11 + $0x24] ss:$8 sps:$4 sm:$0xff]   ;;  %v1120_v22 = vld [vmem:[%s1278_s11 + $0x150] ss:$8 sps:$4 sm:$0xff]  }
  0x2a   : > { %677 = vmatpush1.bf16.msra.mxu0 %v1090_v9  ;;  %v1124_v23 = vld [vmem:[%s1278_s11 + $0x144] ss:$8 sps:$4 sm:$0xff]   ;;  %v1102_v24 = vld [vmem:[%s1278_s11 + $0x20] ss:$8 sps:$4 sm:$0xff]   ;;  %v1103_v25 = vld [vmem:[%s1278_s11 + $0x14] ss:$8 sps:$4 sm:$0xff]  }
  0x2b   : > { %678 = vmatprep.subr.bf16.mxu0 %v1091_v10  ;;  %v1126_v26 = vld [vmem:[%s1278_s11 + $0x140] ss:$8 sps:$4 sm:$0xff]   ;;  %v1130_v27 = vld [vmem:[%s1278_s11 + $0x134] ss:$8 sps:$4 sm:$0xff]   ;;  %v1105_v28 = vld [vmem:[%s1278_s11 + $0x10] ss:$8 sps:$4 sm:$0xff]  }
  0x2c   : > { %720 = vmatpush1.bf16.msra.mxu1 %v1114_v18  ;;  %v1109_v29 = vld [vmem:[%s1278_s11 + $0x4] ss:$8 sps:$4 sm:$0xff]   ;;  %v1132_v30 = vld [vmem:[%s1278_s11 + $0x130] ss:$8 sps:$4 sm:$0xff]   ;;  %v1111_v32 = vld [vmem:[%s1278_s11] ss:$8 sps:$4 sm:$0xff]  }
  0x2d   : > { %721 = vmatprep.subr.bf16.mxu1 %v1118_v20  ;;  %v1136_v31 = vld [vmem:[%s1278_s11 + $0x124] ss:$8 sps:$4 sm:$0xff]   ;;  %v1115_v33 = vld [vmem:[%s1278_s11 + $0xf4] ss:$8 sps:$4 sm:$0xff]   ;;  %v1138_v34 = vld [vmem:[%s1278_s11 + $0x120] ss:$8 sps:$4 sm:$0xff]  }
  0x2e   : > { %679 = vmatpush1.bf16.msra.mxu0 %v1093_v11  ;;  %v1142_v35 = vld [vmem:[%s1278_s11 + $0x114] ss:$8 sps:$4 sm:$0xff]   ;;  %v1117_v36 = vld [vmem:[%s1278_s11 + $0xf0] ss:$8 sps:$4 sm:$0xff]   ;;  %v1121_v37 = vld [vmem:[%s1278_s11 + $0xe4] ss:$8 sps:$4 sm:$0xff]  }
  0x2f   : > { %680 = vmatprep.subr.bf16.mxu0 %v1094_v12  ;;  %v1144_v38 = vld [vmem:[%s1278_s11 + $0x110] ss:$8 sps:$4 sm:$0xff]   ;;  %v1148_v39 = vld [vmem:[%s1278_s11 + $0x104] ss:$8 sps:$4 sm:$0xff]   ;;  %v1123_v41 = vld [vmem:[%s1278_s11 + $0xe0] ss:$8 sps:$4 sm:$0xff]  }
  0x30   : > { %722 = vmatpush1.bf16.msra.mxu1 %v1120_v22  ;;  %v1160_v40 = vld [vmem:[%s1280_s12 + $0x4] ss:$12 sps:$4 sm:$0xff]   ;;  %v1154_v46 = vld [vmem:[%s1280_s12 + $0x8] ss:$12 sps:$4 sm:$0xff]   ;;  %v1158_v56 = vld [vmem:[%s1280_s12] ss:$12 sps:$4 sm:$0xff]  }
  0x31   : > { %723 = vmatprep.subr.bf16.mxu1 %v1124_v23  ;;  %v1127_v42 = vld [vmem:[%s1278_s11 + $0xd4] ss:$8 sps:$4 sm:$0xff]   ;;  %706 = vmatprep.mubr.bf16.mxu0 %v1160_v40  ;;  %v1150_v43 = vld [vmem:[%s1278_s11 + $0x100] ss:$8 sps:$4 sm:$0xff]   ;;  %v1129_v44 = vld [vmem:[%s1278_s11 + $0xd0] ss:$8 sps:$4 sm:$0xff]  }
  0x32   : > { %681 = vmatpush1.bf16.msra.mxu0 %v1096_v15  ;;  %v1133_v45 = vld [vmem:[%s1278_s11 + $0xc4] ss:$8 sps:$4 sm:$0xff]   ;;  %v1135_v47 = vld [vmem:[%s1278_s11 + $0xc0] ss:$8 sps:$4 sm:$0xff]   ;;  %v1139_v48 = vld [vmem:[%s1278_s11 + $0xb4] ss:$8 sps:$4 sm:$0xff]  }
  0x33   : > { %682 = vmatprep.subr.bf16.mxu0 %v1097_v16  ;;  %v1141_v49 = vld [vmem:[%s1278_s11 + $0xb0] ss:$8 sps:$4 sm:$0xff]   ;;  %v1145_v50 = vld [vmem:[%s1278_s11 + $0xa4] ss:$8 sps:$4 sm:$0xff]   ;;  %v1147_v51 = vld [vmem:[%s1278_s11 + $0xa0] ss:$8 sps:$4 sm:$0xff]  }
  0x34   : > { %724 = vmatpush1.bf16.msra.mxu1 %v1126_v26  ;;  %v1151_v52 = vld [vmem:[%s1278_s11 + $0x94] ss:$8 sps:$4 sm:$0xff]   ;;  %v1153_v53 = vld [vmem:[%s1278_s11 + $0x90] ss:$8 sps:$4 sm:$0xff]   ;;  %v1155_v54 = vld [vmem:[%s1278_s11 + $0x84] ss:$8 sps:$4 sm:$0xff]  }
  0x35   : > { %725 = vmatprep.subr.bf16.mxu1 %v1130_v27  ;;  %v1157_v55 = vld [vmem:[%s1278_s11 + $0x80] ss:$8 sps:$4 sm:$0xff]   ;;  %v362_v59 = vld [vmem:[#allocation2 + $0x10] sm:$0xff]  ;;  %v364_v3 = vld [vmem:[#allocation2 + $0x18] sm:$0xff] }
  0x36   : > { %683 = vmatpush1.bf16.msra.mxu0 %v1099_v19  ;;  %v363_v63 = vld [vmem:[#allocation2] sm:$0xff]  ;;  %v365_v8 = vld [vmem:[#allocation2 + $0x8] sm:$0xff] }
  0x37   : > { %684 = vmatprep.subr.bf16.mxu0 %v1100_v21 }
  0x38   : > { %726 = vmatpush1.bf16.msra.mxu1 %v1132_v30 }
  0x39   : > { %727 = vmatprep.subr.bf16.mxu1 %v1136_v31 }
  0x3a   : > { %685 = vmatpush1.bf16.msra.mxu0 %v1102_v24 }
  0x3b   : > { %686 = vmatprep.subr.bf16.mxu0 %v1103_v25 }
  0x3c   : > { %728 = vmatpush1.bf16.msra.mxu1 %v1138_v34 }
  0x3d   : > { %729 = vmatprep.subr.bf16.mxu1 %v1142_v35 }
  0x3e   : > { %687 = vmatpush1.bf16.msra.mxu0 %v1105_v28 }
  0x3f   : > { %688 = vmatprep.subr.bf16.mxu0 %v1109_v29 }
  0x40   : > { %730 = vmatpush1.bf16.msra.mxu1 %v1144_v38 }
  0x41   : > { %731 = vmatprep.subr.bf16.mxu1 %v1148_v39 }
  0x42   : > { %689 = vmatpush1.bf16.msra.mxu0 %v1111_v32 }
  0x43   : > { %690 = vmatprep.subr.bf16.mxu0 %v1115_v33 }
  0x44   : > { %732 = vmatpush1.bf16.msra.mxu1 %v1150_v43 }
  0x46   : > { %691 = vmatpush2.bf16.msra.mxu0 %v1117_v36 }
  0x47   : > { %692 = vmatprep.subr.bf16.mxu0 %v1121_v37  ;;  %750 = vmatmul.mubr.bf16.vlgmr.msra.gmra.mxu1 %v1154_v46 }
  0x4a   : > { %693 = vmatpush2.bf16.msra.mxu0 %v1123_v41 }
  0x4b   : > { %694 = vmatprep.subr.bf16.mxu0 %v1127_v42 }
  0x4e   : > { %695 = vmatpush2.bf16.msra.mxu0 %v1129_v44 }
  0x4f   : > { %696 = vmatprep.subr.bf16.mxu0 %v1133_v45 }
  0x52   : > { %697 = vmatpush2.bf16.msra.mxu0 %v1135_v47 }
  0x53   : > { %698 = vmatprep.subr.bf16.mxu0 %v1139_v48 }
  0x56   : > { %699 = vmatpush2.bf16.msra.mxu0 %v1141_v49 }
  0x57   : > { %700 = vmatprep.subr.bf16.mxu0 %v1145_v50 }
  0x5a   : > { %701 = vmatpush2.bf16.msra.mxu0 %v1147_v51 }
  0x5b   : > { %702 = vmatprep.subr.bf16.mxu0 %v1151_v52 }
  0x5e   : > { %703 = vmatpush2.bf16.msra.mxu0 %v1153_v53 }
  0x5f   : > { %704 = vmatprep.subr.bf16.mxu0 %v1155_v54 }
  0x62   : > { %705 = vmatpush2.bf16.msra.mxu0 %v1157_v55 }
  0x65   : > { %707 = vmatmul.mubr.bf16.vlgmr.msra.gmra.mxu0 %v1158_v56 }
 0x107   : > { %v751_v57 = vpop.f32.mrf.mxu1 }
 0x109   : > { %v753_v58 = vpop.f32.mrf.mxu1 }
 0x10b   : > { %v755_v62 = vpop.f32.mrf.mxu1 }
 0x10d   : > { %v757_v7 = vpop.f32.mrf.mxu1 }
 0x125   : > { %v708_v60 = vpop.f32.mrf.mxu0 }
 0x126   : > { %v752_v61 = vadd.f32 %v751_v57, %v708_v60 }
 0x127   : > { %v710_v0 = vpop.f32.mrf.mxu0 }
 0x128   : > { %v760_v1 = vadd.f32 %v752_v61, %v362_v59  ;;  %v754_v2 = vadd.f32 %v753_v58, %v710_v0 }
 0x129   : > { %v712_v4 = vpop.f32.mrf.mxu0 }
 0x12a   : > { %764 = vst [vmem:[#allocation2 + $0x10] sm:$0xff] %v760_v1  ;;  %v761_v5 = vadd.f32 %v754_v2, %v363_v63  ;;  %v756_v6 = vadd.f32 %v755_v62, %v712_v4 }
 0x12b   : > { %v714_v9 = vpop.f32.mrf.mxu0 }
 0x12c   : > { %765 = vst [vmem:[#allocation2] sm:$0xff] %v761_v5  ;;  %v762_v10 = vadd.f32 %v756_v6, %v364_v3  ;;  %v758_v11 = vadd.f32 %v757_v7, %v714_v9  ;;  %771 = sbr.rel (%p1030_p11) target bundleno = 322 (0x142), region = 70 }
 0x12e   : > { %766 = vst [vmem:[#allocation2 + $0x18] sm:$0xff] %v762_v10  ;;  %v763_v12 = vadd.f32 %v758_v11, %v365_v8 }
 0x130   : > { %767 = vst [vmem:[#allocation2 + $0x8] sm:$0xff] %v763_v12 }
 0x131   : > { %v778_v13 = vlaneseq  ;;  %v776_v15 = vld [vmem:[%s1364_s2] sm:$0x3]  ;;  %v772_v17 = vld [vmem:[#allocation2 + $0x10] sm:$0xff] }
 0x132   : > { %v792_v16 = vld [vmem:[%s1365_s3] sm:$0x3] }
 0x133   : > { %v779_v14 = vshrl.u32 %v778_v13, 7  ;;  %v773_v20 = vld [vmem:[#allocation2] sm:$0xff] }
 0x135   : > { %v780_v18 = vsub.s32 0, %v779_v14  ;;  %v784_v19 = vsub.s32 1, %v779_v14  ;;  %v774_v21 = vld [vmem:[#allocation2 + $0x18] sm:$0xff] }
 0x137   : > { %v775_v22 = vld [vmem:[#allocation2 + $0x8] sm:$0xff]  ;;  %v781_v23 = vrot.slane %v776_v15, %v780_v18  ;;  %v785_v24 = vrot.slane %v776_v15, %v784_v19  ;;  %v797_v25 = vrot.slane %v792_v16, %v780_v18  ;;  %v801_v26 = vrot.slane %v792_v16, %v784_v19 }
 0x139   : > { %v788_v27 = vmul.f32 %v781_v23, %v772_v17  ;;  %v789_v28 = vmul.f32 %v785_v24, %v773_v20  ;;  %v790_v29 = vmul.f32 %v781_v23, %v774_v21  ;;  %v791_v30 = vmul.f32 %v785_v24, %v775_v22 }
 0x13b   : > { %v804_v31 = vadd.f32 %v797_v25, %v788_v27  ;;  %v805_v32 = vadd.f32 %v801_v26, %v789_v28  ;;  %v806_v33 = vadd.f32 %v797_v25, %v790_v29  ;;  %v807_v34 = vadd.f32 %v801_v26, %v791_v30 }
 0x13d   : > { %v808_v35 = vmax.f32 %v804_v31, 0.0  ;;  %v809_v36 = vmax.f32 %v805_v32, 0.0  ;;  %v810_v37 = vmax.f32 %v806_v33, 0.0  ;;  %v811_v38 = vmax.f32 %v807_v34, 0.0 }
 0x13f   : > { %v1039_v39 = vpack.c.bf16 %v809_v36, %v808_v35  ;;  %v1040_v40 = vpack.c.bf16 %v811_v38, %v810_v37 }
 0x141   : > { %824 = vst [vmem:[%s1366_s4] sm:$0xff] %v1039_v39  ;;  %825 = vst [vmem:[%s1366_s4 + $0x8] sm:$0xff] %v1040_v40 }
 0x142 PF: > { %s14_s19 = sadd.s32 1, %s1199_s19   ;;  %s1367_s15 = smov %s1187_s16 }
 0x143   : > { %p11_p12 = scmp.ge.s32.totalorder %s14_s19, 8   ;;  %s1368_s16 = smov %s1263_s23 }
 0x144   : > { %s1369_s17 = smov %s1195_s18  ;;  %s1370_s18 = smov %s1372_s20 }
 0x145   :  { %13 = sbr.rel (!%p11_p12) target bundleno = 3 (0x3), region = 120 }

// kernel: resnet18_forward.34
= control target key start
LH: loop header
LB: loop body
LE: loop exit
PB: predicated region body
PF: predicated region fallthrough
CT: control target
= control target key end

     0   :  { %s1333_s18 = smov 0   ;;  %s1335_s19 = smov 0   ;;  %s1473_s0 = inlined_call_operand.vmem [shape: bf16[16,2304], index: 0, kind: input, shape index: {}]   ;;  %s1474_s1 = inlined_call_operand.vmem [shape: bf16[2304,256], index: 1, kind: input, shape index: {}]   ;;  %s1475_s2 = inlined_call_operand.vmem [shape: f32[1,256], index: 2, kind: input, shape index: {}]   ;;  %s1476_s3 = inlined_call_operand.vmem [shape: f32[1,256], index: 3, kind: input, shape index: {}]   ;;  %s1477_s4 = inlined_call_operand.vmem [shape: bf16[16,256], index: 4, kind: input, shape index: {}]   ;;  %s1478_s5 = inlined_call_operand.vmem [shape: bf16[16,256], index: 5, kind: output, shape index: {}]  }
   0x1   :  { %s1337_s20 = smov 0   ;;  %s1339_s21 = smov 0  }
   0x2   :  { %s1341_s22 = smov 0  }
   0x3 LB: > { %s27_s23 = sadd.s32 1, %s1295_s21  ;;  %p50_p1 = scmp.ne.s32.totalorder %s1287_s19, %s1283_s18  ;;  %s1299_s22 = sphi %s1341_s22, %s15_s22   ;;  %s1295_s21 = sphi %s1339_s21, %s1482_s21   ;;  %s1291_s20 = sphi %s1337_s20, %s1481_s20   ;;  %s1287_s19 = sphi %s1335_s19, %s1480_s19   ;;  %s1283_s18 = sphi %s1333_s18, %s1479_s18  }
   0x4   : > { %p28_p0 = scmp.ge.s32.totalorder %s27_s23, 6  ;;  %p51_p2 = scmp.eq.s32.totalorder %s1299_s22, 0 }
   0x5   : > { %s43_s25 = sadd.s32 1, %s1287_s19  ;;  %p1069_p5 = scmp.ge.s32.totalorder %s1299_s22, 6 }
   0x6   : > { %s1484_s23 = smov (%p28_p0, %s27_s23), 0  ;;  %p52_p3 = por %p51_p2, %p50_p1 }
   0x7   : > { %s39_s24 = ssub.s32 %s1295_s21, %s1484_s23  ;;  %243 = sbr.rel (%p1069_p5) target bundleno = 19 (0x13), region = 28 }
   0x8   : > { %p41_p4 = scmp.eq.s32.totalorder %s39_s24, 0 }
   0xa   : > { %s1368_s26 = scalar_select %p41_p4, %s1287_s19, %s43_s25  }
   0xc   : > { %246 = sbr.rel (!%p52_p3) target bundleno = 19 (0x13), region = 32  ;;  %s248_s27 = sand.u32 (%p52_p3), 1, %s1287_s19  }
   0xd   : > { %s1137_s28 = smul.u32 (%p52_p3), 12, %s1295_s21 }
   0xe   : > { %s1141_s29 = smul.u32 (%p52_p3), 24, %s248_s27 }
   0xf   : > { %s256_s7 = scalar_lea.vmem (%p52_p3), %s1473_s0, %s1137_s28 }
  0x10   : > { %v271_v0 = vld [vmem:[%s256_s7] sm:$0xff] (%p52_p3)  ;;  %v273_v1 = vld [vmem:[%s256_s7 + $0x48] sm:$0xff] (%p52_p3)  ;;  %s250_s8 = scalar_lea.vmem (%p52_p3), [#allocation3], %s1141_s29  ;;  %v1073_v3 = vld [vmem:[%s256_s7 + $0x50] sm:$0xf] (%p52_p3) }
  0x11   : > { %v1071_v2 = vld [vmem:[%s256_s7 + $0x8] sm:$0xf]  ;;  %272 = vst [vmem:[%s250_s8] sm:$0xff] %v271_v0  ;;  %274 = vst [vmem:[%s250_s8 + $0xc] sm:$0xff] %v273_v1 }
  0x12   : > { %1072 = vst [vmem:[%s250_s8 + $0x8] sm:$0xf] %v1071_v2  ;;  %1074 = vst [vmem:[%s250_s8 + $0x14] sm:$0xf] %v1073_v3 }
  0x13 PF: > { %p1075_p6 = scmp.ge.s32.totalorder %s1299_s22, 1  ;;  %p306_p7 = scmp.lt.s32.totalorder %s1299_s22, 7 }
  0x15   : > { %p307_p8 = pnand %p1075_p6, %p306_p7 }
  0x16   : > { %s313_s9 = sand.u32 (!%p307_p8), 1, %s1283_s18   ;;  %s375_s10 = smul.u32 (!%p307_p8), 48, %s1291_s20 }
  0x17   : > { %310 = sbr.rel (%p307_p8) target bundleno = 324 (0x144), region = 62  ;;  %p1078_p10 = scmp.ne.s32.totalorder (!%p307_p8), %s1291_s20, 0 }
  0x18   : > { %s1142_s11 = smul.u32 (!%p307_p8), 24, %s313_s9  ;;  %p377_p9 = scmp.lt.s32.totalorder (!%p307_p8), %s375_s10, 287 }
  0x1a   : > { %s1385_s16 = scalar_lea.vmem (!%p307_p8), [#allocation3], %s1142_s11 }
  0x1c   : > { %s1486_s10 = smov (!%p377_p9, %s375_s10), 287  ;;  %425 = sbr.rel (%p1078_p10) target bundleno = 36 (0x24), region = 70 }
  0x1d   : > { %s1138_s12 = sshll.u32 %s1486_s10, 3 }
  0x1e   : > { %s1383_s15 = scalar_lea.vmem %s1474_s1, %s1138_s12 }
  0x21   : > { %v1301_v4 = vmov 0.0  }
  0x22   : > { %426 = vst [vmem:[#allocation2 + $0x10] sm:$0xff] %v1301_v4  ;;  %427 = vst [vmem:[#allocation2] sm:$0xff] %v1301_v4 }
  0x23   : > { %428 = vst [vmem:[#allocation2 + $0x18] sm:$0xff] %v1301_v4  ;;  %429 = vst [vmem:[#allocation2 + $0x8] sm:$0xff] %v1301_v4 }
  0x24 PF: > { %v1185_v5 = vld [vmem:[%s1383_s15 + $0x74] ss:$8 sps:$4 sm:$0xff]   ;;  %v1187_v6 = vld [vmem:[%s1383_s15 + $0x70] ss:$8 sps:$4 sm:$0xff]   ;;  %v1302_v7 = vmov 0   ;;  %p1130_p11 = scmp.ne.s32.totalorder %s1291_s20, 5 }
  0x25   : > { %817 = vmatprep.mubr.bf16.mxu1 %v1302_v7  ;;  %742 = vmatprep.subr.bf16.mxu0 %v1185_v5  ;;  %v1188_v8 = vld [vmem:[%s1383_s15 + $0x64] ss:$8 sps:$4 sm:$0xff]   ;;  %v1190_v9 = vld [vmem:[%s1383_s15 + $0x60] ss:$8 sps:$4 sm:$0xff]   ;;  %v1191_v10 = vld [vmem:[%s1383_s15 + $0x54] ss:$8 sps:$4 sm:$0xff]  }
  0x26   : > { %743 = vmatpush1.bf16.msra.mxu0 %v1187_v6  ;;  %v1193_v11 = vld [vmem:[%s1383_s15 + $0x50] ss:$8 sps:$4 sm:$0xff]   ;;  %v1194_v12 = vld [vmem:[%s1383_s15 + $0x44] ss:$8 sps:$4 sm:$0xff]   ;;  %v1206_v13 = vld [vmem:[%s1383_s15 + $0x174] ss:$8 sps:$4 sm:$0xff]  }
  0x27   : > { %744 = vmatprep.subr.bf16.mxu0 %v1188_v8  ;;  %v1208_v14 = vld [vmem:[%s1383_s15 + $0x170] ss:$8 sps:$4 sm:$0xff]   ;;  %v1196_v15 = vld [vmem:[%s1383_s15 + $0x40] ss:$8 sps:$4 sm:$0xff]   ;;  %v1197_v16 = vld [vmem:[%s1383_s15 + $0x34] ss:$8 sps:$4 sm:$0xff]   ;;  %785 = vmatprep.subr.bf16.mxu1 %v1206_v13 }
  0x28   : > { %v1212_v17 = vld [vmem:[%s1383_s15 + $0x164] ss:$8 sps:$4 sm:$0xff]   ;;  %786 = vmatpush1.bf16.msra.mxu1 %v1208_v14  ;;  %v1214_v18 = vld [vmem:[%s1383_s15 + $0x160] ss:$8 sps:$4 sm:$0xff]   ;;  %v1199_v19 = vld [vmem:[%s1383_s15 + $0x30] ss:$8 sps:$4 sm:$0xff]  }
  0x29   : > { %787 = vmatprep.subr.bf16.mxu1 %v1212_v17  ;;  %v1218_v20 = vld [vmem:[%s1383_s15 + $0x154] ss:$8 sps:$4 sm:$0xff]   ;;  %v1200_v21 = vld [vmem:[%s1383_s15 + $0x24] ss:$8 sps:$4 sm:$0xff]   ;;  %v1220_v22 = vld [vmem:[%s1383_s15 + $0x150] ss:$8 sps:$4 sm:$0xff]  }
  0x2a   : > { %745 = vmatpush1.bf16.msra.mxu0 %v1190_v9  ;;  %v1224_v23 = vld [vmem:[%s1383_s15 + $0x144] ss:$8 sps:$4 sm:$0xff]   ;;  %v1202_v24 = vld [vmem:[%s1383_s15 + $0x20] ss:$8 sps:$4 sm:$0xff]   ;;  %v1203_v25 = vld [vmem:[%s1383_s15 + $0x14] ss:$8 sps:$4 sm:$0xff]  }
  0x2b   : > { %746 = vmatprep.subr.bf16.mxu0 %v1191_v10  ;;  %v1226_v26 = vld [vmem:[%s1383_s15 + $0x140] ss:$8 sps:$4 sm:$0xff]   ;;  %v1230_v27 = vld [vmem:[%s1383_s15 + $0x134] ss:$8 sps:$4 sm:$0xff]   ;;  %v1205_v28 = vld [vmem:[%s1383_s15 + $0x10] ss:$8 sps:$4 sm:$0xff]  }
  0x2c   : > { %788 = vmatpush1.bf16.msra.mxu1 %v1214_v18  ;;  %v1209_v29 = vld [vmem:[%s1383_s15 + $0x4] ss:$8 sps:$4 sm:$0xff]   ;;  %v1232_v30 = vld [vmem:[%s1383_s15 + $0x130] ss:$8 sps:$4 sm:$0xff]   ;;  %v1211_v32 = vld [vmem:[%s1383_s15] ss:$8 sps:$4 sm:$0xff]  }
  0x2d   : > { %789 = vmatprep.subr.bf16.mxu1 %v1218_v20  ;;  %v1236_v31 = vld [vmem:[%s1383_s15 + $0x124] ss:$8 sps:$4 sm:$0xff]   ;;  %v1215_v33 = vld [vmem:[%s1383_s15 + $0xf4] ss:$8 sps:$4 sm:$0xff]   ;;  %v1238_v34 = vld [vmem:[%s1383_s15 + $0x120] ss:$8 sps:$4 sm:$0xff]  }
  0x2e   : > { %747 = vmatpush1.bf16.msra.mxu0 %v1193_v11  ;;  %v1242_v35 = vld [vmem:[%s1383_s15 + $0x114] ss:$8 sps:$4 sm:$0xff]   ;;  %v1217_v36 = vld [vmem:[%s1383_s15 + $0xf0] ss:$8 sps:$4 sm:$0xff]   ;;  %v1221_v37 = vld [vmem:[%s1383_s15 + $0xe4] ss:$8 sps:$4 sm:$0xff]  }
  0x2f   : > { %748 = vmatprep.subr.bf16.mxu0 %v1194_v12  ;;  %v1244_v38 = vld [vmem:[%s1383_s15 + $0x110] ss:$8 sps:$4 sm:$0xff]   ;;  %v1248_v39 = vld [vmem:[%s1383_s15 + $0x104] ss:$8 sps:$4 sm:$0xff]   ;;  %v1223_v41 = vld [vmem:[%s1383_s15 + $0xe0] ss:$8 sps:$4 sm:$0xff]  }
  0x30   : > { %790 = vmatpush1.bf16.msra.mxu1 %v1220_v22  ;;  %v1260_v40 = vld [vmem:[%s1385_s16 + $0x4] ss:$12 sps:$4 sm:$0xff]   ;;  %v1254_v46 = vld [vmem:[%s1385_s16 + $0x8] ss:$12 sps:$4 sm:$0xff]   ;;  %v1258_v56 = vld [vmem:[%s1385_s16] ss:$12 sps:$4 sm:$0xff]  }
  0x31   : > { %791 = vmatprep.subr.bf16.mxu1 %v1224_v23  ;;  %v1227_v42 = vld [vmem:[%s1383_s15 + $0xd4] ss:$8 sps:$4 sm:$0xff]   ;;  %774 = vmatprep.mubr.bf16.mxu0 %v1260_v40  ;;  %v1250_v43 = vld [vmem:[%s1383_s15 + $0x100] ss:$8 sps:$4 sm:$0xff]   ;;  %v1229_v44 = vld [vmem:[%s1383_s15 + $0xd0] ss:$8 sps:$4 sm:$0xff]  }
  0x32   : > { %749 = vmatpush1.bf16.msra.mxu0 %v1196_v15  ;;  %v1233_v45 = vld [vmem:[%s1383_s15 + $0xc4] ss:$8 sps:$4 sm:$0xff]   ;;  %v1235_v47 = vld [vmem:[%s1383_s15 + $0xc0] ss:$8 sps:$4 sm:$0xff]   ;;  %v1239_v48 = vld [vmem:[%s1383_s15 + $0xb4] ss:$8 sps:$4 sm:$0xff]  }
  0x33   : > { %750 = vmatprep.subr.bf16.mxu0 %v1197_v16  ;;  %v1241_v49 = vld [vmem:[%s1383_s15 + $0xb0] ss:$8 sps:$4 sm:$0xff]   ;;  %v1245_v50 = vld [vmem:[%s1383_s15 + $0xa4] ss:$8 sps:$4 sm:$0xff]   ;;  %v1247_v51 = vld [vmem:[%s1383_s15 + $0xa0] ss:$8 sps:$4 sm:$0xff]  }
  0x34   : > { %792 = vmatpush1.bf16.msra.mxu1 %v1226_v26  ;;  %v1251_v52 = vld [vmem:[%s1383_s15 + $0x94] ss:$8 sps:$4 sm:$0xff]   ;;  %v1253_v53 = vld [vmem:[%s1383_s15 + $0x90] ss:$8 sps:$4 sm:$0xff]   ;;  %v1255_v54 = vld [vmem:[%s1383_s15 + $0x84] ss:$8 sps:$4 sm:$0xff]  }
  0x35   : > { %793 = vmatprep.subr.bf16.mxu1 %v1230_v27  ;;  %v1257_v55 = vld [vmem:[%s1383_s15 + $0x80] ss:$8 sps:$4 sm:$0xff]   ;;  %v430_v59 = vld [vmem:[#allocation2 + $0x10] sm:$0xff]  ;;  %v432_v3 = vld [vmem:[#allocation2 + $0x18] sm:$0xff] }
  0x36   : > { %751 = vmatpush1.bf16.msra.mxu0 %v1199_v19  ;;  %v431_v63 = vld [vmem:[#allocation2] sm:$0xff]  ;;  %v433_v8 = vld [vmem:[#allocation2 + $0x8] sm:$0xff] }
  0x37   : > { %752 = vmatprep.subr.bf16.mxu0 %v1200_v21 }
  0x38   : > { %794 = vmatpush1.bf16.msra.mxu1 %v1232_v30 }
  0x39   : > { %795 = vmatprep.subr.bf16.mxu1 %v1236_v31 }
  0x3a   : > { %753 = vmatpush1.bf16.msra.mxu0 %v1202_v24 }
  0x3b   : > { %754 = vmatprep.subr.bf16.mxu0 %v1203_v25 }
  0x3c   : > { %796 = vmatpush1.bf16.msra.mxu1 %v1238_v34 }
  0x3d   : > { %797 = vmatprep.subr.bf16.mxu1 %v1242_v35 }
  0x3e   : > { %755 = vmatpush1.bf16.msra.mxu0 %v1205_v28 }
  0x3f   : > { %756 = vmatprep.subr.bf16.mxu0 %v1209_v29 }
  0x40   : > { %798 = vmatpush1.bf16.msra.mxu1 %v1244_v38 }
  0x41   : > { %799 = vmatprep.subr.bf16.mxu1 %v1248_v39 }
  0x42   : > { %757 = vmatpush1.bf16.msra.mxu0 %v1211_v32 }
  0x43   : > { %758 = vmatprep.subr.bf16.mxu0 %v1215_v33 }
  0x44   : > { %800 = vmatpush1.bf16.msra.mxu1 %v1250_v43 }
  0x46   : > { %759 = vmatpush2.bf16.msra.mxu0 %v1217_v36 }
  0x47   : > { %760 = vmatprep.subr.bf16.mxu0 %v1221_v37  ;;  %818 = vmatmul.mubr.bf16.vlgmr.msra.gmra.mxu1 %v1254_v46 }
  0x4a   : > { %761 = vmatpush2.bf16.msra.mxu0 %v1223_v41 }
  0x4b   : > { %762 = vmatprep.subr.bf16.mxu0 %v1227_v42 }
  0x4e   : > { %763 = vmatpush2.bf16.msra.mxu0 %v1229_v44 }
  0x4f   : > { %764 = vmatprep.subr.bf16.mxu0 %v1233_v45 }
  0x52   : > { %765 = vmatpush2.bf16.msra.mxu0 %v1235_v47 }
  0x53   : > { %766 = vmatprep.subr.bf16.mxu0 %v1239_v48 }
  0x56   : > { %767 = vmatpush2.bf16.msra.mxu0 %v1241_v49 }
  0x57   : > { %768 = vmatprep.subr.bf16.mxu0 %v1245_v50 }
  0x5a   : > { %769 = vmatpush2.bf16.msra.mxu0 %v1247_v51 }
  0x5b   : > { %770 = vmatprep.subr.bf16.mxu0 %v1251_v52 }
  0x5e   : > { %771 = vmatpush2.bf16.msra.mxu0 %v1253_v53 }
  0x5f   : > { %772 = vmatprep.subr.bf16.mxu0 %v1255_v54 }
  0x62   : > { %773 = vmatpush2.bf16.msra.mxu0 %v1257_v55 }
  0x65   : > { %775 = vmatmul.mubr.bf16.vlgmr.msra.gmra.mxu0 %v1258_v56 }
 0x107   : > { %v819_v57 = vpop.f32.mrf.mxu1 }
 0x109   : > { %v821_v58 = vpop.f32.mrf.mxu1 }
 0x10b   : > { %v823_v62 = vpop.f32.mrf.mxu1 }
 0x10d   : > { %v825_v7 = vpop.f32.mrf.mxu1 }
 0x125   : > { %v776_v60 = vpop.f32.mrf.mxu0 }
 0x126   : > { %v820_v61 = vadd.f32 %v819_v57, %v776_v60 }
 0x127   : > { %v778_v0 = vpop.f32.mrf.mxu0 }
 0x128   : > { %v828_v1 = vadd.f32 %v820_v61, %v430_v59  ;;  %v822_v2 = vadd.f32 %v821_v58, %v778_v0 }
 0x129   : > { %v780_v4 = vpop.f32.mrf.mxu0 }
 0x12a   : > { %832 = vst [vmem:[#allocation2 + $0x10] sm:$0xff] %v828_v1  ;;  %v829_v5 = vadd.f32 %v822_v2, %v431_v63  ;;  %v824_v6 = vadd.f32 %v823_v62, %v780_v4 }
 0x12b   : > { %v782_v9 = vpop.f32.mrf.mxu0 }
 0x12c   : > { %833 = vst [vmem:[#allocation2] sm:$0xff] %v829_v5  ;;  %v830_v10 = vadd.f32 %v824_v6, %v432_v3  ;;  %v826_v11 = vadd.f32 %v825_v7, %v782_v9  ;;  %839 = sbr.rel (%p1130_p11) target bundleno = 324 (0x144), region = 74 }
 0x12e   : > { %834 = vst [vmem:[#allocation2 + $0x18] sm:$0xff] %v830_v10  ;;  %v831_v12 = vadd.f32 %v826_v11, %v433_v8 }
 0x130   : > { %835 = vst [vmem:[#allocation2 + $0x8] sm:$0xff] %v831_v12 }
 0x131   : > { %v846_v13 = vlaneseq  ;;  %v844_v15 = vld [vmem:[%s1475_s2] sm:$0x3]  ;;  %v840_v17 = vld [vmem:[#allocation2 + $0x10] sm:$0xff]  ;;  %v877_v21 = vld [vmem:[%s1477_s4 + $0x8] sm:$0xff] }
 0x132   : > { %v860_v16 = vld [vmem:[%s1476_s3] sm:$0x3]  ;;  %v880_v31 = vunpack.c.l.bf16 %v877_v21  ;;  %v881_v32 = vunpack.c.h.bf16 %v877_v21 }
 0x133   : > { %v847_v14 = vshrl.u32 %v846_v13, 7  ;;  %v876_v20 = vld [vmem:[%s1477_s4] sm:$0xff] }
 0x134   : > { %v841_v22 = vld [vmem:[#allocation2] sm:$0xff]  ;;  %v878_v29 = vunpack.c.l.bf16 %v876_v20  ;;  %v879_v30 = vunpack.c.h.bf16 %v876_v20 }
 0x135   : > { %v848_v18 = vsub.s32 0, %v847_v14  ;;  %v852_v19 = vsub.s32 1, %v847_v14  ;;  %v842_v23 = vld [vmem:[#allocation2 + $0x18] sm:$0xff] }
 0x137   : > { %v843_v24 = vld [vmem:[#allocation2 + $0x8] sm:$0xff]  ;;  %v849_v25 = vrot.slane %v844_v15, %v848_v18  ;;  %v853_v26 = vrot.slane %v844_v15, %v852_v19  ;;  %v865_v27 = vrot.slane %v860_v16, %v848_v18  ;;  %v869_v28 = vrot.slane %v860_v16, %v852_v19 }
 0x139   : > { %v856_v33 = vmul.f32 %v849_v25, %v840_v17  ;;  %v857_v34 = vmul.f32 %v853_v26, %v841_v22  ;;  %v858_v35 = vmul.f32 %v849_v25, %v842_v23  ;;  %v859_v36 = vmul.f32 %v853_v26, %v843_v24 }
 0x13b   : > { %v872_v37 = vadd.f32 %v865_v27, %v856_v33  ;;  %v873_v38 = vadd.f32 %v869_v28, %v857_v34  ;;  %v874_v39 = vadd.f32 %v865_v27, %v858_v35  ;;  %v875_v40 = vadd.f32 %v869_v28, %v859_v36 }
 0x13d   : > { %v882_v41 = vadd.f32 %v878_v29, %v872_v37  ;;  %v883_v42 = vadd.f32 %v879_v30, %v873_v38  ;;  %v884_v43 = vadd.f32 %v880_v31, %v874_v39  ;;  %v885_v44 = vadd.f32 %v881_v32, %v875_v40 }
 0x13f   : > { %v886_v45 = vmax.f32 %v882_v41, 0.0  ;;  %v887_v46 = vmax.f32 %v883_v42, 0.0  ;;  %v888_v47 = vmax.f32 %v884_v43, 0.0  ;;  %v889_v48 = vmax.f32 %v885_v44, 0.0 }
 0x141   : > { %v1139_v49 = vpack.c.bf16 %v887_v46, %v886_v45  ;;  %v1140_v50 = vpack.c.bf16 %v889_v48, %v888_v47 }
 0x143   : > { %902 = vst [vmem:[%s1478_s5] sm:$0xff] %v1139_v49  ;;  %903 = vst [vmem:[%s1478_s5 + $0x8] sm:$0xff] %v1140_v50 }
 0x144 PF: > { %s15_s22 = sadd.s32 1, %s1299_s22   ;;  %s1479_s18 = smov %s1287_s19 }
 0x145   : > { %p12_p12 = scmp.ge.s32.totalorder %s15_s22, 8   ;;  %s1480_s19 = smov %s1368_s26 }
 0x146   : > { %s1481_s20 = smov %s1295_s21  ;;  %s1482_s21 = smov %s1484_s23 }
 0x147   :  { %14 = sbr.rel (!%p12_p12) target bundleno = 3 (0x3), region = 127 }

// kernel: resnet18_forward.38
= control target key start
LH: loop header
LB: loop body
LE: loop exit
PB: predicated region body
PF: predicated region fallthrough
CT: control target
= control target key end

     0   :  { %s1792_s15 = smov 0   ;;  %s1794_s16 = smov 0   ;;  %s1990_s0 = inlined_call_operand.vmem [shape: bf16[16,2304], index: 0, kind: input, shape index: {}]   ;;  %s1991_s1 = inlined_call_operand.vmem [shape: bf16[2304,512], index: 1, kind: input, shape index: {}]   ;;  %s1992_s2 = inlined_call_operand.vmem [shape: f32[1,512], index: 2, kind: input, shape index: {}]   ;;  %s1993_s3 = inlined_call_operand.vmem [shape: f32[1,512], index: 3, kind: input, shape index: {}]   ;;  %s1994_s4 = inlined_call_operand.vmem [shape: bf16[16,512], index: 4, kind: output, shape index: {}]  }
   0x1   :  { %s1796_s17 = smov 0   ;;  %s1798_s18 = smov 0  }
   0x2   :  { %s1800_s19 = smov 0  }
   0x3 LB: > { %s26_s20 = sadd.s32 1, %s1759_s18  ;;  %p49_p1 = scmp.ne.s32.totalorder %s1751_s16, %s1747_s15  ;;  %s1763_s19 = sphi %s1800_s19, %s14_s19   ;;  %s1759_s18 = sphi %s1798_s18, %s1998_s18   ;;  %s1755_s17 = sphi %s1796_s17, %s1997_s17   ;;  %s1751_s16 = sphi %s1794_s16, %s1996_s16   ;;  %s1747_s15 = sphi %s1792_s15, %s1995_s15  }
   0x4   : > { %p27_p0 = scmp.ge.s32.totalorder %s26_s20, 6  ;;  %p50_p2 = scmp.eq.s32.totalorder %s1763_s19, 0 }
   0x5   : > { %s42_s22 = sadd.s32 1, %s1751_s16  ;;  %p1409_p5 = scmp.ge.s32.totalorder %s1763_s19, 6 }
   0x6   : > { %s2000_s20 = smov (%p27_p0, %s26_s20), 0  ;;  %p51_p3 = por %p50_p2, %p49_p1 }
   0x7   : > { %s38_s21 = ssub.s32 %s1759_s18, %s2000_s20  ;;  %199 = sbr.rel (%p1409_p5) target bundleno = 19 (0x13), region = 24 }
   0x8   : > { %p40_p4 = scmp.eq.s32.totalorder %s38_s21, 0 }
   0xa   : > { %s1827_s23 = scalar_select %p40_p4, %s1751_s16, %s42_s22  }
   0xc   : > { %202 = sbr.rel (!%p51_p3) target bundleno = 19 (0x13), region = 28  ;;  %s204_s24 = sand.u32 (%p51_p3), 1, %s1751_s16  }
   0xd   : > { %s1527_s25 = smul.u32 (%p51_p3), 12, %s1759_s18 }
   0xe   : > { %s1533_s26 = smul.u32 (%p51_p3), 24, %s204_s24 }
   0xf   : > { %s212_s29 = scalar_lea.vmem (%p51_p3), %s1990_s0, %s1527_s25 }
  0x10   : > { %v227_v0 = vld [vmem:[%s212_s29] sm:$0xff] (%p51_p3)  ;;  %v229_v1 = vld [vmem:[%s212_s29 + $0x48] sm:$0xff] (%p51_p3)  ;;  %s206_s30 = scalar_lea.vmem (%p51_p3), [#allocation3], %s1533_s26  ;;  %v1413_v3 = vld [vmem:[%s212_s29 + $0x50] sm:$0xf] (%p51_p3) }
  0x11   : > { %v1411_v2 = vld [vmem:[%s212_s29 + $0x8] sm:$0xf]  ;;  %228 = vst [vmem:[%s206_s30] sm:$0xff] %v227_v0  ;;  %230 = vst [vmem:[%s206_s30 + $0xc] sm:$0xff] %v229_v1 }
  0x12   : > { %1412 = vst [vmem:[%s206_s30 + $0x8] sm:$0xf] %v1411_v2  ;;  %1414 = vst [vmem:[%s206_s30 + $0x14] sm:$0xf] %v1413_v3 }
  0x13 PF: > { %p1415_p6 = scmp.ge.s32.totalorder %s1763_s19, 1  ;;  %p262_p7 = scmp.lt.s32.totalorder %s1763_s19, 7 }
  0x15   : > { %p263_p8 = pnand %p1415_p6, %p262_p7 }
  0x16   : > { %s269_s5 = sand.u32 (!%p263_p8), 1, %s1747_s15   ;;  %s319_s6 = smul.u32 (!%p263_p8), 48, %s1755_s17 }
  0x17   : > { %266 = sbr.rel (%p263_p8) target bundleno = 358 (0x166), region = 58  ;;  %p1418_p10 = scmp.ne.s32.totalorder (!%p263_p8), %s1755_s17, 0 }
  0x18   : > { %s1534_s7 = smul.u32 (!%p263_p8), 24, %s269_s5  ;;  %p321_p9 = scmp.lt.s32.totalorder (!%p263_p8), %s319_s6, 287 }
  0x1a   : > { %s1844_s12 = scalar_lea.vmem (!%p263_p8), [#allocation3], %s1534_s7 }
  0x1c   : > { %s2002_s6 = smov (!%p321_p9, %s319_s6), 287  ;;  %357 = sbr.rel (%p1418_p10) target bundleno = 38 (0x26), region = 66 }
  0x1d   : > { %s1528_s8 = sshll.u32 %s2002_s6, 4 }
  0x1e   : > { %s1842_s11 = scalar_lea.vmem %s1991_s1, %s1528_s8 }
  0x21   : > { %v1765_v4 = vmov 0.0  }
  0x22   : > { %358 = vst [vmem:[#allocation2 + $0x30] sm:$0xff] %v1765_v4  ;;  %359 = vst [vmem:[#allocation2] sm:$0xff] %v1765_v4 }
  0x23   : > { %360 = vst [vmem:[#allocation2 + $0x18] sm:$0xff] %v1765_v4  ;;  %361 = vst [vmem:[#allocation2 + $0x10] sm:$0xff] %v1765_v4 }
  0x24   : > { %362 = vst [vmem:[#allocation2 + $0x8] sm:$0xff] %v1765_v4  ;;  %363 = vst [vmem:[#allocation2 + $0x20] sm:$0xff] %v1765_v4 }
  0x25   : > { %364 = vst [vmem:[#allocation2 + $0x28] sm:$0xff] %v1765_v4  ;;  %365 = vst [vmem:[#allocation2 + $0x38] sm:$0xff] %v1765_v4 }
  0x26 PF: > { %v1577_v5 = vld [vmem:[%s1842_s11 + $0xe4] ss:$16 sps:$4 sm:$0xff]   ;;  %v1766_v7 = vmov 0   ;;  %v1581_v8 = vld [vmem:[%s1842_s11 + $0xe0] ss:$16 sps:$4 sm:$0xff]   ;;  %p1518_p11 = scmp.ne.s32.totalorder %s1755_s17, 5 }
  0x27   : > { %v1579_v6 = vld [vmem:[%s1842_s11 + $0x2e4] ss:$16 sps:$4 sm:$0xff]   ;;  %1045 = vmatprep.mubr.bf16.mxu1 %v1766_v7  ;;  %970 = vmatprep.subr.bf16.mxu0 %v1577_v5  ;;  %v1582_v9 = vld [vmem:[%s1842_s11 + $0x2e0] ss:$16 sps:$4 sm:$0xff]   ;;  %v1630_v39 = vld [vmem:[%s1842_s11 + $0xec] ss:$16 sps:$4 sm:$0xff]  }
  0x28   : > { %1013 = vmatprep.subr.bf16.mxu1 %v1579_v6  ;;  %v1583_v10 = vld [vmem:[%s1842_s11 + $0xc4] ss:$16 sps:$4 sm:$0xff]   ;;  %971 = vmatpush1.bf16.msra.mxu0 %v1581_v8  ;;  %v1587_v12 = vld [vmem:[%s1842_s11 + $0xc0] ss:$16 sps:$4 sm:$0xff]   ;;  %v1628_v41 = vld [vmem:[%s1842_s11 + $0xe8] ss:$16 sps:$4 sm:$0xff]  }
  0x29   : > { %1014 = vmatpush1.bf16.msra.mxu1 %v1582_v9  ;;  %v1585_v11 = vld [vmem:[%s1842_s11 + $0x2c4] ss:$16 sps:$4 sm:$0xff]   ;;  %972 = vmatprep.subr.bf16.mxu0 %v1583_v10  ;;  %v1588_v13 = vld [vmem:[%s1842_s11 + $0x2c0] ss:$16 sps:$4 sm:$0xff]   ;;  %v1636_v44 = vld [vmem:[%s1842_s11 + $0xcc] ss:$16 sps:$4 sm:$0xff]  }
  0x2a   : > { %1015 = vmatprep.subr.bf16.mxu1 %v1585_v11  ;;  %v1589_v14 = vld [vmem:[%s1842_s11 + $0xa4] ss:$16 sps:$4 sm:$0xff]   ;;  %v1593_v16 = vld [vmem:[%s1842_s11 + $0xa0] ss:$16 sps:$4 sm:$0xff]   ;;  %v1634_v45 = vld [vmem:[%s1842_s11 + $0xc8] ss:$16 sps:$4 sm:$0xff]  }
  0x2b   : > { %v1591_v15 = vld [vmem:[%s1842_s11 + $0x2a4] ss:$16 sps:$4 sm:$0xff]   ;;  %v1594_v17 = vld [vmem:[%s1842_s11 + $0x2a0] ss:$16 sps:$4 sm:$0xff]   ;;  %v1642_v48 = vld [vmem:[%s1842_s11 + $0xac] ss:$16 sps:$4 sm:$0xff]  }
  0x2c   : > { %973 = vmatpush1.bf16.msra.mxu0 %v1587_v12  ;;  %v1595_v18 = vld [vmem:[%s1842_s11 + $0x84] ss:$16 sps:$4 sm:$0xff]   ;;  %v1599_v20 = vld [vmem:[%s1842_s11 + $0x80] ss:$16 sps:$4 sm:$0xff]   ;;  %v1640_v49 = vld [vmem:[%s1842_s11 + $0xa8] ss:$16 sps:$4 sm:$0xff]  }
  0x2d   : > { %1016 = vmatpush1.bf16.msra.mxu1 %v1588_v13  ;;  %974 = vmatprep.subr.bf16.mxu0 %v1589_v14  ;;  %v1597_v19 = vld [vmem:[%s1842_s11 + $0x284] ss:$16 sps:$4 sm:$0xff]   ;;  %v1600_v21 = vld [vmem:[%s1842_s11 + $0x280] ss:$16 sps:$4 sm:$0xff]   ;;  %v1648_v52 = vld [vmem:[%s1842_s11 + $0x8c] ss:$16 sps:$4 sm:$0xff]  }
  0x2e   : > { %1017 = vmatprep.subr.bf16.mxu1 %v1591_v15  ;;  %v1601_v22 = vld [vmem:[%s1842_s11 + $0x64] ss:$16 sps:$4 sm:$0xff]   ;;  %v1605_v24 = vld [vmem:[%s1842_s11 + $0x60] ss:$16 sps:$4 sm:$0xff]   ;;  %v1646_v53 = vld [vmem:[%s1842_s11 + $0x88] ss:$16 sps:$4 sm:$0xff]  }
  0x2f   : > { %v1603_v23 = vld [vmem:[%s1842_s11 + $0x264] ss:$16 sps:$4 sm:$0xff]   ;;  %v1606_v25 = vld [vmem:[%s1842_s11 + $0x260] ss:$16 sps:$4 sm:$0xff]   ;;  %v1654_v57 = vld [vmem:[%s1842_s11 + $0x6c] ss:$16 sps:$4 sm:$0xff]  }
  0x30   : > { %975 = vmatpush1.bf16.msra.mxu0 %v1593_v16  ;;  %v1607_v26 = vld [vmem:[%s1842_s11 + $0x44] ss:$16 sps:$4 sm:$0xff]   ;;  %v1611_v28 = vld [vmem:[%s1842_s11 + $0x40] ss:$16 sps:$4 sm:$0xff]   ;;  %v1652_v58 = vld [vmem:[%s1842_s11 + $0x68] ss:$16 sps:$4 sm:$0xff]  }
  0x31   : > { %1018 = vmatpush1.bf16.msra.mxu1 %v1594_v17  ;;  %976 = vmatprep.subr.bf16.mxu0 %v1595_v18  ;;  %v1609_v27 = vld [vmem:[%s1842_s11 + $0x244] ss:$16 sps:$4 sm:$0xff]   ;;  %v1612_v29 = vld [vmem:[%s1842_s11 + $0x240] ss:$16 sps:$4 sm:$0xff]   ;;  %v1660_v61 = vld [vmem:[%s1842_s11 + $0x4c] ss:$16 sps:$4 sm:$0xff]  }
  0x32   : > { %1019 = vmatprep.subr.bf16.mxu1 %v1597_v19  ;;  %v1613_v30 = vld [vmem:[%s1842_s11 + $0x24] ss:$16 sps:$4 sm:$0xff]   ;;  %v1617_v32 = vld [vmem:[%s1842_s11 + $0x20] ss:$16 sps:$4 sm:$0xff]   ;;  %v1658_v62 = vld [vmem:[%s1842_s11 + $0x48] ss:$16 sps:$4 sm:$0xff]  }
  0x33   : > { %v1615_v31 = vld [vmem:[%s1842_s11 + $0x224] ss:$16 sps:$4 sm:$0xff]   ;;  %v1618_v33 = vld [vmem:[%s1842_s11 + $0x220] ss:$16 sps:$4 sm:$0xff]   ;;  %v1666_v1 = vld [vmem:[%s1842_s11 + $0x2c] ss:$16 sps:$4 sm:$0xff]  }
  0x34   : > { %977 = vmatpush1.bf16.msra.mxu0 %v1599_v20  ;;  %v1619_v34 = vld [vmem:[%s1842_s11 + $0x4] ss:$16 sps:$4 sm:$0xff]   ;;  %v1623_v36 = vld [vmem:[%s1842_s11] ss:$16 sps:$4 sm:$0xff]   ;;  %v1664_v2 = vld [vmem:[%s1842_s11 + $0x28] ss:$16 sps:$4 sm:$0xff]  }
  0x35   : > { %1020 = vmatpush1.bf16.msra.mxu1 %v1600_v21  ;;  %978 = vmatprep.subr.bf16.mxu0 %v1601_v22  ;;  %v1621_v35 = vld [vmem:[%s1842_s11 + $0x204] ss:$16 sps:$4 sm:$0xff]   ;;  %v1624_v37 = vld [vmem:[%s1842_s11 + $0x200] ss:$16 sps:$4 sm:$0xff]   ;;  %v1672_v5 = vld [vmem:[%s1842_s11 + $0xc] ss:$16 sps:$4 sm:$0xff]  }
  0x36   : > { %1021 = vmatprep.subr.bf16.mxu1 %v1603_v23  ;;  %v1625_v38 = vld [vmem:[%s1842_s11 + $0x1e4] ss:$16 sps:$4 sm:$0xff]   ;;  %v1631_v42 = vld [vmem:[%s1842_s11 + $0x1e0] ss:$16 sps:$4 sm:$0xff]   ;;  %v1670_v6 = vld [vmem:[%s1842_s11 + $0x8] ss:$16 sps:$4 sm:$0xff]  }
  0x37   : > { %v1883_v40 = vld [vmem:[%s1844_s12 + $0x8] ss:$12 sps:$4 sm:$0xff]   ;;  %v1676_v56 = vld [vmem:[%s1844_s12 + $0x4] ss:$12 sps:$4 sm:$0xff]   ;;  %v1920_v11 = vld [vmem:[%s1844_s12] ss:$12 sps:$4 sm:$0xff]  }
  0x38   : > { %979 = vmatpush1.bf16.msra.mxu0 %v1605_v24  ;;  %v1632_v43 = vld [vmem:[%s1842_s11 + $0x1c4] ss:$16 sps:$4 sm:$0xff]   ;;  %v1637_v46 = vld [vmem:[%s1842_s11 + $0x1c0] ss:$16 sps:$4 sm:$0xff]   ;;  %1002 = vmatprep.mubr.bf16.mxu0 %v1676_v56  ;;  %v1679_v9 = vld [vmem:[%s1842_s11 + $0x1ec] ss:$16 sps:$4 sm:$0xff]  }
  0x39   : > { %1022 = vmatpush1.bf16.msra.mxu1 %v1606_v25  ;;  %980 = vmatprep.subr.bf16.mxu0 %v1607_v26  ;;  %v1638_v47 = vld [vmem:[%s1842_s11 + $0x1a4] ss:$16 sps:$4 sm:$0xff]   ;;  %v1643_v50 = vld [vmem:[%s1842_s11 + $0x1a0] ss:$16 sps:$4 sm:$0xff]   ;;  %v1682_v10 = vld [vmem:[%s1842_s11 + $0x2ec] ss:$16 sps:$4 sm:$0xff]  }
  0x3a   : > { %1023 = vmatprep.subr.bf16.mxu1 %v1609_v27  ;;  %v1644_v51 = vld [vmem:[%s1842_s11 + $0x184] ss:$16 sps:$4 sm:$0xff]   ;;  %v1649_v54 = vld [vmem:[%s1842_s11 + $0x180] ss:$16 sps:$4 sm:$0xff]   ;;  %v1677_v12 = vld [vmem:[%s1842_s11 + $0x1e8] ss:$16 sps:$4 sm:$0xff]  }
  0x3b   : > { %v1650_v55 = vld [vmem:[%s1842_s11 + $0x164] ss:$16 sps:$4 sm:$0xff]   ;;  %v1655_v59 = vld [vmem:[%s1842_s11 + $0x160] ss:$16 sps:$4 sm:$0xff]   ;;  %v1680_v13 = vld [vmem:[%s1842_s11 + $0x2e8] ss:$16 sps:$4 sm:$0xff]  }
  0x3c   : > { %981 = vmatpush1.bf16.msra.mxu0 %v1611_v28  ;;  %v1656_v60 = vld [vmem:[%s1842_s11 + $0x144] ss:$16 sps:$4 sm:$0xff]   ;;  %v1661_v63 = vld [vmem:[%s1842_s11 + $0x140] ss:$16 sps:$4 sm:$0xff]   ;;  %v1685_v14 = vld [vmem:[%s1842_s11 + $0x1cc] ss:$16 sps:$4 sm:$0xff]  }
  0x3d   : > { %1024 = vmatpush1.bf16.msra.mxu1 %v1612_v29  ;;  %982 = vmatprep.subr.bf16.mxu0 %v1613_v30  ;;  %v1662_v0 = vld [vmem:[%s1842_s11 + $0x124] ss:$16 sps:$4 sm:$0xff]   ;;  %v1667_v3 = vld [vmem:[%s1842_s11 + $0x120] ss:$16 sps:$4 sm:$0xff]   ;;  %v1688_v15 = vld [vmem:[%s1842_s11 + $0x2cc] ss:$16 sps:$4 sm:$0xff]  }
  0x3e   : > { %1025 = vmatprep.subr.bf16.mxu1 %v1615_v31  ;;  %v1668_v4 = vld [vmem:[%s1842_s11 + $0x104] ss:$16 sps:$4 sm:$0xff]   ;;  %v1673_v8 = vld [vmem:[%s1842_s11 + $0x100] ss:$16 sps:$4 sm:$0xff]   ;;  %v1683_v16 = vld [vmem:[%s1842_s11 + $0x1c8] ss:$16 sps:$4 sm:$0xff]  }
  0x3f   : > { %v1686_v17 = vld [vmem:[%s1842_s11 + $0x2c8] ss:$16 sps:$4 sm:$0xff]   ;;  %v1691_v18 = vld [vmem:[%s1842_s11 + $0x1ac] ss:$16 sps:$4 sm:$0xff]  }
  0x40   : > { %983 = vmatpush1.bf16.msra.mxu0 %v1617_v32  ;;  %v1694_v19 = vld [vmem:[%s1842_s11 + $0x2ac] ss:$16 sps:$4 sm:$0xff]   ;;  %v1689_v20 = vld [vmem:[%s1842_s11 + $0x1a8] ss:$16 sps:$4 sm:$0xff]  }
  0x41   : > { %1026 = vmatpush1.bf16.msra.mxu1 %v1618_v33  ;;  %984 = vmatprep.subr.bf16.mxu0 %v1619_v34  ;;  %v1692_v21 = vld [vmem:[%s1842_s11 + $0x2a8] ss:$16 sps:$4 sm:$0xff]   ;;  %v1697_v22 = vld [vmem:[%s1842_s11 + $0x18c] ss:$16 sps:$4 sm:$0xff]  }
  0x42   : > { %1027 = vmatprep.subr.bf16.mxu1 %v1621_v35  ;;  %v1700_v23 = vld [vmem:[%s1842_s11 + $0x28c] ss:$16 sps:$4 sm:$0xff]   ;;  %v1695_v24 = vld [vmem:[%s1842_s11 + $0x188] ss:$16 sps:$4 sm:$0xff]  }
  0x43   : > { %v1698_v25 = vld [vmem:[%s1842_s11 + $0x288] ss:$16 sps:$4 sm:$0xff]   ;;  %v1706_v26 = vld [vmem:[%s1842_s11 + $0x26c] ss:$16 sps:$4 sm:$0xff]  }
  0x44   : > { %985 = vmatpush1.bf16.msra.mxu0 %v1623_v36  ;;  %v1701_v27 = vld [vmem:[%s1842_s11 + $0x168] ss:$16 sps:$4 sm:$0xff]   ;;  %v1709_v29 = vld [vmem:[%s1842_s11 + $0x14c] ss:$16 sps:$4 sm:$0xff]  }
  0x45   : > { %1028 = vmatpush1.bf16.msra.mxu1 %v1624_v37  ;;  %986 = vmatprep.subr.bf16.mxu0 %v1625_v38  ;;  %v1704_v28 = vld [vmem:[%s1842_s11 + $0x268] ss:$16 sps:$4 sm:$0xff]   ;;  %v1712_v30 = vld [vmem:[%s1842_s11 + $0x24c] ss:$16 sps:$4 sm:$0xff]  }
  0x46   : > { %1056 = vmatprep.subr.bf16.mxu1 %v1630_v39  ;;  %v1707_v31 = vld [vmem:[%s1842_s11 + $0x148] ss:$16 sps:$4 sm:$0xff]   ;;  %v1715_v33 = vld [vmem:[%s1842_s11 + $0x12c] ss:$16 sps:$4 sm:$0xff]  }
  0x47   : > { %v1710_v32 = vld [vmem:[%s1842_s11 + $0x248] ss:$16 sps:$4 sm:$0xff]   ;;  %v1718_v34 = vld [vmem:[%s1842_s11 + $0x22c] ss:$16 sps:$4 sm:$0xff]  }
  0x48   : > { %1046 = vmatmul.mubr.bf16.vlgmr.msra.gmra.mxu1 %v1883_v40  ;;  %987 = vmatpush2.bf16.msra.mxu0 %v1631_v42  ;;  %v1713_v35 = vld [vmem:[%s1842_s11 + $0x128] ss:$16 sps:$4 sm:$0xff]   ;;  %v1721_v37 = vld [vmem:[%s1842_s11 + $0x10c] ss:$16 sps:$4 sm:$0xff]  }
  0x49   : > { %1057 = vmatpush1.bf16.msra.mxu1 %v1628_v41  ;;  %988 = vmatprep.subr.bf16.mxu0 %v1632_v43  ;;  %v1716_v36 = vld [vmem:[%s1842_s11 + $0x228] ss:$16 sps:$4 sm:$0xff]   ;;  %v1724_v38 = vld [vmem:[%s1842_s11 + $0x20c] ss:$16 sps:$4 sm:$0xff]  }
  0x4a   : > { %1058 = vmatprep.subr.bf16.mxu1 %v1636_v44  ;;  %1088 = vmatprep.mubr.bf16.mxu1 %v1676_v56  ;;  %v1719_v39 = vld [vmem:[%s1842_s11 + $0x108] ss:$16 sps:$4 sm:$0xff]   ;;  %v366_v44 = vld [vmem:[#allocation2 + $0x30] sm:$0xff] }
  0x4b   : > { %v1722_v41 = vld [vmem:[%s1842_s11 + $0x208] ss:$16 sps:$4 sm:$0xff]  }
  0x4c   : > { %989 = vmatpush2.bf16.msra.mxu0 %v1637_v46 }
  0x4d   : > { %1059 = vmatpush1.bf16.msra.mxu1 %v1634_v45  ;;  %990 = vmatprep.subr.bf16.mxu0 %v1638_v47 }
  0x4e   : > { %1060 = vmatprep.subr.bf16.mxu1 %v1642_v48  ;;  %v367_v48 = vld [vmem:[#allocation2] sm:$0xff] }
  0x50   : > { %991 = vmatpush2.bf16.msra.mxu0 %v1643_v50 }
  0x51   : > { %1061 = vmatpush1.bf16.msra.mxu1 %v1640_v49  ;;  %992 = vmatprep.subr.bf16.mxu0 %v1644_v51 }
  0x52   : > { %1062 = vmatprep.subr.bf16.mxu1 %v1648_v52  ;;  %v370_v52 = vld [vmem:[#allocation2 + $0x8] sm:$0xff] }
  0x54   : > { %993 = vmatpush2.bf16.msra.mxu0 %v1649_v54 }
  0x55   : > { %1063 = vmatpush1.bf16.msra.mxu1 %v1646_v53  ;;  %994 = vmatprep.subr.bf16.mxu0 %v1650_v55 }
  0x56   : > { %1064 = vmatprep.subr.bf16.mxu1 %v1654_v57  ;;  %v371_v57 = vld [vmem:[#allocation2 + $0x20] sm:$0xff] }
  0x58   : > { %995 = vmatpush2.bf16.msra.mxu0 %v1655_v59 }
  0x59   : > { %1065 = vmatpush1.bf16.msra.mxu1 %v1652_v58  ;;  %996 = vmatprep.subr.bf16.mxu0 %v1656_v60 }
  0x5a   : > { %1066 = vmatprep.subr.bf16.mxu1 %v1660_v61 }
  0x5c   : > { %997 = vmatpush2.bf16.msra.mxu0 %v1661_v63 }
  0x5d   : > { %1067 = vmatpush1.bf16.msra.mxu1 %v1658_v62  ;;  %998 = vmatprep.subr.bf16.mxu0 %v1662_v0  ;;  %v368_v62 = vld [vmem:[#allocation2 + $0x18] sm:$0xff] }
  0x5e   : > { %1068 = vmatprep.subr.bf16.mxu1 %v1666_v1 }
  0x60   : > { %999 = vmatpush2.bf16.msra.mxu0 %v1667_v3 }
  0x61   : > { %1069 = vmatpush1.bf16.msra.mxu1 %v1664_v2  ;;  %1000 = vmatprep.subr.bf16.mxu0 %v1668_v4  ;;  %v369_v2 = vld [vmem:[#allocation2 + $0x10] sm:$0xff] }
  0x62   : > { %1070 = vmatprep.subr.bf16.mxu1 %v1672_v5 }
  0x64   : > { %1001 = vmatpush2.bf16.msra.mxu0 %v1673_v8  ;;  %v372_v8 = vld [vmem:[#allocation2 + $0x28] sm:$0xff] }
  0x65   : > { %1071 = vmatpush1.bf16.msra.mxu1 %v1670_v6  ;;  %1099 = vmatprep.subr.bf16.mxu0 %v1682_v10 }
  0x66   : > { %1072 = vmatprep.subr.bf16.mxu1 %v1679_v9 }
  0x67   : > { %1003 = vmatmul.mubr.bf16.vlgmr.msra.gmra.mxu0 %v1920_v11 }
  0x68   : > { %1100 = vmatpush1.bf16.msra.mxu0 %v1680_v13  ;;  %1131 = vmatprep.mubr.bf16.mxu0 %v1766_v7  ;;  %v1703_v7 = vld [vmem:[%s1842_s11 + $0x16c] ss:$16 sps:$4 sm:$0xff]  }
  0x69   : > { %1073 = vmatpush2.bf16.msra.mxu1 %v1677_v12  ;;  %1101 = vmatprep.subr.bf16.mxu0 %v1688_v15  ;;  %v373_v13 = vld [vmem:[#allocation2 + $0x38] sm:$0xff] }
  0x6a   : > { %1074 = vmatprep.subr.bf16.mxu1 %v1685_v14 }
  0x6c   : > { %1102 = vmatpush1.bf16.msra.mxu0 %v1686_v17 }
  0x6d   : > { %1075 = vmatpush2.bf16.msra.mxu1 %v1683_v16  ;;  %1103 = vmatprep.subr.bf16.mxu0 %v1694_v19 }
  0x6e   : > { %1076 = vmatprep.subr.bf16.mxu1 %v1691_v18 }
  0x70   : > { %1104 = vmatpush1.bf16.msra.mxu0 %v1692_v21 }
  0x71   : > { %1077 = vmatpush2.bf16.msra.mxu1 %v1689_v20  ;;  %1105 = vmatprep.subr.bf16.mxu0 %v1700_v23 }
  0x72   : > { %1078 = vmatprep.subr.bf16.mxu1 %v1697_v22 }
  0x74   : > { %1106 = vmatpush1.bf16.msra.mxu0 %v1698_v25 }
  0x75   : > { %1079 = vmatpush2.bf16.msra.mxu1 %v1695_v24  ;;  %1107 = vmatprep.subr.bf16.mxu0 %v1706_v26 }
  0x76   : > { %1080 = vmatprep.subr.bf16.mxu1 %v1703_v7 }
  0x78   : > { %1108 = vmatpush1.bf16.msra.mxu0 %v1704_v28 }
  0x79   : > { %1081 = vmatpush2.bf16.msra.mxu1 %v1701_v27  ;;  %1109 = vmatprep.subr.bf16.mxu0 %v1712_v30 }
  0x7a   : > { %1082 = vmatprep.subr.bf16.mxu1 %v1709_v29 }
  0x7c   : > { %1110 = vmatpush1.bf16.msra.mxu0 %v1710_v32 }
  0x7d   : > { %1083 = vmatpush2.bf16.msra.mxu1 %v1707_v31  ;;  %1111 = vmatprep.subr.bf16.mxu0 %v1718_v34 }
  0x7e   : > { %1084 = vmatprep.subr.bf16.mxu1 %v1715_v33 }
  0x80   : > { %1112 = vmatpush1.bf16.msra.mxu0 %v1716_v36 }
  0x81   : > { %1085 = vmatpush2.bf16.msra.mxu1 %v1713_v35  ;;  %1113 = vmatprep.subr.bf16.mxu0 %v1724_v38 }
  0x82   : > { %1086 = vmatprep.subr.bf16.mxu1 %v1721_v37 }
  0x84   : > { %1114 = vmatpush1.bf16.msra.mxu0 %v1722_v41 }
  0x85   : > { %1087 = vmatpush2.bf16.msra.mxu1 %v1719_v39 }
  0x87   : > { %1132 = vmatmul.mubr.bf16.vlgmr.msra.gmra.mxu0 %v1883_v40 }
  0x88   : > { %1089 = vmatmul.mubr.bf16.vlgmr.msra.gmra.mxu1 %v1920_v11 }
 0x108   : > { %v1047_v42 = vpop.f32.mrf.mxu1 }
 0x10a   : > { %v1049_v43 = vpop.f32.mrf.mxu1 }
 0x10c   : > { %v1051_v47 = vpop.f32.mrf.mxu1 }
 0x10e   : > { %v1053_v56 = vpop.f32.mrf.mxu1 }
 0x127   : > { %v1004_v45 = vpop.f32.mrf.mxu0 }
 0x128   : > { %v1048_v46 = vadd.f32 %v1047_v42, %v1004_v45 }
 0x129   : > { %v1006_v49 = vpop.f32.mrf.mxu0 }
 0x12a   : > { %v1142_v50 = vadd.f32 %v1048_v46, %v366_v44  ;;  %v1050_v51 = vadd.f32 %v1049_v43, %v1006_v49 }
 0x12b   : > { %v1008_v53 = vpop.f32.mrf.mxu0 }
 0x12c   : > { %1150 = vst [vmem:[#allocation2 + $0x30] sm:$0xff] %v1142_v50  ;;  %v1143_v54 = vadd.f32 %v1050_v51, %v367_v48  ;;  %v1052_v55 = vadd.f32 %v1051_v47, %v1008_v53 }
 0x12d   : > { %v1010_v58 = vpop.f32.mrf.mxu0 }
 0x12e   : > { %1151 = vst [vmem:[#allocation2] sm:$0xff] %v1143_v54  ;;  %v1146_v40 = vadd.f32 %v1052_v55, %v370_v52  ;;  %v1054_v59 = vadd.f32 %v1053_v56, %v1010_v58 }
 0x130   : > { %1154 = vst [vmem:[#allocation2 + $0x8] sm:$0xff] %v1146_v40  ;;  %v1147_v60 = vadd.f32 %v1054_v59, %v371_v57 }
 0x132   : > { %1155 = vst [vmem:[#allocation2 + $0x20] sm:$0xff] %v1147_v60 }
 0x147   : > { %v1133_v63 = vpop.f32.mrf.mxu0 }
 0x148   : > { %v1090_v61 = vpop.f32.mrf.mxu1 }
 0x149   : > { %v1134_v0 = vadd.f32 %v1133_v63, %v1090_v61  ;;  %v1135_v3 = vpop.f32.mrf.mxu0 }
 0x14a   : > { %v1092_v1 = vpop.f32.mrf.mxu1 }
 0x14b   : > { %v1144_v4 = vadd.f32 %v1134_v0, %v368_v62  ;;  %v1136_v5 = vadd.f32 %v1135_v3, %v1092_v1  ;;  %v1137_v9 = vpop.f32.mrf.mxu0 }
 0x14c   : > { %v1094_v6 = vpop.f32.mrf.mxu1 }
 0x14d   : > { %1152 = vst [vmem:[#allocation2 + $0x18] sm:$0xff] %v1144_v4  ;;  %v1145_v10 = vadd.f32 %v1136_v5, %v369_v2  ;;  %v1138_v11 = vadd.f32 %v1137_v9, %v1094_v6  ;;  %v1139_v14 = vpop.f32.mrf.mxu0 }
 0x14e   : > { %v1096_v12 = vpop.f32.mrf.mxu1 }
 0x14f   : > { %1153 = vst [vmem:[#allocation2 + $0x10] sm:$0xff] %v1145_v10  ;;  %v1148_v15 = vadd.f32 %v1138_v11, %v372_v8  ;;  %v1140_v16 = vadd.f32 %v1139_v14, %v1096_v12  ;;  %1161 = sbr.rel (%p1518_p11) target bundleno = 358 (0x166), region = 70 }
 0x151   : > { %1156 = vst [vmem:[#allocation2 + $0x28] sm:$0xff] %v1148_v15  ;;  %v1149_v17 = vadd.f32 %v1140_v16, %v373_v13 }
 0x153   : > { %1157 = vst [vmem:[#allocation2 + $0x38] sm:$0xff] %v1149_v17 }
 0x154   : > { %v1172_v18 = vlaneseq  ;;  %v1170_v20 = vld [vmem:[%s1992_s2] sm:$0xf]  ;;  %v1162_v22 = vld [vmem:[#allocation2 + $0x30] sm:$0xff]  ;;  %v1164_v27 = vld [vmem:[#allocation2 + $0x18] sm:$0xff] }
 0x155   : > { %v1200_v21 = vld [vmem:[%s1993_s3] sm:$0xf]  ;;  %v1166_v28 = vld [vmem:[#allocation2 + $0x8] sm:$0xff] }
 0x156   : > { %v1173_v19 = vshrl.u32 %v1172_v18, 7  ;;  %v1163_v23 = vld [vmem:[#allocation2] sm:$0xff]  ;;  %v1165_v34 = vld [vmem:[#allocation2 + $0x10] sm:$0xff] }
 0x157   : > { %v1167_v29 = vld [vmem:[#allocation2 + $0x20] sm:$0xff] }
 0x158   : > { %v1174_v24 = vsub.s32 0, %v1173_v19  ;;  %v1178_v25 = vsub.s32 1, %v1173_v19  ;;  %v1182_v7 = vsub.s32 2, %v1173_v19  ;;  %v1186_v26 = vsub.s32 3, %v1173_v19  ;;  %v1168_v35 = vld [vmem:[#allocation2 + $0x28] sm:$0xff] }
 0x15a   : > { %v1175_v30 = vrot.slane %v1170_v20, %v1174_v24  ;;  %v1179_v31 = vrot.slane %v1170_v20, %v1178_v25  ;;  %v1205_v32 = vrot.slane %v1200_v21, %v1174_v24  ;;  %v1209_v33 = vrot.slane %v1200_v21, %v1178_v25  ;;  %v1169_v36 = vld [vmem:[#allocation2 + $0x38] sm:$0xff] }
 0x15b   : > { %v1183_v37 = vrot.slane %v1170_v20, %v1182_v7  ;;  %v1187_v38 = vrot.slane %v1170_v20, %v1186_v26  ;;  %v1213_v39 = vrot.slane %v1200_v21, %v1182_v7  ;;  %v1217_v41 = vrot.slane %v1200_v21, %v1186_v26 }
 0x15c   : > { %v1192_v42 = vmul.f32 %v1175_v30, %v1162_v22  ;;  %v1193_v43 = vmul.f32 %v1179_v31, %v1163_v23  ;;  %v1196_v44 = vmul.f32 %v1175_v30, %v1166_v28  ;;  %v1197_v45 = vmul.f32 %v1179_v31, %v1167_v29 }
 0x15d   : > { %v1194_v46 = vmul.f32 %v1183_v37, %v1164_v27  ;;  %v1195_v47 = vmul.f32 %v1187_v38, %v1165_v34  ;;  %v1198_v48 = vmul.f32 %v1183_v37, %v1168_v35  ;;  %v1199_v49 = vmul.f32 %v1187_v38, %v1169_v36 }
 0x15e   : > { %v1222_v50 = vadd.f32 %v1205_v32, %v1192_v42  ;;  %v1223_v51 = vadd.f32 %v1209_v33, %v1193_v43  ;;  %v1226_v52 = vadd.f32 %v1205_v32, %v1196_v44  ;;  %v1227_v53 = vadd.f32 %v1209_v33, %v1197_v45 }
 0x15f   : > { %v1224_v54 = vadd.f32 %v1213_v39, %v1194_v46  ;;  %v1225_v55 = vadd.f32 %v1217_v41, %v1195_v47  ;;  %v1228_v56 = vadd.f32 %v1213_v39, %v1198_v48  ;;  %v1229_v57 = vadd.f32 %v1217_v41, %v1199_v49 }
 0x160   : > { %v1230_v58 = vmax.f32 %v1222_v50, 0.0  ;;  %v1231_v40 = vmax.f32 %v1223_v51, 0.0  ;;  %v1234_v59 = vmax.f32 %v1226_v52, 0.0  ;;  %v1235_v60 = vmax.f32 %v1227_v53, 0.0 }
 0x161   : > { %v1232_v61 = vmax.f32 %v1224_v54, 0.0  ;;  %v1233_v62 = vmax.f32 %v1225_v55, 0.0  ;;  %v1236_v63 = vmax.f32 %v1228_v56, 0.0  ;;  %v1237_v0 = vmax.f32 %v1229_v57, 0.0 }
 0x162   : > { %v1529_v1 = vpack.c.bf16 %v1231_v40, %v1230_v58  ;;  %v1531_v2 = vpack.c.bf16 %v1235_v60, %v1234_v59 }
 0x163   : > { %v1530_v3 = vpack.c.bf16 %v1233_v62, %v1232_v61  ;;  %v1532_v4 = vpack.c.bf16 %v1237_v0, %v1236_v63 }
 0x164   : > { %1262 = vst [vmem:[%s1994_s4] sm:$0xff] %v1529_v1  ;;  %1264 = vst [vmem:[%s1994_s4 + $0x10] sm:$0xff] %v1531_v2 }
 0x165   : > { %1263 = vst [vmem:[%s1994_s4 + $0x8] sm:$0xff] %v1530_v3  ;;  %1265 = vst [vmem:[%s1994_s4 + $0x18] sm:$0xff] %v1532_v4 }
 0x166 PF: > { %s14_s19 = sadd.s32 1, %s1763_s19   ;;  %s1995_s15 = smov %s1751_s16 }
 0x167   : > { %p11_p12 = scmp.ge.s32.totalorder %s14_s19, 8   ;;  %s1996_s16 = smov %s1827_s23 }
 0x168   : > { %s1997_s17 = smov %s1759_s18  ;;  %s1998_s18 = smov %s2000_s20 }
 0x169   :  { %13 = sbr.rel (!%p11_p12) target bundleno = 3 (0x3), region = 120 }

// kernel: resnet18_forward.37
= control target key start
LH: loop header
LB: loop body
LE: loop exit
PB: predicated region body
PF: predicated region fallthrough
CT: control target
= control target key end

     0   :  { %s1052_s1 = inlined_call_operand.vmem [shape: bf16[256,512], index: 1, kind: input, shape index: {}]   ;;  %s1053_s0 = inlined_call_operand.vmem [shape: bf16[16,256], index: 0, kind: input, shape index: {}]   ;;  %s1054_s2 = inlined_call_operand.vmem [shape: f32[1,512], index: 2, kind: input, shape index: {}]   ;;  %s1055_s3 = inlined_call_operand.vmem [shape: f32[1,512], index: 3, kind: input, shape index: {}]   ;;  %s1056_s4 = inlined_call_operand.vmem [shape: bf16[16,512], index: 4, kind: output, shape index: {}]  }
   0x1   :  { %v712_v0 = vld [vmem:[%s1052_s1 + $0xe4] ss:$16 sps:$4 sm:$0xff]   ;;  %v714_v1 = vld [vmem:[%s1052_s1 + $0xec] ss:$16 sps:$4 sm:$0xff]   ;;  %v716_v2 = vld [vmem:[%s1052_s1 + $0xe0] ss:$16 sps:$4 sm:$0xff]  }
   0x2   :  { %433 = vmatprep.subr.bf16.mxu0 %v712_v0  ;;  %v717_v3 = vld [vmem:[%s1052_s1 + $0xe8] ss:$16 sps:$4 sm:$0xff]   ;;  %476 = vmatprep.subr.bf16.mxu1 %v714_v1  ;;  %v718_v4 = vld [vmem:[%s1052_s1 + $0xc4] ss:$16 sps:$4 sm:$0xff]   ;;  %v720_v5 = vld [vmem:[%s1052_s1 + $0xcc] ss:$16 sps:$4 sm:$0xff]  }
   0x3   :  { %434 = vmatpush1.bf16.msra.mxu0 %v716_v2  ;;  %477 = vmatpush1.bf16.msra.mxu1 %v717_v3  ;;  %v722_v6 = vld [vmem:[%s1052_s1 + $0xc0] ss:$16 sps:$4 sm:$0xff]   ;;  %v723_v7 = vld [vmem:[%s1052_s1 + $0xc8] ss:$16 sps:$4 sm:$0xff]   ;;  %v724_v8 = vld [vmem:[%s1052_s1 + $0xa4] ss:$16 sps:$4 sm:$0xff]   ;;  %v548_v2 = vlaneseq }
   0x4   :  { %435 = vmatprep.subr.bf16.mxu0 %v718_v4  ;;  %478 = vmatprep.subr.bf16.mxu1 %v720_v5  ;;  %v726_v9 = vld [vmem:[%s1052_s1 + $0xac] ss:$16 sps:$4 sm:$0xff]   ;;  %v728_v10 = vld [vmem:[%s1052_s1 + $0xa0] ss:$16 sps:$4 sm:$0xff]   ;;  %v729_v11 = vld [vmem:[%s1052_s1 + $0xa8] ss:$16 sps:$4 sm:$0xff]  }
   0x5   :  { %v730_v12 = vld [vmem:[%s1052_s1 + $0x84] ss:$16 sps:$4 sm:$0xff]   ;;  %v732_v13 = vld [vmem:[%s1052_s1 + $0x8c] ss:$16 sps:$4 sm:$0xff]   ;;  %v734_v14 = vld [vmem:[%s1052_s1 + $0x80] ss:$16 sps:$4 sm:$0xff]  }
   0x6   :  { %v735_v15 = vld [vmem:[%s1052_s1 + $0x88] ss:$16 sps:$4 sm:$0xff]   ;;  %v736_v16 = vld [vmem:[%s1052_s1 + $0x64] ss:$16 sps:$4 sm:$0xff]   ;;  %v738_v17 = vld [vmem:[%s1052_s1 + $0x6c] ss:$16 sps:$4 sm:$0xff]  }
   0x7   :  { %436 = vmatpush1.bf16.msra.mxu0 %v722_v6  ;;  %479 = vmatpush1.bf16.msra.mxu1 %v723_v7  ;;  %v740_v18 = vld [vmem:[%s1052_s1 + $0x60] ss:$16 sps:$4 sm:$0xff]   ;;  %v741_v19 = vld [vmem:[%s1052_s1 + $0x68] ss:$16 sps:$4 sm:$0xff]   ;;  %v742_v20 = vld [vmem:[%s1052_s1 + $0x44] ss:$16 sps:$4 sm:$0xff]  }
   0x8   :  { %437 = vmatprep.subr.bf16.mxu0 %v724_v8  ;;  %480 = vmatprep.subr.bf16.mxu1 %v726_v9  ;;  %v744_v21 = vld [vmem:[%s1052_s1 + $0x4c] ss:$16 sps:$4 sm:$0xff]   ;;  %v746_v22 = vld [vmem:[%s1052_s1 + $0x40] ss:$16 sps:$4 sm:$0xff]   ;;  %v747_v23 = vld [vmem:[%s1052_s1 + $0x48] ss:$16 sps:$4 sm:$0xff]  }
   0x9   :  { %v748_v24 = vld [vmem:[%s1052_s1 + $0x24] ss:$16 sps:$4 sm:$0xff]   ;;  %v750_v25 = vld [vmem:[%s1052_s1 + $0x2c] ss:$16 sps:$4 sm:$0xff]   ;;  %v752_v26 = vld [vmem:[%s1052_s1 + $0x20] ss:$16 sps:$4 sm:$0xff]  }
   0xa   :  { %v753_v27 = vld [vmem:[%s1052_s1 + $0x28] ss:$16 sps:$4 sm:$0xff]   ;;  %v754_v28 = vld [vmem:[%s1052_s1 + $0x4] ss:$16 sps:$4 sm:$0xff]   ;;  %v756_v29 = vld [vmem:[%s1052_s1 + $0xc] ss:$16 sps:$4 sm:$0xff]  }
   0xb   :  { %438 = vmatpush1.bf16.msra.mxu0 %v728_v10  ;;  %481 = vmatpush1.bf16.msra.mxu1 %v729_v11  ;;  %v758_v30 = vld [vmem:[%s1052_s1] ss:$16 sps:$4 sm:$0xff]   ;;  %v759_v31 = vld [vmem:[%s1052_s1 + $0x8] ss:$16 sps:$4 sm:$0xff]   ;;  %v760_v32 = vld [vmem:[%s1052_s1 + $0x1e4] ss:$16 sps:$4 sm:$0xff]  }
   0xc   :  { %439 = vmatprep.subr.bf16.mxu0 %v730_v12  ;;  %482 = vmatprep.subr.bf16.mxu1 %v732_v13  ;;  %v762_v33 = vld [vmem:[%s1052_s1 + $0x1ec] ss:$16 sps:$4 sm:$0xff]   ;;  %v764_v34 = vld [vmem:[%s1052_s1 + $0x1e0] ss:$16 sps:$4 sm:$0xff]   ;;  %v765_v35 = vld [vmem:[%s1052_s1 + $0x1e8] ss:$16 sps:$4 sm:$0xff]  }
   0xd   :  { %v766_v36 = vld [vmem:[%s1052_s1 + $0x1c4] ss:$16 sps:$4 sm:$0xff]   ;;  %v768_v37 = vld [vmem:[%s1052_s1 + $0x1cc] ss:$16 sps:$4 sm:$0xff]   ;;  %v770_v38 = vld [vmem:[%s1052_s1 + $0x1c0] ss:$16 sps:$4 sm:$0xff]  }
   0xe   :  { %v771_v39 = vld [vmem:[%s1052_s1 + $0x1c8] ss:$16 sps:$4 sm:$0xff]   ;;  %v772_v40 = vld [vmem:[%s1052_s1 + $0x1a4] ss:$16 sps:$4 sm:$0xff]   ;;  %v774_v41 = vld [vmem:[%s1052_s1 + $0x1ac] ss:$16 sps:$4 sm:$0xff]  }
   0xf   :  { %440 = vmatpush1.bf16.msra.mxu0 %v734_v14  ;;  %483 = vmatpush1.bf16.msra.mxu1 %v735_v15  ;;  %v776_v42 = vld [vmem:[%s1052_s1 + $0x1a0] ss:$16 sps:$4 sm:$0xff]   ;;  %v777_v43 = vld [vmem:[%s1052_s1 + $0x1a8] ss:$16 sps:$4 sm:$0xff]   ;;  %v778_v44 = vld [vmem:[%s1052_s1 + $0x184] ss:$16 sps:$4 sm:$0xff]  }
  0x10   :  { %441 = vmatprep.subr.bf16.mxu0 %v736_v16  ;;  %484 = vmatprep.subr.bf16.mxu1 %v738_v17  ;;  %v780_v45 = vld [vmem:[%s1052_s1 + $0x18c] ss:$16 sps:$4 sm:$0xff]   ;;  %v782_v47 = vld [vmem:[%s1052_s1 + $0x180] ss:$16 sps:$4 sm:$0xff]   ;;  %v783_v48 = vld [vmem:[%s1052_s1 + $0x188] ss:$16 sps:$4 sm:$0xff]  }
  0x11   :  { %v810_v46 = vld [vmem:[%s1053_s0 + $0x4] ss:$8 sps:$4 sm:$0xff]   ;;  %v788_v51 = vld [vmem:[%s1052_s1 + $0x160] ss:$16 sps:$4 sm:$0xff]   ;;  %v789_v52 = vld [vmem:[%s1052_s1 + $0x168] ss:$16 sps:$4 sm:$0xff]  }
  0x12   :  { %v784_v49 = vld [vmem:[%s1052_s1 + $0x164] ss:$16 sps:$4 sm:$0xff]   ;;  %v786_v50 = vld [vmem:[%s1052_s1 + $0x16c] ss:$16 sps:$4 sm:$0xff]   ;;  %465 = vmatprep.mubr.bf16.mxu0 %v810_v46  ;;  %508 = vmatprep.mubr.bf16.mxu1 %v810_v46  ;;  %v794_v55 = vld [vmem:[%s1052_s1 + $0x140] ss:$16 sps:$4 sm:$0xff]  }
  0x13   :  { %442 = vmatpush1.bf16.msra.mxu0 %v740_v18  ;;  %485 = vmatpush1.bf16.msra.mxu1 %v741_v19  ;;  %v790_v53 = vld [vmem:[%s1052_s1 + $0x144] ss:$16 sps:$4 sm:$0xff]   ;;  %v792_v54 = vld [vmem:[%s1052_s1 + $0x14c] ss:$16 sps:$4 sm:$0xff]   ;;  %v795_v56 = vld [vmem:[%s1052_s1 + $0x148] ss:$16 sps:$4 sm:$0xff]  }
  0x14   :  { %443 = vmatprep.subr.bf16.mxu0 %v742_v20  ;;  %486 = vmatprep.subr.bf16.mxu1 %v744_v21  ;;  %v796_v57 = vld [vmem:[%s1052_s1 + $0x124] ss:$16 sps:$4 sm:$0xff]   ;;  %v798_v58 = vld [vmem:[%s1052_s1 + $0x12c] ss:$16 sps:$4 sm:$0xff]   ;;  %v800_v59 = vld [vmem:[%s1052_s1 + $0x120] ss:$16 sps:$4 sm:$0xff]  }
  0x15   :  { %v801_v60 = vld [vmem:[%s1052_s1 + $0x128] ss:$16 sps:$4 sm:$0xff]   ;;  %v802_v61 = vld [vmem:[%s1052_s1 + $0x104] ss:$16 sps:$4 sm:$0xff]   ;;  %v804_v62 = vld [vmem:[%s1052_s1 + $0x10c] ss:$16 sps:$4 sm:$0xff]  }
  0x16   :  { %v806_v63 = vld [vmem:[%s1052_s1 + $0x100] ss:$16 sps:$4 sm:$0xff]   ;;  %v807_v0 = vld [vmem:[%s1052_s1 + $0x108] ss:$16 sps:$4 sm:$0xff]   ;;  %v549_v3 = vshrl.u32 %v548_v2, 7 }
  0x17   :  { %444 = vmatpush1.bf16.msra.mxu0 %v746_v22  ;;  %487 = vmatpush1.bf16.msra.mxu1 %v747_v23  ;;  %v808_v1 = vld [vmem:[%s1053_s0] ss:$8 sps:$4 sm:$0xff]  }
  0x18   :  { %445 = vmatprep.subr.bf16.mxu0 %v748_v24  ;;  %488 = vmatprep.subr.bf16.mxu1 %v750_v25  ;;  %v550_v4 = vsub.s32 0, %v549_v3  ;;  %v558_v5 = vsub.s32 2, %v549_v3  ;;  %v546_v6 = vld [vmem:[%s1054_s2] sm:$0xf]  ;;  %v554_v7 = vsub.s32 1, %v549_v3  ;;  %v562_v8 = vsub.s32 3, %v549_v3 }
  0x19   :  { %v576_v10 = vld [vmem:[%s1055_s3] sm:$0xf] }
  0x1a   :  { %v551_v9 = vrot.slane %v546_v6, %v550_v4  ;;  %v559_v11 = vrot.slane %v546_v6, %v558_v5  ;;  %v555_v12 = vrot.slane %v546_v6, %v554_v7  ;;  %v563_v13 = vrot.slane %v546_v6, %v562_v8 }
  0x1b   :  { %446 = vmatpush1.bf16.msra.mxu0 %v752_v26  ;;  %489 = vmatpush1.bf16.msra.mxu1 %v753_v27  ;;  %v581_v15 = vrot.slane %v576_v10, %v550_v4  ;;  %v589_v17 = vrot.slane %v576_v10, %v558_v5  ;;  %v585_v20 = vrot.slane %v576_v10, %v554_v7 }
  0x1c   :  { %447 = vmatprep.subr.bf16.mxu0 %v754_v28  ;;  %490 = vmatprep.subr.bf16.mxu1 %v756_v29  ;;  %v593_v21 = vrot.slane %v576_v10, %v562_v8 }
  0x1f   :  { %448 = vmatpush1.bf16.msra.mxu0 %v758_v30  ;;  %491 = vmatpush1.bf16.msra.mxu1 %v759_v31 }
  0x20   :  { %449 = vmatprep.subr.bf16.mxu0 %v760_v32  ;;  %492 = vmatprep.subr.bf16.mxu1 %v762_v33 }
  0x23   :  { %450 = vmatpush2.bf16.msra.mxu0 %v764_v34  ;;  %493 = vmatpush2.bf16.msra.mxu1 %v765_v35 }
  0x24   :  { %451 = vmatprep.subr.bf16.mxu0 %v766_v36  ;;  %494 = vmatprep.subr.bf16.mxu1 %v768_v37 }
  0x27   :  { %452 = vmatpush2.bf16.msra.mxu0 %v770_v38  ;;  %495 = vmatpush2.bf16.msra.mxu1 %v771_v39 }
  0x28   :  { %453 = vmatprep.subr.bf16.mxu0 %v772_v40  ;;  %496 = vmatprep.subr.bf16.mxu1 %v774_v41 }
  0x2b   :  { %454 = vmatpush2.bf16.msra.mxu0 %v776_v42  ;;  %497 = vmatpush2.bf16.msra.mxu1 %v777_v43 }
  0x2c   :  { %455 = vmatprep.subr.bf16.mxu0 %v778_v44  ;;  %498 = vmatprep.subr.bf16.mxu1 %v780_v45 }
  0x2f   :  { %456 = vmatpush2.bf16.msra.mxu0 %v782_v47  ;;  %499 = vmatpush2.bf16.msra.mxu1 %v783_v48 }
  0x30   :  { %457 = vmatprep.subr.bf16.mxu0 %v784_v49  ;;  %500 = vmatprep.subr.bf16.mxu1 %v786_v50 }
  0x33   :  { %458 = vmatpush2.bf16.msra.mxu0 %v788_v51  ;;  %501 = vmatpush2.bf16.msra.mxu1 %v789_v52 }
  0x34   :  { %459 = vmatprep.subr.bf16.mxu0 %v790_v53  ;;  %502 = vmatprep.subr.bf16.mxu1 %v792_v54 }
  0x37   :  { %460 = vmatpush2.bf16.msra.mxu0 %v794_v55  ;;  %503 = vmatpush2.bf16.msra.mxu1 %v795_v56 }
  0x38   :  { %461 = vmatprep.subr.bf16.mxu0 %v796_v57  ;;  %504 = vmatprep.subr.bf16.mxu1 %v798_v58 }
  0x3b   :  { %462 = vmatpush2.bf16.msra.mxu0 %v800_v59  ;;  %505 = vmatpush2.bf16.msra.mxu1 %v801_v60 }
  0x3c   :  { %463 = vmatprep.subr.bf16.mxu0 %v802_v61  ;;  %506 = vmatprep.subr.bf16.mxu1 %v804_v62 }
  0x3f   :  { %464 = vmatpush2.bf16.msra.mxu0 %v806_v63  ;;  %507 = vmatpush2.bf16.msra.mxu1 %v807_v0 }
  0x42   :  { %466 = vmatmul.mubr.bf16.vlgmr.msra.gmra.mxu0 %v808_v1  ;;  %509 = vmatmul.mubr.bf16.vlgmr.msra.gmra.mxu1 %v808_v1 }
 0x102   :  { %v467_v14 = vpop.f32.mrf.mxu0  ;;  %v510_v16 = vpop.f32.mrf.mxu1 }
 0x103   :  { %v568_v18 = vmul.f32 %v551_v9, %v467_v14  ;;  %v570_v19 = vmul.f32 %v559_v11, %v510_v16 }
 0x104   :  { %v469_v22 = vpop.f32.mrf.mxu0  ;;  %v512_v23 = vpop.f32.mrf.mxu1 }
 0x105   :  { %v569_v24 = vmul.f32 %v555_v12, %v469_v22  ;;  %v571_v25 = vmul.f32 %v563_v13, %v512_v23  ;;  %v598_v28 = vadd.f32 %v581_v15, %v568_v18  ;;  %v600_v29 = vadd.f32 %v589_v17, %v570_v19 }
 0x106   :  { %v471_v26 = vpop.f32.mrf.mxu0  ;;  %v514_v27 = vpop.f32.mrf.mxu1 }
 0x107   :  { %v599_v30 = vadd.f32 %v585_v20, %v569_v24  ;;  %v601_v31 = vadd.f32 %v593_v21, %v571_v25  ;;  %v572_v32 = vmul.f32 %v551_v9, %v471_v26  ;;  %v574_v33 = vmul.f32 %v559_v11, %v514_v27 }
 0x108   :  { %v473_v34 = vpop.f32.mrf.mxu0  ;;  %v516_v35 = vpop.f32.mrf.mxu1 }
 0x109   :  { %v708_v36 = vpack.c.bf16 %v599_v30, %v598_v28  ;;  %v709_v37 = vpack.c.bf16 %v601_v31, %v600_v29  ;;  %v573_v38 = vmul.f32 %v555_v12, %v473_v34  ;;  %v575_v39 = vmul.f32 %v563_v13, %v516_v35 }
 0x10a   :  { %v602_v40 = vadd.f32 %v581_v15, %v572_v32  ;;  %v604_v41 = vadd.f32 %v589_v17, %v574_v33 }
 0x10b   :  { %630 = vst [vmem:[%s1056_s4] sm:$0xff] %v708_v36  ;;  %631 = vst [vmem:[%s1056_s4 + $0x8] sm:$0xff] %v709_v37  ;;  %v603_v42 = vadd.f32 %v585_v20, %v573_v38  ;;  %v605_v43 = vadd.f32 %v593_v21, %v575_v39 }
 0x10d   :  { %v710_v44 = vpack.c.bf16 %v603_v42, %v602_v40  ;;  %v711_v45 = vpack.c.bf16 %v605_v43, %v604_v41 }
 0x10f   :  { %632 = vst [vmem:[%s1056_s4 + $0x10] sm:$0xff] %v710_v44  ;;  %633 = vst [vmem:[%s1056_s4 + $0x18] sm:$0xff] %v711_v45 }

// kernel: resnet18_forward.39
= control target key start
LH: loop header
LB: loop body
LE: loop exit
PB: predicated region body
PF: predicated region fallthrough
CT: control target
= control target key end

     0   :  { %s2167_s18 = smov 0   ;;  %s2169_s19 = smov 0   ;;  %s2408_s0 = inlined_call_operand.vmem [shape: bf16[16,4608], index: 0, kind: input, shape index: {}]   ;;  %s2409_s1 = inlined_call_operand.vmem [shape: bf16[4608,512], index: 1, kind: input, shape index: {}]   ;;  %s2410_s2 = inlined_call_operand.vmem [shape: f32[1,512], index: 2, kind: input, shape index: {}]   ;;  %s2411_s3 = inlined_call_operand.vmem [shape: f32[1,512], index: 3, kind: input, shape index: {}]   ;;  %s2412_s4 = inlined_call_operand.vmem [shape: bf16[16,512], index: 4, kind: input, shape index: {}]   ;;  %s2413_s5 = inlined_call_operand.vmem [shape: bf16[16,512], index: 5, kind: output, shape index: {}]  }
   0x1   :  { %s2171_s20 = smov 0   ;;  %s2173_s21 = smov 0  }
   0x2   :  { %s2175_s22 = smov 0  }
   0x3 LB: > { %s27_s23 = sadd.s32 1, %s2130_s21  ;;  %p50_p1 = scmp.ne.s32.totalorder %s2122_s19, %s2118_s18  ;;  %s2134_s22 = sphi %s2175_s22, %s15_s22   ;;  %s2130_s21 = sphi %s2173_s21, %s2417_s21   ;;  %s2126_s20 = sphi %s2171_s20, %s2416_s20   ;;  %s2122_s19 = sphi %s2169_s19, %s2415_s19   ;;  %s2118_s18 = sphi %s2167_s18, %s2414_s18  }
   0x4   : > { %p28_p0 = scmp.ge.s32.totalorder %s27_s23, 9  ;;  %p51_p2 = scmp.eq.s32.totalorder %s2134_s22, 0 }
   0x5   : > { %s43_s25 = sadd.s32 1, %s2122_s19  ;;  %p1700_p5 = scmp.ge.s32.totalorder %s2134_s22, 9 }
   0x6   : > { %s2419_s23 = smov (%p28_p0, %s27_s23), 0  ;;  %p52_p3 = por %p51_p2, %p50_p1 }
   0x7   : > { %s39_s24 = ssub.s32 %s2130_s21, %s2419_s23  ;;  %243 = sbr.rel (%p1700_p5) target bundleno = 18 (0x12), region = 28 }
   0x8   : > { %p41_p4 = scmp.eq.s32.totalorder %s39_s24, 0 }
   0xa   : > { %s2202_s26 = scalar_select %p41_p4, %s2122_s19, %s43_s25  }
   0xc   : > { %246 = sbr.rel (!%p52_p3) target bundleno = 18 (0x12), region = 32  ;;  %s248_s27 = sand.u32 (%p52_p3), 1, %s2122_s19  }
   0xd   : > { %s1851_s28 = sshll.u32 (%p52_p3), %s2130_s21, 4  ;;  %s1701_s29 = sshll.u32 (%p52_p3), %s248_s27, 5 }
   0xe   : > { %s256_s7 = scalar_lea.vmem (%p52_p3), %s2408_s0, %s1851_s28  ;;  %s250_s8 = scalar_lea.vmem (%p52_p3), [#allocation3], %s1701_s29 }
   0xf   : > { %v269_v0 = vld [vmem:[%s256_s7] sm:$0xff] (%p52_p3)  ;;  %v271_v1 = vld [vmem:[%s256_s7 + $0x8] sm:$0xff] (%p52_p3)  ;;  %v273_v2 = vld [vmem:[%s256_s7 + $0x90] sm:$0xff] (%p52_p3) }
  0x10   : > { %270 = vst [vmem:[%s250_s8] sm:$0xff] (%p52_p3), %v269_v0  ;;  %272 = vst [vmem:[%s250_s8 + $0x8] sm:$0xff] (%p52_p3), %v271_v1  ;;  %v275_v3 = vld [vmem:[%s256_s7 + $0x98] sm:$0xff] (%p52_p3) }
  0x11   : > { %274 = vst [vmem:[%s250_s8 + $0x10] sm:$0xff] %v273_v2  ;;  %276 = vst [vmem:[%s250_s8 + $0x18] sm:$0xff] %v275_v3 }
  0x12 PF: > { %p1704_p6 = scmp.ge.s32.totalorder %s2134_s22, 1  ;;  %p296_p7 = scmp.lt.s32.totalorder %s2134_s22, 10 }
  0x14   : > { %p297_p8 = pnand %p1704_p6, %p296_p7 }
  0x15   : > { %s303_s9 = sand.u32 (!%p297_p8), 1, %s2118_s18   ;;  %s1706_s10 = sshll.u32 (!%p297_p8), %s2126_s20, 6 }
  0x16   : > { %300 = sbr.rel (%p297_p8) target bundleno = 391 (0x187), region = 59  ;;  %s1705_s11 = sshll.u32 (!%p297_p8), %s303_s9, 5 }
  0x17   : > { %p367_p9 = scmp.lt.s32.totalorder (!%p297_p8), %s1706_s10, 575  ;;  %s2219_s16 = scalar_lea.vmem (!%p297_p8), [#allocation3], %s1705_s11 }
  0x18   : > { %p1709_p10 = scmp.ne.s32.totalorder (!%p297_p8), %s2126_s20, 0 }
  0x1b   : > { %s2421_s10 = smov (!%p367_p9, %s1706_s10), 575  ;;  %414 = sbr.rel (%p1709_p10) target bundleno = 37 (0x25), region = 67 }
  0x1c   : > { %s1852_s12 = sshll.u32 %s2421_s10, 4 }
  0x1d   : > { %s2217_s15 = scalar_lea.vmem %s2409_s1, %s1852_s12 }
  0x20   : > { %v2136_v4 = vmov 0.0  }
  0x21   : > { %415 = vst [vmem:[#allocation2 + $0x30] sm:$0xff] %v2136_v4  ;;  %416 = vst [vmem:[#allocation2] sm:$0xff] %v2136_v4 }
  0x22   : > { %417 = vst [vmem:[#allocation2 + $0x18] sm:$0xff] %v2136_v4  ;;  %418 = vst [vmem:[#allocation2 + $0x10] sm:$0xff] %v2136_v4 }
  0x23   : > { %419 = vst [vmem:[#allocation2 + $0x8] sm:$0xff] %v2136_v4  ;;  %420 = vst [vmem:[#allocation2 + $0x20] sm:$0xff] %v2136_v4 }
  0x24   : > { %421 = vst [vmem:[#allocation2 + $0x28] sm:$0xff] %v2136_v4  ;;  %422 = vst [vmem:[#allocation2 + $0x38] sm:$0xff] %v2136_v4 }
  0x25 PF: > { %v1898_v5 = vld [vmem:[%s2217_s15 + $0xe4] ss:$16 sps:$4 sm:$0xff]   ;;  %v1902_v7 = vld [vmem:[%s2217_s15 + $0xe0] ss:$16 sps:$4 sm:$0xff]   ;;  %v1999_v56 = vld [vmem:[%s2219_s16 + $0xc] ss:$16 sps:$4 sm:$0xff]  }
  0x26   : > { %v1900_v6 = vld [vmem:[%s2217_s15 + $0x2e4] ss:$16 sps:$4 sm:$0xff]   ;;  %1223 = vmatprep.subr.bf16.mxu0 %v1898_v5  ;;  %v1903_v8 = vld [vmem:[%s2217_s15 + $0x2e0] ss:$16 sps:$4 sm:$0xff]   ;;  %1298 = vmatprep.mubr.bf16.mxu1 %v1999_v56  ;;  %p1842_p11 = scmp.ne.s32.totalorder %s2126_s20, 8 }
  0x27   : > { %1266 = vmatprep.subr.bf16.mxu1 %v1900_v6  ;;  %v1904_v9 = vld [vmem:[%s2217_s15 + $0xc4] ss:$16 sps:$4 sm:$0xff]   ;;  %1224 = vmatpush1.bf16.msra.mxu0 %v1902_v7  ;;  %v1908_v11 = vld [vmem:[%s2217_s15 + $0xc0] ss:$16 sps:$4 sm:$0xff]   ;;  %v2002_v7 = vld [vmem:[%s2217_s15 + $0xec] ss:$16 sps:$4 sm:$0xff]  }
  0x28   : > { %1267 = vmatpush1.bf16.msra.mxu1 %v1903_v8  ;;  %v1906_v10 = vld [vmem:[%s2217_s15 + $0x2c4] ss:$16 sps:$4 sm:$0xff]   ;;  %1225 = vmatprep.subr.bf16.mxu0 %v1904_v9  ;;  %v1909_v12 = vld [vmem:[%s2217_s15 + $0x2c0] ss:$16 sps:$4 sm:$0xff]   ;;  %v2005_v8 = vld [vmem:[%s2217_s15 + $0x2ec] ss:$16 sps:$4 sm:$0xff]  }
  0x29   : > { %1268 = vmatprep.subr.bf16.mxu1 %v1906_v10  ;;  %v1910_v13 = vld [vmem:[%s2217_s15 + $0xa4] ss:$16 sps:$4 sm:$0xff]   ;;  %v1914_v15 = vld [vmem:[%s2217_s15 + $0xa0] ss:$16 sps:$4 sm:$0xff]   ;;  %v2294_v10 = vld [vmem:[%s2219_s16 + $0x8] ss:$16 sps:$4 sm:$0xff]  }
  0x2a   : > { %v1912_v14 = vld [vmem:[%s2217_s15 + $0x2a4] ss:$16 sps:$4 sm:$0xff]   ;;  %v1915_v16 = vld [vmem:[%s2217_s15 + $0x2a0] ss:$16 sps:$4 sm:$0xff]  }
  0x2b   : > { %1226 = vmatpush1.bf16.msra.mxu0 %v1908_v11  ;;  %v1916_v17 = vld [vmem:[%s2217_s15 + $0x84] ss:$16 sps:$4 sm:$0xff]   ;;  %v1920_v19 = vld [vmem:[%s2217_s15 + $0x80] ss:$16 sps:$4 sm:$0xff]   ;;  %v2000_v11 = vld [vmem:[%s2217_s15 + $0xe8] ss:$16 sps:$4 sm:$0xff]  }
  0x2c   : > { %1269 = vmatpush1.bf16.msra.mxu1 %v1909_v12  ;;  %1227 = vmatprep.subr.bf16.mxu0 %v1910_v13  ;;  %v1918_v18 = vld [vmem:[%s2217_s15 + $0x284] ss:$16 sps:$4 sm:$0xff]   ;;  %v1921_v20 = vld [vmem:[%s2217_s15 + $0x280] ss:$16 sps:$4 sm:$0xff]   ;;  %v2003_v12 = vld [vmem:[%s2217_s15 + $0x2e8] ss:$16 sps:$4 sm:$0xff]  }
  0x2d   : > { %1270 = vmatprep.subr.bf16.mxu1 %v1912_v14  ;;  %v1922_v21 = vld [vmem:[%s2217_s15 + $0x64] ss:$16 sps:$4 sm:$0xff]   ;;  %v1926_v23 = vld [vmem:[%s2217_s15 + $0x60] ss:$16 sps:$4 sm:$0xff]   ;;  %v2008_v13 = vld [vmem:[%s2217_s15 + $0xcc] ss:$16 sps:$4 sm:$0xff]  }
  0x2e   : > { %v1924_v22 = vld [vmem:[%s2217_s15 + $0x264] ss:$16 sps:$4 sm:$0xff]   ;;  %v1927_v24 = vld [vmem:[%s2217_s15 + $0x260] ss:$16 sps:$4 sm:$0xff]   ;;  %v2011_v14 = vld [vmem:[%s2217_s15 + $0x2cc] ss:$16 sps:$4 sm:$0xff]  }
  0x2f   : > { %1228 = vmatpush1.bf16.msra.mxu0 %v1914_v15  ;;  %v1928_v25 = vld [vmem:[%s2217_s15 + $0x44] ss:$16 sps:$4 sm:$0xff]   ;;  %v1932_v27 = vld [vmem:[%s2217_s15 + $0x40] ss:$16 sps:$4 sm:$0xff]   ;;  %v2006_v15 = vld [vmem:[%s2217_s15 + $0xc8] ss:$16 sps:$4 sm:$0xff]  }
  0x30   : > { %1271 = vmatpush1.bf16.msra.mxu1 %v1915_v16  ;;  %1229 = vmatprep.subr.bf16.mxu0 %v1916_v17  ;;  %v1930_v26 = vld [vmem:[%s2217_s15 + $0x244] ss:$16 sps:$4 sm:$0xff]   ;;  %v1933_v28 = vld [vmem:[%s2217_s15 + $0x240] ss:$16 sps:$4 sm:$0xff]   ;;  %v2009_v16 = vld [vmem:[%s2217_s15 + $0x2c8] ss:$16 sps:$4 sm:$0xff]  }
  0x31   : > { %1272 = vmatprep.subr.bf16.mxu1 %v1918_v18  ;;  %v1934_v29 = vld [vmem:[%s2217_s15 + $0x24] ss:$16 sps:$4 sm:$0xff]   ;;  %v1938_v31 = vld [vmem:[%s2217_s15 + $0x20] ss:$16 sps:$4 sm:$0xff]   ;;  %v2014_v17 = vld [vmem:[%s2217_s15 + $0xac] ss:$16 sps:$4 sm:$0xff]  }
  0x32   : > { %v1936_v30 = vld [vmem:[%s2217_s15 + $0x224] ss:$16 sps:$4 sm:$0xff]   ;;  %v1939_v32 = vld [vmem:[%s2217_s15 + $0x220] ss:$16 sps:$4 sm:$0xff]   ;;  %v2017_v18 = vld [vmem:[%s2217_s15 + $0x2ac] ss:$16 sps:$4 sm:$0xff]  }
  0x33   : > { %1230 = vmatpush1.bf16.msra.mxu0 %v1920_v19  ;;  %v1940_v33 = vld [vmem:[%s2217_s15 + $0x4] ss:$16 sps:$4 sm:$0xff]   ;;  %v1944_v35 = vld [vmem:[%s2217_s15] ss:$16 sps:$4 sm:$0xff]   ;;  %v2012_v19 = vld [vmem:[%s2217_s15 + $0xa8] ss:$16 sps:$4 sm:$0xff]  }
  0x34   : > { %1273 = vmatpush1.bf16.msra.mxu1 %v1921_v20  ;;  %1231 = vmatprep.subr.bf16.mxu0 %v1922_v21  ;;  %v1942_v34 = vld [vmem:[%s2217_s15 + $0x204] ss:$16 sps:$4 sm:$0xff]   ;;  %v1945_v36 = vld [vmem:[%s2217_s15 + $0x200] ss:$16 sps:$4 sm:$0xff]   ;;  %v2015_v20 = vld [vmem:[%s2217_s15 + $0x2a8] ss:$16 sps:$4 sm:$0xff]  }
  0x35   : > { %1274 = vmatprep.subr.bf16.mxu1 %v1924_v22  ;;  %v1946_v37 = vld [vmem:[%s2217_s15 + $0x1e4] ss:$16 sps:$4 sm:$0xff]   ;;  %v1950_v39 = vld [vmem:[%s2217_s15 + $0x1e0] ss:$16 sps:$4 sm:$0xff]   ;;  %v2020_v21 = vld [vmem:[%s2217_s15 + $0x8c] ss:$16 sps:$4 sm:$0xff]  }
  0x36   : > { %v1948_v38 = vld [vmem:[%s2217_s15 + $0x3e4] ss:$16 sps:$4 sm:$0xff]   ;;  %v1951_v40 = vld [vmem:[%s2217_s15 + $0x3e0] ss:$16 sps:$4 sm:$0xff]   ;;  %v2023_v22 = vld [vmem:[%s2217_s15 + $0x28c] ss:$16 sps:$4 sm:$0xff]  }
  0x37   : > { %1232 = vmatpush1.bf16.msra.mxu0 %v1926_v23  ;;  %v1952_v41 = vld [vmem:[%s2217_s15 + $0x1c4] ss:$16 sps:$4 sm:$0xff]   ;;  %v1956_v43 = vld [vmem:[%s2217_s15 + $0x1c0] ss:$16 sps:$4 sm:$0xff]   ;;  %v2018_v23 = vld [vmem:[%s2217_s15 + $0x88] ss:$16 sps:$4 sm:$0xff]  }
  0x38   : > { %1275 = vmatpush1.bf16.msra.mxu1 %v1927_v24  ;;  %1233 = vmatprep.subr.bf16.mxu0 %v1928_v25  ;;  %v1954_v42 = vld [vmem:[%s2217_s15 + $0x3c4] ss:$16 sps:$4 sm:$0xff]   ;;  %v1957_v44 = vld [vmem:[%s2217_s15 + $0x3c0] ss:$16 sps:$4 sm:$0xff]   ;;  %v2021_v24 = vld [vmem:[%s2217_s15 + $0x288] ss:$16 sps:$4 sm:$0xff]  }
  0x39   : > { %1276 = vmatprep.subr.bf16.mxu1 %v1930_v26  ;;  %v1958_v45 = vld [vmem:[%s2217_s15 + $0x1a4] ss:$16 sps:$4 sm:$0xff]   ;;  %v1962_v47 = vld [vmem:[%s2217_s15 + $0x1a0] ss:$16 sps:$4 sm:$0xff]   ;;  %v2026_v25 = vld [vmem:[%s2217_s15 + $0x6c] ss:$16 sps:$4 sm:$0xff]  }
  0x3a   : > { %v1960_v46 = vld [vmem:[%s2217_s15 + $0x3a4] ss:$16 sps:$4 sm:$0xff]   ;;  %v1963_v48 = vld [vmem:[%s2217_s15 + $0x3a0] ss:$16 sps:$4 sm:$0xff]   ;;  %v2029_v26 = vld [vmem:[%s2217_s15 + $0x26c] ss:$16 sps:$4 sm:$0xff]  }
  0x3b   : > { %1234 = vmatpush1.bf16.msra.mxu0 %v1932_v27  ;;  %v1964_v49 = vld [vmem:[%s2217_s15 + $0x184] ss:$16 sps:$4 sm:$0xff]   ;;  %v1968_v51 = vld [vmem:[%s2217_s15 + $0x180] ss:$16 sps:$4 sm:$0xff]   ;;  %v2024_v27 = vld [vmem:[%s2217_s15 + $0x68] ss:$16 sps:$4 sm:$0xff]  }
  0x3c   : > { %1277 = vmatpush1.bf16.msra.mxu1 %v1933_v28  ;;  %1235 = vmatprep.subr.bf16.mxu0 %v1934_v29  ;;  %v1966_v50 = vld [vmem:[%s2217_s15 + $0x384] ss:$16 sps:$4 sm:$0xff]   ;;  %v1969_v52 = vld [vmem:[%s2217_s15 + $0x380] ss:$16 sps:$4 sm:$0xff]   ;;  %v2027_v28 = vld [vmem:[%s2217_s15 + $0x268] ss:$16 sps:$4 sm:$0xff]  }
  0x3d   : > { %1278 = vmatprep.subr.bf16.mxu1 %v1936_v30  ;;  %v1970_v53 = vld [vmem:[%s2217_s15 + $0x164] ss:$16 sps:$4 sm:$0xff]   ;;  %v1974_v57 = vld [vmem:[%s2217_s15 + $0x160] ss:$16 sps:$4 sm:$0xff]   ;;  %v2032_v29 = vld [vmem:[%s2217_s15 + $0x4c] ss:$16 sps:$4 sm:$0xff]  }
  0x3e   : > { %v1996_v54 = vld [vmem:[%s2219_s16 + $0x4] ss:$16 sps:$4 sm:$0xff]   ;;  %v1975_v58 = vld [vmem:[%s2217_s15 + $0x360] ss:$16 sps:$4 sm:$0xff]   ;;  %v2035_v30 = vld [vmem:[%s2217_s15 + $0x24c] ss:$16 sps:$4 sm:$0xff]  }
  0x3f   : > { %1236 = vmatpush1.bf16.msra.mxu0 %v1938_v31  ;;  %v1972_v55 = vld [vmem:[%s2217_s15 + $0x364] ss:$16 sps:$4 sm:$0xff]   ;;  %1255 = vmatprep.mubr.bf16.mxu0 %v1996_v54  ;;  %v1980_v61 = vld [vmem:[%s2217_s15 + $0x140] ss:$16 sps:$4 sm:$0xff]   ;;  %v2030_v31 = vld [vmem:[%s2217_s15 + $0x48] ss:$16 sps:$4 sm:$0xff]  }
  0x40   : > { %1279 = vmatpush1.bf16.msra.mxu1 %v1939_v32  ;;  %1237 = vmatprep.subr.bf16.mxu0 %v1940_v33  ;;  %v1976_v59 = vld [vmem:[%s2217_s15 + $0x144] ss:$16 sps:$4 sm:$0xff]   ;;  %v1981_v62 = vld [vmem:[%s2217_s15 + $0x340] ss:$16 sps:$4 sm:$0xff]   ;;  %v2033_v32 = vld [vmem:[%s2217_s15 + $0x248] ss:$16 sps:$4 sm:$0xff]  }
  0x41   : > { %1280 = vmatprep.subr.bf16.mxu1 %v1942_v34  ;;  %v1978_v60 = vld [vmem:[%s2217_s15 + $0x344] ss:$16 sps:$4 sm:$0xff]   ;;  %v1986_v1 = vld [vmem:[%s2217_s15 + $0x120] ss:$16 sps:$4 sm:$0xff]   ;;  %v2038_v33 = vld [vmem:[%s2217_s15 + $0x2c] ss:$16 sps:$4 sm:$0xff]  }
  0x42   : > { %v1982_v63 = vld [vmem:[%s2217_s15 + $0x124] ss:$16 sps:$4 sm:$0xff]   ;;  %v1987_v2 = vld [vmem:[%s2217_s15 + $0x320] ss:$16 sps:$4 sm:$0xff]   ;;  %v2041_v34 = vld [vmem:[%s2217_s15 + $0x22c] ss:$16 sps:$4 sm:$0xff]  }
  0x43   : > { %1238 = vmatpush1.bf16.msra.mxu0 %v1944_v35  ;;  %v1984_v0 = vld [vmem:[%s2217_s15 + $0x324] ss:$16 sps:$4 sm:$0xff]   ;;  %v1992_v5 = vld [vmem:[%s2217_s15 + $0x100] ss:$16 sps:$4 sm:$0xff]   ;;  %v2036_v35 = vld [vmem:[%s2217_s15 + $0x28] ss:$16 sps:$4 sm:$0xff]  }
  0x44   : > { %1281 = vmatpush1.bf16.msra.mxu1 %v1945_v36  ;;  %1239 = vmatprep.subr.bf16.mxu0 %v1946_v37  ;;  %v1988_v3 = vld [vmem:[%s2217_s15 + $0x104] ss:$16 sps:$4 sm:$0xff]   ;;  %v1993_v6 = vld [vmem:[%s2217_s15 + $0x300] ss:$16 sps:$4 sm:$0xff]   ;;  %v2039_v36 = vld [vmem:[%s2217_s15 + $0x228] ss:$16 sps:$4 sm:$0xff]  }
  0x45   : > { %1282 = vmatprep.subr.bf16.mxu1 %v1948_v38  ;;  %v1990_v4 = vld [vmem:[%s2217_s15 + $0x304] ss:$16 sps:$4 sm:$0xff]   ;;  %v2291_v9 = vld [vmem:[%s2219_s16] ss:$16 sps:$4 sm:$0xff]   ;;  %v2044_v37 = vld [vmem:[%s2217_s15 + $0xc] ss:$16 sps:$4 sm:$0xff]  }
  0x46   : > { %v2047_v38 = vld [vmem:[%s2217_s15 + $0x20c] ss:$16 sps:$4 sm:$0xff]  }
  0x47   : > { %1240 = vmatpush2.bf16.msra.mxu0 %v1950_v39  ;;  %v2042_v39 = vld [vmem:[%s2217_s15 + $0x8] ss:$16 sps:$4 sm:$0xff]  }
  0x48   : > { %1283 = vmatpush2.bf16.msra.mxu1 %v1951_v40  ;;  %1241 = vmatprep.subr.bf16.mxu0 %v1952_v41  ;;  %v2045_v40 = vld [vmem:[%s2217_s15 + $0x208] ss:$16 sps:$4 sm:$0xff]   ;;  %v2050_v41 = vld [vmem:[%s2217_s15 + $0x1ec] ss:$16 sps:$4 sm:$0xff]  }
  0x49   : > { %1284 = vmatprep.subr.bf16.mxu1 %v1954_v42  ;;  %v2053_v42 = vld [vmem:[%s2217_s15 + $0x3ec] ss:$16 sps:$4 sm:$0xff]  }
  0x4b   : > { %1242 = vmatpush2.bf16.msra.mxu0 %v1956_v43  ;;  %v2048_v43 = vld [vmem:[%s2217_s15 + $0x1e8] ss:$16 sps:$4 sm:$0xff]  }
  0x4c   : > { %1285 = vmatpush2.bf16.msra.mxu1 %v1957_v44  ;;  %1243 = vmatprep.subr.bf16.mxu0 %v1958_v45  ;;  %v2051_v44 = vld [vmem:[%s2217_s15 + $0x3e8] ss:$16 sps:$4 sm:$0xff]   ;;  %v2056_v45 = vld [vmem:[%s2217_s15 + $0x1cc] ss:$16 sps:$4 sm:$0xff]  }
  0x4d   : > { %1286 = vmatprep.subr.bf16.mxu1 %v1960_v46  ;;  %v2059_v46 = vld [vmem:[%s2217_s15 + $0x3cc] ss:$16 sps:$4 sm:$0xff]  }
  0x4f   : > { %1244 = vmatpush2.bf16.msra.mxu0 %v1962_v47  ;;  %v2054_v47 = vld [vmem:[%s2217_s15 + $0x1c8] ss:$16 sps:$4 sm:$0xff]  }
  0x50   : > { %1287 = vmatpush2.bf16.msra.mxu1 %v1963_v48  ;;  %1245 = vmatprep.subr.bf16.mxu0 %v1964_v49  ;;  %v2057_v48 = vld [vmem:[%s2217_s15 + $0x3c8] ss:$16 sps:$4 sm:$0xff]   ;;  %v2062_v49 = vld [vmem:[%s2217_s15 + $0x1ac] ss:$16 sps:$4 sm:$0xff]  }
  0x51   : > { %1288 = vmatprep.subr.bf16.mxu1 %v1966_v50  ;;  %v2065_v50 = vld [vmem:[%s2217_s15 + $0x3ac] ss:$16 sps:$4 sm:$0xff]  }
  0x53   : > { %1246 = vmatpush2.bf16.msra.mxu0 %v1968_v51  ;;  %v2060_v51 = vld [vmem:[%s2217_s15 + $0x1a8] ss:$16 sps:$4 sm:$0xff]  }
  0x54   : > { %1289 = vmatpush2.bf16.msra.mxu1 %v1969_v52  ;;  %1247 = vmatprep.subr.bf16.mxu0 %v1970_v53  ;;  %v2063_v52 = vld [vmem:[%s2217_s15 + $0x3a8] ss:$16 sps:$4 sm:$0xff]   ;;  %v2068_v53 = vld [vmem:[%s2217_s15 + $0x18c] ss:$16 sps:$4 sm:$0xff]  }
  0x55   : > { %1290 = vmatprep.subr.bf16.mxu1 %v1972_v55  ;;  %v2066_v55 = vld [vmem:[%s2217_s15 + $0x188] ss:$16 sps:$4 sm:$0xff]  }
  0x57   : > { %1248 = vmatpush2.bf16.msra.mxu0 %v1974_v57  ;;  %v2074_v57 = vld [vmem:[%s2217_s15 + $0x16c] ss:$16 sps:$4 sm:$0xff]  }
  0x58   : > { %1291 = vmatpush2.bf16.msra.mxu1 %v1975_v58  ;;  %1249 = vmatprep.subr.bf16.mxu0 %v1976_v59  ;;  %v2077_v58 = vld [vmem:[%s2217_s15 + $0x36c] ss:$16 sps:$4 sm:$0xff]   ;;  %v2072_v59 = vld [vmem:[%s2217_s15 + $0x168] ss:$16 sps:$4 sm:$0xff]  }
  0x59   : > { %1292 = vmatprep.subr.bf16.mxu1 %v1978_v60  ;;  %v2075_v60 = vld [vmem:[%s2217_s15 + $0x368] ss:$16 sps:$4 sm:$0xff]  }
  0x5b   : > { %1250 = vmatpush2.bf16.msra.mxu0 %v1980_v61  ;;  %v2080_v61 = vld [vmem:[%s2217_s15 + $0x14c] ss:$16 sps:$4 sm:$0xff]  }
  0x5c   : > { %1293 = vmatpush2.bf16.msra.mxu1 %v1981_v62  ;;  %1251 = vmatprep.subr.bf16.mxu0 %v1982_v63  ;;  %v2083_v62 = vld [vmem:[%s2217_s15 + $0x34c] ss:$16 sps:$4 sm:$0xff]   ;;  %v2078_v63 = vld [vmem:[%s2217_s15 + $0x148] ss:$16 sps:$4 sm:$0xff]  }
  0x5d   : > { %1294 = vmatprep.subr.bf16.mxu1 %v1984_v0  ;;  %v2081_v0 = vld [vmem:[%s2217_s15 + $0x348] ss:$16 sps:$4 sm:$0xff]  }
  0x5f   : > { %1252 = vmatpush2.bf16.msra.mxu0 %v1986_v1  ;;  %v2086_v1 = vld [vmem:[%s2217_s15 + $0x12c] ss:$16 sps:$4 sm:$0xff]  }
  0x60   : > { %1295 = vmatpush2.bf16.msra.mxu1 %v1987_v2  ;;  %1253 = vmatprep.subr.bf16.mxu0 %v1988_v3  ;;  %v2089_v2 = vld [vmem:[%s2217_s15 + $0x32c] ss:$16 sps:$4 sm:$0xff]   ;;  %v2084_v3 = vld [vmem:[%s2217_s15 + $0x128] ss:$16 sps:$4 sm:$0xff]  }
  0x61   : > { %1296 = vmatprep.subr.bf16.mxu1 %v1990_v4  ;;  %v2087_v4 = vld [vmem:[%s2217_s15 + $0x328] ss:$16 sps:$4 sm:$0xff]  }
  0x63   : > { %1254 = vmatpush2.bf16.msra.mxu0 %v1992_v5  ;;  %v2092_v5 = vld [vmem:[%s2217_s15 + $0x10c] ss:$16 sps:$4 sm:$0xff]  }
  0x64   : > { %1297 = vmatpush2.bf16.msra.mxu1 %v1993_v6  ;;  %1309 = vmatprep.subr.bf16.mxu0 %v2002_v7  ;;  %v2095_v6 = vld [vmem:[%s2217_s15 + $0x30c] ss:$16 sps:$4 sm:$0xff]   ;;  %v2090_v7 = vld [vmem:[%s2217_s15 + $0x108] ss:$16 sps:$4 sm:$0xff]  }
  0x65   : > { %1352 = vmatprep.subr.bf16.mxu1 %v2005_v8  ;;  %v2093_v8 = vld [vmem:[%s2217_s15 + $0x308] ss:$16 sps:$4 sm:$0xff]  }
  0x66   : > { %1256 = vmatmul.mubr.bf16.vlgmr.msra.gmra.mxu0 %v2291_v9 }
  0x67   : > { %1299 = vmatmul.mubr.bf16.vlgmr.msra.gmra.mxu1 %v2294_v10  ;;  %1310 = vmatpush1.bf16.msra.mxu0 %v2000_v11 }
  0x68   : > { %1353 = vmatpush1.bf16.msra.mxu1 %v2003_v12  ;;  %1311 = vmatprep.subr.bf16.mxu0 %v2008_v13  ;;  %v423_v12 = vld [vmem:[#allocation2 + $0x30] sm:$0xff] }
  0x69   : > { %1354 = vmatprep.subr.bf16.mxu1 %v2011_v14  ;;  %1341 = vmatprep.mubr.bf16.mxu0 %v1996_v54  ;;  %v2071_v54 = vld [vmem:[%s2217_s15 + $0x38c] ss:$16 sps:$4 sm:$0xff]  }
  0x6a   : > { %1384 = vmatprep.mubr.bf16.mxu1 %v1999_v56  ;;  %v2069_v56 = vld [vmem:[%s2217_s15 + $0x388] ss:$16 sps:$4 sm:$0xff]  }
  0x6b   : > { %1312 = vmatpush1.bf16.msra.mxu0 %v2006_v15 }
  0x6c   : > { %1355 = vmatpush1.bf16.msra.mxu1 %v2009_v16  ;;  %1313 = vmatprep.subr.bf16.mxu0 %v2014_v17  ;;  %v424_v16 = vld [vmem:[#allocation2] sm:$0xff] }
  0x6d   : > { %1356 = vmatprep.subr.bf16.mxu1 %v2017_v18 }
  0x6f   : > { %1314 = vmatpush1.bf16.msra.mxu0 %v2012_v19 }
  0x70   : > { %1357 = vmatpush1.bf16.msra.mxu1 %v2015_v20  ;;  %1315 = vmatprep.subr.bf16.mxu0 %v2020_v21  ;;  %v427_v21 = vld [vmem:[#allocation2 + $0x8] sm:$0xff] }
  0x71   : > { %1358 = vmatprep.subr.bf16.mxu1 %v2023_v22 }
  0x73   : > { %1316 = vmatpush1.bf16.msra.mxu0 %v2018_v23 }
  0x74   : > { %1359 = vmatpush1.bf16.msra.mxu1 %v2021_v24  ;;  %1317 = vmatprep.subr.bf16.mxu0 %v2026_v25 }
  0x75   : > { %1360 = vmatprep.subr.bf16.mxu1 %v2029_v26  ;;  %v428_v26 = vld [vmem:[#allocation2 + $0x20] sm:$0xff] }
  0x77   : > { %1318 = vmatpush1.bf16.msra.mxu0 %v2024_v27 }
  0x78   : > { %1361 = vmatpush1.bf16.msra.mxu1 %v2027_v28  ;;  %1319 = vmatprep.subr.bf16.mxu0 %v2032_v29 }
  0x79   : > { %1362 = vmatprep.subr.bf16.mxu1 %v2035_v30  ;;  %v425_v30 = vld [vmem:[#allocation2 + $0x18] sm:$0xff] }
  0x7b   : > { %1320 = vmatpush1.bf16.msra.mxu0 %v2030_v31 }
  0x7c   : > { %1363 = vmatpush1.bf16.msra.mxu1 %v2033_v32  ;;  %1321 = vmatprep.subr.bf16.mxu0 %v2038_v33 }
  0x7d   : > { %1364 = vmatprep.subr.bf16.mxu1 %v2041_v34  ;;  %v426_v34 = vld [vmem:[#allocation2 + $0x10] sm:$0xff] }
  0x7f   : > { %1322 = vmatpush1.bf16.msra.mxu0 %v2036_v35 }
  0x80   : > { %1365 = vmatpush1.bf16.msra.mxu1 %v2039_v36  ;;  %1323 = vmatprep.subr.bf16.mxu0 %v2044_v37 }
  0x81   : > { %1366 = vmatprep.subr.bf16.mxu1 %v2047_v38 }
  0x83   : > { %1324 = vmatpush1.bf16.msra.mxu0 %v2042_v39  ;;  %v429_v39 = vld [vmem:[#allocation2 + $0x28] sm:$0xff] }
  0x84   : > { %1367 = vmatpush1.bf16.msra.mxu1 %v2045_v40  ;;  %1325 = vmatprep.subr.bf16.mxu0 %v2050_v41 }
  0x85   : > { %1368 = vmatprep.subr.bf16.mxu1 %v2053_v42 }
  0x87   : > { %1326 = vmatpush2.bf16.msra.mxu0 %v2048_v43 }
  0x88   : > { %1369 = vmatpush2.bf16.msra.mxu1 %v2051_v44  ;;  %1327 = vmatprep.subr.bf16.mxu0 %v2056_v45  ;;  %v430_v44 = vld [vmem:[#allocation2 + $0x38] sm:$0xff] }
  0x89   : > { %1370 = vmatprep.subr.bf16.mxu1 %v2059_v46 }
  0x8b   : > { %1328 = vmatpush2.bf16.msra.mxu0 %v2054_v47 }
  0x8c   : > { %1371 = vmatpush2.bf16.msra.mxu1 %v2057_v48  ;;  %1329 = vmatprep.subr.bf16.mxu0 %v2062_v49 }
  0x8d   : > { %1372 = vmatprep.subr.bf16.mxu1 %v2065_v50 }
  0x8f   : > { %1330 = vmatpush2.bf16.msra.mxu0 %v2060_v51 }
  0x90   : > { %1373 = vmatpush2.bf16.msra.mxu1 %v2063_v52  ;;  %1331 = vmatprep.subr.bf16.mxu0 %v2068_v53 }
  0x91   : > { %1374 = vmatprep.subr.bf16.mxu1 %v2071_v54 }
  0x93   : > { %1332 = vmatpush2.bf16.msra.mxu0 %v2066_v55 }
  0x94   : > { %1375 = vmatpush2.bf16.msra.mxu1 %v2069_v56  ;;  %1333 = vmatprep.subr.bf16.mxu0 %v2074_v57 }
  0x95   : > { %1376 = vmatprep.subr.bf16.mxu1 %v2077_v58 }
  0x97   : > { %1334 = vmatpush2.bf16.msra.mxu0 %v2072_v59 }
  0x98   : > { %1377 = vmatpush2.bf16.msra.mxu1 %v2075_v60  ;;  %1335 = vmatprep.subr.bf16.mxu0 %v2080_v61 }
  0x99   : > { %1378 = vmatprep.subr.bf16.mxu1 %v2083_v62 }
  0x9b   : > { %1336 = vmatpush2.bf16.msra.mxu0 %v2078_v63 }
  0x9c   : > { %1379 = vmatpush2.bf16.msra.mxu1 %v2081_v0  ;;  %1337 = vmatprep.subr.bf16.mxu0 %v2086_v1 }
  0x9d   : > { %1380 = vmatprep.subr.bf16.mxu1 %v2089_v2 }
  0x9f   : > { %1338 = vmatpush2.bf16.msra.mxu0 %v2084_v3 }
  0xa0   : > { %1381 = vmatpush2.bf16.msra.mxu1 %v2087_v4  ;;  %1339 = vmatprep.subr.bf16.mxu0 %v2092_v5 }
  0xa1   : > { %1382 = vmatprep.subr.bf16.mxu1 %v2095_v6 }
  0xa3   : > { %1340 = vmatpush2.bf16.msra.mxu0 %v2090_v7 }
  0xa4   : > { %1383 = vmatpush2.bf16.msra.mxu1 %v2093_v8 }
  0xa6   : > { %1342 = vmatmul.mubr.bf16.vlgmr.msra.gmra.mxu0 %v2291_v9 }
  0xa7   : > { %1385 = vmatmul.mubr.bf16.vlgmr.msra.gmra.mxu1 %v2294_v10 }
 0x126   : > { %v1257_v11 = vpop.f32.mrf.mxu0 }
 0x127   : > { %v1300_v13 = vpop.f32.mrf.mxu1 }
 0x128   : > { %v1301_v14 = vadd.f32 %v1300_v13, %v1257_v11  ;;  %v1259_v15 = vpop.f32.mrf.mxu0 }
 0x129   : > { %v1302_v17 = vpop.f32.mrf.mxu1 }
 0x12a   : > { %v1395_v18 = vadd.f32 %v1301_v14, %v423_v12  ;;  %v1303_v19 = vadd.f32 %v1302_v17, %v1259_v15  ;;  %v1261_v20 = vpop.f32.mrf.mxu0 }
 0x12b   : > { %v1304_v22 = vpop.f32.mrf.mxu1 }
 0x12c   : > { %1403 = vst [vmem:[#allocation2 + $0x30] sm:$0xff] %v1395_v18  ;;  %v1396_v23 = vadd.f32 %v1303_v19, %v424_v16  ;;  %v1305_v24 = vadd.f32 %v1304_v22, %v1261_v20  ;;  %v1263_v25 = vpop.f32.mrf.mxu0 }
 0x12d   : > { %v1306_v9 = vpop.f32.mrf.mxu1 }
 0x12e   : > { %1404 = vst [vmem:[#allocation2] sm:$0xff] %v1396_v23  ;;  %v1399_v10 = vadd.f32 %v1305_v24, %v427_v21  ;;  %v1307_v27 = vadd.f32 %v1306_v9, %v1263_v25 }
 0x130   : > { %1407 = vst [vmem:[#allocation2 + $0x8] sm:$0xff] %v1399_v10  ;;  %v1400_v28 = vadd.f32 %v1307_v27, %v428_v26 }
 0x132   : > { %1408 = vst [vmem:[#allocation2 + $0x20] sm:$0xff] %v1400_v28 }
 0x166   : > { %v1343_v29 = vpop.f32.mrf.mxu0 }
 0x167   : > { %v1386_v31 = vpop.f32.mrf.mxu1 }
 0x168   : > { %v1387_v32 = vadd.f32 %v1386_v31, %v1343_v29  ;;  %v1345_v33 = vpop.f32.mrf.mxu0 }
 0x169   : > { %v1388_v35 = vpop.f32.mrf.mxu1 }
 0x16a   : > { %v1397_v36 = vadd.f32 %v1387_v32, %v425_v30  ;;  %v1389_v37 = vadd.f32 %v1388_v35, %v1345_v33  ;;  %v1347_v38 = vpop.f32.mrf.mxu0 }
 0x16b   : > { %v1390_v40 = vpop.f32.mrf.mxu1 }
 0x16c   : > { %1405 = vst [vmem:[#allocation2 + $0x18] sm:$0xff] %v1397_v36  ;;  %v1398_v41 = vadd.f32 %v1389_v37, %v426_v34  ;;  %v1391_v42 = vadd.f32 %v1390_v40, %v1347_v38  ;;  %v1349_v43 = vpop.f32.mrf.mxu0 }
 0x16d   : > { %v1392_v45 = vpop.f32.mrf.mxu1 }
 0x16e   : > { %1406 = vst [vmem:[#allocation2 + $0x10] sm:$0xff] %v1398_v41  ;;  %v1401_v46 = vadd.f32 %v1391_v42, %v429_v39  ;;  %v1393_v47 = vadd.f32 %v1392_v45, %v1349_v43  ;;  %1414 = sbr.rel (%p1842_p11) target bundleno = 391 (0x187), region = 71 }
 0x170   : > { %1409 = vst [vmem:[#allocation2 + $0x28] sm:$0xff] %v1401_v46  ;;  %v1402_v48 = vadd.f32 %v1393_v47, %v430_v44 }
 0x172   : > { %1410 = vst [vmem:[#allocation2 + $0x38] sm:$0xff] %v1402_v48 }
 0x173   : > { %v1425_v49 = vlaneseq  ;;  %v1483_v50 = vld [vmem:[%s2412_s4] sm:$0xff]  ;;  %v1484_v52 = vld [vmem:[%s2412_s4 + $0x8] sm:$0xff]  ;;  %v1415_v53 = vld [vmem:[#allocation2 + $0x30] sm:$0xff] }
 0x174   : > { %v1423_v54 = vld [vmem:[%s2410_s2] sm:$0xf]  ;;  %v1487_v56 = vunpack.c.l.bf16 %v1483_v50  ;;  %v1488_v57 = vunpack.c.h.bf16 %v1483_v50  ;;  %v1489_v58 = vunpack.c.l.bf16 %v1484_v52  ;;  %v1490_v59 = vunpack.c.h.bf16 %v1484_v52  ;;  %v1485_v60 = vld [vmem:[%s2412_s4 + $0x10] sm:$0xff]  ;;  %v1486_v2 = vld [vmem:[%s2412_s4 + $0x18] sm:$0xff] }
 0x175   : > { %v1426_v51 = vshrl.u32 %v1425_v49, 7  ;;  %v1453_v55 = vld [vmem:[%s2411_s3] sm:$0xf]  ;;  %v1417_v3 = vld [vmem:[#allocation2 + $0x18] sm:$0xff]  ;;  %v1419_v4 = vld [vmem:[#allocation2 + $0x8] sm:$0xff]  ;;  %v1491_v6 = vunpack.c.l.bf16 %v1485_v60  ;;  %v1492_v7 = vunpack.c.h.bf16 %v1485_v60  ;;  %v1493_v8 = vunpack.c.l.bf16 %v1486_v2 }
 0x176   : > { %v1416_v61 = vld [vmem:[#allocation2] sm:$0xff]  ;;  %v1494_v11 = vunpack.c.h.bf16 %v1486_v2  ;;  %v1418_v16 = vld [vmem:[#allocation2 + $0x10] sm:$0xff] }
 0x177   : > { %v1427_v62 = vsub.s32 0, %v1426_v51  ;;  %v1431_v63 = vsub.s32 1, %v1426_v51  ;;  %v1435_v0 = vsub.s32 2, %v1426_v51  ;;  %v1439_v1 = vsub.s32 3, %v1426_v51  ;;  %v1420_v5 = vld [vmem:[#allocation2 + $0x20] sm:$0xff]  ;;  %v1421_v17 = vld [vmem:[#allocation2 + $0x28] sm:$0xff] }
 0x179   : > { %v1428_v12 = vrot.slane %v1423_v54, %v1427_v62  ;;  %v1432_v13 = vrot.slane %v1423_v54, %v1431_v63  ;;  %v1458_v14 = vrot.slane %v1453_v55, %v1427_v62  ;;  %v1462_v15 = vrot.slane %v1453_v55, %v1431_v63  ;;  %v1422_v18 = vld [vmem:[#allocation2 + $0x38] sm:$0xff] }
 0x17a   : > { %v1436_v19 = vrot.slane %v1423_v54, %v1435_v0  ;;  %v1440_v20 = vrot.slane %v1423_v54, %v1439_v1  ;;  %v1466_v21 = vrot.slane %v1453_v55, %v1435_v0  ;;  %v1470_v22 = vrot.slane %v1453_v55, %v1439_v1 }
 0x17b   : > { %v1445_v23 = vmul.f32 %v1428_v12, %v1415_v53  ;;  %v1446_v24 = vmul.f32 %v1432_v13, %v1416_v61  ;;  %v1449_v25 = vmul.f32 %v1428_v12, %v1419_v4  ;;  %v1450_v26 = vmul.f32 %v1432_v13, %v1420_v5 }
 0x17c   : > { %v1447_v9 = vmul.f32 %v1436_v19, %v1417_v3  ;;  %v1448_v10 = vmul.f32 %v1440_v20, %v1418_v16  ;;  %v1451_v27 = vmul.f32 %v1436_v19, %v1421_v17  ;;  %v1452_v28 = vmul.f32 %v1440_v20, %v1422_v18 }
 0x17d   : > { %v1475_v29 = vadd.f32 %v1458_v14, %v1445_v23  ;;  %v1476_v30 = vadd.f32 %v1462_v15, %v1446_v24  ;;  %v1479_v31 = vadd.f32 %v1458_v14, %v1449_v25  ;;  %v1480_v32 = vadd.f32 %v1462_v15, %v1450_v26 }
 0x17e   : > { %v1477_v33 = vadd.f32 %v1466_v21, %v1447_v9  ;;  %v1478_v34 = vadd.f32 %v1470_v22, %v1448_v10  ;;  %v1481_v35 = vadd.f32 %v1466_v21, %v1451_v27  ;;  %v1482_v36 = vadd.f32 %v1470_v22, %v1452_v28 }
 0x17f   : > { %v1495_v37 = vadd.f32 %v1487_v56, %v1475_v29  ;;  %v1496_v38 = vadd.f32 %v1488_v57, %v1476_v30  ;;  %v1499_v39 = vadd.f32 %v1491_v6, %v1479_v31  ;;  %v1500_v40 = vadd.f32 %v1492_v7, %v1480_v32 }
 0x180   : > { %v1497_v41 = vadd.f32 %v1489_v58, %v1477_v33  ;;  %v1498_v42 = vadd.f32 %v1490_v59, %v1478_v34  ;;  %v1501_v43 = vadd.f32 %v1493_v8, %v1481_v35  ;;  %v1502_v44 = vadd.f32 %v1494_v11, %v1482_v36 }
 0x181   : > { %v1503_v45 = vmax.f32 %v1495_v37, 0.0  ;;  %v1504_v46 = vmax.f32 %v1496_v38, 0.0  ;;  %v1507_v47 = vmax.f32 %v1499_v39, 0.0  ;;  %v1508_v48 = vmax.f32 %v1500_v40, 0.0 }
 0x182   : > { %v1505_v49 = vmax.f32 %v1497_v41, 0.0  ;;  %v1506_v50 = vmax.f32 %v1498_v42, 0.0  ;;  %v1509_v51 = vmax.f32 %v1501_v43, 0.0  ;;  %v1510_v52 = vmax.f32 %v1502_v44, 0.0 }
 0x183   : > { %v1853_v53 = vpack.c.bf16 %v1504_v46, %v1503_v45  ;;  %v1855_v54 = vpack.c.bf16 %v1508_v48, %v1507_v47 }
 0x184   : > { %v1854_v55 = vpack.c.bf16 %v1506_v50, %v1505_v49  ;;  %v1856_v60 = vpack.c.bf16 %v1510_v52, %v1509_v51 }
 0x185   : > { %1535 = vst [vmem:[%s2413_s5] sm:$0xff] %v1853_v53  ;;  %1537 = vst [vmem:[%s2413_s5 + $0x10] sm:$0xff] %v1855_v54 }
 0x186   : > { %1536 = vst [vmem:[%s2413_s5 + $0x8] sm:$0xff] %v1854_v55  ;;  %1538 = vst [vmem:[%s2413_s5 + $0x18] sm:$0xff] %v1856_v60 }
 0x187 PF: > { %s15_s22 = sadd.s32 1, %s2134_s22   ;;  %s2414_s18 = smov %s2122_s19 }
 0x188   : > { %p12_p12 = scmp.ge.s32.totalorder %s15_s22, 11   ;;  %s2415_s19 = smov %s2202_s26 }
 0x189   : > { %s2416_s20 = smov %s2130_s21  ;;  %s2417_s21 = smov %s2419_s23 }
 0x18a   :  { %14 = sbr.rel (!%p12_p12) target bundleno = 3 (0x3), region = 118 }

// kernel: resnet18_forward.40
= control target key start
LH: loop header
LB: loop body
LE: loop exit
PB: predicated region body
PF: predicated region fallthrough
CT: control target
= control target key end

     0   :  { %s2052_s15 = smov 0   ;;  %s2054_s16 = smov 0   ;;  %s2281_s0 = inlined_call_operand.vmem [shape: bf16[16,4608], index: 0, kind: input, shape index: {}]   ;;  %s2282_s1 = inlined_call_operand.vmem [shape: bf16[4608,512], index: 1, kind: input, shape index: {}]   ;;  %s2283_s2 = inlined_call_operand.vmem [shape: f32[1,512], index: 2, kind: input, shape index: {}]   ;;  %s2284_s3 = inlined_call_operand.vmem [shape: f32[1,512], index: 3, kind: input, shape index: {}]   ;;  %s2285_s4 = inlined_call_operand.vmem [shape: bf16[16,512], index: 4, kind: output, shape index: {}]  }
   0x1   :  { %s2056_s17 = smov 0   ;;  %s2058_s18 = smov 0  }
   0x2   :  { %s2060_s19 = smov 0  }
   0x3 LB: > { %s26_s20 = sadd.s32 1, %s2020_s18  ;;  %p49_p1 = scmp.ne.s32.totalorder %s2012_s16, %s2008_s15  ;;  %s2024_s19 = sphi %s2060_s19, %s14_s19   ;;  %s2020_s18 = sphi %s2058_s18, %s2289_s18   ;;  %s2016_s17 = sphi %s2056_s17, %s2288_s17   ;;  %s2012_s16 = sphi %s2054_s16, %s2287_s16   ;;  %s2008_s15 = sphi %s2052_s15, %s2286_s15  }
   0x4   : > { %p27_p0 = scmp.ge.s32.totalorder %s26_s20, 9  ;;  %p50_p2 = scmp.eq.s32.totalorder %s2024_s19, 0 }
   0x5   : > { %s42_s22 = sadd.s32 1, %s2012_s16  ;;  %p1590_p5 = scmp.ge.s32.totalorder %s2024_s19, 9 }
   0x6   : > { %s2291_s20 = smov (%p27_p0, %s26_s20), 0  ;;  %p51_p3 = por %p50_p2, %p49_p1 }
   0x7   : > { %s38_s21 = ssub.s32 %s2020_s18, %s2291_s20  ;;  %199 = sbr.rel (%p1590_p5) target bundleno = 18 (0x12), region = 24 }
   0x8   : > { %p40_p4 = scmp.eq.s32.totalorder %s38_s21, 0 }
   0xa   : > { %s2087_s23 = scalar_select %p40_p4, %s2012_s16, %s42_s22  }
   0xc   : > { %202 = sbr.rel (!%p51_p3) target bundleno = 18 (0x12), region = 28  ;;  %s204_s24 = sand.u32 (%p51_p3), 1, %s2012_s16  }
   0xd   : > { %s1741_s25 = sshll.u32 (%p51_p3), %s2020_s18, 4  ;;  %s1591_s26 = sshll.u32 (%p51_p3), %s204_s24, 5 }
   0xe   : > { %s212_s29 = scalar_lea.vmem (%p51_p3), %s2281_s0, %s1741_s25  ;;  %s206_s30 = scalar_lea.vmem (%p51_p3), [#allocation3], %s1591_s26 }
   0xf   : > { %v225_v0 = vld [vmem:[%s212_s29] sm:$0xff] (%p51_p3)  ;;  %v227_v1 = vld [vmem:[%s212_s29 + $0x8] sm:$0xff] (%p51_p3)  ;;  %v229_v2 = vld [vmem:[%s212_s29 + $0x90] sm:$0xff] (%p51_p3) }
  0x10   : > { %226 = vst [vmem:[%s206_s30] sm:$0xff] (%p51_p3), %v225_v0  ;;  %228 = vst [vmem:[%s206_s30 + $0x8] sm:$0xff] (%p51_p3), %v227_v1  ;;  %v231_v3 = vld [vmem:[%s212_s29 + $0x98] sm:$0xff] (%p51_p3) }
  0x11   : > { %230 = vst [vmem:[%s206_s30 + $0x10] sm:$0xff] %v229_v2  ;;  %232 = vst [vmem:[%s206_s30 + $0x18] sm:$0xff] %v231_v3 }
  0x12 PF: > { %p1594_p6 = scmp.ge.s32.totalorder %s2024_s19, 1  ;;  %p252_p7 = scmp.lt.s32.totalorder %s2024_s19, 10 }
  0x14   : > { %p253_p8 = pnand %p1594_p6, %p252_p7 }
  0x15   : > { %s259_s5 = sand.u32 (!%p253_p8), 1, %s2008_s15   ;;  %s1596_s6 = sshll.u32 (!%p253_p8), %s2016_s17, 6 }
  0x16   : > { %256 = sbr.rel (%p253_p8) target bundleno = 389 (0x185), region = 55  ;;  %s1595_s7 = sshll.u32 (!%p253_p8), %s259_s5, 5 }
  0x17   : > { %p311_p9 = scmp.lt.s32.totalorder (!%p253_p8), %s1596_s6, 575  ;;  %s2104_s12 = scalar_lea.vmem (!%p253_p8), [#allocation3], %s1595_s7 }
  0x18   : > { %p1599_p10 = scmp.ne.s32.totalorder (!%p253_p8), %s2016_s17, 0 }
  0x1b   : > { %s2293_s6 = smov (!%p311_p9, %s1596_s6), 575  ;;  %346 = sbr.rel (%p1599_p10) target bundleno = 37 (0x25), region = 63 }
  0x1c   : > { %s1742_s8 = sshll.u32 %s2293_s6, 4 }
  0x1d   : > { %s2102_s11 = scalar_lea.vmem %s2282_s1, %s1742_s8 }
  0x20   : > { %v2026_v4 = vmov 0.0  }
  0x21   : > { %347 = vst [vmem:[#allocation2 + $0x30] sm:$0xff] %v2026_v4  ;;  %348 = vst [vmem:[#allocation2] sm:$0xff] %v2026_v4 }
  0x22   : > { %349 = vst [vmem:[#allocation2 + $0x18] sm:$0xff] %v2026_v4  ;;  %350 = vst [vmem:[#allocation2 + $0x10] sm:$0xff] %v2026_v4 }
  0x23   : > { %351 = vst [vmem:[#allocation2 + $0x8] sm:$0xff] %v2026_v4  ;;  %352 = vst [vmem:[#allocation2 + $0x20] sm:$0xff] %v2026_v4 }
  0x24   : > { %353 = vst [vmem:[#allocation2 + $0x28] sm:$0xff] %v2026_v4  ;;  %354 = vst [vmem:[#allocation2 + $0x38] sm:$0xff] %v2026_v4 }
  0x25 PF: > { %v1788_v5 = vld [vmem:[%s2102_s11 + $0xe4] ss:$16 sps:$4 sm:$0xff]   ;;  %v1792_v7 = vld [vmem:[%s2102_s11 + $0xe0] ss:$16 sps:$4 sm:$0xff]   ;;  %v1889_v56 = vld [vmem:[%s2104_s12 + $0xc] ss:$16 sps:$4 sm:$0xff]  }
  0x26   : > { %v1790_v6 = vld [vmem:[%s2102_s11 + $0x2e4] ss:$16 sps:$4 sm:$0xff]   ;;  %1155 = vmatprep.subr.bf16.mxu0 %v1788_v5  ;;  %v1793_v8 = vld [vmem:[%s2102_s11 + $0x2e0] ss:$16 sps:$4 sm:$0xff]   ;;  %1230 = vmatprep.mubr.bf16.mxu1 %v1889_v56  ;;  %p1732_p11 = scmp.ne.s32.totalorder %s2016_s17, 8 }
  0x27   : > { %1198 = vmatprep.subr.bf16.mxu1 %v1790_v6  ;;  %v1794_v9 = vld [vmem:[%s2102_s11 + $0xc4] ss:$16 sps:$4 sm:$0xff]   ;;  %1156 = vmatpush1.bf16.msra.mxu0 %v1792_v7  ;;  %v1798_v11 = vld [vmem:[%s2102_s11 + $0xc0] ss:$16 sps:$4 sm:$0xff]   ;;  %v1892_v7 = vld [vmem:[%s2102_s11 + $0xec] ss:$16 sps:$4 sm:$0xff]  }
  0x28   : > { %1199 = vmatpush1.bf16.msra.mxu1 %v1793_v8  ;;  %v1796_v10 = vld [vmem:[%s2102_s11 + $0x2c4] ss:$16 sps:$4 sm:$0xff]   ;;  %1157 = vmatprep.subr.bf16.mxu0 %v1794_v9  ;;  %v1799_v12 = vld [vmem:[%s2102_s11 + $0x2c0] ss:$16 sps:$4 sm:$0xff]   ;;  %v1895_v8 = vld [vmem:[%s2102_s11 + $0x2ec] ss:$16 sps:$4 sm:$0xff]  }
  0x29   : > { %1200 = vmatprep.subr.bf16.mxu1 %v1796_v10  ;;  %v1800_v13 = vld [vmem:[%s2102_s11 + $0xa4] ss:$16 sps:$4 sm:$0xff]   ;;  %v1804_v15 = vld [vmem:[%s2102_s11 + $0xa0] ss:$16 sps:$4 sm:$0xff]   ;;  %v2179_v10 = vld [vmem:[%s2104_s12 + $0x8] ss:$16 sps:$4 sm:$0xff]  }
  0x2a   : > { %v1802_v14 = vld [vmem:[%s2102_s11 + $0x2a4] ss:$16 sps:$4 sm:$0xff]   ;;  %v1805_v16 = vld [vmem:[%s2102_s11 + $0x2a0] ss:$16 sps:$4 sm:$0xff]  }
  0x2b   : > { %1158 = vmatpush1.bf16.msra.mxu0 %v1798_v11  ;;  %v1806_v17 = vld [vmem:[%s2102_s11 + $0x84] ss:$16 sps:$4 sm:$0xff]   ;;  %v1810_v19 = vld [vmem:[%s2102_s11 + $0x80] ss:$16 sps:$4 sm:$0xff]   ;;  %v1890_v11 = vld [vmem:[%s2102_s11 + $0xe8] ss:$16 sps:$4 sm:$0xff]  }
  0x2c   : > { %1201 = vmatpush1.bf16.msra.mxu1 %v1799_v12  ;;  %1159 = vmatprep.subr.bf16.mxu0 %v1800_v13  ;;  %v1808_v18 = vld [vmem:[%s2102_s11 + $0x284] ss:$16 sps:$4 sm:$0xff]   ;;  %v1811_v20 = vld [vmem:[%s2102_s11 + $0x280] ss:$16 sps:$4 sm:$0xff]   ;;  %v1893_v12 = vld [vmem:[%s2102_s11 + $0x2e8] ss:$16 sps:$4 sm:$0xff]  }
  0x2d   : > { %1202 = vmatprep.subr.bf16.mxu1 %v1802_v14  ;;  %v1812_v21 = vld [vmem:[%s2102_s11 + $0x64] ss:$16 sps:$4 sm:$0xff]   ;;  %v1816_v23 = vld [vmem:[%s2102_s11 + $0x60] ss:$16 sps:$4 sm:$0xff]   ;;  %v1898_v13 = vld [vmem:[%s2102_s11 + $0xcc] ss:$16 sps:$4 sm:$0xff]  }
  0x2e   : > { %v1814_v22 = vld [vmem:[%s2102_s11 + $0x264] ss:$16 sps:$4 sm:$0xff]   ;;  %v1817_v24 = vld [vmem:[%s2102_s11 + $0x260] ss:$16 sps:$4 sm:$0xff]   ;;  %v1901_v14 = vld [vmem:[%s2102_s11 + $0x2cc] ss:$16 sps:$4 sm:$0xff]  }
  0x2f   : > { %1160 = vmatpush1.bf16.msra.mxu0 %v1804_v15  ;;  %v1818_v25 = vld [vmem:[%s2102_s11 + $0x44] ss:$16 sps:$4 sm:$0xff]   ;;  %v1822_v27 = vld [vmem:[%s2102_s11 + $0x40] ss:$16 sps:$4 sm:$0xff]   ;;  %v1896_v15 = vld [vmem:[%s2102_s11 + $0xc8] ss:$16 sps:$4 sm:$0xff]  }
  0x30   : > { %1203 = vmatpush1.bf16.msra.mxu1 %v1805_v16  ;;  %1161 = vmatprep.subr.bf16.mxu0 %v1806_v17  ;;  %v1820_v26 = vld [vmem:[%s2102_s11 + $0x244] ss:$16 sps:$4 sm:$0xff]   ;;  %v1823_v28 = vld [vmem:[%s2102_s11 + $0x240] ss:$16 sps:$4 sm:$0xff]   ;;  %v1899_v16 = vld [vmem:[%s2102_s11 + $0x2c8] ss:$16 sps:$4 sm:$0xff]  }
  0x31   : > { %1204 = vmatprep.subr.bf16.mxu1 %v1808_v18  ;;  %v1824_v29 = vld [vmem:[%s2102_s11 + $0x24] ss:$16 sps:$4 sm:$0xff]   ;;  %v1828_v31 = vld [vmem:[%s2102_s11 + $0x20] ss:$16 sps:$4 sm:$0xff]   ;;  %v1904_v17 = vld [vmem:[%s2102_s11 + $0xac] ss:$16 sps:$4 sm:$0xff]  }
  0x32   : > { %v1826_v30 = vld [vmem:[%s2102_s11 + $0x224] ss:$16 sps:$4 sm:$0xff]   ;;  %v1829_v32 = vld [vmem:[%s2102_s11 + $0x220] ss:$16 sps:$4 sm:$0xff]   ;;  %v1907_v18 = vld [vmem:[%s2102_s11 + $0x2ac] ss:$16 sps:$4 sm:$0xff]  }
  0x33   : > { %1162 = vmatpush1.bf16.msra.mxu0 %v1810_v19  ;;  %v1830_v33 = vld [vmem:[%s2102_s11 + $0x4] ss:$16 sps:$4 sm:$0xff]   ;;  %v1834_v35 = vld [vmem:[%s2102_s11] ss:$16 sps:$4 sm:$0xff]   ;;  %v1902_v19 = vld [vmem:[%s2102_s11 + $0xa8] ss:$16 sps:$4 sm:$0xff]  }
  0x34   : > { %1205 = vmatpush1.bf16.msra.mxu1 %v1811_v20  ;;  %1163 = vmatprep.subr.bf16.mxu0 %v1812_v21  ;;  %v1832_v34 = vld [vmem:[%s2102_s11 + $0x204] ss:$16 sps:$4 sm:$0xff]   ;;  %v1835_v36 = vld [vmem:[%s2102_s11 + $0x200] ss:$16 sps:$4 sm:$0xff]   ;;  %v1905_v20 = vld [vmem:[%s2102_s11 + $0x2a8] ss:$16 sps:$4 sm:$0xff]  }
  0x35   : > { %1206 = vmatprep.subr.bf16.mxu1 %v1814_v22  ;;  %v1836_v37 = vld [vmem:[%s2102_s11 + $0x1e4] ss:$16 sps:$4 sm:$0xff]   ;;  %v1840_v39 = vld [vmem:[%s2102_s11 + $0x1e0] ss:$16 sps:$4 sm:$0xff]   ;;  %v1910_v21 = vld [vmem:[%s2102_s11 + $0x8c] ss:$16 sps:$4 sm:$0xff]  }
  0x36   : > { %v1838_v38 = vld [vmem:[%s2102_s11 + $0x3e4] ss:$16 sps:$4 sm:$0xff]   ;;  %v1841_v40 = vld [vmem:[%s2102_s11 + $0x3e0] ss:$16 sps:$4 sm:$0xff]   ;;  %v1913_v22 = vld [vmem:[%s2102_s11 + $0x28c] ss:$16 sps:$4 sm:$0xff]  }
  0x37   : > { %1164 = vmatpush1.bf16.msra.mxu0 %v1816_v23  ;;  %v1842_v41 = vld [vmem:[%s2102_s11 + $0x1c4] ss:$16 sps:$4 sm:$0xff]   ;;  %v1846_v43 = vld [vmem:[%s2102_s11 + $0x1c0] ss:$16 sps:$4 sm:$0xff]   ;;  %v1908_v23 = vld [vmem:[%s2102_s11 + $0x88] ss:$16 sps:$4 sm:$0xff]  }
  0x38   : > { %1207 = vmatpush1.bf16.msra.mxu1 %v1817_v24  ;;  %1165 = vmatprep.subr.bf16.mxu0 %v1818_v25  ;;  %v1844_v42 = vld [vmem:[%s2102_s11 + $0x3c4] ss:$16 sps:$4 sm:$0xff]   ;;  %v1847_v44 = vld [vmem:[%s2102_s11 + $0x3c0] ss:$16 sps:$4 sm:$0xff]   ;;  %v1911_v24 = vld [vmem:[%s2102_s11 + $0x288] ss:$16 sps:$4 sm:$0xff]  }
  0x39   : > { %1208 = vmatprep.subr.bf16.mxu1 %v1820_v26  ;;  %v1848_v45 = vld [vmem:[%s2102_s11 + $0x1a4] ss:$16 sps:$4 sm:$0xff]   ;;  %v1852_v47 = vld [vmem:[%s2102_s11 + $0x1a0] ss:$16 sps:$4 sm:$0xff]   ;;  %v1916_v25 = vld [vmem:[%s2102_s11 + $0x6c] ss:$16 sps:$4 sm:$0xff]  }
  0x3a   : > { %v1850_v46 = vld [vmem:[%s2102_s11 + $0x3a4] ss:$16 sps:$4 sm:$0xff]   ;;  %v1853_v48 = vld [vmem:[%s2102_s11 + $0x3a0] ss:$16 sps:$4 sm:$0xff]   ;;  %v1919_v26 = vld [vmem:[%s2102_s11 + $0x26c] ss:$16 sps:$4 sm:$0xff]  }
  0x3b   : > { %1166 = vmatpush1.bf16.msra.mxu0 %v1822_v27  ;;  %v1854_v49 = vld [vmem:[%s2102_s11 + $0x184] ss:$16 sps:$4 sm:$0xff]   ;;  %v1858_v51 = vld [vmem:[%s2102_s11 + $0x180] ss:$16 sps:$4 sm:$0xff]   ;;  %v1914_v27 = vld [vmem:[%s2102_s11 + $0x68] ss:$16 sps:$4 sm:$0xff]  }
  0x3c   : > { %1209 = vmatpush1.bf16.msra.mxu1 %v1823_v28  ;;  %1167 = vmatprep.subr.bf16.mxu0 %v1824_v29  ;;  %v1856_v50 = vld [vmem:[%s2102_s11 + $0x384] ss:$16 sps:$4 sm:$0xff]   ;;  %v1859_v52 = vld [vmem:[%s2102_s11 + $0x380] ss:$16 sps:$4 sm:$0xff]   ;;  %v1917_v28 = vld [vmem:[%s2102_s11 + $0x268] ss:$16 sps:$4 sm:$0xff]  }
  0x3d   : > { %1210 = vmatprep.subr.bf16.mxu1 %v1826_v30  ;;  %v1860_v53 = vld [vmem:[%s2102_s11 + $0x164] ss:$16 sps:$4 sm:$0xff]   ;;  %v1864_v57 = vld [vmem:[%s2102_s11 + $0x160] ss:$16 sps:$4 sm:$0xff]   ;;  %v1922_v29 = vld [vmem:[%s2102_s11 + $0x4c] ss:$16 sps:$4 sm:$0xff]  }
  0x3e   : > { %v1886_v54 = vld [vmem:[%s2104_s12 + $0x4] ss:$16 sps:$4 sm:$0xff]   ;;  %v1865_v58 = vld [vmem:[%s2102_s11 + $0x360] ss:$16 sps:$4 sm:$0xff]   ;;  %v1925_v30 = vld [vmem:[%s2102_s11 + $0x24c] ss:$16 sps:$4 sm:$0xff]  }
  0x3f   : > { %1168 = vmatpush1.bf16.msra.mxu0 %v1828_v31  ;;  %v1862_v55 = vld [vmem:[%s2102_s11 + $0x364] ss:$16 sps:$4 sm:$0xff]   ;;  %1187 = vmatprep.mubr.bf16.mxu0 %v1886_v54  ;;  %v1870_v61 = vld [vmem:[%s2102_s11 + $0x140] ss:$16 sps:$4 sm:$0xff]   ;;  %v1920_v31 = vld [vmem:[%s2102_s11 + $0x48] ss:$16 sps:$4 sm:$0xff]  }
  0x40   : > { %1211 = vmatpush1.bf16.msra.mxu1 %v1829_v32  ;;  %1169 = vmatprep.subr.bf16.mxu0 %v1830_v33  ;;  %v1866_v59 = vld [vmem:[%s2102_s11 + $0x144] ss:$16 sps:$4 sm:$0xff]   ;;  %v1871_v62 = vld [vmem:[%s2102_s11 + $0x340] ss:$16 sps:$4 sm:$0xff]   ;;  %v1923_v32 = vld [vmem:[%s2102_s11 + $0x248] ss:$16 sps:$4 sm:$0xff]  }
  0x41   : > { %1212 = vmatprep.subr.bf16.mxu1 %v1832_v34  ;;  %v1868_v60 = vld [vmem:[%s2102_s11 + $0x344] ss:$16 sps:$4 sm:$0xff]   ;;  %v1876_v1 = vld [vmem:[%s2102_s11 + $0x120] ss:$16 sps:$4 sm:$0xff]   ;;  %v1928_v33 = vld [vmem:[%s2102_s11 + $0x2c] ss:$16 sps:$4 sm:$0xff]  }
  0x42   : > { %v1872_v63 = vld [vmem:[%s2102_s11 + $0x124] ss:$16 sps:$4 sm:$0xff]   ;;  %v1877_v2 = vld [vmem:[%s2102_s11 + $0x320] ss:$16 sps:$4 sm:$0xff]   ;;  %v1931_v34 = vld [vmem:[%s2102_s11 + $0x22c] ss:$16 sps:$4 sm:$0xff]  }
  0x43   : > { %1170 = vmatpush1.bf16.msra.mxu0 %v1834_v35  ;;  %v1874_v0 = vld [vmem:[%s2102_s11 + $0x324] ss:$16 sps:$4 sm:$0xff]   ;;  %v1882_v5 = vld [vmem:[%s2102_s11 + $0x100] ss:$16 sps:$4 sm:$0xff]   ;;  %v1926_v35 = vld [vmem:[%s2102_s11 + $0x28] ss:$16 sps:$4 sm:$0xff]  }
  0x44   : > { %1213 = vmatpush1.bf16.msra.mxu1 %v1835_v36  ;;  %1171 = vmatprep.subr.bf16.mxu0 %v1836_v37  ;;  %v1878_v3 = vld [vmem:[%s2102_s11 + $0x104] ss:$16 sps:$4 sm:$0xff]   ;;  %v1883_v6 = vld [vmem:[%s2102_s11 + $0x300] ss:$16 sps:$4 sm:$0xff]   ;;  %v1929_v36 = vld [vmem:[%s2102_s11 + $0x228] ss:$16 sps:$4 sm:$0xff]  }
  0x45   : > { %1214 = vmatprep.subr.bf16.mxu1 %v1838_v38  ;;  %v1880_v4 = vld [vmem:[%s2102_s11 + $0x304] ss:$16 sps:$4 sm:$0xff]   ;;  %v2176_v9 = vld [vmem:[%s2104_s12] ss:$16 sps:$4 sm:$0xff]   ;;  %v1934_v37 = vld [vmem:[%s2102_s11 + $0xc] ss:$16 sps:$4 sm:$0xff]  }
  0x46   : > { %v1937_v38 = vld [vmem:[%s2102_s11 + $0x20c] ss:$16 sps:$4 sm:$0xff]  }
  0x47   : > { %1172 = vmatpush2.bf16.msra.mxu0 %v1840_v39  ;;  %v1932_v39 = vld [vmem:[%s2102_s11 + $0x8] ss:$16 sps:$4 sm:$0xff]  }
  0x48   : > { %1215 = vmatpush2.bf16.msra.mxu1 %v1841_v40  ;;  %1173 = vmatprep.subr.bf16.mxu0 %v1842_v41  ;;  %v1935_v40 = vld [vmem:[%s2102_s11 + $0x208] ss:$16 sps:$4 sm:$0xff]   ;;  %v1940_v41 = vld [vmem:[%s2102_s11 + $0x1ec] ss:$16 sps:$4 sm:$0xff]  }
  0x49   : > { %1216 = vmatprep.subr.bf16.mxu1 %v1844_v42  ;;  %v1943_v42 = vld [vmem:[%s2102_s11 + $0x3ec] ss:$16 sps:$4 sm:$0xff]  }
  0x4b   : > { %1174 = vmatpush2.bf16.msra.mxu0 %v1846_v43  ;;  %v1938_v43 = vld [vmem:[%s2102_s11 + $0x1e8] ss:$16 sps:$4 sm:$0xff]  }
  0x4c   : > { %1217 = vmatpush2.bf16.msra.mxu1 %v1847_v44  ;;  %1175 = vmatprep.subr.bf16.mxu0 %v1848_v45  ;;  %v1941_v44 = vld [vmem:[%s2102_s11 + $0x3e8] ss:$16 sps:$4 sm:$0xff]   ;;  %v1946_v45 = vld [vmem:[%s2102_s11 + $0x1cc] ss:$16 sps:$4 sm:$0xff]  }
  0x4d   : > { %1218 = vmatprep.subr.bf16.mxu1 %v1850_v46  ;;  %v1949_v46 = vld [vmem:[%s2102_s11 + $0x3cc] ss:$16 sps:$4 sm:$0xff]  }
  0x4f   : > { %1176 = vmatpush2.bf16.msra.mxu0 %v1852_v47  ;;  %v1944_v47 = vld [vmem:[%s2102_s11 + $0x1c8] ss:$16 sps:$4 sm:$0xff]  }
  0x50   : > { %1219 = vmatpush2.bf16.msra.mxu1 %v1853_v48  ;;  %1177 = vmatprep.subr.bf16.mxu0 %v1854_v49  ;;  %v1947_v48 = vld [vmem:[%s2102_s11 + $0x3c8] ss:$16 sps:$4 sm:$0xff]   ;;  %v1952_v49 = vld [vmem:[%s2102_s11 + $0x1ac] ss:$16 sps:$4 sm:$0xff]  }
  0x51   : > { %1220 = vmatprep.subr.bf16.mxu1 %v1856_v50  ;;  %v1955_v50 = vld [vmem:[%s2102_s11 + $0x3ac] ss:$16 sps:$4 sm:$0xff]  }
  0x53   : > { %1178 = vmatpush2.bf16.msra.mxu0 %v1858_v51  ;;  %v1950_v51 = vld [vmem:[%s2102_s11 + $0x1a8] ss:$16 sps:$4 sm:$0xff]  }
  0x54   : > { %1221 = vmatpush2.bf16.msra.mxu1 %v1859_v52  ;;  %1179 = vmatprep.subr.bf16.mxu0 %v1860_v53  ;;  %v1953_v52 = vld [vmem:[%s2102_s11 + $0x3a8] ss:$16 sps:$4 sm:$0xff]   ;;  %v1958_v53 = vld [vmem:[%s2102_s11 + $0x18c] ss:$16 sps:$4 sm:$0xff]  }
  0x55   : > { %1222 = vmatprep.subr.bf16.mxu1 %v1862_v55  ;;  %v1956_v55 = vld [vmem:[%s2102_s11 + $0x188] ss:$16 sps:$4 sm:$0xff]  }
  0x57   : > { %1180 = vmatpush2.bf16.msra.mxu0 %v1864_v57  ;;  %v1964_v57 = vld [vmem:[%s2102_s11 + $0x16c] ss:$16 sps:$4 sm:$0xff]  }
  0x58   : > { %1223 = vmatpush2.bf16.msra.mxu1 %v1865_v58  ;;  %1181 = vmatprep.subr.bf16.mxu0 %v1866_v59  ;;  %v1967_v58 = vld [vmem:[%s2102_s11 + $0x36c] ss:$16 sps:$4 sm:$0xff]   ;;  %v1962_v59 = vld [vmem:[%s2102_s11 + $0x168] ss:$16 sps:$4 sm:$0xff]  }
  0x59   : > { %1224 = vmatprep.subr.bf16.mxu1 %v1868_v60  ;;  %v1965_v60 = vld [vmem:[%s2102_s11 + $0x368] ss:$16 sps:$4 sm:$0xff]  }
  0x5b   : > { %1182 = vmatpush2.bf16.msra.mxu0 %v1870_v61  ;;  %v1970_v61 = vld [vmem:[%s2102_s11 + $0x14c] ss:$16 sps:$4 sm:$0xff]  }
  0x5c   : > { %1225 = vmatpush2.bf16.msra.mxu1 %v1871_v62  ;;  %1183 = vmatprep.subr.bf16.mxu0 %v1872_v63  ;;  %v1973_v62 = vld [vmem:[%s2102_s11 + $0x34c] ss:$16 sps:$4 sm:$0xff]   ;;  %v1968_v63 = vld [vmem:[%s2102_s11 + $0x148] ss:$16 sps:$4 sm:$0xff]  }
  0x5d   : > { %1226 = vmatprep.subr.bf16.mxu1 %v1874_v0  ;;  %v1971_v0 = vld [vmem:[%s2102_s11 + $0x348] ss:$16 sps:$4 sm:$0xff]  }
  0x5f   : > { %1184 = vmatpush2.bf16.msra.mxu0 %v1876_v1  ;;  %v1976_v1 = vld [vmem:[%s2102_s11 + $0x12c] ss:$16 sps:$4 sm:$0xff]  }
  0x60   : > { %1227 = vmatpush2.bf16.msra.mxu1 %v1877_v2  ;;  %1185 = vmatprep.subr.bf16.mxu0 %v1878_v3  ;;  %v1979_v2 = vld [vmem:[%s2102_s11 + $0x32c] ss:$16 sps:$4 sm:$0xff]   ;;  %v1974_v3 = vld [vmem:[%s2102_s11 + $0x128] ss:$16 sps:$4 sm:$0xff]  }
  0x61   : > { %1228 = vmatprep.subr.bf16.mxu1 %v1880_v4  ;;  %v1977_v4 = vld [vmem:[%s2102_s11 + $0x328] ss:$16 sps:$4 sm:$0xff]  }
  0x63   : > { %1186 = vmatpush2.bf16.msra.mxu0 %v1882_v5  ;;  %v1982_v5 = vld [vmem:[%s2102_s11 + $0x10c] ss:$16 sps:$4 sm:$0xff]  }
  0x64   : > { %1229 = vmatpush2.bf16.msra.mxu1 %v1883_v6  ;;  %1241 = vmatprep.subr.bf16.mxu0 %v1892_v7  ;;  %v1985_v6 = vld [vmem:[%s2102_s11 + $0x30c] ss:$16 sps:$4 sm:$0xff]   ;;  %v1980_v7 = vld [vmem:[%s2102_s11 + $0x108] ss:$16 sps:$4 sm:$0xff]  }
  0x65   : > { %1284 = vmatprep.subr.bf16.mxu1 %v1895_v8  ;;  %v1983_v8 = vld [vmem:[%s2102_s11 + $0x308] ss:$16 sps:$4 sm:$0xff]  }
  0x66   : > { %1188 = vmatmul.mubr.bf16.vlgmr.msra.gmra.mxu0 %v2176_v9 }
  0x67   : > { %1231 = vmatmul.mubr.bf16.vlgmr.msra.gmra.mxu1 %v2179_v10  ;;  %1242 = vmatpush1.bf16.msra.mxu0 %v1890_v11 }
  0x68   : > { %1285 = vmatpush1.bf16.msra.mxu1 %v1893_v12  ;;  %1243 = vmatprep.subr.bf16.mxu0 %v1898_v13  ;;  %v355_v12 = vld [vmem:[#allocation2 + $0x30] sm:$0xff] }
  0x69   : > { %1286 = vmatprep.subr.bf16.mxu1 %v1901_v14  ;;  %1273 = vmatprep.mubr.bf16.mxu0 %v1886_v54  ;;  %v1961_v54 = vld [vmem:[%s2102_s11 + $0x38c] ss:$16 sps:$4 sm:$0xff]  }
  0x6a   : > { %1316 = vmatprep.mubr.bf16.mxu1 %v1889_v56  ;;  %v1959_v56 = vld [vmem:[%s2102_s11 + $0x388] ss:$16 sps:$4 sm:$0xff]  }
  0x6b   : > { %1244 = vmatpush1.bf16.msra.mxu0 %v1896_v15 }
  0x6c   : > { %1287 = vmatpush1.bf16.msra.mxu1 %v1899_v16  ;;  %1245 = vmatprep.subr.bf16.mxu0 %v1904_v17  ;;  %v356_v16 = vld [vmem:[#allocation2] sm:$0xff] }
  0x6d   : > { %1288 = vmatprep.subr.bf16.mxu1 %v1907_v18 }
  0x6f   : > { %1246 = vmatpush1.bf16.msra.mxu0 %v1902_v19 }
  0x70   : > { %1289 = vmatpush1.bf16.msra.mxu1 %v1905_v20  ;;  %1247 = vmatprep.subr.bf16.mxu0 %v1910_v21  ;;  %v359_v21 = vld [vmem:[#allocation2 + $0x8] sm:$0xff] }
  0x71   : > { %1290 = vmatprep.subr.bf16.mxu1 %v1913_v22 }
  0x73   : > { %1248 = vmatpush1.bf16.msra.mxu0 %v1908_v23 }
  0x74   : > { %1291 = vmatpush1.bf16.msra.mxu1 %v1911_v24  ;;  %1249 = vmatprep.subr.bf16.mxu0 %v1916_v25 }
  0x75   : > { %1292 = vmatprep.subr.bf16.mxu1 %v1919_v26  ;;  %v360_v26 = vld [vmem:[#allocation2 + $0x20] sm:$0xff] }
  0x77   : > { %1250 = vmatpush1.bf16.msra.mxu0 %v1914_v27 }
  0x78   : > { %1293 = vmatpush1.bf16.msra.mxu1 %v1917_v28  ;;  %1251 = vmatprep.subr.bf16.mxu0 %v1922_v29 }
  0x79   : > { %1294 = vmatprep.subr.bf16.mxu1 %v1925_v30  ;;  %v357_v30 = vld [vmem:[#allocation2 + $0x18] sm:$0xff] }
  0x7b   : > { %1252 = vmatpush1.bf16.msra.mxu0 %v1920_v31 }
  0x7c   : > { %1295 = vmatpush1.bf16.msra.mxu1 %v1923_v32  ;;  %1253 = vmatprep.subr.bf16.mxu0 %v1928_v33 }
  0x7d   : > { %1296 = vmatprep.subr.bf16.mxu1 %v1931_v34  ;;  %v358_v34 = vld [vmem:[#allocation2 + $0x10] sm:$0xff] }
  0x7f   : > { %1254 = vmatpush1.bf16.msra.mxu0 %v1926_v35 }
  0x80   : > { %1297 = vmatpush1.bf16.msra.mxu1 %v1929_v36  ;;  %1255 = vmatprep.subr.bf16.mxu0 %v1934_v37 }
  0x81   : > { %1298 = vmatprep.subr.bf16.mxu1 %v1937_v38 }
  0x83   : > { %1256 = vmatpush1.bf16.msra.mxu0 %v1932_v39  ;;  %v361_v39 = vld [vmem:[#allocation2 + $0x28] sm:$0xff] }
  0x84   : > { %1299 = vmatpush1.bf16.msra.mxu1 %v1935_v40  ;;  %1257 = vmatprep.subr.bf16.mxu0 %v1940_v41 }
  0x85   : > { %1300 = vmatprep.subr.bf16.mxu1 %v1943_v42 }
  0x87   : > { %1258 = vmatpush2.bf16.msra.mxu0 %v1938_v43 }
  0x88   : > { %1301 = vmatpush2.bf16.msra.mxu1 %v1941_v44  ;;  %1259 = vmatprep.subr.bf16.mxu0 %v1946_v45  ;;  %v362_v44 = vld [vmem:[#allocation2 + $0x38] sm:$0xff] }
  0x89   : > { %1302 = vmatprep.subr.bf16.mxu1 %v1949_v46 }
  0x8b   : > { %1260 = vmatpush2.bf16.msra.mxu0 %v1944_v47 }
  0x8c   : > { %1303 = vmatpush2.bf16.msra.mxu1 %v1947_v48  ;;  %1261 = vmatprep.subr.bf16.mxu0 %v1952_v49 }
  0x8d   : > { %1304 = vmatprep.subr.bf16.mxu1 %v1955_v50 }
  0x8f   : > { %1262 = vmatpush2.bf16.msra.mxu0 %v1950_v51 }
  0x90   : > { %1305 = vmatpush2.bf16.msra.mxu1 %v1953_v52  ;;  %1263 = vmatprep.subr.bf16.mxu0 %v1958_v53 }
  0x91   : > { %1306 = vmatprep.subr.bf16.mxu1 %v1961_v54 }
  0x93   : > { %1264 = vmatpush2.bf16.msra.mxu0 %v1956_v55 }
  0x94   : > { %1307 = vmatpush2.bf16.msra.mxu1 %v1959_v56  ;;  %1265 = vmatprep.subr.bf16.mxu0 %v1964_v57 }
  0x95   : > { %1308 = vmatprep.subr.bf16.mxu1 %v1967_v58 }
  0x97   : > { %1266 = vmatpush2.bf16.msra.mxu0 %v1962_v59 }
  0x98   : > { %1309 = vmatpush2.bf16.msra.mxu1 %v1965_v60  ;;  %1267 = vmatprep.subr.bf16.mxu0 %v1970_v61 }
  0x99   : > { %1310 = vmatprep.subr.bf16.mxu1 %v1973_v62 }
  0x9b   : > { %1268 = vmatpush2.bf16.msra.mxu0 %v1968_v63 }
  0x9c   : > { %1311 = vmatpush2.bf16.msra.mxu1 %v1971_v0  ;;  %1269 = vmatprep.subr.bf16.mxu0 %v1976_v1 }
  0x9d   : > { %1312 = vmatprep.subr.bf16.mxu1 %v1979_v2 }
  0x9f   : > { %1270 = vmatpush2.bf16.msra.mxu0 %v1974_v3 }
  0xa0   : > { %1313 = vmatpush2.bf16.msra.mxu1 %v1977_v4  ;;  %1271 = vmatprep.subr.bf16.mxu0 %v1982_v5 }
  0xa1   : > { %1314 = vmatprep.subr.bf16.mxu1 %v1985_v6 }
  0xa3   : > { %1272 = vmatpush2.bf16.msra.mxu0 %v1980_v7 }
  0xa4   : > { %1315 = vmatpush2.bf16.msra.mxu1 %v1983_v8 }
  0xa6   : > { %1274 = vmatmul.mubr.bf16.vlgmr.msra.gmra.mxu0 %v2176_v9 }
  0xa7   : > { %1317 = vmatmul.mubr.bf16.vlgmr.msra.gmra.mxu1 %v2179_v10 }
 0x126   : > { %v1189_v11 = vpop.f32.mrf.mxu0 }
 0x127   : > { %v1232_v13 = vpop.f32.mrf.mxu1 }
 0x128   : > { %v1233_v14 = vadd.f32 %v1232_v13, %v1189_v11  ;;  %v1191_v15 = vpop.f32.mrf.mxu0 }
 0x129   : > { %v1234_v17 = vpop.f32.mrf.mxu1 }
 0x12a   : > { %v1327_v18 = vadd.f32 %v1233_v14, %v355_v12  ;;  %v1235_v19 = vadd.f32 %v1234_v17, %v1191_v15  ;;  %v1193_v20 = vpop.f32.mrf.mxu0 }
 0x12b   : > { %v1236_v22 = vpop.f32.mrf.mxu1 }
 0x12c   : > { %1335 = vst [vmem:[#allocation2 + $0x30] sm:$0xff] %v1327_v18  ;;  %v1328_v23 = vadd.f32 %v1235_v19, %v356_v16  ;;  %v1237_v24 = vadd.f32 %v1236_v22, %v1193_v20  ;;  %v1195_v25 = vpop.f32.mrf.mxu0 }
 0x12d   : > { %v1238_v9 = vpop.f32.mrf.mxu1 }
 0x12e   : > { %1336 = vst [vmem:[#allocation2] sm:$0xff] %v1328_v23  ;;  %v1331_v10 = vadd.f32 %v1237_v24, %v359_v21  ;;  %v1239_v27 = vadd.f32 %v1238_v9, %v1195_v25 }
 0x130   : > { %1339 = vst [vmem:[#allocation2 + $0x8] sm:$0xff] %v1331_v10  ;;  %v1332_v28 = vadd.f32 %v1239_v27, %v360_v26 }
 0x132   : > { %1340 = vst [vmem:[#allocation2 + $0x20] sm:$0xff] %v1332_v28 }
 0x166   : > { %v1275_v29 = vpop.f32.mrf.mxu0 }
 0x167   : > { %v1318_v31 = vpop.f32.mrf.mxu1 }
 0x168   : > { %v1319_v32 = vadd.f32 %v1318_v31, %v1275_v29  ;;  %v1277_v33 = vpop.f32.mrf.mxu0 }
 0x169   : > { %v1320_v35 = vpop.f32.mrf.mxu1 }
 0x16a   : > { %v1329_v36 = vadd.f32 %v1319_v32, %v357_v30  ;;  %v1321_v37 = vadd.f32 %v1320_v35, %v1277_v33  ;;  %v1279_v38 = vpop.f32.mrf.mxu0 }
 0x16b   : > { %v1322_v40 = vpop.f32.mrf.mxu1 }
 0x16c   : > { %1337 = vst [vmem:[#allocation2 + $0x18] sm:$0xff] %v1329_v36  ;;  %v1330_v41 = vadd.f32 %v1321_v37, %v358_v34  ;;  %v1323_v42 = vadd.f32 %v1322_v40, %v1279_v38  ;;  %v1281_v43 = vpop.f32.mrf.mxu0 }
 0x16d   : > { %v1324_v45 = vpop.f32.mrf.mxu1 }
 0x16e   : > { %1338 = vst [vmem:[#allocation2 + $0x10] sm:$0xff] %v1330_v41  ;;  %v1333_v46 = vadd.f32 %v1323_v42, %v361_v39  ;;  %v1325_v47 = vadd.f32 %v1324_v45, %v1281_v43  ;;  %1346 = sbr.rel (%p1732_p11) target bundleno = 389 (0x185), region = 67 }
 0x170   : > { %1341 = vst [vmem:[#allocation2 + $0x28] sm:$0xff] %v1333_v46  ;;  %v1334_v48 = vadd.f32 %v1325_v47, %v362_v44 }
 0x172   : > { %1342 = vst [vmem:[#allocation2 + $0x38] sm:$0xff] %v1334_v48 }
 0x173   : > { %v1357_v49 = vlaneseq  ;;  %v1355_v51 = vld [vmem:[%s2283_s2] sm:$0xf]  ;;  %v1347_v53 = vld [vmem:[#allocation2 + $0x30] sm:$0xff]  ;;  %v1349_v59 = vld [vmem:[#allocation2 + $0x18] sm:$0xff] }
 0x174   : > { %v1385_v52 = vld [vmem:[%s2284_s3] sm:$0xf]  ;;  %v1351_v60 = vld [vmem:[#allocation2 + $0x8] sm:$0xff] }
 0x175   : > { %v1358_v50 = vshrl.u32 %v1357_v49, 7  ;;  %v1348_v54 = vld [vmem:[#allocation2] sm:$0xff]  ;;  %v1350_v2 = vld [vmem:[#allocation2 + $0x10] sm:$0xff] }
 0x176   : > { %v1352_v61 = vld [vmem:[#allocation2 + $0x20] sm:$0xff] }
 0x177   : > { %v1359_v55 = vsub.s32 0, %v1358_v50  ;;  %v1363_v56 = vsub.s32 1, %v1358_v50  ;;  %v1367_v57 = vsub.s32 2, %v1358_v50  ;;  %v1371_v58 = vsub.s32 3, %v1358_v50  ;;  %v1353_v3 = vld [vmem:[#allocation2 + $0x28] sm:$0xff] }
 0x179   : > { %v1360_v62 = vrot.slane %v1355_v51, %v1359_v55  ;;  %v1364_v63 = vrot.slane %v1355_v51, %v1363_v56  ;;  %v1390_v0 = vrot.slane %v1385_v52, %v1359_v55  ;;  %v1394_v1 = vrot.slane %v1385_v52, %v1363_v56  ;;  %v1354_v4 = vld [vmem:[#allocation2 + $0x38] sm:$0xff] }
 0x17a   : > { %v1368_v5 = vrot.slane %v1355_v51, %v1367_v57  ;;  %v1372_v6 = vrot.slane %v1355_v51, %v1371_v58  ;;  %v1398_v7 = vrot.slane %v1385_v52, %v1367_v57  ;;  %v1402_v8 = vrot.slane %v1385_v52, %v1371_v58 }
 0x17b   : > { %v1377_v11 = vmul.f32 %v1360_v62, %v1347_v53  ;;  %v1378_v12 = vmul.f32 %v1364_v63, %v1348_v54  ;;  %v1381_v13 = vmul.f32 %v1360_v62, %v1351_v60  ;;  %v1382_v14 = vmul.f32 %v1364_v63, %v1352_v61 }
 0x17c   : > { %v1379_v15 = vmul.f32 %v1368_v5, %v1349_v59  ;;  %v1380_v16 = vmul.f32 %v1372_v6, %v1350_v2  ;;  %v1383_v17 = vmul.f32 %v1368_v5, %v1353_v3  ;;  %v1384_v18 = vmul.f32 %v1372_v6, %v1354_v4 }
 0x17d   : > { %v1407_v19 = vadd.f32 %v1390_v0, %v1377_v11  ;;  %v1408_v20 = vadd.f32 %v1394_v1, %v1378_v12  ;;  %v1411_v21 = vadd.f32 %v1390_v0, %v1381_v13  ;;  %v1412_v22 = vadd.f32 %v1394_v1, %v1382_v14 }
 0x17e   : > { %v1409_v23 = vadd.f32 %v1398_v7, %v1379_v15  ;;  %v1410_v24 = vadd.f32 %v1402_v8, %v1380_v16  ;;  %v1413_v25 = vadd.f32 %v1398_v7, %v1383_v17  ;;  %v1414_v26 = vadd.f32 %v1402_v8, %v1384_v18 }
 0x17f   : > { %v1415_v9 = vmax.f32 %v1407_v19, 0.0  ;;  %v1416_v10 = vmax.f32 %v1408_v20, 0.0  ;;  %v1419_v27 = vmax.f32 %v1411_v21, 0.0  ;;  %v1420_v28 = vmax.f32 %v1412_v22, 0.0 }
 0x180   : > { %v1417_v29 = vmax.f32 %v1409_v23, 0.0  ;;  %v1418_v30 = vmax.f32 %v1410_v24, 0.0  ;;  %v1421_v31 = vmax.f32 %v1413_v25, 0.0  ;;  %v1422_v32 = vmax.f32 %v1414_v26, 0.0 }
 0x181   : > { %v1743_v33 = vpack.c.bf16 %v1416_v10, %v1415_v9  ;;  %v1745_v34 = vpack.c.bf16 %v1420_v28, %v1419_v27 }
 0x182   : > { %v1744_v35 = vpack.c.bf16 %v1418_v30, %v1417_v29  ;;  %v1746_v36 = vpack.c.bf16 %v1422_v32, %v1421_v31 }
 0x183   : > { %1447 = vst [vmem:[%s2285_s4] sm:$0xff] %v1743_v33  ;;  %1449 = vst [vmem:[%s2285_s4 + $0x10] sm:$0xff] %v1745_v34 }
 0x184   : > { %1448 = vst [vmem:[%s2285_s4 + $0x8] sm:$0xff] %v1744_v35  ;;  %1450 = vst [vmem:[%s2285_s4 + $0x18] sm:$0xff] %v1746_v36 }
 0x185 PF: > { %s14_s19 = sadd.s32 1, %s2024_s19   ;;  %s2286_s15 = smov %s2012_s16 }
 0x186   : > { %p11_p12 = scmp.ge.s32.totalorder %s14_s19, 11   ;;  %s2287_s16 = smov %s2087_s23 }
 0x187   : > { %s2288_s17 = smov %s2020_s18  ;;  %s2289_s18 = smov %s2291_s20 }
 0x188   :  { %13 = sbr.rel (!%p11_p12) target bundleno = 3 (0x3), region = 111 }

// kernel: resnet18_forward.42
= control target key start
LH: loop header
LB: loop body
LE: loop exit
PB: predicated region body
PF: predicated region fallthrough
CT: control target
= control target key end

     0   :  { %vm21_vm0 = vcmask 1041409   ;;  %vm23_vm1 = vcmask 1043459   ;;  %vm25_vm2 = vcmask 1045509   ;;  %vm27_vm3 = vcmask 1047559   ;;  %s55_s0 = inlined_call_operand.vmem [shape: bf16[2,1,512], index: 0, kind: input, shape index: {}]   ;;  %s56_s1 = inlined_call_operand.vmem [shape: f32[2,512], index: 1, kind: output, shape index: {}]  }
   0x1   :  { %v36_v0 = vld [vmem:[%s55_s0] sm:$0xff]  }
   0x2   :  { %v37_v1 = vunpack.c.l.bf16 %v36_v0  ;;  %v38_v2 = vunpack.c.h.bf16 %v36_v0 }
   0x4   :  { %v20_v3 = vrot.slane %v38_v2, 7 }
   0x6   :  { %v22_v4 = vsel %vm21_vm0, %v20_v3, %v37_v1 }
   0x7   :  { %v24_v5 = vsel %vm23_vm1, %v20_v3, %v22_v4 }
   0x8   :  { %v26_v6 = vsel %vm25_vm2, %v20_v3, %v24_v5 }
   0x9   :  { %v28_v7 = vsel %vm27_vm3, %v20_v3, %v26_v6 }
   0xa   :  { %30 = vst [vmem:[%s56_s1] sm:$0xff] %v28_v7 }

// kernel: resnet18_forward.43
= control target key start
LH: loop header
LB: loop body
LE: loop exit
PB: predicated region body
PF: predicated region fallthrough
CT: control target
= control target key end

     0   :  { %s665_s1 = inlined_call_operand.vmem [shape: bf16[512,128], index: 1, kind: input, shape index: {}]   ;;  %s666_s0 = inlined_call_operand.vmem [shape: bf16[16,512], index: 0, kind: input, shape index: {}]   ;;  %s667_s2 = inlined_call_operand.vmem [shape: f32[1,128], index: 2, kind: input, shape index: {}]   ;;  %s668_s3 = inlined_call_operand.vmem [shape: f32[16,128], index: 3, kind: output, shape index: {}]  }
   0x1   :  { %v490_v0 = vld [vmem:[%s665_s1 + $0x78] sm:$0xff]   ;;  %v494_v4 = vld [vmem:[%s665_s1 + $0x70] sm:$0xff]   ;;  %v498_v8 = vld [vmem:[%s665_s1 + $0x68] sm:$0xff]  }
   0x2   :  { %v491_v1 = vld [vmem:[%s665_s1 + $0xf8] sm:$0xff]   ;;  %446 = vmatprep.subr.bf16.mxu0 %v490_v0  ;;  %v495_v5 = vld [vmem:[%s665_s1 + $0xf0] sm:$0xff]   ;;  %v499_v9 = vld [vmem:[%s665_s1 + $0xe8] sm:$0xff]  }
   0x3   :  { %v492_v2 = vld [vmem:[%s665_s1 + $0x38] sm:$0xff]   ;;  %468 = vmatprep.subr.bf16.mxu1 %v491_v1  ;;  %v496_v6 = vld [vmem:[%s665_s1 + $0x30] sm:$0xff]   ;;  %v500_v10 = vld [vmem:[%s665_s1 + $0x28] sm:$0xff]  }
   0x4   :  { %v493_v3 = vld [vmem:[%s665_s1 + $0xb8] sm:$0xff]   ;;  %447 = vmatpush3.bf16.msra.mxu0 %v492_v2  ;;  %v497_v7 = vld [vmem:[%s665_s1 + $0xb0] sm:$0xff]   ;;  %v501_v11 = vld [vmem:[%s665_s1 + $0xa8] sm:$0xff]  }
   0x5   :  { %469 = vmatpush3.bf16.msra.mxu1 %v493_v3  ;;  %448 = vmatprep.subr.bf16.mxu0 %v494_v4  ;;  %v502_v12 = vld [vmem:[%s665_s1 + $0x60] sm:$0xff]   ;;  %v506_v16 = vld [vmem:[%s665_s1 + $0x58] sm:$0xff]   ;;  %v510_v20 = vld [vmem:[%s665_s1 + $0x50] sm:$0xff]  }
   0x6   :  { %470 = vmatprep.subr.bf16.mxu1 %v495_v5  ;;  %v503_v13 = vld [vmem:[%s665_s1 + $0xe0] sm:$0xff]   ;;  %v507_v17 = vld [vmem:[%s665_s1 + $0xd8] sm:$0xff]   ;;  %v511_v21 = vld [vmem:[%s665_s1 + $0xd0] sm:$0xff]  }
   0x7   :  { %v504_v14 = vld [vmem:[%s665_s1 + $0x20] sm:$0xff]   ;;  %v508_v18 = vld [vmem:[%s665_s1 + $0x18] sm:$0xff]   ;;  %v512_v22 = vld [vmem:[%s665_s1 + $0x10] sm:$0xff]  }
   0x8   :  { %449 = vmatpush3.bf16.msra.mxu0 %v496_v6  ;;  %v505_v15 = vld [vmem:[%s665_s1 + $0xa0] sm:$0xff]   ;;  %v509_v19 = vld [vmem:[%s665_s1 + $0x98] sm:$0xff]   ;;  %v513_v23 = vld [vmem:[%s665_s1 + $0x90] sm:$0xff]  }
   0x9   :  { %471 = vmatpush3.bf16.msra.mxu1 %v497_v7  ;;  %450 = vmatprep.subr.bf16.mxu0 %v498_v8  ;;  %v514_v24 = vld [vmem:[%s665_s1 + $0x48] sm:$0xff]   ;;  %v518_v28 = vld [vmem:[%s665_s1 + $0x40] sm:$0xff]  }
   0xa   :  { %472 = vmatprep.subr.bf16.mxu1 %v499_v9  ;;  %v515_v25 = vld [vmem:[%s665_s1 + $0xc8] sm:$0xff]   ;;  %v519_v29 = vld [vmem:[%s665_s1 + $0xc0] sm:$0xff]  }
   0xb   :  { %v516_v26 = vld [vmem:[%s665_s1 + $0x8] sm:$0xff]   ;;  %v520_v30 = vld [vmem:[%s665_s1] sm:$0xff]  }
   0xc   :  { %451 = vmatpush3.bf16.msra.mxu0 %v500_v10  ;;  %v517_v27 = vld [vmem:[%s665_s1 + $0x88] sm:$0xff]   ;;  %v521_v31 = vld [vmem:[%s665_s1 + $0x80] sm:$0xff]  }
   0xd   :  { %473 = vmatpush3.bf16.msra.mxu1 %v501_v11  ;;  %452 = vmatprep.subr.bf16.mxu0 %v502_v12  ;;  %v522_v32 = vld [vmem:[%s666_s0] ss:$16 sps:$4 sm:$0xff]   ;;  %v524_v33 = vld [vmem:[%s666_s0 + $0x4] ss:$16 sps:$4 sm:$0xff]   ;;  %v525_v34 = vld [vmem:[%s666_s0 + $0x8] ss:$16 sps:$4 sm:$0xff]  }
   0xe   :  { %474 = vmatprep.subr.bf16.mxu1 %v503_v13  ;;  %v527_v35 = vld [vmem:[%s666_s0 + $0xc] ss:$16 sps:$4 sm:$0xff]   ;;  %335 = vmatprep.mubr.bf16.mxu0 %v524_v33  ;;  %v445_v43 = vld [vmem:[%s667_s2] ss:$0 sm:$0xff] }
   0xf   :  { %376 = vmatprep.mubr.bf16.mxu1 %v527_v35 }
  0x10   :  { %453 = vmatpush3.bf16.msra.mxu0 %v504_v14 }
  0x11   :  { %475 = vmatpush3.bf16.msra.mxu1 %v505_v15  ;;  %454 = vmatprep.subr.bf16.mxu0 %v506_v16 }
  0x12   :  { %476 = vmatprep.subr.bf16.mxu1 %v507_v17 }
  0x14   :  { %455 = vmatpush3.bf16.msra.mxu0 %v508_v18 }
  0x15   :  { %477 = vmatpush3.bf16.msra.mxu1 %v509_v19  ;;  %456 = vmatprep.subr.bf16.mxu0 %v510_v20 }
  0x16   :  { %478 = vmatprep.subr.bf16.mxu1 %v511_v21 }
  0x18   :  { %457 = vmatpush3.bf16.msra.mxu0 %v512_v22 }
  0x19   :  { %479 = vmatpush3.bf16.msra.mxu1 %v513_v23  ;;  %458 = vmatprep.subr.bf16.mxu0 %v514_v24 }
  0x1a   :  { %480 = vmatprep.subr.bf16.mxu1 %v515_v25 }
  0x1c   :  { %459 = vmatpush3.bf16.msra.mxu0 %v516_v26 }
  0x1d   :  { %481 = vmatpush3.bf16.msra.mxu1 %v517_v27  ;;  %460 = vmatprep.subr.bf16.mxu0 %v518_v28 }
  0x1e   :  { %482 = vmatprep.subr.bf16.mxu1 %v519_v29 }
  0x20   :  { %461 = vmatpush3.bf16.msra.mxu0 %v520_v30 }
  0x21   :  { %483 = vmatpush3.bf16.msra.mxu1 %v521_v31 }
  0x23   :  { %336 = vmatmul.mubr.bf16.vlgmr.msra.gmra.mxu0 %v522_v32 }
  0x24   :  { %377 = vmatmul.mubr.bf16.vlgmr.msra.gmra.mxu1 %v525_v34 }
  0xe3   :  { %v462_v36 = vpop.f32.mrf.mxu0 }
  0xe4   :  { %v484_v37 = vpop.f32.mrf.mxu1 }
  0xe5   :  { %v463_v38 = vpop.f32.mrf.mxu0 }
  0xe6   :  { %v464_v39 = vadd.f32 %v463_v38, %v462_v36  ;;  %v485_v40 = vpop.f32.mrf.mxu1 }
  0xe7   :  { %v486_v41 = vadd.f32 %v485_v40, %v484_v37  ;;  %v465_v42 = vpop.f32.mrf.mxu0 }
  0xe8   :  { %v487_v44 = vpop.f32.mrf.mxu1 }
  0xe9   :  { %v379_v45 = vadd.f32 %v486_v41, %v464_v39  ;;  %v466_v46 = vpop.f32.mrf.mxu0 }
  0xea   :  { %v467_v47 = vadd.f32 %v466_v46, %v465_v42  ;;  %v488_v48 = vpop.f32.mrf.mxu1 }
  0xeb   :  { %v401_v49 = vadd.f32 %v445_v43, %v379_v45  ;;  %v489_v50 = vadd.f32 %v488_v48, %v487_v44 }
  0xed   :  { %403 = vst [vmem:[%s668_s3] sm:$0xff] %v401_v49  ;;  %v382_v51 = vadd.f32 %v489_v50, %v467_v47 }
  0xef   :  { %v402_v52 = vadd.f32 %v445_v43, %v382_v51 }
  0xf1   :  { %404 = vst [vmem:[%s668_s3 + $0x8] sm:$0xff] %v402_v52 }

</bundles_post_ra>
